<compile_context>
chip_gen: v5e
topology: v5e:2x2
jax: 0.10.0
libtpu: 0.0.40
codegen_flags: <defaults>
</compile_context>

<pallas_src>
import numpy as np
import jax
import jax.numpy as jnp
from jax.experimental import pallas as pl
from jax.experimental.pallas import tpu as pltpu


def _make_basic_block_kernel(Cin, Cout, D, H, W):
    """Build the fused conv1+bn1+relu+conv2+bn2+residual+relu kernel body."""
    Dp, Hp, Wp = D + 2, H + 2, W + 2
    S = Dp * Hp * Wp                      # padded flat spatial size (lane axis)
    o_max = 2 * (Hp * Wp + Wp + 1)        # largest tap offset
    o_c = Hp * Wp + Wp + 1                # (d,h,w) -> (d+1,h+1,w+1) flat shift
    S_in = S + o_max                      # input slab length (extra zero tail)
    taps = [(kd, kh, kw) for kd in range(3) for kh in range(3) for kw in range(3)]

    def kernel(xp_ref, w1_ref, w2_ref, s1_ref, b1_ref, s2_ref, b2_ref, mask_ref,
               out_ref, cols1_ref, cols2_ref, mid_ref):
        # ---------------- conv1: im2col then ONE MXU matmul (K = 27*Cin) -----
        for t, (kd, kh, kw) in enumerate(taps):
            o = kd * Hp * Wp + kh * Wp + kw
            cols1_ref[t * Cin:(t + 1) * Cin, :] = xp_ref[:, o:o + S]
        y1 = jnp.dot(w1_ref[...], cols1_ref[...].astype(jnp.bfloat16),
                     preferred_element_type=jnp.float32)          # (Cout, S) f32
        # Folded BN1 + ReLU (f32 epilogue), then mask the garbage border
        # positions to zero so y1 doubles as conv2's zero-padded input.
        y1 = jnp.maximum(y1 * s1_ref[...] + b1_ref[...], 0.0) * mask_ref[...]

        # Stage conv1 output as conv2's padded flat input (zero halo + offset).
        mid_ref[...] = jnp.zeros_like(mid_ref)
        mid_ref[:, o_c:o_c + S] = y1

        # ---------------- conv2: im2col then ONE MXU matmul (K = 27*Cout) ----
        for t, (kd, kh, kw) in enumerate(taps):
            o = kd * Hp * Wp + kh * Wp + kw
            cols2_ref[t * Cout:(t + 1) * Cout, :] = mid_ref[:, o:o + S]
        y2 = jnp.dot(w2_ref[...], cols2_ref[...].astype(jnp.bfloat16),
                     preferred_element_type=jnp.float32)          # (Cout, S) f32
        y2 = y2 * s2_ref[...] + b2_ref[...]
        # Residual: original x (f32) lives in the same padded flat layout,
        # shifted by o_c.  Garbage positions are sliced away by the wrapper.
        y2 = y2 + xp_ref[:, o_c:o_c + S]
        out_ref[...] = jnp.maximum(y2, 0.0).astype(out_ref.dtype)

    return kernel, S, S_in, o_c, o_max


def fold_bn(gamma, beta, running_mean, running_var, eps=1e-5):
    scale = gamma / jnp.sqrt(running_var + eps)
    bias = beta - running_mean * scale
    return scale, bias


def basic_block_forward(x, params, *, stride=1, dilation=1, downsample=None):
    """BasicBlock forward. x: (N, C, D, H, W) f32. Returns (N, C, D, H, W)."""
    if stride != 1 or dilation != 1 or downsample is not None:
        # TODO(synk): stride>1 / dilation>1 / downsample path not implemented.
        raise NotImplementedError(
            "Only stride=1, dilation=1, downsample=None is implemented.")

    N, Cin, D, H, W = x.shape
    Cout = params["w1"].shape[0]
    assert params["w1"].shape == (Cout, Cin, 3, 3, 3)
    assert params["w2"].shape == (Cout, Cout, 3, 3, 3)
    assert Cin == Cout, "identity residual requires inplanes == planes"

    kernel, S, S_in, o_c, o_max = _make_basic_block_kernel(Cin, Cout, D, H, W)
    Dp, Hp, Wp = D + 2, H + 2, W + 2

    # Padded, channel-major, flattened-spatial input slab (+ zero tail so every
    # tap slice and the residual slice stay in bounds).
    # TODO(synk): move halo construction into the kernel to avoid this HBM copy.
    xp = jnp.pad(x, ((0, 0), (0, 0), (1, 1), (1, 1), (1, 1)))
    xp = xp.reshape(N, Cin, S)
    xp = jnp.pad(xp, ((0, 0), (0, 0), (0, o_max)))                # (N, Cin, S_in)

    # Weights reshaped for the single K = 27*Cin contraction.
    # K ordering = (kd, kh, kw, cin), matching how `cols` is filled.
    w1t = jnp.transpose(params["w1"], (0, 2, 3, 4, 1)).reshape(Cout, 27 * Cin)
    w2t = jnp.transpose(params["w2"], (0, 2, 3, 4, 1)).reshape(Cout, 27 * Cout)
    w1t = w1t.astype(jnp.bfloat16)
    w2t = w2t.astype(jnp.bfloat16)

    s1 = params["scale1"].reshape(Cout, 1).astype(jnp.float32)
    b1 = params["bias1"].reshape(Cout, 1).astype(jnp.float32)
    s2 = params["scale2"].reshape(Cout, 1).astype(jnp.float32)
    b2 = params["bias2"].reshape(Cout, 1).astype(jnp.float32)

    # Validity mask over the padded flat grid: 1.0 at real output positions
    # (d<D, h<H, w<W), 0.0 at the garbage border positions.
    valid = ((jnp.arange(Dp) < D)[:, None, None]
             & (jnp.arange(Hp) < H)[None, :, None]
             & (jnp.arange(Wp) < W)[None, None, :])
    mask = valid.reshape(1, S).astype(jnp.float32)

    flops = 2 * N * D * H * W * 27 * (Cin * Cout + Cout * Cout)
    bytes_accessed = (xp.size + N * Cout * S) * 4 + (w1t.size + w2t.size) * 2

    out_flat = pl.pallas_call(
        kernel,
        out_shape=jax.ShapeDtypeStruct((N, Cout, S), x.dtype),
        grid=(N,),
        in_specs=[
            pl.BlockSpec((None, Cin, S_in), lambda n: (n, 0, 0)),   # padded x
            pl.BlockSpec((Cout, 27 * Cin), lambda n: (0, 0)),       # w1 (bf16)
            pl.BlockSpec((Cout, 27 * Cout), lambda n: (0, 0)),      # w2 (bf16)
            pl.BlockSpec((Cout, 1), lambda n: (0, 0)),              # scale1
            pl.BlockSpec((Cout, 1), lambda n: (0, 0)),              # bias1
            pl.BlockSpec((Cout, 1), lambda n: (0, 0)),              # scale2
            pl.BlockSpec((Cout, 1), lambda n: (0, 0)),              # bias2
            pl.BlockSpec((1, S), lambda n: (0, 0)),                 # valid mask
        ],
        out_specs=pl.BlockSpec((None, Cout, S), lambda n: (n, 0, 0)),
        scratch_shapes=[
            pltpu.VMEM((27 * Cin, S), jnp.float32),    # cols1 (im2col, conv1)
            pltpu.VMEM((27 * Cout, S), jnp.float32),   # cols2 (im2col, conv2)
            pltpu.VMEM((Cout, S_in), jnp.float32),     # conv1 out, re-padded
        ],
        compiler_params=pltpu.CompilerParams(
            dimension_semantics=("parallel",),         # megacore-shard batch
            vmem_limit_bytes=32 * 1024 * 1024,
        ),
        cost_estimate=pl.CostEstimate(
            flops=int(flops), transcendentals=0,
            bytes_accessed=int(bytes_accessed)),
    )(xp, w1t, w2t, s1, b1, s2, b2, mask)

    # Valid outputs sit at flat positions d*Hp*Wp + h*Wp + w -> a plain slice,
    # and the layout is already NCDHW.
    out = out_flat.reshape(N, Cout, Dp, Hp, Wp)[:, :, :D, :H, :W]
    return out


def reference_forward(x, params):
    """Pure-JAX reference (lax conv) mirroring the kernel numerics:
    bf16 conv inputs/weights, f32 accumulation, f32 epilogue + residual."""
    xn = jnp.transpose(x, (0, 2, 3, 4, 1))                         # NDHWC
    w1 = jnp.transpose(params["w1"], (2, 3, 4, 1, 0)).astype(jnp.bfloat16)
    w2 = jnp.transpose(params["w2"], (2, 3, 4, 1, 0)).astype(jnp.bfloat16)

    def conv(a, w):
        return jax.lax.conv_general_dilated(
            a.astype(jnp.bfloat16), w, window_strides=(1, 1, 1),
            padding=[(1, 1)] * 3,
            dimension_numbers=("NDHWC", "DHWIO", "NDHWC"),
            preferred_element_type=jnp.float32)

    h = conv(xn, w1) * params["scale1"] + params["bias1"]
    h = jnp.maximum(h, 0.0)
    o = conv(h, w2) * params["scale2"] + params["bias2"]
    o = jnp.maximum(o + xn, 0.0)
    return jnp.transpose(o, (0, 4, 1, 2, 3))


if __name__ == "__main__":
    # Small shapes: inplanes = planes = 4, N = 2, D = H = W = 8.
    N, C, D, H, W = 2, 4, 8, 8, 8
    inplanes = planes = C

    key = jax.random.PRNGKey(0)
    k = jax.random.split(key, 8)

    x = jax.random.normal(k[0], (N, C, D, H, W), jnp.float32)

    # Conv3d weights in PyTorch (Cout, Cin, kD, kH, kW) layout, bias=False.
    w1 = 0.1 * jax.random.normal(k[1], (planes, inplanes, 3, 3, 3), jnp.float32)
    w2 = 0.1 * jax.random.normal(k[2], (planes, planes, 3, 3, 3), jnp.float32)

    # BatchNorm3d params (inference semantics, running stats).
    gamma1 = 1.0 + 0.1 * jax.random.normal(k[3], (planes,), jnp.float32)
    beta1 = 0.1 * jax.random.normal(k[4], (planes,), jnp.float32)
    rm1 = 0.05 * jax.random.normal(k[5], (planes,), jnp.float32)
    rv1 = jnp.abs(1.0 + 0.1 * jax.random.normal(k[6], (planes,), jnp.float32))
    gamma2 = jnp.ones((planes,), jnp.float32)
    beta2 = jnp.zeros((planes,), jnp.float32)
    rm2 = 0.02 * jax.random.normal(k[7], (planes,), jnp.float32)
    rv2 = jnp.ones((planes,), jnp.float32) * 1.3

    scale1, bias1 = fold_bn(gamma1, beta1, rm1, rv1)
    scale2, bias2 = fold_bn(gamma2, beta2, rm2, rv2)

    params = dict(w1=w1, w2=w2, scale1=scale1, bias1=bias1,
                  scale2=scale2, bias2=bias2)

    out = jax.block_until_ready(jax.jit(basic_block_forward)(x, params))
    ref = jax.block_until_ready(reference_forward(x, params))

    assert out.shape == (N, C, D, H, W)
    # Kernel and reference share identical bf16-input / f32-accumulate
    # numerics; tolerance covers accumulation-order and rare bf16 rounding
    # differences of the intermediate activation.
    np.testing.assert_allclose(np.asarray(out), np.asarray(ref),
                               rtol=1e-2, atol=1e-2)

    print("KERNEL_OK")
</pallas_src>

<mosaic_0001>
module attributes {stable_mosaic.version = 11 : i64} {
  func.func @kernel(%arg0: i32, %arg1: memref<1x4x1222xf32, #tpu.memory_space<vmem>>, %arg2: memref<4x108xbf16, #tpu.memory_space<vmem>>, %arg3: memref<4x108xbf16, #tpu.memory_space<vmem>>, %arg4: memref<4x1xf32, #tpu.memory_space<vmem>>, %arg5: memref<4x1xf32, #tpu.memory_space<vmem>>, %arg6: memref<4x1xf32, #tpu.memory_space<vmem>>, %arg7: memref<4x1xf32, #tpu.memory_space<vmem>>, %arg8: memref<1x1000xf32, #tpu.memory_space<vmem>>, %arg9: memref<1x4x1000xf32, #tpu.memory_space<vmem>>, %arg10: memref<108x1000xf32, #tpu.memory_space<vmem>>, %arg11: memref<108x1000xf32, #tpu.memory_space<vmem>>, %arg12: memref<4x1222xf32, #tpu.memory_space<vmem>>) attributes {dimension_semantics = [#tpu.dimension_semantics<parallel>], iteration_bounds = array<i64: 2>, scalar_prefetch = 0 : i64, scratch_operands = 3 : i64, tpu.core_type = #tpu.core_type<tc>, window_params = [{transform_indices = @transform_0, window_bounds = array<i64: 1, 4, 1222>}, {pipeline_mode = #tpu.pipeline_mode<synchronous>, transform_indices = @transform_1, window_bounds = array<i64: 4, 108>}, {pipeline_mode = #tpu.pipeline_mode<synchronous>, transform_indices = @transform_2, window_bounds = array<i64: 4, 108>}, {pipeline_mode = #tpu.pipeline_mode<synchronous>, transform_indices = @transform_3, window_bounds = array<i64: 4, 1>}, {pipeline_mode = #tpu.pipeline_mode<synchronous>, transform_indices = @transform_4, window_bounds = array<i64: 4, 1>}, {pipeline_mode = #tpu.pipeline_mode<synchronous>, transform_indices = @transform_5, window_bounds = array<i64: 4, 1>}, {pipeline_mode = #tpu.pipeline_mode<synchronous>, transform_indices = @transform_6, window_bounds = array<i64: 4, 1>}, {pipeline_mode = #tpu.pipeline_mode<synchronous>, transform_indices = @transform_7, window_bounds = array<i64: 1, 1000>}, {transform_indices = @transform_8, window_bounds = array<i64: 1, 4, 1000>}]} {
    %c0 = arith.constant 0 : index
    %c0_0 = arith.constant 0 : index
    %c0_1 = arith.constant 0 : index
    %0 = vector.load %arg1[%c0, %c0_0, %c0_1] : memref<1x4x1222xf32, #tpu.memory_space<vmem>>, vector<1x4x1000xf32>
    %1 = vector.shape_cast %0 : vector<1x4x1000xf32> to vector<4x1000xf32>
    %c0_2 = arith.constant 0 : index
    %c0_3 = arith.constant 0 : index
    %2 = vector.load %arg10[%c0_2, %c0_3] : memref<108x1000xf32, #tpu.memory_space<vmem>>, vector<4x1000xf32>
    tpu.vector_store %arg10[%c0_2, %c0_3], %1 {strides = array<i32>} : memref<108x1000xf32, #tpu.memory_space<vmem>>, vector<4x1000xf32>,
    %c0_4 = arith.constant 0 : index
    %c0_5 = arith.constant 0 : index
    %c1 = arith.constant 1 : index
    %3 = vector.load %arg1[%c0_4, %c0_5, %c1] : memref<1x4x1222xf32, #tpu.memory_space<vmem>>, vector<1x4x1000xf32>
    %4 = vector.shape_cast %3 : vector<1x4x1000xf32> to vector<4x1000xf32>
    %c4 = arith.constant 4 : index
    %c0_6 = arith.constant 0 : index
    %5 = vector.load %arg10[%c4, %c0_6] : memref<108x1000xf32, #tpu.memory_space<vmem>>, vector<4x1000xf32>
    tpu.vector_store %arg10[%c4, %c0_6], %4 {strides = array<i32>} : memref<108x1000xf32, #tpu.memory_space<vmem>>, vector<4x1000xf32>,
    %c0_7 = arith.constant 0 : index
    %c0_8 = arith.constant 0 : index
    %c2 = arith.constant 2 : index
    %6 = vector.load %arg1[%c0_7, %c0_8, %c2] : memref<1x4x1222xf32, #tpu.memory_space<vmem>>, vector<1x4x1000xf32>
    %7 = vector.shape_cast %6 : vector<1x4x1000xf32> to vector<4x1000xf32>
    %c8 = arith.constant 8 : index
    %c0_9 = arith.constant 0 : index
    %8 = vector.load %arg10[%c8, %c0_9] : memref<108x1000xf32, #tpu.memory_space<vmem>>, vector<4x1000xf32>
    tpu.vector_store %arg10[%c8, %c0_9], %7 {strides = array<i32>} : memref<108x1000xf32, #tpu.memory_space<vmem>>, vector<4x1000xf32>,
    %c0_10 = arith.constant 0 : index
    %c0_11 = arith.constant 0 : index
    %c10 = arith.constant 10 : index
    %9 = vector.load %arg1[%c0_10, %c0_11, %c10] : memref<1x4x1222xf32, #tpu.memory_space<vmem>>, vector<1x4x1000xf32>
    %10 = vector.shape_cast %9 : vector<1x4x1000xf32> to vector<4x1000xf32>
    %c12 = arith.constant 12 : index
    %c0_12 = arith.constant 0 : index
    %11 = vector.load %arg10[%c12, %c0_12] : memref<108x1000xf32, #tpu.memory_space<vmem>>, vector<4x1000xf32>
    tpu.vector_store %arg10[%c12, %c0_12], %10 {strides = array<i32>} : memref<108x1000xf32, #tpu.memory_space<vmem>>, vector<4x1000xf32>,
    %c0_13 = arith.constant 0 : index
    %c0_14 = arith.constant 0 : index
    %c11 = arith.constant 11 : index
    %12 = vector.load %arg1[%c0_13, %c0_14, %c11] : memref<1x4x1222xf32, #tpu.memory_space<vmem>>, vector<1x4x1000xf32>
    %13 = vector.shape_cast %12 : vector<1x4x1000xf32> to vector<4x1000xf32>
    %c16 = arith.constant 16 : index
    %c0_15 = arith.constant 0 : index
    %14 = vector.load %arg10[%c16, %c0_15] : memref<108x1000xf32, #tpu.memory_space<vmem>>, vector<4x1000xf32>
    tpu.vector_store %arg10[%c16, %c0_15], %13 {strides = array<i32>} : memref<108x1000xf32, #tpu.memory_space<vmem>>, vector<4x1000xf32>,
    %c0_16 = arith.constant 0 : index
    %c0_17 = arith.constant 0 : index
    %c12_18 = arith.constant 12 : index
    %15 = vector.load %arg1[%c0_16, %c0_17, %c12_18] : memref<1x4x1222xf32, #tpu.memory_space<vmem>>, vector<1x4x1000xf32>
    %16 = vector.shape_cast %15 : vector<1x4x1000xf32> to vector<4x1000xf32>
    %c20 = arith.constant 20 : index
    %c0_19 = arith.constant 0 : index
    %17 = vector.load %arg10[%c20, %c0_19] : memref<108x1000xf32, #tpu.memory_space<vmem>>, vector<4x1000xf32>
    tpu.vector_store %arg10[%c20, %c0_19], %16 {strides = array<i32>} : memref<108x1000xf32, #tpu.memory_space<vmem>>, vector<4x1000xf32>,
    %c0_20 = arith.constant 0 : index
    %c0_21 = arith.constant 0 : index
    %c20_22 = arith.constant 20 : index
    %18 = vector.load %arg1[%c0_20, %c0_21, %c20_22] : memref<1x4x1222xf32, #tpu.memory_space<vmem>>, vector<1x4x1000xf32>
    %19 = vector.shape_cast %18 : vector<1x4x1000xf32> to vector<4x1000xf32>
    %c24 = arith.constant 24 : index
    %c0_23 = arith.constant 0 : index
    %20 = vector.load %arg10[%c24, %c0_23] : memref<108x1000xf32, #tpu.memory_space<vmem>>, vector<4x1000xf32>
    tpu.vector_store %arg10[%c24, %c0_23], %19 {strides = array<i32>} : memref<108x1000xf32, #tpu.memory_space<vmem>>, vector<4x1000xf32>,
    %c0_24 = arith.constant 0 : index
    %c0_25 = arith.constant 0 : index
    %c21 = arith.constant 21 : index
    %21 = vector.load %arg1[%c0_24, %c0_25, %c21] : memref<1x4x1222xf32, #tpu.memory_space<vmem>>, vector<1x4x1000xf32>
    %22 = vector.shape_cast %21 : vector<1x4x1000xf32> to vector<4x1000xf32>
    %c28 = arith.constant 28 : index
    %c0_26 = arith.constant 0 : index
    %23 = vector.load %arg10[%c28, %c0_26] : memref<108x1000xf32, #tpu.memory_space<vmem>>, vector<4x1000xf32>
    tpu.vector_store %arg10[%c28, %c0_26], %22 {strides = array<i32>} : memref<108x1000xf32, #tpu.memory_space<vmem>>, vector<4x1000xf32>,
    %c0_27 = arith.constant 0 : index
    %c0_28 = arith.constant 0 : index
    %c22 = arith.constant 22 : index
    %24 = vector.load %arg1[%c0_27, %c0_28, %c22] : memref<1x4x1222xf32, #tpu.memory_space<vmem>>, vector<1x4x1000xf32>
    %25 = vector.shape_cast %24 : vector<1x4x1000xf32> to vector<4x1000xf32>
    %c32 = arith.constant 32 : index
    %c0_29 = arith.constant 0 : index
    %26 = vector.load %arg10[%c32, %c0_29] : memref<108x1000xf32, #tpu.memory_space<vmem>>, vector<4x1000xf32>
    tpu.vector_store %arg10[%c32, %c0_29], %25 {strides = array<i32>} : memref<108x1000xf32, #tpu.memory_space<vmem>>, vector<4x1000xf32>,
    %c0_30 = arith.constant 0 : index
    %c0_31 = arith.constant 0 : index
    %c100 = arith.constant 100 : index
    %27 = vector.load %arg1[%c0_30, %c0_31, %c100] : memref<1x4x1222xf32, #tpu.memory_space<vmem>>, vector<1x4x1000xf32>
    %28 = vector.shape_cast %27 : vector<1x4x1000xf32> to vector<4x1000xf32>
    %c36 = arith.constant 36 : index
    %c0_32 = arith.constant 0 : index
    %29 = vector.load %arg10[%c36, %c0_32] : memref<108x1000xf32, #tpu.memory_space<vmem>>, vector<4x1000xf32>
    tpu.vector_store %arg10[%c36, %c0_32], %28 {strides = array<i32>} : memref<108x1000xf32, #tpu.memory_space<vmem>>, vector<4x1000xf32>,
    %c0_33 = arith.constant 0 : index
    %c0_34 = arith.constant 0 : index
    %c101 = arith.constant 101 : index
    %30 = vector.load %arg1[%c0_33, %c0_34, %c101] : memref<1x4x1222xf32, #tpu.memory_space<vmem>>, vector<1x4x1000xf32>
    %31 = vector.shape_cast %30 : vector<1x4x1000xf32> to vector<4x1000xf32>
    %c40 = arith.constant 40 : index
    %c0_35 = arith.constant 0 : index
    %32 = vector.load %arg10[%c40, %c0_35] : memref<108x1000xf32, #tpu.memory_space<vmem>>, vector<4x1000xf32>
    tpu.vector_store %arg10[%c40, %c0_35], %31 {strides = array<i32>} : memref<108x1000xf32, #tpu.memory_space<vmem>>, vector<4x1000xf32>,
    %c0_36 = arith.constant 0 : index
    %c0_37 = arith.constant 0 : index
    %c102 = arith.constant 102 : index
    %33 = vector.load %arg1[%c0_36, %c0_37, %c102] : memref<1x4x1222xf32, #tpu.memory_space<vmem>>, vector<1x4x1000xf32>
    %34 = vector.shape_cast %33 : vector<1x4x1000xf32> to vector<4x1000xf32>
    %c44 = arith.constant 44 : index
    %c0_38 = arith.constant 0 : index
    %35 = vector.load %arg10[%c44, %c0_38] : memref<108x1000xf32, #tpu.memory_space<vmem>>, vector<4x1000xf32>
    tpu.vector_store %arg10[%c44, %c0_38], %34 {strides = array<i32>} : memref<108x1000xf32, #tpu.memory_space<vmem>>, vector<4x1000xf32>,
    %c0_39 = arith.constant 0 : index
    %c0_40 = arith.constant 0 : index
    %c110 = arith.constant 110 : index
    %36 = vector.load %arg1[%c0_39, %c0_40, %c110] : memref<1x4x1222xf32, #tpu.memory_space<vmem>>, vector<1x4x1000xf32>
    %37 = vector.shape_cast %36 : vector<1x4x1000xf32> to vector<4x1000xf32>
    %c48 = arith.constant 48 : index
    %c0_41 = arith.constant 0 : index
    %38 = vector.load %arg10[%c48, %c0_41] : memref<108x1000xf32, #tpu.memory_space<vmem>>, vector<4x1000xf32>
    tpu.vector_store %arg10[%c48, %c0_41], %37 {strides = array<i32>} : memref<108x1000xf32, #tpu.memory_space<vmem>>, vector<4x1000xf32>,
    %c0_42 = arith.constant 0 : index
    %c0_43 = arith.constant 0 : index
    %c111 = arith.constant 111 : index
    %39 = vector.load %arg1[%c0_42, %c0_43, %c111] : memref<1x4x1222xf32, #tpu.memory_space<vmem>>, vector<1x4x1000xf32>
    %40 = vector.shape_cast %39 : vector<1x4x1000xf32> to vector<4x1000xf32>
    %c52 = arith.constant 52 : index
    %c0_44 = arith.constant 0 : index
    %41 = vector.load %arg10[%c52, %c0_44] : memref<108x1000xf32, #tpu.memory_space<vmem>>, vector<4x1000xf32>
    tpu.vector_store %arg10[%c52, %c0_44], %40 {strides = array<i32>} : memref<108x1000xf32, #tpu.memory_space<vmem>>, vector<4x1000xf32>,
    %c0_45 = arith.constant 0 : index
    %c0_46 = arith.constant 0 : index
    %c112 = arith.constant 112 : index
    %42 = vector.load %arg1[%c0_45, %c0_46, %c112] : memref<1x4x1222xf32, #tpu.memory_space<vmem>>, vector<1x4x1000xf32>
    %43 = vector.shape_cast %42 : vector<1x4x1000xf32> to vector<4x1000xf32>
    %c56 = arith.constant 56 : index
    %c0_47 = arith.constant 0 : index
    %44 = vector.load %arg10[%c56, %c0_47] : memref<108x1000xf32, #tpu.memory_space<vmem>>, vector<4x1000xf32>
    tpu.vector_store %arg10[%c56, %c0_47], %43 {strides = array<i32>} : memref<108x1000xf32, #tpu.memory_space<vmem>>, vector<4x1000xf32>,
    %c0_48 = arith.constant 0 : index
    %c0_49 = arith.constant 0 : index
    %c120 = arith.constant 120 : index
    %45 = vector.load %arg1[%c0_48, %c0_49, %c120] : memref<1x4x1222xf32, #tpu.memory_space<vmem>>, vector<1x4x1000xf32>
    %46 = vector.shape_cast %45 : vector<1x4x1000xf32> to vector<4x1000xf32>
    %c60 = arith.constant 60 : index
    %c0_50 = arith.constant 0 : index
    %47 = vector.load %arg10[%c60, %c0_50] : memref<108x1000xf32, #tpu.memory_space<vmem>>, vector<4x1000xf32>
    tpu.vector_store %arg10[%c60, %c0_50], %46 {strides = array<i32>} : memref<108x1000xf32, #tpu.memory_space<vmem>>, vector<4x1000xf32>,
    %c0_51 = arith.constant 0 : index
    %c0_52 = arith.constant 0 : index
    %c121 = arith.constant 121 : index
    %48 = vector.load %arg1[%c0_51, %c0_52, %c121] : memref<1x4x1222xf32, #tpu.memory_space<vmem>>, vector<1x4x1000xf32>
    %49 = vector.shape_cast %48 : vector<1x4x1000xf32> to vector<4x1000xf32>
    %c64 = arith.constant 64 : index
    %c0_53 = arith.constant 0 : index
    %50 = vector.load %arg10[%c64, %c0_53] : memref<108x1000xf32, #tpu.memory_space<vmem>>, vector<4x1000xf32>
    tpu.vector_store %arg10[%c64, %c0_53], %49 {strides = array<i32>} : memref<108x1000xf32, #tpu.memory_space<vmem>>, vector<4x1000xf32>,
    %c0_54 = arith.constant 0 : index
    %c0_55 = arith.constant 0 : index
    %c122 = arith.constant 122 : index
    %51 = vector.load %arg1[%c0_54, %c0_55, %c122] : memref<1x4x1222xf32, #tpu.memory_space<vmem>>, vector<1x4x1000xf32>
    %52 = vector.shape_cast %51 : vector<1x4x1000xf32> to vector<4x1000xf32>
    %c68 = arith.constant 68 : index
    %c0_56 = arith.constant 0 : index
    %53 = vector.load %arg10[%c68, %c0_56] : memref<108x1000xf32, #tpu.memory_space<vmem>>, vector<4x1000xf32>
    tpu.vector_store %arg10[%c68, %c0_56], %52 {strides = array<i32>} : memref<108x1000xf32, #tpu.memory_space<vmem>>, vector<4x1000xf32>,
    %c0_57 = arith.constant 0 : index
    %c0_58 = arith.constant 0 : index
    %c200 = arith.constant 200 : index
    %54 = vector.load %arg1[%c0_57, %c0_58, %c200] : memref<1x4x1222xf32, #tpu.memory_space<vmem>>, vector<1x4x1000xf32>
    %55 = vector.shape_cast %54 : vector<1x4x1000xf32> to vector<4x1000xf32>
    %c72 = arith.constant 72 : index
    %c0_59 = arith.constant 0 : index
    %56 = vector.load %arg10[%c72, %c0_59] : memref<108x1000xf32, #tpu.memory_space<vmem>>, vector<4x1000xf32>
    tpu.vector_store %arg10[%c72, %c0_59], %55 {strides = array<i32>} : memref<108x1000xf32, #tpu.memory_space<vmem>>, vector<4x1000xf32>,
    %c0_60 = arith.constant 0 : index
    %c0_61 = arith.constant 0 : index
    %c201 = arith.constant 201 : index
    %57 = vector.load %arg1[%c0_60, %c0_61, %c201] : memref<1x4x1222xf32, #tpu.memory_space<vmem>>, vector<1x4x1000xf32>
    %58 = vector.shape_cast %57 : vector<1x4x1000xf32> to vector<4x1000xf32>
    %c76 = arith.constant 76 : index
    %c0_62 = arith.constant 0 : index
    %59 = vector.load %arg10[%c76, %c0_62] : memref<108x1000xf32, #tpu.memory_space<vmem>>, vector<4x1000xf32>
    tpu.vector_store %arg10[%c76, %c0_62], %58 {strides = array<i32>} : memref<108x1000xf32, #tpu.memory_space<vmem>>, vector<4x1000xf32>,
    %c0_63 = arith.constant 0 : index
    %c0_64 = arith.constant 0 : index
    %c202 = arith.constant 202 : index
    %60 = vector.load %arg1[%c0_63, %c0_64, %c202] : memref<1x4x1222xf32, #tpu.memory_space<vmem>>, vector<1x4x1000xf32>
    %61 = vector.shape_cast %60 : vector<1x4x1000xf32> to vector<4x1000xf32>
    %c80 = arith.constant 80 : index
    %c0_65 = arith.constant 0 : index
    %62 = vector.load %arg10[%c80, %c0_65] : memref<108x1000xf32, #tpu.memory_space<vmem>>, vector<4x1000xf32>
    tpu.vector_store %arg10[%c80, %c0_65], %61 {strides = array<i32>} : memref<108x1000xf32, #tpu.memory_space<vmem>>, vector<4x1000xf32>,
    %c0_66 = arith.constant 0 : index
    %c0_67 = arith.constant 0 : index
    %c210 = arith.constant 210 : index
    %63 = vector.load %arg1[%c0_66, %c0_67, %c210] : memref<1x4x1222xf32, #tpu.memory_space<vmem>>, vector<1x4x1000xf32>
    %64 = vector.shape_cast %63 : vector<1x4x1000xf32> to vector<4x1000xf32>
    %c84 = arith.constant 84 : index
    %c0_68 = arith.constant 0 : index
    %65 = vector.load %arg10[%c84, %c0_68] : memref<108x1000xf32, #tpu.memory_space<vmem>>, vector<4x1000xf32>
    tpu.vector_store %arg10[%c84, %c0_68], %64 {strides = array<i32>} : memref<108x1000xf32, #tpu.memory_space<vmem>>, vector<4x1000xf32>,
    %c0_69 = arith.constant 0 : index
    %c0_70 = arith.constant 0 : index
    %c211 = arith.constant 211 : index
    %66 = vector.load %arg1[%c0_69, %c0_70, %c211] : memref<1x4x1222xf32, #tpu.memory_space<vmem>>, vector<1x4x1000xf32>
    %67 = vector.shape_cast %66 : vector<1x4x1000xf32> to vector<4x1000xf32>
    %c88 = arith.constant 88 : index
    %c0_71 = arith.constant 0 : index
    %68 = vector.load %arg10[%c88, %c0_71] : memref<108x1000xf32, #tpu.memory_space<vmem>>, vector<4x1000xf32>
    tpu.vector_store %arg10[%c88, %c0_71], %67 {strides = array<i32>} : memref<108x1000xf32, #tpu.memory_space<vmem>>, vector<4x1000xf32>,
    %c0_72 = arith.constant 0 : index
    %c0_73 = arith.constant 0 : index
    %c212 = arith.constant 212 : index
    %69 = vector.load %arg1[%c0_72, %c0_73, %c212] : memref<1x4x1222xf32, #tpu.memory_space<vmem>>, vector<1x4x1000xf32>
    %70 = vector.shape_cast %69 : vector<1x4x1000xf32> to vector<4x1000xf32>
    %c92 = arith.constant 92 : index
    %c0_74 = arith.constant 0 : index
    %71 = vector.load %arg10[%c92, %c0_74] : memref<108x1000xf32, #tpu.memory_space<vmem>>, vector<4x1000xf32>
    tpu.vector_store %arg10[%c92, %c0_74], %70 {strides = array<i32>} : memref<108x1000xf32, #tpu.memory_space<vmem>>, vector<4x1000xf32>,
    %c0_75 = arith.constant 0 : index
    %c0_76 = arith.constant 0 : index
    %c220 = arith.constant 220 : index
    %72 = vector.load %arg1[%c0_75, %c0_76, %c220] : memref<1x4x1222xf32, #tpu.memory_space<vmem>>, vector<1x4x1000xf32>
    %73 = vector.shape_cast %72 : vector<1x4x1000xf32> to vector<4x1000xf32>
    %c96 = arith.constant 96 : index
    %c0_77 = arith.constant 0 : index
    %74 = vector.load %arg10[%c96, %c0_77] : memref<108x1000xf32, #tpu.memory_space<vmem>>, vector<4x1000xf32>
    tpu.vector_store %arg10[%c96, %c0_77], %73 {strides = array<i32>} : memref<108x1000xf32, #tpu.memory_space<vmem>>, vector<4x1000xf32>,
    %c0_78 = arith.constant 0 : index
    %c0_79 = arith.constant 0 : index
    %c221 = arith.constant 221 : index
    %75 = vector.load %arg1[%c0_78, %c0_79, %c221] : memref<1x4x1222xf32, #tpu.memory_space<vmem>>, vector<1x4x1000xf32>
    %76 = vector.shape_cast %75 : vector<1x4x1000xf32> to vector<4x1000xf32>
    %c100_80 = arith.constant 100 : index
    %c0_81 = arith.constant 0 : index
    %77 = vector.load %arg10[%c100_80, %c0_81] : memref<108x1000xf32, #tpu.memory_space<vmem>>, vector<4x1000xf32>
    tpu.vector_store %arg10[%c100_80, %c0_81], %76 {strides = array<i32>} : memref<108x1000xf32, #tpu.memory_space<vmem>>, vector<4x1000xf32>,
    %c0_82 = arith.constant 0 : index
    %c0_83 = arith.constant 0 : index
    %c222 = arith.constant 222 : index
    %78 = vector.load %arg1[%c0_82, %c0_83, %c222] : memref<1x4x1222xf32, #tpu.memory_space<vmem>>, vector<1x4x1000xf32>
    %79 = vector.shape_cast %78 : vector<1x4x1000xf32> to vector<4x1000xf32>
    %c104 = arith.constant 104 : index
    %c0_84 = arith.constant 0 : index
    %80 = vector.load %arg10[%c104, %c0_84] : memref<108x1000xf32, #tpu.memory_space<vmem>>, vector<4x1000xf32>
    tpu.vector_store %arg10[%c104, %c0_84], %79 {strides = array<i32>} : memref<108x1000xf32, #tpu.memory_space<vmem>>, vector<4x1000xf32>,
    %c0_85 = arith.constant 0 : index
    %c0_86 = arith.constant 0 : index
    %81 = vector.load %arg2[%c0_85, %c0_86] : memref<4x108xbf16, #tpu.memory_space<vmem>>, vector<4x108xbf16>
    %c0_87 = arith.constant 0 : index
    %c0_88 = arith.constant 0 : index
    %82 = vector.load %arg10[%c0_87, %c0_88] : memref<108x1000xf32, #tpu.memory_space<vmem>>, vector<108x1000xf32>
    %83 = arith.truncf %82 : vector<108x1000xf32> to vector<108x1000xbf16>
    %cst = arith.constant dense<0.000000e+00> : vector<4x1000xf32>
    %84 = tpu.matmul %81, %83, %cst {dimension_numbers = #tpu.dot_dimension_numbers<[1], [0], [0], [1], [0, 0, 1, 1], [], []>} : vector<4x108xbf16>, vector<108x1000xbf16>, vector<4x1000xf32> -> vector<4x1000xf32>
    %c0_89 = arith.constant 0 : index
    %c0_90 = arith.constant 0 : index
    %85 = vector.load %arg4[%c0_89, %c0_90] : memref<4x1xf32, #tpu.memory_space<vmem>>, vector<4x1xf32>
    %86 = vector.broadcast %85 : vector<4x1xf32> to vector<4x1000xf32>
    %87 = arith.mulf %84, %86 : vector<4x1000xf32>
    %c0_91 = arith.constant 0 : index
    %c0_92 = arith.constant 0 : index
    %88 = vector.load %arg5[%c0_91, %c0_92] : memref<4x1xf32, #tpu.memory_space<vmem>>, vector<4x1xf32>
    %89 = vector.broadcast %88 : vector<4x1xf32> to vector<4x1000xf32>
    %90 = arith.addf %87, %89 : vector<4x1000xf32>
    %cst_93 = arith.constant 0.000000e+00 : f32
    %91 = vector.broadcast %cst_93 : f32 to vector<4x1000xf32>
    %92 = arith.maximumf %90, %91 : vector<4x1000xf32>
    %c0_94 = arith.constant 0 : index
    %c0_95 = arith.constant 0 : index
    %93 = vector.load %arg8[%c0_94, %c0_95] : memref<1x1000xf32, #tpu.memory_space<vmem>>, vector<1x1000xf32>
    %94 = vector.broadcast %93 : vector<1x1000xf32> to vector<4x1000xf32>
    %95 = arith.mulf %92, %94 : vector<4x1000xf32>
    %cst_96 = arith.constant 0.000000e+00 : f32
    %96 = vector.broadcast %cst_96 : f32 to vector<4x1222xf32>
    %c0_97 = arith.constant 0 : index
    %c0_98 = arith.constant 0 : index
    %97 = vector.load %arg12[%c0_97, %c0_98] : memref<4x1222xf32, #tpu.memory_space<vmem>>, vector<4x1222xf32>
    tpu.vector_store %arg12[%c0_97, %c0_98], %96 {strides = array<i32>} : memref<4x1222xf32, #tpu.memory_space<vmem>>, vector<4x1222xf32>,
    %c0_99 = arith.constant 0 : index
    %c111_100 = arith.constant 111 : index
    %98 = vector.load %arg12[%c0_99, %c111_100] : memref<4x1222xf32, #tpu.memory_space<vmem>>, vector<4x1000xf32>
    tpu.vector_store %arg12[%c0_99, %c111_100], %95 {strides = array<i32>} : memref<4x1222xf32, #tpu.memory_space<vmem>>, vector<4x1000xf32>,
    %c0_101 = arith.constant 0 : index
    %c0_102 = arith.constant 0 : index
    %99 = vector.load %arg12[%c0_101, %c0_102] : memref<4x1222xf32, #tpu.memory_space<vmem>>, vector<4x1000xf32>
    %c0_103 = arith.constant 0 : index
    %c0_104 = arith.constant 0 : index
    %100 = vector.load %arg11[%c0_103, %c0_104] : memref<108x1000xf32, #tpu.memory_space<vmem>>, vector<4x1000xf32>
    tpu.vector_store %arg11[%c0_103, %c0_104], %99 {strides = array<i32>} : memref<108x1000xf32, #tpu.memory_space<vmem>>, vector<4x1000xf32>,
    %c0_105 = arith.constant 0 : index
    %c1_106 = arith.constant 1 : index
    %101 = vector.load %arg12[%c0_105, %c1_106] : memref<4x1222xf32, #tpu.memory_space<vmem>>, vector<4x1000xf32>
    %c4_107 = arith.constant 4 : index
    %c0_108 = arith.constant 0 : index
    %102 = vector.load %arg11[%c4_107, %c0_108] : memref<108x1000xf32, #tpu.memory_space<vmem>>, vector<4x1000xf32>
    tpu.vector_store %arg11[%c4_107, %c0_108], %101 {strides = array<i32>} : memref<108x1000xf32, #tpu.memory_space<vmem>>, vector<4x1000xf32>,
    %c0_109 = arith.constant 0 : index
    %c2_110 = arith.constant 2 : index
    %103 = vector.load %arg12[%c0_109, %c2_110] : memref<4x1222xf32, #tpu.memory_space<vmem>>, vector<4x1000xf32>
    %c8_111 = arith.constant 8 : index
    %c0_112 = arith.constant 0 : index
    %104 = vector.load %arg11[%c8_111, %c0_112] : memref<108x1000xf32, #tpu.memory_space<vmem>>, vector<4x1000xf32>
    tpu.vector_store %arg11[%c8_111, %c0_112], %103 {strides = array<i32>} : memref<108x1000xf32, #tpu.memory_space<vmem>>, vector<4x1000xf32>,
    %c0_113 = arith.constant 0 : index
    %c10_114 = arith.constant 10 : index
    %105 = vector.load %arg12[%c0_113, %c10_114] : memref<4x1222xf32, #tpu.memory_space<vmem>>, vector<4x1000xf32>
    %c12_115 = arith.constant 12 : index
    %c0_116 = arith.constant 0 : index
    %106 = vector.load %arg11[%c12_115, %c0_116] : memref<108x1000xf32, #tpu.memory_space<vmem>>, vector<4x1000xf32>
    tpu.vector_store %arg11[%c12_115, %c0_116], %105 {strides = array<i32>} : memref<108x1000xf32, #tpu.memory_space<vmem>>, vector<4x1000xf32>,
    %c0_117 = arith.constant 0 : index
    %c11_118 = arith.constant 11 : index
    %107 = vector.load %arg12[%c0_117, %c11_118] : memref<4x1222xf32, #tpu.memory_space<vmem>>, vector<4x1000xf32>
    %c16_119 = arith.constant 16 : index
    %c0_120 = arith.constant 0 : index
    %108 = vector.load %arg11[%c16_119, %c0_120] : memref<108x1000xf32, #tpu.memory_space<vmem>>, vector<4x1000xf32>
    tpu.vector_store %arg11[%c16_119, %c0_120], %107 {strides = array<i32>} : memref<108x1000xf32, #tpu.memory_space<vmem>>, vector<4x1000xf32>,
    %c0_121 = arith.constant 0 : index
    %c12_122 = arith.constant 12 : index
    %109 = vector.load %arg12[%c0_121, %c12_122] : memref<4x1222xf32, #tpu.memory_space<vmem>>, vector<4x1000xf32>
    %c20_123 = arith.constant 20 : index
    %c0_124 = arith.constant 0 : index
    %110 = vector.load %arg11[%c20_123, %c0_124] : memref<108x1000xf32, #tpu.memory_space<vmem>>, vector<4x1000xf32>
    tpu.vector_store %arg11[%c20_123, %c0_124], %109 {strides = array<i32>} : memref<108x1000xf32, #tpu.memory_space<vmem>>, vector<4x1000xf32>,
    %c0_125 = arith.constant 0 : index
    %c20_126 = arith.constant 20 : index
    %111 = vector.load %arg12[%c0_125, %c20_126] : memref<4x1222xf32, #tpu.memory_space<vmem>>, vector<4x1000xf32>
    %c24_127 = arith.constant 24 : index
    %c0_128 = arith.constant 0 : index
    %112 = vector.load %arg11[%c24_127, %c0_128] : memref<108x1000xf32, #tpu.memory_space<vmem>>, vector<4x1000xf32>
    tpu.vector_store %arg11[%c24_127, %c0_128], %111 {strides = array<i32>} : memref<108x1000xf32, #tpu.memory_space<vmem>>, vector<4x1000xf32>,
    %c0_129 = arith.constant 0 : index
    %c21_130 = arith.constant 21 : index
    %113 = vector.load %arg12[%c0_129, %c21_130] : memref<4x1222xf32, #tpu.memory_space<vmem>>, vector<4x1000xf32>
    %c28_131 = arith.constant 28 : index
    %c0_132 = arith.constant 0 : index
    %114 = vector.load %arg11[%c28_131, %c0_132] : memref<108x1000xf32, #tpu.memory_space<vmem>>, vector<4x1000xf32>
    tpu.vector_store %arg11[%c28_131, %c0_132], %113 {strides = array<i32>} : memref<108x1000xf32, #tpu.memory_space<vmem>>, vector<4x1000xf32>,
    %c0_133 = arith.constant 0 : index
    %c22_134 = arith.constant 22 : index
    %115 = vector.load %arg12[%c0_133, %c22_134] : memref<4x1222xf32, #tpu.memory_space<vmem>>, vector<4x1000xf32>
    %c32_135 = arith.constant 32 : index
    %c0_136 = arith.constant 0 : index
    %116 = vector.load %arg11[%c32_135, %c0_136] : memref<108x1000xf32, #tpu.memory_space<vmem>>, vector<4x1000xf32>
    tpu.vector_store %arg11[%c32_135, %c0_136], %115 {strides = array<i32>} : memref<108x1000xf32, #tpu.memory_space<vmem>>, vector<4x1000xf32>,
    %c0_137 = arith.constant 0 : index
    %c100_138 = arith.constant 100 : index
    %117 = vector.load %arg12[%c0_137, %c100_138] : memref<4x1222xf32, #tpu.memory_space<vmem>>, vector<4x1000xf32>
    %c36_139 = arith.constant 36 : index
    %c0_140 = arith.constant 0 : index
    %118 = vector.load %arg11[%c36_139, %c0_140] : memref<108x1000xf32, #tpu.memory_space<vmem>>, vector<4x1000xf32>
    tpu.vector_store %arg11[%c36_139, %c0_140], %117 {strides = array<i32>} : memref<108x1000xf32, #tpu.memory_space<vmem>>, vector<4x1000xf32>,
    %c0_141 = arith.constant 0 : index
    %c101_142 = arith.constant 101 : index
    %119 = vector.load %arg12[%c0_141, %c101_142] : memref<4x1222xf32, #tpu.memory_space<vmem>>, vector<4x1000xf32>
    %c40_143 = arith.constant 40 : index
    %c0_144 = arith.constant 0 : index
    %120 = vector.load %arg11[%c40_143, %c0_144] : memref<108x1000xf32, #tpu.memory_space<vmem>>, vector<4x1000xf32>
    tpu.vector_store %arg11[%c40_143, %c0_144], %119 {strides = array<i32>} : memref<108x1000xf32, #tpu.memory_space<vmem>>, vector<4x1000xf32>,
    %c0_145 = arith.constant 0 : index
    %c102_146 = arith.constant 102 : index
    %121 = vector.load %arg12[%c0_145, %c102_146] : memref<4x1222xf32, #tpu.memory_space<vmem>>, vector<4x1000xf32>
    %c44_147 = arith.constant 44 : index
    %c0_148 = arith.constant 0 : index
    %122 = vector.load %arg11[%c44_147, %c0_148] : memref<108x1000xf32, #tpu.memory_space<vmem>>, vector<4x1000xf32>
    tpu.vector_store %arg11[%c44_147, %c0_148], %121 {strides = array<i32>} : memref<108x1000xf32, #tpu.memory_space<vmem>>, vector<4x1000xf32>,
    %c0_149 = arith.constant 0 : index
    %c110_150 = arith.constant 110 : index
    %123 = vector.load %arg12[%c0_149, %c110_150] : memref<4x1222xf32, #tpu.memory_space<vmem>>, vector<4x1000xf32>
    %c48_151 = arith.constant 48 : index
    %c0_152 = arith.constant 0 : index
    %124 = vector.load %arg11[%c48_151, %c0_152] : memref<108x1000xf32, #tpu.memory_space<vmem>>, vector<4x1000xf32>
    tpu.vector_store %arg11[%c48_151, %c0_152], %123 {strides = array<i32>} : memref<108x1000xf32, #tpu.memory_space<vmem>>, vector<4x1000xf32>,
    %c0_153 = arith.constant 0 : index
    %c111_154 = arith.constant 111 : index
    %125 = vector.load %arg12[%c0_153, %c111_154] : memref<4x1222xf32, #tpu.memory_space<vmem>>, vector<4x1000xf32>
    %c52_155 = arith.constant 52 : index
    %c0_156 = arith.constant 0 : index
    %126 = vector.load %arg11[%c52_155, %c0_156] : memref<108x1000xf32, #tpu.memory_space<vmem>>, vector<4x1000xf32>
    tpu.vector_store %arg11[%c52_155, %c0_156], %125 {strides = array<i32>} : memref<108x1000xf32, #tpu.memory_space<vmem>>, vector<4x1000xf32>,
    %c0_157 = arith.constant 0 : index
    %c112_158 = arith.constant 112 : index
    %127 = vector.load %arg12[%c0_157, %c112_158] : memref<4x1222xf32, #tpu.memory_space<vmem>>, vector<4x1000xf32>
    %c56_159 = arith.constant 56 : index
    %c0_160 = arith.constant 0 : index
    %128 = vector.load %arg11[%c56_159, %c0_160] : memref<108x1000xf32, #tpu.memory_space<vmem>>, vector<4x1000xf32>
    tpu.vector_store %arg11[%c56_159, %c0_160], %127 {strides = array<i32>} : memref<108x1000xf32, #tpu.memory_space<vmem>>, vector<4x1000xf32>,
    %c0_161 = arith.constant 0 : index
    %c120_162 = arith.constant 120 : index
    %129 = vector.load %arg12[%c0_161, %c120_162] : memref<4x1222xf32, #tpu.memory_space<vmem>>, vector<4x1000xf32>
    %c60_163 = arith.constant 60 : index
    %c0_164 = arith.constant 0 : index
    %130 = vector.load %arg11[%c60_163, %c0_164] : memref<108x1000xf32, #tpu.memory_space<vmem>>, vector<4x1000xf32>
    tpu.vector_store %arg11[%c60_163, %c0_164], %129 {strides = array<i32>} : memref<108x1000xf32, #tpu.memory_space<vmem>>, vector<4x1000xf32>,
    %c0_165 = arith.constant 0 : index
    %c121_166 = arith.constant 121 : index
    %131 = vector.load %arg12[%c0_165, %c121_166] : memref<4x1222xf32, #tpu.memory_space<vmem>>, vector<4x1000xf32>
    %c64_167 = arith.constant 64 : index
    %c0_168 = arith.constant 0 : index
    %132 = vector.load %arg11[%c64_167, %c0_168] : memref<108x1000xf32, #tpu.memory_space<vmem>>, vector<4x1000xf32>
    tpu.vector_store %arg11[%c64_167, %c0_168], %131 {strides = array<i32>} : memref<108x1000xf32, #tpu.memory_space<vmem>>, vector<4x1000xf32>,
    %c0_169 = arith.constant 0 : index
    %c122_170 = arith.constant 122 : index
    %133 = vector.load %arg12[%c0_169, %c122_170] : memref<4x1222xf32, #tpu.memory_space<vmem>>, vector<4x1000xf32>
    %c68_171 = arith.constant 68 : index
    %c0_172 = arith.constant 0 : index
    %134 = vector.load %arg11[%c68_171, %c0_172] : memref<108x1000xf32, #tpu.memory_space<vmem>>, vector<4x1000xf32>
    tpu.vector_store %arg11[%c68_171, %c0_172], %133 {strides = array<i32>} : memref<108x1000xf32, #tpu.memory_space<vmem>>, vector<4x1000xf32>,
    %c0_173 = arith.constant 0 : index
    %c200_174 = arith.constant 200 : index
    %135 = vector.load %arg12[%c0_173, %c200_174] : memref<4x1222xf32, #tpu.memory_space<vmem>>, vector<4x1000xf32>
    %c72_175 = arith.constant 72 : index
    %c0_176 = arith.constant 0 : index
    %136 = vector.load %arg11[%c72_175, %c0_176] : memref<108x1000xf32, #tpu.memory_space<vmem>>, vector<4x1000xf32>
    tpu.vector_store %arg11[%c72_175, %c0_176], %135 {strides = array<i32>} : memref<108x1000xf32, #tpu.memory_space<vmem>>, vector<4x1000xf32>,
    %c0_177 = arith.constant 0 : index
    %c201_178 = arith.constant 201 : index
    %137 = vector.load %arg12[%c0_177, %c201_178] : memref<4x1222xf32, #tpu.memory_space<vmem>>, vector<4x1000xf32>
    %c76_179 = arith.constant 76 : index
    %c0_180 = arith.constant 0 : index
    %138 = vector.load %arg11[%c76_179, %c0_180] : memref<108x1000xf32, #tpu.memory_space<vmem>>, vector<4x1000xf32>
    tpu.vector_store %arg11[%c76_179, %c0_180], %137 {strides = array<i32>} : memref<108x1000xf32, #tpu.memory_space<vmem>>, vector<4x1000xf32>,
    %c0_181 = arith.constant 0 : index
    %c202_182 = arith.constant 202 : index
    %139 = vector.load %arg12[%c0_181, %c202_182] : memref<4x1222xf32, #tpu.memory_space<vmem>>, vector<4x1000xf32>
    %c80_183 = arith.constant 80 : index
    %c0_184 = arith.constant 0 : index
    %140 = vector.load %arg11[%c80_183, %c0_184] : memref<108x1000xf32, #tpu.memory_space<vmem>>, vector<4x1000xf32>
    tpu.vector_store %arg11[%c80_183, %c0_184], %139 {strides = array<i32>} : memref<108x1000xf32, #tpu.memory_space<vmem>>, vector<4x1000xf32>,
    %c0_185 = arith.constant 0 : index
    %c210_186 = arith.constant 210 : index
    %141 = vector.load %arg12[%c0_185, %c210_186] : memref<4x1222xf32, #tpu.memory_space<vmem>>, vector<4x1000xf32>
    %c84_187 = arith.constant 84 : index
    %c0_188 = arith.constant 0 : index
    %142 = vector.load %arg11[%c84_187, %c0_188] : memref<108x1000xf32, #tpu.memory_space<vmem>>, vector<4x1000xf32>
    tpu.vector_store %arg11[%c84_187, %c0_188], %141 {strides = array<i32>} : memref<108x1000xf32, #tpu.memory_space<vmem>>, vector<4x1000xf32>,
    %c0_189 = arith.constant 0 : index
    %c211_190 = arith.constant 211 : index
    %143 = vector.load %arg12[%c0_189, %c211_190] : memref<4x1222xf32, #tpu.memory_space<vmem>>, vector<4x1000xf32>
    %c88_191 = arith.constant 88 : index
    %c0_192 = arith.constant 0 : index
    %144 = vector.load %arg11[%c88_191, %c0_192] : memref<108x1000xf32, #tpu.memory_space<vmem>>, vector<4x1000xf32>
    tpu.vector_store %arg11[%c88_191, %c0_192], %143 {strides = array<i32>} : memref<108x1000xf32, #tpu.memory_space<vmem>>, vector<4x1000xf32>,
    %c0_193 = arith.constant 0 : index
    %c212_194 = arith.constant 212 : index
    %145 = vector.load %arg12[%c0_193, %c212_194] : memref<4x1222xf32, #tpu.memory_space<vmem>>, vector<4x1000xf32>
    %c92_195 = arith.constant 92 : index
    %c0_196 = arith.constant 0 : index
    %146 = vector.load %arg11[%c92_195, %c0_196] : memref<108x1000xf32, #tpu.memory_space<vmem>>, vector<4x1000xf32>
    tpu.vector_store %arg11[%c92_195, %c0_196], %145 {strides = array<i32>} : memref<108x1000xf32, #tpu.memory_space<vmem>>, vector<4x1000xf32>,
    %c0_197 = arith.constant 0 : index
    %c220_198 = arith.constant 220 : index
    %147 = vector.load %arg12[%c0_197, %c220_198] : memref<4x1222xf32, #tpu.memory_space<vmem>>, vector<4x1000xf32>
    %c96_199 = arith.constant 96 : index
    %c0_200 = arith.constant 0 : index
    %148 = vector.load %arg11[%c96_199, %c0_200] : memref<108x1000xf32, #tpu.memory_space<vmem>>, vector<4x1000xf32>
    tpu.vector_store %arg11[%c96_199, %c0_200], %147 {strides = array<i32>} : memref<108x1000xf32, #tpu.memory_space<vmem>>, vector<4x1000xf32>,
    %c0_201 = arith.constant 0 : index
    %c221_202 = arith.constant 221 : index
    %149 = vector.load %arg12[%c0_201, %c221_202] : memref<4x1222xf32, #tpu.memory_space<vmem>>, vector<4x1000xf32>
    %c100_203 = arith.constant 100 : index
    %c0_204 = arith.constant 0 : index
    %150 = vector.load %arg11[%c100_203, %c0_204] : memref<108x1000xf32, #tpu.memory_space<vmem>>, vector<4x1000xf32>
    tpu.vector_store %arg11[%c100_203, %c0_204], %149 {strides = array<i32>} : memref<108x1000xf32, #tpu.memory_space<vmem>>, vector<4x1000xf32>,
    %c0_205 = arith.constant 0 : index
    %c222_206 = arith.constant 222 : index
    %151 = vector.load %arg12[%c0_205, %c222_206] : memref<4x1222xf32, #tpu.memory_space<vmem>>, vector<4x1000xf32>
    %c104_207 = arith.constant 104 : index
    %c0_208 = arith.constant 0 : index
    %152 = vector.load %arg11[%c104_207, %c0_208] : memref<108x1000xf32, #tpu.memory_space<vmem>>, vector<4x1000xf32>
    tpu.vector_store %arg11[%c104_207, %c0_208], %151 {strides = array<i32>} : memref<108x1000xf32, #tpu.memory_space<vmem>>, vector<4x1000xf32>,
    %c0_209 = arith.constant 0 : index
    %c0_210 = arith.constant 0 : index
    %153 = vector.load %arg3[%c0_209, %c0_210] : memref<4x108xbf16, #tpu.memory_space<vmem>>, vector<4x108xbf16>
    %c0_211 = arith.constant 0 : index
    %c0_212 = arith.constant 0 : index
    %154 = vector.load %arg11[%c0_211, %c0_212] : memref<108x1000xf32, #tpu.memory_space<vmem>>, vector<108x1000xf32>
    %155 = arith.truncf %154 : vector<108x1000xf32> to vector<108x1000xbf16>
    %cst_213 = arith.constant dense<0.000000e+00> : vector<4x1000xf32>
    %156 = tpu.matmul %153, %155, %cst_213 {dimension_numbers = #tpu.dot_dimension_numbers<[1], [0], [0], [1], [0, 0, 1, 1], [], []>} : vector<4x108xbf16>, vector<108x1000xbf16>, vector<4x1000xf32> -> vector<4x1000xf32>
    %c0_214 = arith.constant 0 : index
    %c0_215 = arith.constant 0 : index
    %157 = vector.load %arg6[%c0_214, %c0_215] : memref<4x1xf32, #tpu.memory_space<vmem>>, vector<4x1xf32>
    %158 = vector.broadcast %157 : vector<4x1xf32> to vector<4x1000xf32>
    %159 = arith.mulf %156, %158 : vector<4x1000xf32>
    %c0_216 = arith.constant 0 : index
    %c0_217 = arith.constant 0 : index
    %160 = vector.load %arg7[%c0_216, %c0_217] : memref<4x1xf32, #tpu.memory_space<vmem>>, vector<4x1xf32>
    %161 = vector.broadcast %160 : vector<4x1xf32> to vector<4x1000xf32>
    %162 = arith.addf %159, %161 : vector<4x1000xf32>
    %c0_218 = arith.constant 0 : index
    %c0_219 = arith.constant 0 : index
    %c111_220 = arith.constant 111 : index
    %163 = vector.load %arg1[%c0_218, %c0_219, %c111_220] : memref<1x4x1222xf32, #tpu.memory_space<vmem>>, vector<1x4x1000xf32>
    %164 = vector.shape_cast %163 : vector<1x4x1000xf32> to vector<4x1000xf32>
    %165 = arith.addf %162, %164 : vector<4x1000xf32>
    %cst_221 = arith.constant 0.000000e+00 : f32
    %166 = vector.broadcast %cst_221 : f32 to vector<4x1000xf32>
    %167 = arith.maximumf %165, %166 : vector<4x1000xf32>
    %c0_222 = arith.constant 0 : index
    %c0_223 = arith.constant 0 : index
    %c0_224 = arith.constant 0 : index
    %168 = vector.load %arg9[%c0_222, %c0_223, %c0_224] : memref<1x4x1000xf32, #tpu.memory_space<vmem>>, vector<1x4x1000xf32>
    %169 = vector.shape_cast %168 : vector<1x4x1000xf32> to vector<4x1000xf32>
    %170 = vector.shape_cast %167 : vector<4x1000xf32> to vector<1x4x1000xf32>
    tpu.vector_store %arg9[%c0_222, %c0_223, %c0_224], %170 {strides = array<i32>} : memref<1x4x1000xf32, #tpu.memory_space<vmem>>, vector<1x4x1000xf32>,
    return
  }
  func.func @transform_0(%arg0: i32) -> (i32, i32, i32) {
    %c0_i32 = arith.constant 0 : i32
    %c0_i32_0 = arith.constant 0 : i32
    %c0_i32_1 = arith.constant 0 : i32
    return %arg0, %c0_i32, %c0_i32_0 : i32, i32, i32
  }
  func.func @transform_1(%arg0: i32) -> (i32, i32) {
    %c0_i32 = arith.constant 0 : i32
    %c0_i32_0 = arith.constant 0 : i32
    %c0_i32_1 = arith.constant 0 : i32
    return %c0_i32, %c0_i32_0 : i32, i32
  }
  func.func @transform_2(%arg0: i32) -> (i32, i32) {
    %c0_i32 = arith.constant 0 : i32
    %c0_i32_0 = arith.constant 0 : i32
    %c0_i32_1 = arith.constant 0 : i32
    return %c0_i32, %c0_i32_0 : i32, i32
  }
  func.func @transform_3(%arg0: i32) -> (i32, i32) {
    %c0_i32 = arith.constant 0 : i32
    %c0_i32_0 = arith.constant 0 : i32
    %c0_i32_1 = arith.constant 0 : i32
    return %c0_i32, %c0_i32_0 : i32, i32
  }
  func.func @transform_4(%arg0: i32) -> (i32, i32) {
    %c0_i32 = arith.constant 0 : i32
    %c0_i32_0 = arith.constant 0 : i32
    %c0_i32_1 = arith.constant 0 : i32
    return %c0_i32, %c0_i32_0 : i32, i32
  }
  func.func @transform_5(%arg0: i32) -> (i32, i32) {
    %c0_i32 = arith.constant 0 : i32
    %c0_i32_0 = arith.constant 0 : i32
    %c0_i32_1 = arith.constant 0 : i32
    return %c0_i32, %c0_i32_0 : i32, i32
  }
  func.func @transform_6(%arg0: i32) -> (i32, i32) {
    %c0_i32 = arith.constant 0 : i32
    %c0_i32_0 = arith.constant 0 : i32
    %c0_i32_1 = arith.constant 0 : i32
    return %c0_i32, %c0_i32_0 : i32, i32
  }
  func.func @transform_7(%arg0: i32) -> (i32, i32) {
    %c0_i32 = arith.constant 0 : i32
    %c0_i32_0 = arith.constant 0 : i32
    %c0_i32_1 = arith.constant 0 : i32
    return %c0_i32, %c0_i32_0 : i32, i32
  }
  func.func @transform_8(%arg0: i32) -> (i32, i32, i32) {
    %c0_i32 = arith.constant 0 : i32
    %c0_i32_0 = arith.constant 0 : i32
    %c0_i32_1 = arith.constant 0 : i32
    return %arg0, %c0_i32, %c0_i32_0 : i32, i32, i32
  }
}

</mosaic_0001>

<bundles_post_ra>
// kernel: basic_block_forward.1
= control target key start
LH: loop header
LB: loop body
LE: loop exit
PB: predicated region body
PF: predicated region fallthrough
CT: control target
= control target key end

     0   :  { %s4971_s27 = smov 0   ;;  %s7630_s0 = inlined_call_operand.vmem [shape: f32[2,4,1222], index: 0, kind: input, shape index: {}]   ;;  %s7631_s1 = inlined_call_operand.vmem [shape: bf16[4,108], index: 1, kind: input, shape index: {}]   ;;  %s7632_s2 = inlined_call_operand.vmem [shape: bf16[4,108], index: 2, kind: input, shape index: {}]   ;;  %s7633_s3 = inlined_call_operand.vmem [shape: f32[4,1], index: 3, kind: input, shape index: {}]   ;;  %s7634_s4 = inlined_call_operand.vmem [shape: f32[4,1], index: 4, kind: input, shape index: {}]   ;;  %s7635_s5 = inlined_call_operand.vmem [shape: f32[4,1], index: 5, kind: input, shape index: {}]   ;;  %s7636_s6 = inlined_call_operand.vmem [shape: f32[4,1], index: 6, kind: input, shape index: {}]   ;;  %s7637_s7 = inlined_call_operand.vmem [shape: f32[1,1000], index: 7, kind: input, shape index: {}]   ;;  %s7638_s8 = inlined_call_operand.vmem [shape: f32[2,4,1000], index: 8, kind: output, shape index: {}]  }
   0x1 LB: > { %s4821_s28 = sadd.s32 4294967295, %s4895_s27   ;;  %p4825_p0 = scmp.ge.s32.totalorder %s4895_s27, 1  ;;  %s4895_s27 = sphi %s4971_s27, %s18_s27  }
   0x2   : > { %p262_p1 = scmp.lt.s32.totalorder %s4895_s27, 3 }
   0x4   : > { %p263_p2 = pnand %p4825_p0, %p262_p1 }
   0x6   : > { %266 = sbr.rel (%p263_p2) target bundleno = 1962 (0x7aa), region = 52 }
   0xb   : > { %p296_p3 = scmp.lt.s32.totalorder %s4821_s28, 1  ;;  %s4897_s11 = smov 127   ;;  %vm387_vm0 = vcmask 1039360   ;;  %vm345_vm1 = vcmask 846848   ;;  %vm410_vm2 = vcmask 850948   ;;  %vm451_vm3 = vcmask 1031168  }
   0xc   : > { %s4898_s12 = smov 126   ;;  %s4899_s13 = smov 118   ;;  %vm515_vm4 = vcmask 965632   ;;  %vm578_vm5 = vcmask 957440   ;;  %vm642_vm6 = vcmask 949248   ;;  %vm705_vm7 = vcmask 883712  }
   0xd   : > { %s7987_s28 = smov (!%p296_p3, %s4821_s28), 1  ;;  %s4900_s14 = smov 117   ;;  %vm769_vm8 = vcmask 875520   ;;  %vm832_vm9 = vcmask 867328   ;;  %vm902_vm10 = vcmask 228352   ;;  %vm7664_vm11 = vcmask 220160  }
   0xe   : > { %s4848_s29 = smul.u32 40, %s7987_s28  ;;  %s4901_s15 = smov 116   ;;  %vm7663_vm12 = vcmask 211968   ;;  %vm7661_vm13 = vcmask 146432   ;;  %vm7639_vm14 = vcmask 138240   ;;  %vm7642_vm15 = vcmask 130048  }
   0xf   : > { %s4902_s16 = smov 108   ;;  %s4903_s17 = smov 107  }
  0x10   : > { %s4985_s10 = scalar_lea.vmem %s7630_s0, %s4848_s29  ;;  %s4904_s18 = smov 106  }
  0x11   : > { %v4988_v0 = vld [vmem:[%s4985_s10 + $0x10] sm:$0xff]  ;;  %v4991_v1 = vld [vmem:[%s4985_s10 + $0x8] sm:$0xff]  ;;  %v4994_v2 = vld [vmem:[%s4985_s10] sm:$0xff]  ;;  %s4905_s19 = smov 28   ;;  %s4906_s20 = smov 27  }
  0x12   : > { %319 = vst [vmem:[#allocation1 + $0x20] ss:$2 sm:$0xff] %v4988_v0  ;;  %v4998_v3 = vld [vmem:[%s4985_s10 + $0x18] sm:$0xff]  ;;  %s4907_s21 = smov 26   ;;  %s4908_s22 = smov 18  }
  0x13   : > { %317 = vst [vmem:[#allocation1 + $0x10] ss:$2 sm:$0xff] %v4991_v1  ;;  %s4909_s23 = smov 17   ;;  %s4910_s24 = smov 16  }
  0x14   : > { %315 = vst [vmem:[#allocation1] ss:$2 sm:$0xff] %v4994_v2  ;;  %s4911_s25 = smov 8   ;;  %s7653_s26 = smov 7  }
  0x15   : > { %321 = vst [vmem:[#allocation1 + $0x30] ss:$2 sm:$0xff] %v4998_v3  ;;  %s7651_s29 = smov 6   ;;  %s7640_s30 = smov 56  }
  0x16   : > { %s7643_s9 = smov 55  }
  0x19   : > { %v326_v4 = vld.sshfl [vmem:[#allocation1 + $0x20] sm:$0xff pattern:$0x75316420]  ;;  %v327_v5 = vld.sshfl [vmem:[#allocation1 + $0x28] sm:$0xff pattern:$0x75316420] }
  0x1a   : > { %360 = vst [vmem:[#allocation1 + $0x21] ss:$2 sm:$0xff] %v4988_v0  ;;  %v324_v6 = vld.sshfl [vmem:[#allocation1 + $0x10] sm:$0xff pattern:$0x75316420] }
  0x1b   : > { %342 = vst [vmem:[#allocation2 + $0x20] sm:$0xf] %v326_v4  ;;  %v325_v7 = vld.sshfl [vmem:[#allocation1 + $0x18] sm:$0xff pattern:$0x75316420] }
  0x1c   : > { %343 = vst [vmem:[#allocation2 + $0x28] sm:$0xf] %v327_v5  ;;  %v322_v8 = vld.sshfl [vmem:[#allocation1] sm:$0xff pattern:$0x75316420] }
  0x1d   : > { %358 = vst [vmem:[#allocation1 + $0x11] ss:$2 sm:$0xff] %v4991_v1  ;;  %v323_v9 = vld.sshfl [vmem:[#allocation1 + $0x8] sm:$0xff pattern:$0x75316420] }
  0x1e   : > { %340 = vst [vmem:[#allocation2 + $0x10] sm:$0xf] %v324_v6  ;;  %v328_v10 = vld.sshfl [vmem:[#allocation1 + $0x30] sm:$0xff pattern:$0x75316420] }
  0x1f   : > { %341 = vst [vmem:[#allocation2 + $0x18] sm:$0xf] %v325_v7  ;;  %v5006_v11 = vld.sshfl [vmem:[#allocation1 + $0x38] sm:$0xff pattern:$0x75316420] }
  0x20   : > { %356 = vst [vmem:[#allocation1 + $0x1] ss:$2 sm:$0xff] %v4994_v2 }
  0x21   : > { %v367_v12 = vld.sshfl [vmem:[#allocation1 + $0x20] sm:$0xff pattern:$0x75316420]  ;;  %338 = vst [vmem:[#allocation2] sm:$0xf] %v322_v8 }
  0x22   : > { %379 = vrot.lane.b32.xlu2 %v367_v12, %s4897_s11  ;;  %339 = vst [vmem:[#allocation2 + $0x8] sm:$0xf] %v323_v9  ;;  %v368_v15 = vld.sshfl [vmem:[#allocation1 + $0x28] sm:$0xff pattern:$0x75316420] }
  0x23   : > { %362 = vst [vmem:[#allocation1 + $0x31] ss:$2 sm:$0xff] %v4998_v3 }
  0x24   : > { %v365_v13 = vld.sshfl [vmem:[#allocation1 + $0x10] sm:$0xff pattern:$0x75316420]  ;;  %v366_v14 = vld.sshfl [vmem:[#allocation1 + $0x18] sm:$0xff pattern:$0x75316420] }
  0x25   : > { %375 = vrot.lane.b32.xlu1 %v365_v13, %s4897_s11  ;;  %344 = vst [vmem:[#allocation2 + $0x30] sm:$0xf] %v328_v10 }
  0x26   : > { %422 = vst [vmem:[#allocation1 + $0x10] ss:$2 sm:$0xff] %v4991_v1 }
  0x27   : > { %v363_v16 = vld.sshfl [vmem:[#allocation1] sm:$0xff pattern:$0x75316420]  ;;  %v364_v17 = vld.sshfl [vmem:[#allocation1 + $0x8] sm:$0xff pattern:$0x75316420] }
  0x28   : > { %371 = vrot.lane.b32.xlu0 %v363_v16, %s4897_s11  ;;  %420 = vst [vmem:[#allocation1] ss:$2 sm:$0xff] %v4994_v2 }
  0x29   : > { %424 = vst [vmem:[#allocation1 + $0x20] ss:$2 sm:$0xff] %v4988_v0 }
  0x2a   : > { %381 = vrot.lane.b32.xlu2 %v368_v15, %s4897_s11  ;;  %v370_v18 = vld.sshfl [vmem:[#allocation1 + $0x38] sm:$0xff pattern:$0x75316420]  ;;  %v369_v19 = vld.sshfl [vmem:[#allocation1 + $0x30] sm:$0xff pattern:$0x75316420] }
  0x2b   : > { %426 = vst [vmem:[#allocation1 + $0x30] ss:$2 sm:$0xff] %v4998_v3 }
  0x2c   : > { %346 = vst.msk [vmem:[#allocation2 + $0x38] sm:$0xf] %vm345_vm1, %v5006_v11 }
  0x2d   : > { %377 = vrot.lane.b32.xlu1 %v366_v14, %s4897_s11  ;;  %v429_v20 = vld.sshfl [vmem:[#allocation1 + $0x10] sm:$0xff pattern:$0x75316420]  ;;  %v430_v21 = vld.sshfl [vmem:[#allocation1 + $0x18] sm:$0xff pattern:$0x75316420] }
  0x2e   : > { %486 = vst [vmem:[#allocation1 + $0x11] ss:$2 sm:$0xff] %v4991_v1 }
  0x2f   : > { %v427_v22 = vld.sshfl [vmem:[#allocation1] sm:$0xff pattern:$0x75316420]  ;;  %v428_v23 = vld.sshfl [vmem:[#allocation1 + $0x8] sm:$0xff pattern:$0x75316420] }
  0x30   : > { %373 = vrot.lane.b32.xlu0 %v364_v17, %s4897_s11  ;;  %v432_v24 = vld.sshfl [vmem:[#allocation1 + $0x28] sm:$0xff pattern:$0x75316420]  ;;  %484 = vst [vmem:[#allocation1 + $0x1] ss:$2 sm:$0xff] %v4994_v2 }
  0x31   : > { %v431_v25 = vld.sshfl [vmem:[#allocation1 + $0x20] sm:$0xff pattern:$0x75316420] }
  0x32   : > { %435 = vrot.lane.b32.xlu2 %v427_v22, %s4898_s12  ;;  %v433_v26 = vld.sshfl [vmem:[#allocation1 + $0x30] sm:$0xff pattern:$0x75316420]  ;;  %v434_v27 = vld.sshfl [vmem:[#allocation1 + $0x38] sm:$0xff pattern:$0x75316420] }
  0x33   : > { %488 = vst [vmem:[#allocation1 + $0x21] ss:$2 sm:$0xff] %v4988_v0 }
  0x34   : > { %490 = vst [vmem:[#allocation1 + $0x31] ss:$2 sm:$0xff] %v4998_v3 }
  0x35   : > { %385 = vrot.lane.b32.xlu1 %v370_v18, %s4897_s11  ;;  %v493_v28 = vld.sshfl [vmem:[#allocation1 + $0x10] sm:$0xff pattern:$0x75316420]  ;;  %v494_v29 = vld.sshfl [vmem:[#allocation1 + $0x18] sm:$0xff pattern:$0x75316420] }
  0x36   : > { %549 = vst [vmem:[#allocation1 + $0x10] ss:$2 sm:$0xff] %v4991_v1 }
  0x37   : > { %v492_v30 = vld.sshfl [vmem:[#allocation1 + $0x8] sm:$0xff pattern:$0x75316420]  ;;  %v491_v31 = vld.sshfl [vmem:[#allocation1] sm:$0xff pattern:$0x75316420] }
  0x38   : > { %383 = vrot.lane.b32.xlu0 %v369_v19, %s4897_s11  ;;  %547 = vst [vmem:[#allocation1] ss:$2 sm:$0xff] %v4994_v2 }
  0x3a   : > { %441 = vrot.lane.b32.xlu2 %v430_v21, %s4898_s12  ;;  %v495_v32 = vld.sshfl [vmem:[#allocation1 + $0x20] sm:$0xff pattern:$0x75316420]  ;;  %v496_v33 = vld.sshfl [vmem:[#allocation1 + $0x28] sm:$0xff pattern:$0x75316420] }
  0x3b   : > { %551 = vst [vmem:[#allocation1 + $0x20] ss:$2 sm:$0xff] %v4988_v0  ;;  %v498_v34 = vld.sshfl [vmem:[#allocation1 + $0x38] sm:$0xff pattern:$0x75316420] }
  0x3c   : > { %v497_v35 = vld.sshfl [vmem:[#allocation1 + $0x30] sm:$0xff pattern:$0x75316420] }
  0x3d   : > { %439 = vrot.lane.b32.xlu1 %v429_v20, %s4898_s12  ;;  %553 = vst [vmem:[#allocation1 + $0x30] ss:$2 sm:$0xff] %v4998_v3  ;;  %v556_v40 = vld.sshfl [vmem:[#allocation1 + $0x10] sm:$0xff pattern:$0x75316420] }
  0x3e   : > { %v557_v41 = vld.sshfl [vmem:[#allocation1 + $0x18] sm:$0xff pattern:$0x75316420] }
  0x3f   : > { %v555_v36 = vld.sshfl [vmem:[#allocation1 + $0x8] sm:$0xff pattern:$0x75316420]  ;;  %v554_v37 = vld.sshfl [vmem:[#allocation1] sm:$0xff pattern:$0x75316420] }
  0x40   : > { %437 = vrot.lane.b32.xlu0 %v428_v23, %s4898_s12  ;;  %611 = vst [vmem:[#allocation1 + $0x1] ss:$2 sm:$0xff] %v4994_v2 }
  0x41   : > { %613 = vst [vmem:[#allocation1 + $0x11] ss:$2 sm:$0xff] %v4991_v1 }
  0x42   : > { %447 = vrot.lane.b32.xlu2 %v433_v26, %s4898_s12  ;;  %v559_v38 = vld.sshfl [vmem:[#allocation1 + $0x28] sm:$0xff pattern:$0x75316420]  ;;  %v558_v39 = vld.sshfl [vmem:[#allocation1 + $0x20] sm:$0xff pattern:$0x75316420] }
  0x43   : > { %615 = vst [vmem:[#allocation1 + $0x21] ss:$2 sm:$0xff] %v4988_v0 }
  0x44   : > { %v561_v42 = vld.sshfl [vmem:[#allocation1 + $0x38] sm:$0xff pattern:$0x75316420]  ;;  %v560_v43 = vld.sshfl [vmem:[#allocation1 + $0x30] sm:$0xff pattern:$0x75316420] }
  0x45   : > { %445 = vrot.lane.b32.xlu1 %v432_v24, %s4898_s12  ;;  %617 = vst [vmem:[#allocation1 + $0x31] ss:$2 sm:$0xff] %v4998_v3 }
  0x47   : > { %v618_v44 = vld.sshfl [vmem:[#allocation1] sm:$0xff pattern:$0x75316420]  ;;  %v619_v45 = vld.sshfl [vmem:[#allocation1 + $0x8] sm:$0xff pattern:$0x75316420] }
  0x48   : > { %443 = vrot.lane.b32.xlu0 %v431_v25, %s4898_s12  ;;  %674 = vst [vmem:[#allocation1] ss:$2 sm:$0xff] %v4994_v2  ;;  %v620_v46 = vld.sshfl [vmem:[#allocation1 + $0x10] sm:$0xff pattern:$0x75316420] }
  0x49   : > { %v621_v47 = vld.sshfl [vmem:[#allocation1 + $0x18] sm:$0xff pattern:$0x75316420] }
  0x4a   : > { %501 = vrot.lane.b32.xlu2 %v492_v30, %s4899_s13  ;;  %676 = vst [vmem:[#allocation1 + $0x10] ss:$2 sm:$0xff] %v4991_v1  ;;  %v623_v48 = vld.sshfl [vmem:[#allocation1 + $0x28] sm:$0xff pattern:$0x75316420] }
  0x4b   : > { %v622_v49 = vld.sshfl [vmem:[#allocation1 + $0x20] sm:$0xff pattern:$0x75316420] }
  0x4c   : > { %678 = vst [vmem:[#allocation1 + $0x20] ss:$2 sm:$0xff] %v4988_v0  ;;  %v624_v50 = vld.sshfl [vmem:[#allocation1 + $0x30] sm:$0xff pattern:$0x75316420] }
  0x4d   : > { %499 = vrot.lane.b32.xlu1 %v491_v31, %s4899_s13  ;;  %v625_v51 = vld.sshfl [vmem:[#allocation1 + $0x38] sm:$0xff pattern:$0x75316420] }
  0x4e   : > { %680 = vst [vmem:[#allocation1 + $0x30] ss:$2 sm:$0xff] %v4998_v3 }
  0x4f   : > { %v682_v52 = vld.sshfl [vmem:[#allocation1 + $0x8] sm:$0xff pattern:$0x75316420]  ;;  %v681_v53 = vld.sshfl [vmem:[#allocation1] sm:$0xff pattern:$0x75316420] }
  0x50   : > { %449 = vrot.lane.b32.xlu0 %v434_v27, %s4898_s12  ;;  %738 = vst [vmem:[#allocation1 + $0x1] ss:$2 sm:$0xff] %v4994_v2 }
  0x51   : > { %v683_v54 = vld.sshfl [vmem:[#allocation1 + $0x10] sm:$0xff pattern:$0x75316420]  ;;  %v684_v55 = vld.sshfl [vmem:[#allocation1 + $0x18] sm:$0xff pattern:$0x75316420] }
  0x52   : > { %507 = vrot.lane.b32.xlu2 %v495_v32, %s4899_s13  ;;  %740 = vst [vmem:[#allocation1 + $0x11] ss:$2 sm:$0xff] %v4991_v1 }
  0x53   : > { %v685_v56 = vld.sshfl [vmem:[#allocation1 + $0x20] sm:$0xff pattern:$0x75316420]  ;;  %v686_v57 = vld.sshfl [vmem:[#allocation1 + $0x28] sm:$0xff pattern:$0x75316420] }
  0x54   : > { %742 = vst [vmem:[#allocation1 + $0x21] ss:$2 sm:$0xff] %v4988_v0 }
  0x55   : > { %505 = vrot.lane.b32.xlu1 %v494_v29, %s4899_s13  ;;  %v688_v59 = vld.sshfl [vmem:[#allocation1 + $0x38] sm:$0xff pattern:$0x75316420]  ;;  %v687_v60 = vld.sshfl [vmem:[#allocation1 + $0x30] sm:$0xff pattern:$0x75316420] }
  0x56   : > { %744 = vst [vmem:[#allocation1 + $0x31] ss:$2 sm:$0xff] %v4998_v3 }
  0x57   : > { %v746_v63 = vld.sshfl [vmem:[#allocation1 + $0x8] sm:$0xff pattern:$0x75316420]  ;;  %v745_v4 = vld.sshfl [vmem:[#allocation1] sm:$0xff pattern:$0x75316420] }
  0x58   : > { %503 = vrot.lane.b32.xlu0 %v493_v28, %s4899_s13  ;;  %801 = vst [vmem:[#allocation1] ss:$2 sm:$0xff] %v4994_v2 }
  0x59   : > { %v747_v6 = vld.sshfl [vmem:[#allocation1 + $0x10] sm:$0xff pattern:$0x75316420]  ;;  %v748_v9 = vld.sshfl [vmem:[#allocation1 + $0x18] sm:$0xff pattern:$0x75316420] }
  0x5a   : > { %513 = vrot.lane.b32.xlu2 %v498_v34, %s4899_s13  ;;  %803 = vst [vmem:[#allocation1 + $0x10] ss:$2 sm:$0xff] %v4991_v1 }
  0x5b   : > { %v750_v7 = vld.sshfl [vmem:[#allocation1 + $0x28] sm:$0xff pattern:$0x75316420]  ;;  %v749_v8 = vld.sshfl [vmem:[#allocation1 + $0x20] sm:$0xff pattern:$0x75316420] }
  0x5c   : > { %805 = vst [vmem:[#allocation1 + $0x20] ss:$2 sm:$0xff] %v4988_v0 }
  0x5d   : > { %511 = vrot.lane.b32.xlu1 %v497_v35, %s4899_s13  ;;  %v752_v12 = vld.sshfl [vmem:[#allocation1 + $0x38] sm:$0xff pattern:$0x75316420]  ;;  %v5090_v13 = vld.sshfl [vmem:[#allocation1 + $0x30] sm:$0xff pattern:$0x75316420] }
  0x5e   : > { %807 = vst [vmem:[#allocation1 + $0x30] ss:$2 sm:$0xff] %v4998_v3 }
  0x5f   : > { %v808_v11 = vld.sshfl [vmem:[#allocation1] sm:$0xff pattern:$0x75316420]  ;;  %v5098_v17 = vld.sshfl [vmem:[#allocation1 + $0x8] sm:$0xff pattern:$0x75316420] }
  0x60   : > { %509 = vrot.lane.b32.xlu0 %v496_v33, %s4899_s13  ;;  %867 = vst [vmem:[#allocation1 + $0x1] ss:$2 sm:$0xff] %v4994_v2 }
  0x61   : > { %v5104_v21 = vld.sshfl [vmem:[#allocation1 + $0x10] sm:$0xff pattern:$0x75316420]  ;;  %v811_v23 = vld.sshfl [vmem:[#allocation1 + $0x18] sm:$0xff pattern:$0x75316420] }
  0x62   : > { %566 = vrot.lane.b32.xlu2 %v556_v40, %s4900_s14  ;;  %869 = vst [vmem:[#allocation1 + $0x11] ss:$2 sm:$0xff] %v4991_v1 }
  0x63   : > { %v5112_v27 = vld.sshfl [vmem:[#allocation1 + $0x28] sm:$0xff pattern:$0x75316420]  ;;  %v5115_v28 = vld.sshfl [vmem:[#allocation1 + $0x20] sm:$0xff pattern:$0x75316420] }
  0x64   : > { %871 = vst [vmem:[#allocation1 + $0x21] ss:$2 sm:$0xff] %v4988_v0 }
  0x65   : > { %564 = vrot.lane.b32.xlu1 %v555_v36, %s4900_s14  ;;  %v814_v34 = vld.sshfl [vmem:[#allocation1 + $0x30] sm:$0xff pattern:$0x75316420]  ;;  %v5127_v35 = vld.sshfl [vmem:[#allocation1 + $0x38] sm:$0xff pattern:$0x75316420] }
  0x66   : > { %873 = vst [vmem:[#allocation1 + $0x31] ss:$2 sm:$0xff] %v4998_v3 }
  0x68   : > { %562 = vrot.lane.b32.xlu0 %v554_v37, %s4900_s14 }
  0x6a   : > { %572 = vrot.lane.b32.xlu2 %v559_v38, %s4900_s14 }
  0x6d   : > { %570 = vrot.lane.b32.xlu1 %v558_v39, %s4900_s14 }
  0x70   : > { %568 = vrot.lane.b32.xlu0 %v557_v41, %s4900_s14 }
  0x72   : > { %626 = vrot.lane.b32.xlu2 %v618_v44, %s4901_s15 }
  0x75   : > { %576 = vrot.lane.b32.xlu1 %v561_v42, %s4900_s14 }
  0x78   : > { %574 = vrot.lane.b32.xlu0 %v560_v43, %s4900_s14  ;;  %v875_v43 = vld.sshfl [vmem:[#allocation1 + $0x8] sm:$0xff pattern:$0x75316420] }
  0x7a   : > { %632 = vrot.lane.b32.xlu2 %v621_v47, %s4901_s15  ;;  %v860_v47 = vld [vmem:[%s4985_s10 + $0x20] sm:$0xf] }
  0x7c   : > { %v380_v58 = vpop.permute.xlu2 %379 }
  0x7d   : > { %630 = vrot.lane.b32.xlu1 %v620_v46, %s4901_s15  ;;  %v5143_v46 = vld.sshfl [vmem:[#allocation1 + $0x10] sm:$0xff pattern:$0x75316420] }
  0x80   : > { %628 = vrot.lane.b32.xlu0 %v619_v45, %s4901_s15  ;;  %v874_v45 = vld.sshfl [vmem:[#allocation1] sm:$0xff pattern:$0x75316420] }
  0x81   : > { %882 = vst [vmem:[#allocation1 + $0x1] ss:$2 sm:$0xff] %v860_v47 }
  0x82   : > { %638 = vrot.lane.b32.xlu2 %v624_v50, %s4901_s15 }
  0x84   : > { %v5070_v61 = vpop.permute.xlu2 %381 }
  0x85   : > { %636 = vrot.lane.b32.xlu1 %v623_v48, %s4901_s15  ;;  %v392_v62 = vsel %vm387_vm0, %v380_v58, %v5070_v61 }
  0x86   : > { %407 = vst [vmem:[#allocation2 + $0x20] sm:$0xf0] %v392_v62  ;;  %v880_v62 = vld.sshfl [vmem:[#allocation1 + $0x30] sm:$0xff pattern:$0x75316420] }
  0x88   : > { %634 = vrot.lane.b32.xlu0 %v622_v49, %s4901_s15  ;;  %v877_v49 = vld.sshfl [vmem:[#allocation1 + $0x18] sm:$0xff pattern:$0x75316420] }
  0x89   : > { %939 = vst [vmem:[#allocation1 + $0x10] ss:$2 sm:$0xff] %v4991_v1 }
  0x8a   : > { %691 = vrot.lane.b32.xlu2 %v682_v52, %s4902_s16 }
  0x8c   : > { %v5078_v5 = vpop.permute.xlu2 %435 }
  0x8d   : > { %689 = vrot.lane.b32.xlu1 %v681_v53, %s4902_s16  ;;  %v878_v53 = vld.sshfl [vmem:[#allocation1 + $0x20] sm:$0xff pattern:$0x75316420] }
  0x90   : > { %640 = vrot.lane.b32.xlu0 %v625_v51, %s4901_s15 }
  0x92   : > { %697 = vrot.lane.b32.xlu2 %v685_v56, %s4902_s16 }
  0x94   : > { %v5087_v10 = vpop.permute.xlu2 %441 }
  0x95   : > { %695 = vrot.lane.b32.xlu1 %v684_v55, %s4902_s16 }
  0x97   : > { %v376_v14 = vpop.permute.xlu1 %375 }
  0x98   : > { %693 = vrot.lane.b32.xlu0 %v683_v54, %s4902_s16  ;;  %v5155_v54 = vld.sshfl [vmem:[#allocation1 + $0x28] sm:$0xff pattern:$0x75316420] }
  0x99   : > { %941 = vst [vmem:[#allocation1 + $0x20] ss:$2 sm:$0xff] %v4988_v0 }
  0x9a   : > { %v372_v15 = vpop.permute.xlu0 %371  ;;  %703 = vrot.lane.b32.xlu2 %v688_v59, %s4902_s16 }
  0x9c   : > { %v5095_v16 = vpop.permute.xlu2 %447 }
  0x9d   : > { %701 = vrot.lane.b32.xlu1 %v687_v60, %s4902_s16  ;;  %v881_v60 = vld.sshfl [vmem:[#allocation1 + $0x38] sm:$0xff pattern:$0x75316420] }
  0x9e   : > { %943 = vst [vmem:[#allocation1 + $0x30] ss:$2 sm:$0xff] %v4998_v3 }
  0x9f   : > { %v378_v18 = vpop.permute.xlu1 %377 }
  0xa0   : > { %699 = vrot.lane.b32.xlu0 %v686_v57, %s4902_s16  ;;  %v390_v19 = vsel %vm387_vm0, %v376_v14, %v378_v18  ;;  %v391_v20 = vsel %vm387_vm0, %v378_v18, %v380_v58  ;;  %v5162_v57 = vld.sshfl [vmem:[#allocation1] sm:$0xff pattern:$0x75316420] }
  0xa1   : > { %405 = vst [vmem:[#allocation2 + $0x10] sm:$0xf0] %v390_v19 }
  0xa2   : > { %406 = vst [vmem:[#allocation2 + $0x18] sm:$0xf0] %v391_v20  ;;  %v374_v22 = vpop.permute.xlu0 %373  ;;  %757 = vrot.lane.b32.xlu2 %v747_v6, %s4903_s17  ;;  %v948_v20 = vld.sshfl [vmem:[#allocation1 + $0x20] sm:$0xff pattern:$0x75316420] }
  0xa3   : > { %v388_v24 = vsel %vm387_vm0, %v372_v15, %v374_v22  ;;  %v389_v25 = vsel %vm387_vm0, %v374_v22, %v376_v14  ;;  %937 = vst [vmem:[#allocation1] ss:$2 sm:$0xff] %v4994_v2  ;;  %v5188_v14 = vld.sshfl [vmem:[#allocation1 + $0x10] sm:$0xff pattern:$0x75316420] }
  0xa4   : > { %403 = vst [vmem:[#allocation2] sm:$0xf0] %v388_v24  ;;  %v5110_v26 = vpop.permute.xlu2 %501  ;;  %v931_v15 = vld [vmem:[%s4985_s10 + $0x20] sm:$0xf] }
  0xa5   : > { %404 = vst [vmem:[#allocation2 + $0x8] sm:$0xf0] %v389_v25  ;;  %755 = vrot.lane.b32.xlu1 %v746_v63, %s4903_s17  ;;  %v951_v24 = vld.sshfl [vmem:[#allocation1 + $0x38] sm:$0xff pattern:$0x75316420] }
  0xa7   : > { %v386_v29 = vpop.permute.xlu1 %385 }
  0xa8   : > { %753 = vrot.lane.b32.xlu0 %v745_v4, %s4903_s17  ;;  %411 = vst.msk [vmem:[#allocation2 + $0x38] sm:$0xf0] %vm410_vm2, %v386_v29 }
  0xaa   : > { %v384_v30 = vpop.permute.xlu0 %383  ;;  %763 = vrot.lane.b32.xlu2 %v750_v7, %s4903_s17 }
  0xab   : > { %v393_v31 = vsel %vm387_vm0, %v5070_v61, %v384_v30  ;;  %v394_v32 = vsel %vm387_vm0, %v384_v30, %v386_v29 }
  0xac   : > { %408 = vst [vmem:[#allocation2 + $0x28] sm:$0xf0] %v393_v31  ;;  %v5124_v33 = vpop.permute.xlu2 %507 }
  0xad   : > { %409 = vst [vmem:[#allocation2 + $0x30] sm:$0xf0] %v394_v32  ;;  %761 = vrot.lane.b32.xlu1 %v749_v8, %s4903_s17 }
  0xaf   : > { %v440_v36 = vpop.permute.xlu1 %439 }
  0xb0   : > { %759 = vrot.lane.b32.xlu0 %v748_v9, %s4903_s17  ;;  %v454_v37 = vsel %vm451_vm3, %v440_v36, %v5087_v10 }
  0xb1   : > { %469 = vst [vmem:[#allocation2 + $0x50] sm:$0xf] %v454_v37 }
  0xb2   : > { %v438_v38 = vpop.permute.xlu0 %437  ;;  %816 = vrot.lane.b32.xlu2 %v808_v11, %s4904_s18  ;;  %v947_v11 = vld.sshfl [vmem:[#allocation1 + $0x18] sm:$0xff pattern:$0x75316420] }
  0xb3   : > { %v452_v39 = vsel %vm451_vm3, %v5078_v5, %v438_v38  ;;  %v453_v40 = vsel %vm451_vm3, %v438_v38, %v440_v36  ;;  %1010 = vst [vmem:[#allocation1 + $0x11] ss:$2 sm:$0xff] %v4991_v1 }
  0xb4   : > { %467 = vst [vmem:[#allocation2 + $0x40] sm:$0xf] %v452_v39  ;;  %v514_v41 = vpop.permute.xlu2 %513 }
  0xb5   : > { %468 = vst [vmem:[#allocation2 + $0x48] sm:$0xf] %v453_v40  ;;  %767 = vrot.lane.b32.xlu1 %v752_v12, %s4903_s17  ;;  %v1001_v40 = vld [vmem:[%s4985_s10 + $0x20] sm:$0xf] }
  0xb6   : > { %538 = vst.msk [vmem:[#allocation2 + $0x78] sm:$0xf0] %vm410_vm2, %v514_v41 }
  0xb7   : > { %v446_v42 = vpop.permute.xlu1 %445 }
  0xb8   : > { %765 = vrot.lane.b32.xlu0 %v5090_v13, %s4903_s17  ;;  %v457_v44 = vsel %vm451_vm3, %v446_v42, %v5095_v16  ;;  %v944_v13 = vld.sshfl [vmem:[#allocation1] sm:$0xff pattern:$0x75316420] }
  0xb9   : > { %472 = vst [vmem:[#allocation2 + $0x68] sm:$0xf] %v457_v44 }
  0xba   : > { %v444_v48 = vpop.permute.xlu0 %443  ;;  %822 = vrot.lane.b32.xlu2 %v811_v23, %s4904_s18  ;;  %v5229_v39 = vld.sshfl [vmem:[#allocation1 + $0x10] sm:$0xff pattern:$0x75316420] }
  0xbb   : > { %v455_v50 = vsel %vm451_vm3, %v5087_v10, %v444_v48  ;;  %v456_v51 = vsel %vm451_vm3, %v444_v48, %v446_v42  ;;  %v945_v10 = vld.sshfl [vmem:[#allocation1 + $0x8] sm:$0xff pattern:$0x75316420]  ;;  %v1018_v42 = vld.sshfl [vmem:[#allocation1 + $0x18] sm:$0xff pattern:$0x75316420] }
  0xbc   : > { %470 = vst [vmem:[#allocation2 + $0x58] sm:$0xf] %v455_v50  ;;  %v5151_v52 = vpop.permute.xlu2 %566 }
  0xbd   : > { %471 = vst [vmem:[#allocation2 + $0x60] sm:$0xf] %v456_v51  ;;  %820 = vrot.lane.b32.xlu1 %v5104_v21, %s4904_s18  ;;  %v5199_v21 = vld.sshfl [vmem:[#allocation1 + $0x28] sm:$0xff pattern:$0x75316420] }
  0xbe   : > { %952 = vst [vmem:[#allocation1] ss:$2 sm:$0xff] %v931_v15 }
  0xbf   : > { %v500_v55 = vpop.permute.xlu1 %499  ;;  %1012 = vst [vmem:[#allocation1 + $0x21] ss:$2 sm:$0xff] %v4988_v0 }
  0xc0   : > { %818 = vrot.lane.b32.xlu0 %v5098_v17, %s4904_s18  ;;  %v516_v56 = vsel %vm515_vm4, %v500_v55, %v5110_v26  ;;  %1080 = vst [vmem:[#allocation1 + $0x10] ss:$2 sm:$0xff] %v4991_v1 }
  0xc1   : > { %531 = vst [vmem:[#allocation2 + $0x40] sm:$0xf0] %v516_v56 }
  0xc2   : > { %v450_v58 = vpop.permute.xlu0 %449  ;;  %828 = vrot.lane.b32.xlu2 %v814_v34, %s4904_s18 }
  0xc3   : > { %v458_v59 = vsel %vm451_vm3, %v5095_v16, %v450_v58  ;;  %474 = vst.msk [vmem:[#allocation2 + $0x78] sm:$0xf] %vm345_vm1, %v450_v58 }
  0xc4   : > { %473 = vst [vmem:[#allocation2 + $0x70] sm:$0xf] %v458_v59  ;;  %v5169_v61 = vpop.permute.xlu2 %572 }
  0xc5   : > { %826 = vrot.lane.b32.xlu1 %v5112_v27, %s4904_s18  ;;  %v5206_v25 = vld.sshfl [vmem:[#allocation1] sm:$0xff pattern:$0x75316420]  ;;  %v950_v27 = vld.sshfl [vmem:[#allocation1 + $0x30] sm:$0xff pattern:$0x75316420] }
  0xc6   : > { %1008 = vst [vmem:[#allocation1 + $0x1] ss:$2 sm:$0xff] %v4994_v2  ;;  %v5240_v47 = vld.sshfl [vmem:[#allocation1 + $0x28] sm:$0xff pattern:$0x75316420] }
  0xc7   : > { %v506_v63 = vpop.permute.xlu1 %505  ;;  %1014 = vst [vmem:[#allocation1 + $0x31] ss:$2 sm:$0xff] %v4998_v3 }
  0xc8   : > { %824 = vrot.lane.b32.xlu0 %v5115_v28, %s4904_s18  ;;  %v519_v4 = vsel %vm515_vm4, %v506_v63, %v5124_v33 }
  0xc9   : > { %534 = vst [vmem:[#allocation2 + $0x58] sm:$0xf0] %v519_v4  ;;  %v1072_v4 = vld [vmem:[%s4985_s10 + $0x20] sm:$0xf] }
  0xca   : > { %v504_v5 = vpop.permute.xlu0 %503  ;;  %886 = vrot.lane.b32.xlu2 %v875_v43, %s4905_s19 }
  0xcb   : > { %v517_v6 = vsel %vm515_vm4, %v5110_v26, %v504_v5  ;;  %v518_v7 = vsel %vm515_vm4, %v504_v5, %v506_v63 }
  0xcc   : > { %532 = vst [vmem:[#allocation2 + $0x48] sm:$0xf0] %v517_v6  ;;  %v5182_v8 = vpop.permute.xlu2 %626 }
  0xcd   : > { %533 = vst [vmem:[#allocation2 + $0x50] sm:$0xf0] %v518_v7  ;;  %884 = vrot.lane.b32.xlu1 %v874_v45, %s4905_s19  ;;  %v1016_v37 = vld.sshfl [vmem:[#allocation1 + $0x8] sm:$0xff pattern:$0x75316420] }
  0xce   : > { %v1015_v38 = vld.sshfl [vmem:[#allocation1] sm:$0xff pattern:$0x75316420]  ;;  %v1022_v1 = vld.sshfl [vmem:[#allocation1 + $0x38] sm:$0xff pattern:$0x75316420] }
  0xcf   : > { %v512_v9 = vpop.permute.xlu1 %511  ;;  %1023 = vst [vmem:[#allocation1 + $0x1] ss:$2 sm:$0xff] %v1001_v40 }
  0xd0   : > { %830 = vrot.lane.b32.xlu0 %v5127_v35, %s4904_s18  ;;  %v522_v12 = vsel %vm515_vm4, %v512_v9, %v514_v41 }
  0xd1   : > { %537 = vst [vmem:[#allocation2 + $0x70] sm:$0xf0] %v522_v12 }
  0xd2   : > { %v510_v16 = vpop.permute.xlu0 %509  ;;  %892 = vrot.lane.b32.xlu2 %v878_v53, %s4905_s19 }
  0xd3   : > { %v520_v17 = vsel %vm515_vm4, %v5124_v33, %v510_v16  ;;  %v521_v18 = vsel %vm515_vm4, %v510_v16, %v512_v9 }
  0xd4   : > { %535 = vst [vmem:[#allocation2 + $0x60] sm:$0xf0] %v520_v17  ;;  %v5196_v19 = vpop.permute.xlu2 %632 }
  0xd5   : > { %536 = vst [vmem:[#allocation2 + $0x68] sm:$0xf0] %v521_v18  ;;  %890 = vrot.lane.b32.xlu1 %v877_v49, %s4905_s19 }
  0xd6   : > { %v5247_v50 = vld.sshfl [vmem:[#allocation1] sm:$0xff pattern:$0x75316420] }
  0xd7   : > { %v565_v22 = vpop.permute.xlu1 %564  ;;  %1078 = vst [vmem:[#allocation1] ss:$2 sm:$0xff] %v4994_v2 }
  0xd8   : > { %888 = vrot.lane.b32.xlu0 %v5143_v46, %s4905_s19  ;;  %v580_v23 = vsel %vm578_vm5, %v565_v22, %v5151_v52  ;;  %v1019_v46 = vld.sshfl [vmem:[#allocation1 + $0x20] sm:$0xff pattern:$0x75316420] }
  0xd9   : > { %595 = vst [vmem:[#allocation2 + $0x88] sm:$0xf] %v580_v23 }
  0xda   : > { %v563_v26 = vpop.permute.xlu0 %562  ;;  %898 = vrot.lane.b32.xlu2 %v881_v60, %s4905_s19  ;;  %1082 = vst [vmem:[#allocation1 + $0x20] ss:$2 sm:$0xff] %v4988_v0 }
  0xdb   : > { %v579_v28 = vsel %vm578_vm5, %v563_v26, %v565_v22 }
  0xdc   : > { %594 = vst [vmem:[#allocation2 + $0x80] sm:$0xf] %v579_v28  ;;  %v5212_v29 = vpop.permute.xlu2 %638 }
  0xdd   : > { %896 = vrot.lane.b32.xlu1 %v880_v62, %s4905_s19 }
  0xde   : > { %v1086_v62 = vld.sshfl [vmem:[#allocation1 + $0x8] sm:$0xff pattern:$0x75316420]  ;;  %v1085_v63 = vld.sshfl [vmem:[#allocation1] sm:$0xff pattern:$0x75316420] }
  0xdf   : > { %v571_v30 = vpop.permute.xlu1 %570  ;;  %1093 = vst [vmem:[#allocation1] ss:$2 sm:$0xff] %v1072_v4 }
  0xe0   : > { %894 = vrot.lane.b32.xlu0 %v5155_v54, %s4905_s19  ;;  %v583_v31 = vsel %vm578_vm5, %v571_v30, %v5169_v61 }
  0xe1   : > { %598 = vst [vmem:[#allocation2 + $0xa0] sm:$0xf] %v583_v31  ;;  %v1089_v18 = vld.sshfl [vmem:[#allocation1 + $0x20] sm:$0xff pattern:$0x75316420] }
  0xe2   : > { %v569_v32 = vpop.permute.xlu0 %568  ;;  %956 = vrot.lane.b32.xlu2 %v945_v10, %s4906_s20  ;;  %v1090_v22 = vld.sshfl [vmem:[#allocation1 + $0x28] sm:$0xff pattern:$0x75316420] }
  0xe3   : > { %v581_v33 = vsel %vm578_vm5, %v5151_v52, %v569_v32  ;;  %v582_v34 = vsel %vm578_vm5, %v569_v32, %v571_v30  ;;  %v1021_v52 = vld.sshfl [vmem:[#allocation1 + $0x30] sm:$0xff pattern:$0x75316420] }
  0xe4   : > { %596 = vst [vmem:[#allocation2 + $0x90] sm:$0xf] %v581_v33  ;;  %v5223_v35 = vpop.permute.xlu2 %691 }
  0xe5   : > { %597 = vst [vmem:[#allocation2 + $0x98] sm:$0xf] %v582_v34  ;;  %954 = vrot.lane.b32.xlu1 %v944_v13, %s4906_s20  ;;  %v1142_v34 = vld [vmem:[%s4985_s10 + $0x20] sm:$0xf] }
  0xe6   : > { %1084 = vst [vmem:[#allocation1 + $0x30] ss:$2 sm:$0xff] %v4998_v3  ;;  %v5284_v10 = vld.sshfl [vmem:[#allocation1] sm:$0xff pattern:$0x75316420] }
  0xe7   : > { %v577_v36 = vpop.permute.xlu1 %576  ;;  %1149 = vst [vmem:[#allocation1 + $0x1] ss:$2 sm:$0xff] %v4994_v2  ;;  %v5298_v2 = vld [vmem:[%s4985_s10 + $0x8] sm:$0xff] }
  0xe8   : > { %900 = vrot.lane.b32.xlu0 %v5162_v57, %s4905_s19  ;;  %601 = vst.msk [vmem:[#allocation2 + $0xb8] sm:$0xf] %vm345_vm1, %v577_v36 }
  0xea   : > { %v575_v41 = vpop.permute.xlu0 %574  ;;  %962 = vrot.lane.b32.xlu2 %v948_v20, %s4906_s20  ;;  %v1088_v20 = vld.sshfl [vmem:[#allocation1 + $0x18] sm:$0xff pattern:$0x75316420] }
  0xeb   : > { %v584_v43 = vsel %vm578_vm5, %v5169_v61, %v575_v41  ;;  %v585_v44 = vsel %vm578_vm5, %v575_v41, %v577_v36 }
  0xec   : > { %599 = vst [vmem:[#allocation2 + $0xa8] sm:$0xf] %v584_v43  ;;  %v5237_v45 = vpop.permute.xlu2 %697 }
  0xed   : > { %600 = vst [vmem:[#allocation2 + $0xb0] sm:$0xf] %v585_v44  ;;  %960 = vrot.lane.b32.xlu1 %v947_v11, %s4906_s20  ;;  %v1087_v11 = vld.sshfl [vmem:[#allocation1 + $0x10] sm:$0xff pattern:$0x75316420] }
  0xee   : > { %1151 = vst [vmem:[#allocation1 + $0x11] ss:$2 sm:$0xff] %v5298_v2  ;;  %v1092_v28 = vld.sshfl [vmem:[#allocation1 + $0x38] sm:$0xff pattern:$0x75316420] }
  0xef   : > { %v631_v48 = vpop.permute.xlu1 %630  ;;  %v1091_v30 = vld.sshfl [vmem:[#allocation1 + $0x30] sm:$0xff pattern:$0x75316420]  ;;  %v1157_v32 = vld.sshfl [vmem:[#allocation1 + $0x8] sm:$0xff pattern:$0x75316420] }
  0xf0   : > { %958 = vrot.lane.b32.xlu0 %v5188_v14, %s4906_s20  ;;  %v645_v49 = vsel %vm642_vm6, %v631_v48, %v5196_v19  ;;  %v1156_v33 = vld.sshfl [vmem:[#allocation1] sm:$0xff pattern:$0x75316420] }
  0xf1   : > { %660 = vst [vmem:[#allocation2 + $0x90] sm:$0xf0] %v645_v49 }
  0xf2   : > { %v629_v51 = vpop.permute.xlu0 %628  ;;  %968 = vrot.lane.b32.xlu2 %v951_v24, %s4906_s20  ;;  %1164 = vst [vmem:[#allocation1 + $0x1] ss:$2 sm:$0xff] %v1142_v34 }
  0xf3   : > { %v643_v0 = vsel %vm642_vm6, %v5182_v8, %v629_v51  ;;  %v644_v53 = vsel %vm642_vm6, %v629_v51, %v631_v48  ;;  %v5340_v48 = vld [vmem:[%s4985_s10] sm:$0xff] }
  0xf4   : > { %658 = vst [vmem:[#allocation2 + $0x80] sm:$0xf0] %v643_v0  ;;  %v704_v54 = vpop.permute.xlu2 %703 }
  0xf5   : > { %659 = vst [vmem:[#allocation2 + $0x88] sm:$0xf0] %v644_v53  ;;  %966 = vrot.lane.b32.xlu1 %v950_v27, %s4906_s20  ;;  %v5322_v36 = vld.sshfl [vmem:[#allocation1 + $0x10] sm:$0xff pattern:$0x75316420] }
  0xf6   : > { %728 = vst.msk [vmem:[#allocation2 + $0xf8] sm:$0xf] %vm345_vm1, %v704_v54 }
  0xf7   : > { %v637_v55 = vpop.permute.xlu1 %636 }
  0xf8   : > { %964 = vrot.lane.b32.xlu0 %v5199_v21, %s4906_s20  ;;  %v648_v56 = vsel %vm642_vm6, %v637_v55, %v5212_v29 }
  0xf9   : > { %663 = vst [vmem:[#allocation2 + $0xa8] sm:$0xf0] %v648_v56 }
  0xfa   : > { %v635_v57 = vpop.permute.xlu0 %634  ;;  %1027 = vrot.lane.b32.xlu2 %v1016_v37, %s4907_s21 }
  0xfb   : > { %v646_v3 = vsel %vm642_vm6, %v5196_v19, %v635_v57  ;;  %v647_v58 = vsel %vm642_vm6, %v635_v57, %v637_v55  ;;  %v5301_v19 = vld [vmem:[%s4985_s10 + $0x10] sm:$0xff] }
  0xfc   : > { %661 = vst [vmem:[#allocation2 + $0x98] sm:$0xf0] %v646_v3  ;;  %v5265_v59 = vpop.permute.xlu2 %757 }
  0xfd   : > { %662 = vst [vmem:[#allocation2 + $0xa0] sm:$0xf0] %v647_v58  ;;  %1025 = vrot.lane.b32.xlu1 %v1015_v38, %s4907_s21  ;;  %v1213_v58 = vld [vmem:[%s4985_s10 + $0x20] sm:$0xf] }
  0xfe   : > { %1153 = vst [vmem:[#allocation1 + $0x21] ss:$2 sm:$0xff] %v5301_v19 }
  0xff   : > { %v690_v60 = vpop.permute.xlu1 %689 }
 0x100   : > { %970 = vrot.lane.b32.xlu0 %v5206_v25, %s4906_s20  ;;  %v706_v61 = vsel %vm705_vm7, %v690_v60, %v5223_v35 }
 0x101   : > { %721 = vst [vmem:[#allocation2 + $0xc0] sm:$0xf] %v706_v61 }
 0x102   : > { %v641_v5 = vpop.permute.xlu0 %640  ;;  %1033 = vrot.lane.b32.xlu2 %v1019_v46, %s4907_s21 }
 0x103   : > { %v649_v6 = vsel %vm642_vm6, %v5212_v29, %v641_v5  ;;  %665 = vst.msk [vmem:[#allocation2 + $0xb8] sm:$0xf0] %vm410_vm2, %v641_v5  ;;  %v5317_v29 = vld [vmem:[%s4985_s10 + $0x18] sm:$0xff] }
 0x104   : > { %664 = vst [vmem:[#allocation2 + $0xb0] sm:$0xf0] %v649_v6  ;;  %v5277_v7 = vpop.permute.xlu2 %763 }
 0x105   : > { %1031 = vrot.lane.b32.xlu1 %v1018_v42, %s4907_s21  ;;  %1155 = vst [vmem:[#allocation1 + $0x31] ss:$2 sm:$0xff] %v5317_v29  ;;  %v1160_v38 = vld.sshfl [vmem:[#allocation1 + $0x20] sm:$0xff pattern:$0x75316420] }
 0x106   : > { %v5328_v40 = vld.sshfl [vmem:[#allocation1 + $0x28] sm:$0xff pattern:$0x75316420] }
 0x107   : > { %v696_v8 = vpop.permute.xlu1 %695  ;;  %1223 = vst [vmem:[#allocation1 + $0x20] ss:$2 sm:$0xff] %v5301_v19 }
 0x108   : > { %1029 = vrot.lane.b32.xlu0 %v5229_v39, %s4907_s21  ;;  %v709_v9 = vsel %vm705_vm7, %v696_v8, %v5237_v45  ;;  %v1159_v39 = vld.sshfl [vmem:[#allocation1 + $0x18] sm:$0xff pattern:$0x75316420] }
 0x109   : > { %724 = vst [vmem:[#allocation2 + $0xd8] sm:$0xf] %v709_v9 }
 0x10a   : > { %v694_v12 = vpop.permute.xlu0 %693  ;;  %1039 = vrot.lane.b32.xlu2 %v1022_v1, %s4907_s21  ;;  %1221 = vst [vmem:[#allocation1 + $0x10] ss:$2 sm:$0xff] %v5298_v2  ;;  %v5345_v1 = vld.sshfl [vmem:[#allocation1] sm:$0xff pattern:$0x75316420] }
 0x10b   : > { %v707_v13 = vsel %vm705_vm7, %v5223_v35, %v694_v12  ;;  %v708_v14 = vsel %vm705_vm7, %v694_v12, %v696_v8  ;;  %1219 = vst [vmem:[#allocation1] ss:$2 sm:$0xff] %v5340_v48 }
 0x10c   : > { %722 = vst [vmem:[#allocation2 + $0xc8] sm:$0xf] %v707_v13  ;;  %v5291_v15 = vpop.permute.xlu2 %816  ;;  %v1163_v44 = vld.sshfl [vmem:[#allocation1 + $0x38] sm:$0xff pattern:$0x75316420] }
 0x10d   : > { %723 = vst [vmem:[#allocation2 + $0xd0] sm:$0xf] %v708_v14  ;;  %1037 = vrot.lane.b32.xlu1 %v1021_v52, %s4907_s21 }
 0x10e   : > { %v1230_v4 = vld.sshfl [vmem:[#allocation1 + $0x20] sm:$0xff pattern:$0x75316420]  ;;  %v5373_v5 = vld.sshfl [vmem:[#allocation1 + $0x28] sm:$0xff pattern:$0x75316420] }
 0x10f   : > { %v702_v16 = vpop.permute.xlu1 %701  ;;  %1294 = vst [vmem:[#allocation1 + $0x21] ss:$2 sm:$0xff] %v5301_v19 }
 0x110   : > { %1035 = vrot.lane.b32.xlu0 %v5240_v47, %s4907_s21  ;;  %v712_v17 = vsel %vm705_vm7, %v702_v16, %v704_v54 }
 0x111   : > { %727 = vst [vmem:[#allocation2 + $0xf0] sm:$0xf] %v712_v17  ;;  %v5362_v3 = vld.sshfl [vmem:[#allocation1 + $0x10] sm:$0xff pattern:$0x75316420] }
 0x112   : > { %v700_v21 = vpop.permute.xlu0 %699  ;;  %1097 = vrot.lane.b32.xlu2 %v1086_v62, %s4908_s22  ;;  %v1227_v55 = vld.sshfl [vmem:[#allocation1 + $0x8] sm:$0xff pattern:$0x75316420]  ;;  %v1226_v57 = vld.sshfl [vmem:[#allocation1] sm:$0xff pattern:$0x75316420] }
 0x113   : > { %v710_v23 = vsel %vm705_vm7, %v5237_v45, %v700_v21  ;;  %v711_v24 = vsel %vm705_vm7, %v700_v21, %v702_v16  ;;  %v1162_v45 = vld.sshfl [vmem:[#allocation1 + $0x30] sm:$0xff pattern:$0x75316420]  ;;  %v1229_v60 = vld.sshfl [vmem:[#allocation1 + $0x18] sm:$0xff pattern:$0x75316420] }
 0x114   : > { %725 = vst [vmem:[#allocation2 + $0xe0] sm:$0xf] %v710_v23  ;;  %v5309_v25 = vpop.permute.xlu2 %822 }
 0x115   : > { %726 = vst [vmem:[#allocation2 + $0xe8] sm:$0xf] %v711_v24  ;;  %1095 = vrot.lane.b32.xlu1 %v1085_v63, %s4908_s22 }
 0x116   : > { %1225 = vst [vmem:[#allocation1 + $0x30] ss:$2 sm:$0xff] %v5317_v29  ;;  %v5417_v34 = vld.sshfl [vmem:[#allocation1 + $0x28] sm:$0xff pattern:$0x75316420] }
 0x117   : > { %v756_v26 = vpop.permute.xlu1 %755  ;;  %1234 = vst [vmem:[#allocation1] ss:$2 sm:$0xff] %v1213_v58 }
 0x118   : > { %1041 = vrot.lane.b32.xlu0 %v5247_v50, %s4907_s21  ;;  %v771_v27 = vsel %vm769_vm8, %v756_v26, %v5265_v59  ;;  %1292 = vst [vmem:[#allocation1 + $0x11] ss:$2 sm:$0xff] %v5298_v2 }
 0x119   : > { %786 = vst [vmem:[#allocation2 + $0xc8] sm:$0xf0] %v771_v27 }
 0x11a   : > { %v754_v31 = vpop.permute.xlu0 %753  ;;  %1103 = vrot.lane.b32.xlu2 %v1089_v18, %s4908_s22 }
 0x11b   : > { %v770_v35 = vsel %vm769_vm8, %v754_v31, %v756_v26  ;;  %v1283_v26 = vld [vmem:[%s4985_s10 + $0x20] sm:$0xf] }
 0x11c   : > { %785 = vst [vmem:[#allocation2 + $0xc0] sm:$0xf0] %v770_v35  ;;  %v5325_v37 = vpop.permute.xlu2 %828 }
 0x11d   : > { %1101 = vrot.lane.b32.xlu1 %v1088_v20, %s4908_s22  ;;  %v1233_v8 = vld.sshfl [vmem:[#allocation1 + $0x38] sm:$0xff pattern:$0x75316420]  ;;  %v1232_v12 = vld.sshfl [vmem:[#allocation1 + $0x30] sm:$0xff pattern:$0x75316420] }
 0x11e   : > { %v5380_v9 = vld.sshfl [vmem:[#allocation1] sm:$0xff pattern:$0x75316420]  ;;  %1296 = vst [vmem:[#allocation1 + $0x31] ss:$2 sm:$0xff] %v5317_v29 }
 0x11f   : > { %v762_v41 = vpop.permute.xlu1 %761  ;;  %1290 = vst [vmem:[#allocation1 + $0x1] ss:$2 sm:$0xff] %v5340_v48 }
 0x120   : > { %1099 = vrot.lane.b32.xlu0 %v1087_v11, %s4908_s22  ;;  %v774_v42 = vsel %vm769_vm8, %v762_v41, %v5277_v7 }
 0x121   : > { %789 = vst [vmem:[#allocation2 + $0xe0] sm:$0xf0] %v774_v42 }
 0x122   : > { %v760_v43 = vpop.permute.xlu0 %759  ;;  %1109 = vrot.lane.b32.xlu2 %v1092_v28, %s4908_s22  ;;  %v1300_v28 = vld.sshfl [vmem:[#allocation1 + $0x18] sm:$0xff pattern:$0x75316420] }
 0x123   : > { %v772_v46 = vsel %vm769_vm8, %v5265_v59, %v760_v43  ;;  %v773_v47 = vsel %vm769_vm8, %v760_v43, %v762_v41 }
 0x124   : > { %787 = vst [vmem:[#allocation2 + $0xd0] sm:$0xf0] %v772_v46  ;;  %v5343_v49 = vpop.permute.xlu2 %886 }
 0x125   : > { %788 = vst [vmem:[#allocation2 + $0xd8] sm:$0xf0] %v773_v47  ;;  %1107 = vrot.lane.b32.xlu1 %v1091_v30, %s4908_s22 }
 0x126   : > { %v1297_v24 = vld.sshfl [vmem:[#allocation1] sm:$0xff pattern:$0x75316420] }
 0x127   : > { %v768_v50 = vpop.permute.xlu1 %767 }
 0x128   : > { %1105 = vrot.lane.b32.xlu0 %v1090_v22, %s4908_s22  ;;  %792 = vst.msk [vmem:[#allocation2 + $0xf8] sm:$0xf0] %vm410_vm2, %v768_v50  ;;  %v1298_v22 = vld.sshfl [vmem:[#allocation1 + $0x8] sm:$0xff pattern:$0x75316420] }
 0x129   : > { %1305 = vst [vmem:[#allocation1 + $0x1] ss:$2 sm:$0xff] %v1283_v26 }
 0x12a   : > { %v766_v51 = vpop.permute.xlu0 %765  ;;  %1168 = vrot.lane.b32.xlu2 %v1157_v32, %s4909_s23 }
 0x12b   : > { %v775_v52 = vsel %vm769_vm8, %v5277_v7, %v766_v51  ;;  %v776_v0 = vsel %vm769_vm8, %v766_v51, %v768_v50 }
 0x12c   : > { %790 = vst [vmem:[#allocation2 + $0xe8] sm:$0xf0] %v775_v52  ;;  %v5355_v53 = vpop.permute.xlu2 %892 }
 0x12d   : > { %791 = vst [vmem:[#allocation2 + $0xf0] sm:$0xf0] %v776_v0  ;;  %1166 = vrot.lane.b32.xlu1 %v1156_v33, %s4909_s23  ;;  %v1301_v33 = vld.sshfl [vmem:[#allocation1 + $0x20] sm:$0xff pattern:$0x75316420] }
 0x12e   : > { %1364 = vst [vmem:[#allocation1 + $0x20] ss:$2 sm:$0xff] %v5301_v19 }
 0x12f   : > { %v821_v54 = vpop.permute.xlu1 %820 }
 0x130   : > { %1111 = vrot.lane.b32.xlu0 %v5284_v10, %s4908_s22  ;;  %v835_v56 = vsel %vm832_vm9, %v821_v54, %v5309_v25 }
 0x131   : > { %850 = vst [vmem:[#allocation2 + $0x110] sm:$0xf] %v835_v56 }
 0x132   : > { %v819_v59 = vpop.permute.xlu0 %818  ;;  %1174 = vrot.lane.b32.xlu2 %v1160_v38, %s4909_s23  ;;  %v5424_v38 = vld.sshfl [vmem:[#allocation1] sm:$0xff pattern:$0x75316420] }
 0x133   : > { %v833_v61 = vsel %vm832_vm9, %v5291_v15, %v819_v59  ;;  %v834_v62 = vsel %vm832_vm9, %v819_v59, %v821_v54  ;;  %1360 = vst [vmem:[#allocation1] ss:$2 sm:$0xff] %v5340_v48 }
 0x134   : > { %848 = vst [vmem:[#allocation2 + $0x100] sm:$0xf] %v833_v61  ;;  %v5370_v63 = vpop.permute.xlu2 %898 }
 0x135   : > { %849 = vst [vmem:[#allocation2 + $0x108] sm:$0xf] %v834_v62  ;;  %1172 = vrot.lane.b32.xlu1 %v1159_v39, %s4909_s23  ;;  %v1371_v58 = vld.sshfl [vmem:[#allocation1 + $0x20] sm:$0xff pattern:$0x75316420] }
 0x136   : > { %v5459_v59 = vld.sshfl [vmem:[#allocation1 + $0x28] sm:$0xff pattern:$0x75316420] }
 0x137   : > { %v827_v6 = vpop.permute.xlu1 %826  ;;  %1435 = vst [vmem:[#allocation1 + $0x21] ss:$2 sm:$0xff] %v5301_v19 }
 0x138   : > { %1170 = vrot.lane.b32.xlu0 %v5322_v36, %s4909_s23  ;;  %v838_v7 = vsel %vm832_vm9, %v827_v6, %v5325_v37 }
 0x139   : > { %853 = vst [vmem:[#allocation2 + $0x128] sm:$0xf] %v838_v7 }
 0x13a   : > { %v825_v10 = vpop.permute.xlu0 %824  ;;  %1180 = vrot.lane.b32.xlu2 %v1163_v44, %s4909_s23  ;;  %v1368_v50 = vld.sshfl [vmem:[#allocation1 + $0x8] sm:$0xff pattern:$0x75316420]  ;;  %v1367_v52 = vld.sshfl [vmem:[#allocation1] sm:$0xff pattern:$0x75316420] }
 0x13b   : > { %v836_v13 = vsel %vm832_vm9, %v5309_v25, %v825_v10  ;;  %v837_v14 = vsel %vm832_vm9, %v825_v10, %v827_v6  ;;  %v5406_v25 = vld.sshfl [vmem:[#allocation1 + $0x10] sm:$0xff pattern:$0x75316420] }
 0x13c   : > { %851 = vst [vmem:[#allocation2 + $0x118] sm:$0xf] %v836_v13  ;;  %v5388_v15 = vpop.permute.xlu2 %956 }
 0x13d   : > { %852 = vst [vmem:[#allocation2 + $0x120] sm:$0xf] %v837_v14  ;;  %1178 = vrot.lane.b32.xlu1 %v1162_v45, %s4909_s23 }
 0x13e   : > { %1362 = vst [vmem:[#allocation1 + $0x10] ss:$2 sm:$0xff] %v5298_v2 }
 0x13f   : > { %v885_v16 = vpop.permute.xlu1 %884 }
 0x140   : > { %1176 = vrot.lane.b32.xlu0 %v5328_v40, %s4909_s23  ;;  %v903_v11 = vsel %vm902_vm10, %v885_v16, %v5343_v49  ;;  %v1303_v40 = vld.sshfl [vmem:[#allocation1 + $0x30] sm:$0xff pattern:$0x75316420] }
 0x141   : > { %919 = vst [vmem:[#allocation2 + $0x100] sm:$0xf0] %v903_v11 }
 0x142   : > { %v831_v17 = vpop.permute.xlu0 %830  ;;  %1238 = vrot.lane.b32.xlu2 %v1227_v55, %s4910_s24 }
 0x143   : > { %v839_v18 = vsel %vm832_vm9, %v5325_v37, %v831_v17  ;;  %855 = vst.msk [vmem:[#allocation2 + $0x138] sm:$0xf] %vm345_vm1, %v831_v17  ;;  %v1304_v37 = vld.sshfl [vmem:[#allocation1 + $0x38] sm:$0xff pattern:$0x75316420] }
 0x144   : > { %854 = vst [vmem:[#allocation2 + $0x130] sm:$0xf] %v839_v18  ;;  %v5399_v20 = vpop.permute.xlu2 %962 }
 0x145   : > { %1236 = vrot.lane.b32.xlu1 %v1226_v57, %s4910_s24  ;;  %1366 = vst [vmem:[#allocation1 + $0x30] ss:$2 sm:$0xff] %v5317_v29  ;;  %v1369_v0 = vld.sshfl [vmem:[#allocation1 + $0x10] sm:$0xff pattern:$0x75316420] }
 0x146   : > { %v1370_v55 = vld.sshfl [vmem:[#allocation1 + $0x18] sm:$0xff pattern:$0x75316420] }
 0x147   : > { %v891_v21 = vpop.permute.xlu1 %890  ;;  %1433 = vst [vmem:[#allocation1 + $0x11] ss:$2 sm:$0xff] %v5298_v2 }
 0x148   : > { %1182 = vrot.lane.b32.xlu0 %v5345_v1, %s4909_s23  ;;  %v906_v23 = vsel %vm902_vm10, %v891_v21, %v5355_v53 }
 0x149   : > { %922 = vst [vmem:[#allocation2 + $0x118] sm:$0xf0] %v906_v23  ;;  %v5506_v23 = vld [vmem:[%s4985_s10 + $0x4] sm:$0xff] }
 0x14a   : > { %v889_v27 = vpop.permute.xlu0 %888  ;;  %1244 = vrot.lane.b32.xlu2 %v1230_v4, %s4910_s24 }
 0x14b   : > { %v904_v30 = vsel %vm902_vm10, %v5343_v49, %v889_v27  ;;  %v905_v31 = vsel %vm902_vm10, %v889_v27, %v891_v21 }
 0x14c   : > { %920 = vst [vmem:[#allocation2 + $0x108] sm:$0xf0] %v904_v30  ;;  %v5414_v32 = vpop.permute.xlu2 %968  ;;  %v1374_v62 = vld.sshfl [vmem:[#allocation1 + $0x38] sm:$0xff pattern:$0x75316420] }
 0x14d   : > { %921 = vst [vmem:[#allocation2 + $0x110] sm:$0xf0] %v905_v31  ;;  %1242 = vrot.lane.b32.xlu1 %v1229_v60, %s4910_s24  ;;  %v1373_v4 = vld.sshfl [vmem:[#allocation1 + $0x30] sm:$0xff pattern:$0x75316420] }
 0x14e   : > { %1437 = vst [vmem:[#allocation1 + $0x31] ss:$2 sm:$0xff] %v5317_v29  ;;  %v1440_v30 = vld.sshfl [vmem:[#allocation1 + $0x10] sm:$0xff pattern:$0x75316420] }
 0x14f   : > { %v897_v35 = vpop.permute.xlu1 %896 }
 0x150   : > { %1240 = vrot.lane.b32.xlu0 %v5362_v3, %s4910_s24  ;;  %v909_v36 = vsel %vm902_vm10, %v897_v35, %v5370_v63 }
 0x151   : > { %925 = vst [vmem:[#allocation2 + $0x130] sm:$0xf0] %v909_v36 }
 0x152   : > { %v895_v39 = vpop.permute.xlu0 %894  ;;  %1250 = vrot.lane.b32.xlu2 %v1233_v8, %s4910_s24 }
 0x153   : > { %v907_v41 = vsel %vm902_vm10, %v5355_v53, %v895_v39  ;;  %v908_v42 = vsel %vm902_vm10, %v895_v39, %v897_v35  ;;  %v1354_v53 = vld [vmem:[%s4985_s10 + $0x20] sm:$0xf]  ;;  %v1441_v35 = vld.sshfl [vmem:[#allocation1 + $0x18] sm:$0xff pattern:$0x75316420] }
 0x154   : > { %923 = vst [vmem:[#allocation2 + $0x120] sm:$0xf0] %v907_v41  ;;  %v5432_v43 = vpop.permute.xlu2 %1027 }
 0x155   : > { %924 = vst [vmem:[#allocation2 + $0x128] sm:$0xf0] %v908_v42  ;;  %1248 = vrot.lane.b32.xlu1 %v1232_v12, %s4910_s24  ;;  %v5540_v42 = vld [vmem:[%s4985_s10 + $0x1c] sm:$0xff] }
 0x156   : > { %1375 = vst [vmem:[#allocation1] ss:$2 sm:$0xff] %v1354_v53 }
 0x157   : > { %v955_v44 = vpop.permute.xlu1 %954 }
 0x158   : > { %1246 = vrot.lane.b32.xlu0 %v5373_v5, %s4910_s24  ;;  %v973_v45 = vsel %vm7664_vm11, %v955_v44, %v5388_v15  ;;  %v1445_v44 = vld.sshfl [vmem:[#allocation1 + $0x38] sm:$0xff pattern:$0x75316420] }
 0x159   : > { %989 = vst [vmem:[#allocation2 + $0x140] sm:$0xf] %v973_v45  ;;  %v1444_v45 = vld.sshfl [vmem:[#allocation1 + $0x30] sm:$0xff pattern:$0x75316420] }
 0x15a   : > { %v901_v46 = vpop.permute.xlu0 %900  ;;  %1309 = vrot.lane.b32.xlu2 %v1298_v22, %s4911_s25  ;;  %1507 = vst [vmem:[#allocation1 + $0x30] ss:$2 sm:$0xff] %v5540_v42 }
 0x15b   : > { %v910_v47 = vsel %vm902_vm10, %v5370_v63, %v901_v46 }
 0x15c   : > { %926 = vst.msk [vmem:[#allocation2 + $0x138] sm:$0xf0] %vm410_vm2, %v910_v47  ;;  %v5443_v49 = vpop.permute.xlu2 %1033 }
 0x15d   : > { %1307 = vrot.lane.b32.xlu1 %v1297_v24, %s4911_s25  ;;  %v5466_v2 = vld.sshfl [vmem:[#allocation1] sm:$0xff pattern:$0x75316420] }
 0x15e   : > { %1431 = vst [vmem:[#allocation1 + $0x1] ss:$2 sm:$0xff] %v5340_v48 }
 0x15f   : > { %v961_v1 = vpop.permute.xlu1 %960 }
 0x160   : > { %1252 = vrot.lane.b32.xlu0 %v5380_v9, %s4910_s24  ;;  %v976_v51 = vsel %vm7664_vm11, %v961_v1, %v5399_v20 }
 0x161   : > { %992 = vst [vmem:[#allocation2 + $0x158] sm:$0xf] %v976_v51 }
 0x162   : > { %v959_v54 = vpop.permute.xlu0 %958  ;;  %1315 = vrot.lane.b32.xlu2 %v1301_v33, %s4911_s25  ;;  %v5521_v33 = vld [vmem:[%s4985_s10 + $0xc] sm:$0xff] }
 0x163   : > { %v974_v56 = vsel %vm7664_vm11, %v5388_v15, %v959_v54  ;;  %v975_v57 = vsel %vm7664_vm11, %v959_v54, %v961_v1  ;;  %v1424_v15 = vld [vmem:[%s4985_s10 + $0x20] sm:$0xf]  ;;  %1503 = vst [vmem:[#allocation1 + $0x10] ss:$2 sm:$0xff] %v5521_v33 }
 0x164   : > { %990 = vst [vmem:[#allocation2 + $0x148] sm:$0xf] %v974_v56  ;;  %v5456_v3 = vpop.permute.xlu2 %1039 }
 0x165   : > { %991 = vst [vmem:[#allocation2 + $0x150] sm:$0xf] %v975_v57  ;;  %1313 = vrot.lane.b32.xlu1 %v1300_v28, %s4911_s25  ;;  %v1439_v13 = vld.sshfl [vmem:[#allocation1 + $0x8] sm:$0xff pattern:$0x75316420] }
 0x166   : > { %v1438_v14 = vld.sshfl [vmem:[#allocation1] sm:$0xff pattern:$0x75316420] }
 0x167   : > { %v967_v60 = vpop.permute.xlu1 %966  ;;  %1446 = vst [vmem:[#allocation1 + $0x1] ss:$2 sm:$0xff] %v1424_v15 }
 0x168   : > { %1311 = vrot.lane.b32.xlu0 %v5406_v25, %s4911_s25  ;;  %v979_v61 = vsel %vm7664_vm11, %v967_v60, %v5414_v32 }
 0x169   : > { %995 = vst [vmem:[#allocation2 + $0x170] sm:$0xf] %v979_v61 }
 0x16a   : > { %v965_v63 = vpop.permute.xlu0 %964  ;;  %1321 = vrot.lane.b32.xlu2 %v1304_v37, %s4911_s25  ;;  %v1443_v37 = vld.sshfl [vmem:[#allocation1 + $0x28] sm:$0xff pattern:$0x75316420]  ;;  %v1511_v53 = vld.sshfl [vmem:[#allocation1 + $0x18] sm:$0xff pattern:$0x75316420] }
 0x16b   : > { %v977_v19 = vsel %vm7664_vm11, %v5399_v20, %v965_v63  ;;  %v978_v5 = vsel %vm7664_vm11, %v965_v63, %v967_v60 }
 0x16c   : > { %993 = vst [vmem:[#allocation2 + $0x160] sm:$0xf] %v977_v19  ;;  %v5474_v6 = vpop.permute.xlu2 %1097 }
 0x16d   : > { %994 = vst [vmem:[#allocation2 + $0x168] sm:$0xf] %v978_v5  ;;  %1319 = vrot.lane.b32.xlu1 %v1303_v40, %s4911_s25  ;;  %v1565_v5 = vld [vmem:[%s4985_s10 + $0x24] sm:$0xf] }
 0x16e   : > { %v5503_v22 = vld.sshfl [vmem:[#allocation1] sm:$0xff pattern:$0x75316420] }
 0x16f   : > { %v1026_v7 = vpop.permute.xlu1 %1025  ;;  %1501 = vst [vmem:[#allocation1] ss:$2 sm:$0xff] %v5506_v23 }
 0x170   : > { %1317 = vrot.lane.b32.xlu0 %v5417_v34, %s4911_s25  ;;  %v1044_v48 = vsel %vm7663_vm12, %v1026_v7, %v5432_v43  ;;  %v5524_v34 = vld [vmem:[%s4985_s10 + $0x14] sm:$0xff] }
 0x171   : > { %1060 = vst [vmem:[#allocation2 + $0x140] sm:$0xf0] %v1044_v48 }
 0x172   : > { %v971_v8 = vpop.permute.xlu0 %970  ;;  %1379 = vrot.lane.b32.xlu2 %v1368_v50, %s7653_s26  ;;  %v1495_v50 = vld [vmem:[%s4985_s10 + $0x24] sm:$0xf] }
 0x173   : > { %v980_v29 = vsel %vm7664_vm11, %v5414_v32, %v971_v8  ;;  %v1442_v32 = vld.sshfl [vmem:[#allocation1 + $0x20] sm:$0xff pattern:$0x75316420]  ;;  %vm7674_vm11 = vcmask 277504  }
 0x174   : > { %996 = vst.msk [vmem:[#allocation2 + $0x178] sm:$0xf] %vm345_vm1, %v980_v29  ;;  %v5485_v9 = vpop.permute.xlu2 %1103 }
 0x175   : > { %1377 = vrot.lane.b32.xlu1 %v1367_v52, %s7653_s26  ;;  %1505 = vst [vmem:[#allocation1 + $0x20] ss:$2 sm:$0xff] %v5524_v34  ;;  %v1510_v52 = vld.sshfl [vmem:[#allocation1 + $0x10] sm:$0xff pattern:$0x75316420] }
 0x176   : > { %v1508_v1 = vld.sshfl [vmem:[#allocation1] sm:$0xff pattern:$0x75316420]  ;;  %1574 = vst [vmem:[#allocation1 + $0x11] ss:$2 sm:$0xff] %v5521_v33 }
 0x177   : > { %v1032_v10 = vpop.permute.xlu1 %1031 }
 0x178   : > { %1323 = vrot.lane.b32.xlu0 %v5424_v38, %s4911_s25  ;;  %v1047_v12 = vsel %vm7663_vm12, %v1032_v10, %v5443_v49 }
 0x179   : > { %1063 = vst [vmem:[#allocation2 + $0x158] sm:$0xf0] %v1047_v12 }
 0x17a   : > { %v1030_v16 = vpop.permute.xlu0 %1029  ;;  %1385 = vrot.lane.b32.xlu2 %v1371_v58, %s7653_s26  ;;  %v1514_v58 = vld.sshfl [vmem:[#allocation1 + $0x30] sm:$0xff pattern:$0x75316420] }
 0x17b   : > { %v1045_v11 = vsel %vm7663_vm12, %v5432_v43, %v1030_v16  ;;  %v1046_v17 = vsel %vm7663_vm12, %v1030_v16, %v1032_v10 }
 0x17c   : > { %1061 = vst [vmem:[#allocation2 + $0x148] sm:$0xf0] %v1045_v11  ;;  %v5497_v18 = vpop.permute.xlu2 %1109 }
 0x17d   : > { %1062 = vst [vmem:[#allocation2 + $0x150] sm:$0xf0] %v1046_v17  ;;  %1383 = vrot.lane.b32.xlu1 %v1370_v55, %s7653_s26  ;;  %v5551_v55 = vld.sshfl [vmem:[#allocation1 + $0x28] sm:$0xff pattern:$0x75316420] }
 0x17e   : > { %v1582_v10 = vld.sshfl [vmem:[#allocation1 + $0x18] sm:$0xff pattern:$0x75316420] }
 0x17f   : > { %v1038_v20 = vpop.permute.xlu1 %1037 }
 0x180   : > { %1381 = vrot.lane.b32.xlu0 %v1369_v0, %s7653_s26  ;;  %v1050_v21 = vsel %vm7663_vm12, %v1038_v20, %v5456_v3  ;;  %v1512_v0 = vld.sshfl [vmem:[#allocation1 + $0x20] sm:$0xff pattern:$0x75316420] }
 0x181   : > { %1066 = vst [vmem:[#allocation2 + $0x170] sm:$0xf0] %v1050_v21 }
 0x182   : > { %v1036_v24 = vpop.permute.xlu0 %1035  ;;  %1391 = vrot.lane.b32.xlu2 %v1374_v62, %s7653_s26  ;;  %1576 = vst [vmem:[#allocation1 + $0x21] ss:$2 sm:$0xff] %v5524_v34 }
 0x183   : > { %v1048_v25 = vsel %vm7663_vm12, %v5443_v49, %v1036_v24  ;;  %v1049_v26 = vsel %vm7663_vm12, %v1036_v24, %v1038_v20  ;;  %v1509_v49 = vld.sshfl [vmem:[#allocation1 + $0x8] sm:$0xff pattern:$0x75316420] }
 0x184   : > { %1064 = vst [vmem:[#allocation2 + $0x160] sm:$0xf0] %v1048_v25  ;;  %v5513_v27 = vpop.permute.xlu2 %1168 }
 0x185   : > { %1065 = vst [vmem:[#allocation2 + $0x168] sm:$0xf0] %v1049_v26  ;;  %1389 = vrot.lane.b32.xlu1 %v1373_v4, %s7653_s26 }
 0x186   : > { %1516 = vst [vmem:[#allocation1] ss:$2 sm:$0xff] %v1495_v50 }
 0x187   : > { %v1096_v28 = vpop.permute.xlu1 %1095 }
 0x188   : > { %1387 = vrot.lane.b32.xlu0 %v5459_v59, %s7653_s26  ;;  %v1114_v31 = vsel %vm7661_vm13, %v1096_v28, %v5474_v6  ;;  %v1636_v28 = vld [vmem:[%s4985_s10 + $0x24] sm:$0xf] }
 0x189   : > { %1130 = vst [vmem:[#allocation2 + $0x180] sm:$0xf] %v1114_v31  ;;  %v1583_v16 = vld.sshfl [vmem:[#allocation1 + $0x20] sm:$0xff pattern:$0x75316420] }
 0x18a   : > { %v1042_v36 = vpop.permute.xlu0 %1041  ;;  %1450 = vrot.lane.b32.xlu2 %v1439_v13, %s7651_s29  ;;  %v5594_v11 = vld.sshfl [vmem:[#allocation1 + $0x28] sm:$0xff pattern:$0x75316420] }
 0x18b   : > { %v1051_v38 = vsel %vm7663_vm12, %v5456_v3, %v1042_v36  ;;  %v1515_v3 = vld.sshfl [vmem:[#allocation1 + $0x38] sm:$0xff pattern:$0x75316420]  ;;  %1646 = vst [vmem:[#allocation1 + $0x20] ss:$2 sm:$0xff] %v5524_v34  ;;  %vm7675_vm12 = vcmask 285696  }
 0x18c   : > { %1067 = vst.msk [vmem:[#allocation2 + $0x178] sm:$0xf0] %vm410_vm2, %v1051_v38  ;;  %v5532_v39 = vpop.permute.xlu2 %1174 }
 0x18d   : > { %1448 = vrot.lane.b32.xlu1 %v1438_v14, %s7651_s29  ;;  %1578 = vst [vmem:[#allocation1 + $0x31] ss:$2 sm:$0xff] %v5540_v42  ;;  %v5566_v62 = vld.sshfl [vmem:[#allocation1] sm:$0xff pattern:$0x75316420] }
 0x18e   : > { %1572 = vst [vmem:[#allocation1 + $0x1] ss:$2 sm:$0xff] %v5506_v23 }
 0x18f   : > { %v1102_v40 = vpop.permute.xlu1 %1101 }
 0x190   : > { %1393 = vrot.lane.b32.xlu0 %v5466_v2, %s7653_s26  ;;  %v1117_v41 = vsel %vm7661_vm13, %v1102_v40, %v5485_v9  ;;  %s7668_s26 = smov 35  }
 0x191   : > { %1133 = vst [vmem:[#allocation2 + $0x198] sm:$0xf] %v1117_v41 }
 0x192   : > { %v1100_v43 = vpop.permute.xlu0 %1099  ;;  %1456 = vrot.lane.b32.xlu2 %v1442_v32, %s7651_s29  ;;  %v5646_v50 = vld.sshfl [vmem:[#allocation1 + $0x28] sm:$0xff pattern:$0x75316420] }
 0x193   : > { %v1115_v46 = vsel %vm7661_vm13, %v5474_v6, %v1100_v43  ;;  %v1116_v47 = vsel %vm7661_vm13, %v1100_v43, %v1102_v40 }
 0x194   : > { %1131 = vst [vmem:[#allocation2 + $0x188] sm:$0xf] %v1115_v46  ;;  %v5548_v51 = vpop.permute.xlu2 %1180  ;;  %v1586_v21 = vld.sshfl [vmem:[#allocation1 + $0x38] sm:$0xff pattern:$0x75316420] }
 0x195   : > { %1132 = vst [vmem:[#allocation2 + $0x190] sm:$0xf] %v1116_v47  ;;  %1454 = vrot.lane.b32.xlu1 %v1441_v35, %s7651_s29  ;;  %v1580_v7 = vld.sshfl [vmem:[#allocation1 + $0x8] sm:$0xff pattern:$0x75316420] }
 0x196   : > { %v1579_v48 = vld.sshfl [vmem:[#allocation1] sm:$0xff pattern:$0x75316420] }
 0x197   : > { %v1108_v54 = vpop.permute.xlu1 %1107  ;;  %1587 = vst [vmem:[#allocation1 + $0x1] ss:$2 sm:$0xff] %v1565_v5 }
 0x198   : > { %1452 = vrot.lane.b32.xlu0 %v1440_v30, %s7651_s29  ;;  %v1120_v56 = vsel %vm7661_vm13, %v1108_v54, %v5497_v18 }
 0x199   : > { %1136 = vst [vmem:[#allocation2 + $0x1b0] sm:$0xf] %v1120_v56 }
 0x19a   : > { %v1106_v57 = vpop.permute.xlu0 %1105  ;;  %1462 = vrot.lane.b32.xlu2 %v1445_v44, %s7651_s29 }
 0x19b   : > { %v1118_v59 = vsel %vm7661_vm13, %v5485_v9, %v1106_v57  ;;  %v1119_v60 = vsel %vm7661_vm13, %v1106_v57, %v1108_v54  ;;  %v5584_v9 = vld.sshfl [vmem:[#allocation1 + $0x10] sm:$0xff pattern:$0x75316420] }
 0x19c   : > { %1134 = vst [vmem:[#allocation2 + $0x1a0] sm:$0xf] %v1118_v59  ;;  %v5563_v61 = vpop.permute.xlu2 %1238 }
 0x19d   : > { %1135 = vst [vmem:[#allocation2 + $0x1a8] sm:$0xf] %v1119_v60  ;;  %1460 = vrot.lane.b32.xlu1 %v1444_v45, %s7651_s29 }
 0x19e   : > { %1644 = vst [vmem:[#allocation1 + $0x10] ss:$2 sm:$0xff] %v5521_v33  ;;  %v5596_v17 = vld.sshfl [vmem:[#allocation1] sm:$0xff pattern:$0x75316420] }
 0x19f   : > { %v1167_v2 = vpop.permute.xlu1 %1166  ;;  %1642 = vst [vmem:[#allocation1] ss:$2 sm:$0xff] %v5506_v23 }
 0x1a0   : > { %1458 = vrot.lane.b32.xlu0 %v1443_v37, %s7651_s29  ;;  %v1185_v63 = vsel %vm7639_vm14, %v1167_v2, %v5513_v27 }
 0x1a1   : > { %1201 = vst [vmem:[#allocation2 + $0x180] sm:$0xf0] %v1185_v63 }
 0x1a2   : > { %v1112_v4 = vpop.permute.xlu0 %1111  ;;  %1520 = vrot.lane.b32.xlu2 %v1509_v49, %s7640_s30 }
 0x1a3   : > { %v1121_v19 = vsel %vm7661_vm13, %v5497_v18, %v1112_v4  ;;  %vm7676_vm13 = vcmask 293888  }
 0x1a4   : > { %1137 = vst.msk [vmem:[#allocation2 + $0x1b8] sm:$0xf] %vm345_vm1, %v1121_v19  ;;  %v5577_v6 = vpop.permute.xlu2 %1244 }
 0x1a5   : > { %1518 = vrot.lane.b32.xlu1 %v1508_v1, %s7640_s30  ;;  %v5634_v43 = vld.sshfl [vmem:[#allocation1 + $0x10] sm:$0xff pattern:$0x75316420]  ;;  %v5636_v44 = vld.sshfl [vmem:[#allocation1 + $0x18] sm:$0xff pattern:$0x75316420] }
 0x1a6   : > { %v1650_v30 = vld.sshfl [vmem:[#allocation1 + $0x8] sm:$0xff pattern:$0x75316420]  ;;  %v5614_v31 = vld.sshfl [vmem:[#allocation1] sm:$0xff pattern:$0x75316420] }
 0x1a7   : > { %v1173_v8 = vpop.permute.xlu1 %1172  ;;  %1657 = vst [vmem:[#allocation1] ss:$2 sm:$0xff] %v1636_v28  ;;  %v1653_v1 = vld.sshfl [vmem:[#allocation1 + $0x20] sm:$0xff pattern:$0x75316420] }
 0x1a8   : > { %1464 = vrot.lane.b32.xlu0 %v5503_v22, %s7651_s29  ;;  %v1188_v29 = vsel %vm7639_vm14, %v1173_v8, %v5532_v39  ;;  %v5603_v22 = vld.sshfl [vmem:[#allocation1 + $0x30] sm:$0xff pattern:$0x75316420]  ;;  %1715 = vst [vmem:[#allocation1 + $0x11] ss:$2 sm:$0xff] %v5521_v33  ;;  %s7666_s29 = smov 44  }
 0x1a9   : > { %1204 = vst [vmem:[#allocation2 + $0x198] sm:$0xf0] %v1188_v29 }
 0x1aa   : > { %v1171_v12 = vpop.permute.xlu0 %1170  ;;  %1526 = vrot.lane.b32.xlu2 %v1512_v0, %s7640_s30  ;;  %1648 = vst [vmem:[#allocation1 + $0x30] ss:$2 sm:$0xff] %v5540_v42 }
 0x1ab   : > { %v1186_v13 = vsel %vm7639_vm14, %v5513_v27, %v1171_v12  ;;  %v1187_v14 = vsel %vm7639_vm14, %v1171_v12, %v1173_v8  ;;  %1717 = vst [vmem:[#allocation1 + $0x21] ss:$2 sm:$0xff] %v5524_v34  ;;  %v1777_v8 = vld [vmem:[%s4985_s10 + $0x24] sm:$0xf] }
 0x1ac   : > { %1202 = vst [vmem:[#allocation2 + $0x188] sm:$0xf0] %v1186_v13  ;;  %v5591_v15 = vpop.permute.xlu2 %1250 }
 0x1ad   : > { %1203 = vst [vmem:[#allocation2 + $0x190] sm:$0xf0] %v1187_v14  ;;  %1524 = vrot.lane.b32.xlu1 %v1511_v53, %s7640_s30 }
 0x1af   : > { %v1179_v18 = vpop.permute.xlu1 %1178 }
 0x1b0   : > { %1522 = vrot.lane.b32.xlu0 %v1510_v52, %s7640_s30  ;;  %v1191_v20 = vsel %vm7639_vm14, %v1179_v18, %v5548_v51 }
 0x1b1   : > { %1207 = vst [vmem:[#allocation2 + $0x1b0] sm:$0xf0] %v1191_v20  ;;  %v1656_v54 = vld.sshfl [vmem:[#allocation1 + $0x38] sm:$0xff pattern:$0x75316420] }
 0x1b2   : > { %v1177_v24 = vpop.permute.xlu0 %1176  ;;  %1532 = vrot.lane.b32.xlu2 %v1515_v3, %s7640_s30  ;;  %v1655_v56 = vld.sshfl [vmem:[#allocation1 + $0x30] sm:$0xff pattern:$0x75316420] }
 0x1b3   : > { %v1189_v25 = vsel %vm7639_vm14, %v5532_v39, %v1177_v24  ;;  %v1190_v26 = vsel %vm7639_vm14, %v1177_v24, %v1179_v18  ;;  %v5627_v39 = vld.sshfl [vmem:[#allocation1] sm:$0xff pattern:$0x75316420]  ;;  %1719 = vst [vmem:[#allocation1 + $0x31] ss:$2 sm:$0xff] %v5540_v42 }
 0x1b4   : > { %1205 = vst [vmem:[#allocation2 + $0x1a0] sm:$0xf0] %v1189_v25  ;;  %v5610_v27 = vpop.permute.xlu2 %1309 }
 0x1b5   : > { %1206 = vst [vmem:[#allocation2 + $0x1a8] sm:$0xf0] %v1190_v26  ;;  %1530 = vrot.lane.b32.xlu1 %v1514_v58, %s7640_s30 }
 0x1b6   : > { %1713 = vst [vmem:[#allocation1 + $0x1] ss:$2 sm:$0xff] %v5506_v23 }
 0x1b7   : > { %v1237_v32 = vpop.permute.xlu1 %1236 }
 0x1b8   : > { %1528 = vrot.lane.b32.xlu0 %v5551_v55, %s7640_s30  ;;  %v1255_v35 = vsel %vm7642_vm15, %v1237_v32, %v5563_v61  ;;  %v1847_v32 = vld [vmem:[%s4985_s10 + $0x24] sm:$0xf] }
 0x1b9   : > { %1271 = vst [vmem:[#allocation2 + $0x1c0] sm:$0xf] %v1255_v35 }
 0x1ba   : > { %v1183_v36 = vpop.permute.xlu0 %1182  ;;  %1591 = vrot.lane.b32.xlu2 %v1580_v7, %s7643_s9  ;;  %v5687_v7 = vld.sshfl [vmem:[#allocation1 + $0x10] sm:$0xff pattern:$0x75316420] }
 0x1bb   : > { %v1192_v37 = vsel %vm7639_vm14, %v5548_v51, %v1183_v36  ;;  %v1706_v51 = vld [vmem:[%s4985_s10 + $0x24] sm:$0xf]  ;;  %vm7645_vm14 = vcmask 64512   ;;  %v5709_v18 = vld.sshfl [vmem:[#allocation1 + $0x30] sm:$0xff pattern:$0x75316420] }
 0x1bc   : > { %1208 = vst.msk [vmem:[#allocation2 + $0x1b8] sm:$0xf0] %vm410_vm2, %v1192_v37  ;;  %v5624_v38 = vpop.permute.xlu2 %1315 }
 0x1bd   : > { %1589 = vrot.lane.b32.xlu1 %v1579_v48, %s7643_s9  ;;  %v5649_v0 = vld.sshfl [vmem:[#allocation1 + $0x8] sm:$0xff pattern:$0x75316420]  ;;  %v5656_v55 = vld.sshfl [vmem:[#allocation1] sm:$0xff pattern:$0x75316420] }
 0x1be   : > { %1728 = vst [vmem:[#allocation1 + $0x1] ss:$2 sm:$0xff] %v1706_v51  ;;  %v1723_v48 = vld.sshfl [vmem:[#allocation1 + $0x18] sm:$0xff pattern:$0x75316420] }
 0x1bf   : > { %v1243_v40 = vpop.permute.xlu1 %1242  ;;  %1785 = vst [vmem:[#allocation1 + $0x10] ss:$2 sm:$0xff] %v5521_v33 }
 0x1c0   : > { %1534 = vrot.lane.b32.xlu0 %v5566_v62, %s7640_s30  ;;  %v1258_v41 = vsel %vm7642_vm15, %v1243_v40, %v5577_v6  ;;  %s7646_s30 = smov 54  }
 0x1c1   : > { %1274 = vst [vmem:[#allocation2 + $0x1d8] sm:$0xf] %v1258_v41 }
 0x1c2   : > { %v1241_v45 = vpop.permute.xlu0 %1240  ;;  %1597 = vrot.lane.b32.xlu2 %v1583_v16, %s7643_s9 }
 0x1c3   : > { %v1256_v46 = vsel %vm7642_vm15, %v5563_v61, %v1241_v45  ;;  %v1257_v47 = vsel %vm7642_vm15, %v1241_v45, %v1243_v40 }
 0x1c4   : > { %1272 = vst [vmem:[#allocation2 + $0x1c8] sm:$0xf] %v1256_v46  ;;  %v5643_v49 = vpop.permute.xlu2 %1321 }
 0x1c5   : > { %1273 = vst [vmem:[#allocation2 + $0x1d0] sm:$0xf] %v1257_v47  ;;  %1595 = vrot.lane.b32.xlu1 %v1582_v10, %s7643_s9  ;;  %v5672_v2 = vld.sshfl [vmem:[#allocation1] sm:$0xff pattern:$0x75316420] }
 0x1c6   : > { %1783 = vst [vmem:[#allocation1] ss:$2 sm:$0xff] %v5506_v23  ;;  %v1724_v10 = vld.sshfl [vmem:[#allocation1 + $0x20] sm:$0xff pattern:$0x75316420] }
 0x1c7   : > { %v1249_v52 = vpop.permute.xlu1 %1248  ;;  %v5746_v41 = vld.sshfl [vmem:[#allocation1 + $0x18] sm:$0xff pattern:$0x75316420] }
 0x1c8   : > { %1593 = vrot.lane.b32.xlu0 %v5584_v9, %s7643_s9  ;;  %v1261_v53 = vsel %vm7642_vm15, %v1249_v52, %v5591_v15 }
 0x1c9   : > { %1277 = vst [vmem:[#allocation2 + $0x1f0] sm:$0xf] %v1261_v53 }
 0x1ca   : > { %v1247_v57 = vpop.permute.xlu0 %1246  ;;  %1603 = vrot.lane.b32.xlu2 %v1586_v21, %s7643_s9 }
 0x1cb   : > { %v1259_v3 = vsel %vm7642_vm15, %v5577_v6, %v1247_v57  ;;  %v1260_v58 = vsel %vm7642_vm15, %v1247_v57, %v1249_v52 }
 0x1cc   : > { %1275 = vst [vmem:[#allocation2 + $0x1e0] sm:$0xf] %v1259_v3  ;;  %v5663_v59 = vpop.permute.xlu2 %1379  ;;  %v1918_v3 = vld [vmem:[%s4985_s10 + $0x24] sm:$0xf] }
 0x1cd   : > { %1276 = vst [vmem:[#allocation2 + $0x1e8] sm:$0xf] %v1260_v58  ;;  %1601 = vrot.lane.b32.xlu1 %v5603_v22, %s7643_s9  ;;  %v5693_v12 = vld.sshfl [vmem:[#allocation1 + $0x8] sm:$0xff pattern:$0x75316420] }
 0x1ce   : > { %v5698_v14 = vld.sshfl [vmem:[#allocation1] sm:$0xff pattern:$0x75316420] }
 0x1cf   : > { %v1308_v60 = vpop.permute.xlu1 %1307  ;;  %1798 = vst [vmem:[#allocation1] ss:$2 sm:$0xff] %v1777_v8 }
 0x1d0   : > { %1599 = vrot.lane.b32.xlu0 %v5594_v11, %s7643_s9  ;;  %v1326_v61 = vsel %vm7645_vm14, %v1308_v60, %v5610_v27 }
 0x1d1   : > { %1342 = vst [vmem:[#allocation2 + $0x1c0] sm:$0xf0] %v1326_v61 }
 0x1d2   : > { %v1253_v62 = vpop.permute.xlu0 %1252  ;;  %1661 = vrot.lane.b32.xlu2 %v1650_v30, %s7646_s30 }
 0x1d3   : > { %v1262_v63 = vsel %vm7642_vm15, %v5591_v15, %v1253_v62  ;;  %v5702_v15 = vld.sshfl [vmem:[#allocation1 + $0x28] sm:$0xff pattern:$0x75316420]  ;;  %vm7648_vm15 = vcmask 56320  }
 0x1d4   : > { %1278 = vst.msk [vmem:[#allocation2 + $0x1f8] sm:$0xf] %vm345_vm1, %v1262_v63  ;;  %v5678_v4 = vpop.permute.xlu2 %1385 }
 0x1d5   : > { %1659 = vrot.lane.b32.xlu1 %v5614_v31, %s7646_s30  ;;  %1787 = vst [vmem:[#allocation1 + $0x20] ss:$2 sm:$0xff] %v5524_v34 }
 0x1d6   : > { %v5719_v25 = vld.sshfl [vmem:[#allocation1] sm:$0xff pattern:$0x75316420] }
 0x1d7   : > { %v1314_v19 = vpop.permute.xlu1 %1313  ;;  %1854 = vst [vmem:[#allocation1 + $0x1] ss:$2 sm:$0xff] %v5506_v23 }
 0x1d8   : > { %1605 = vrot.lane.b32.xlu0 %v5596_v17, %s7643_s9  ;;  %v1329_v5 = vsel %vm7645_vm14, %v1314_v19, %v5624_v38  ;;  %v1727_v17 = vld.sshfl [vmem:[#allocation1 + $0x38] sm:$0xff pattern:$0x75316420]  ;;  %s7649_s9 = smov 46  }
 0x1d9   : > { %1345 = vst [vmem:[#allocation2 + $0x1d8] sm:$0xf0] %v1329_v5 }
 0x1da   : > { %v1312_v6 = vpop.permute.xlu0 %1311  ;;  %1667 = vrot.lane.b32.xlu2 %v1653_v1, %s7646_s30  ;;  %1789 = vst [vmem:[#allocation1 + $0x30] ss:$2 sm:$0xff] %v5540_v42 }
 0x1db   : > { %v1327_v29 = vsel %vm7645_vm14, %v5610_v27, %v1312_v6  ;;  %v1328_v9 = vsel %vm7645_vm14, %v1312_v6, %v1314_v19 }
 0x1dc   : > { %1343 = vst [vmem:[#allocation2 + $0x1c8] sm:$0xf0] %v1327_v29  ;;  %v5696_v13 = vpop.permute.xlu2 %1391  ;;  %v5756_v47 = vld.sshfl [vmem:[#allocation1 + $0x28] sm:$0xff pattern:$0x75316420] }
 0x1dd   : > { %1344 = vst [vmem:[#allocation2 + $0x1d0] sm:$0xf0] %v1328_v9  ;;  %1665 = vrot.lane.b32.xlu1 %v5636_v44, %s7646_s30 }
 0x1de   : > { %v5736_v35 = vld.sshfl [vmem:[#allocation1] sm:$0xff pattern:$0x75316420]  ;;  %v5738_v36 = vld.sshfl [vmem:[#allocation1 + $0x8] sm:$0xff pattern:$0x75316420] }
 0x1df   : > { %v1320_v16 = vpop.permute.xlu1 %1319  ;;  %1869 = vst [vmem:[#allocation1 + $0x1] ss:$2 sm:$0xff] %v1847_v32 }
 0x1e0   : > { %1663 = vrot.lane.b32.xlu0 %v5634_v43, %s7646_s30  ;;  %v1332_v11 = vsel %vm7645_vm14, %v1320_v16, %v5643_v49 }
 0x1e1   : > { %1348 = vst [vmem:[#allocation2 + $0x1f0] sm:$0xf0] %v1332_v11  ;;  %v1797_v51 = vld.sshfl [vmem:[#allocation1 + $0x38] sm:$0xff pattern:$0x75316420] }
 0x1e2   : > { %v1318_v20 = vpop.permute.xlu0 %1317  ;;  %1673 = vrot.lane.b32.xlu2 %v1656_v54, %s7646_s30  ;;  %v5766_v52 = vld.sshfl [vmem:[#allocation1 + $0x30] sm:$0xff pattern:$0x75316420] }
 0x1e3   : > { %v1330_v21 = vsel %vm7645_vm14, %v5624_v38, %v1318_v20  ;;  %v1331_v22 = vsel %vm7645_vm14, %v1318_v20, %v1320_v16  ;;  %v5740_v38 = vld.sshfl [vmem:[#allocation1 + $0x10] sm:$0xff pattern:$0x75316420]  ;;  %1860 = vst [vmem:[#allocation1 + $0x31] ss:$2 sm:$0xff] %v5540_v42 }
 0x1e4   : > { %1346 = vst [vmem:[#allocation2 + $0x1e0] sm:$0xf0] %v1330_v21  ;;  %v5716_v24 = vpop.permute.xlu2 %1450 }
 0x1e5   : > { %1347 = vst [vmem:[#allocation2 + $0x1e8] sm:$0xf0] %v1331_v22  ;;  %1671 = vrot.lane.b32.xlu1 %v1655_v56, %s7646_s30 }
 0x1e6   : > { %1856 = vst [vmem:[#allocation1 + $0x11] ss:$2 sm:$0xff] %v5521_v33 }
 0x1e7   : > { %v1378_v26 = vpop.permute.xlu1 %1377 }
 0x1e8   : > { %1669 = vrot.lane.b32.xlu0 %v5646_v50, %s7646_s30  ;;  %v1396_v27 = vsel %vm7648_vm15, %v1378_v26, %v5663_v59 }
 0x1e9   : > { %1412 = vst [vmem:[#allocation2 + $0x200] sm:$0xf] %v1396_v27 }
 0x1ea   : > { %v1324_v28 = vpop.permute.xlu0 %1323  ;;  %1732 = vrot.lane.b32.xlu2 %v5649_v0, %s7649_s9 }
 0x1eb   : > { %v1333_v30 = vsel %vm7645_vm14, %v5643_v49, %v1324_v28  ;;  %v5758_v49 = vld.sshfl [vmem:[#allocation1] sm:$0xff pattern:$0x75316420]  ;;  %vm7657_vm14 = vcmask 48128  }
 0x1ec   : > { %1349 = vst.msk [vmem:[#allocation2 + $0x1f8] sm:$0xf0] %vm410_vm2, %v1333_v30  ;;  %v5731_v31 = vpop.permute.xlu2 %1456 }
 0x1ed   : > { %1730 = vrot.lane.b32.xlu1 %v5656_v55, %s7649_s9  ;;  %1924 = vst [vmem:[#allocation1] ss:$2 sm:$0xff] %v5506_v23  ;;  %v5768_v0 = vld.sshfl [vmem:[#allocation1 + $0x10] sm:$0xff pattern:$0x75316420] }
 0x1ee   : > { %v5771_v54 = vld.sshfl [vmem:[#allocation1 + $0x18] sm:$0xff pattern:$0x75316420] }
 0x1ef   : > { %v1384_v37 = vpop.permute.xlu1 %1383  ;;  %1926 = vst [vmem:[#allocation1 + $0x10] ss:$2 sm:$0xff] %v5521_v33 }
 0x1f0   : > { %1675 = vrot.lane.b32.xlu0 %v5627_v39, %s7646_s30  ;;  %v1399_v40 = vsel %vm7648_vm15, %v1384_v37, %v5678_v4  ;;  %v1794_v39 = vld.sshfl [vmem:[#allocation1 + $0x20] sm:$0xff pattern:$0x75316420]  ;;  %s7655_s30 = smov 45  }
 0x1f1   : > { %1415 = vst [vmem:[#allocation2 + $0x218] sm:$0xf] %v1399_v40 }
 0x1f2   : > { %v1382_v43 = vpop.permute.xlu0 %1381  ;;  %1738 = vrot.lane.b32.xlu2 %v1724_v10, %s7649_s9  ;;  %1858 = vst [vmem:[#allocation1 + $0x21] ss:$2 sm:$0xff] %v5524_v34 }
 0x1f3   : > { %v1397_v44 = vsel %vm7648_vm15, %v5663_v59, %v1382_v43  ;;  %v1398_v45 = vsel %vm7648_vm15, %v1382_v43, %v1384_v37  ;;  %v1868_v43 = vld.sshfl [vmem:[#allocation1 + $0x38] sm:$0xff pattern:$0x75316420] }
 0x1f4   : > { %1413 = vst [vmem:[#allocation2 + $0x208] sm:$0xf] %v1397_v44  ;;  %v5753_v46 = vpop.permute.xlu2 %1462  ;;  %v1932_v58 = vld.sshfl [vmem:[#allocation1 + $0x8] sm:$0xff pattern:$0x75316420] }
 0x1f5   : > { %1414 = vst [vmem:[#allocation2 + $0x210] sm:$0xf] %v1398_v45  ;;  %1736 = vrot.lane.b32.xlu1 %v1723_v48, %s7649_s9  ;;  %v5783_v59 = vld.sshfl [vmem:[#allocation1] sm:$0xff pattern:$0x75316420] }
 0x1f6   : > { %1939 = vst [vmem:[#allocation1] ss:$2 sm:$0xff] %v1918_v3  ;;  %v5791_v63 = vld.sshfl [vmem:[#allocation1 + $0x10] sm:$0xff pattern:$0x75316420] }
 0x1f7   : > { %v1390_v1 = vpop.permute.xlu1 %1389  ;;  %v1867_v44 = vld.sshfl [vmem:[#allocation1 + $0x30] sm:$0xff pattern:$0x75316420] }
 0x1f8   : > { %1734 = vrot.lane.b32.xlu0 %v5687_v7, %s7649_s9  ;;  %v1402_v50 = vsel %vm7648_vm15, %v1390_v1, %v5696_v13  ;;  %1930 = vst [vmem:[#allocation1 + $0x30] ss:$2 sm:$0xff] %v5540_v42 }
 0x1f9   : > { %1418 = vst [vmem:[#allocation2 + $0x230] sm:$0xf] %v1402_v50 }
 0x1fa   : > { %v1388_v53 = vpop.permute.xlu0 %1387  ;;  %1744 = vrot.lane.b32.xlu2 %v1727_v17, %s7649_s9 }
 0x1fb   : > { %v1400_v55 = vsel %vm7648_vm15, %v5678_v4, %v1388_v53  ;;  %v1401_v56 = vsel %vm7648_vm15, %v1388_v53, %v1390_v1  ;;  %v5793_v4 = vld.sshfl [vmem:[#allocation1 + $0x18] sm:$0xff pattern:$0x75316420] }
 0x1fc   : > { %1416 = vst [vmem:[#allocation2 + $0x220] sm:$0xf] %v1400_v55  ;;  %v5778_v57 = vpop.permute.xlu2 %1520 }
 0x1fd   : > { %1417 = vst [vmem:[#allocation2 + $0x228] sm:$0xf] %v1401_v56  ;;  %1742 = vrot.lane.b32.xlu1 %v5709_v18, %s7649_s9  ;;  %v5803_v6 = vld.sshfl [vmem:[#allocation1] sm:$0xff pattern:$0x75316420] }
 0x1fe   : > { %1997 = vst [vmem:[#allocation1 + $0x11] ss:$2 sm:$0xff] %v5521_v33 }
 0x1ff   : > { %v1449_v60 = vpop.permute.xlu1 %1448  ;;  %1995 = vst [vmem:[#allocation1 + $0x1] ss:$2 sm:$0xff] %v5506_v23 }
 0x200   : > { %1740 = vrot.lane.b32.xlu0 %v5702_v15, %s7649_s9  ;;  %v1467_v61 = vsel %vm7657_vm14, %v1449_v60, %v5716_v24 }
 0x201   : > { %1483 = vst [vmem:[#allocation2 + $0x200] sm:$0xf0] %v1467_v61 }
 0x202   : > { %v1394_v62 = vpop.permute.xlu0 %1393  ;;  %1802 = vrot.lane.b32.xlu2 %v5693_v12, %s7655_s30 }
 0x203   : > { %v1403_v19 = vsel %vm7648_vm15, %v5696_v13, %v1394_v62  ;;  %vm7658_vm15 = vcmask 457728  }
 0x204   : > { %1419 = vst.msk [vmem:[#allocation2 + $0x238] sm:$0xf] %vm345_vm1, %v1403_v19  ;;  %v5799_v5 = vpop.permute.xlu2 %1526 }
 0x205   : > { %1800 = vrot.lane.b32.xlu1 %v5698_v14, %s7655_s30  ;;  %v2004_v29 = vld.sshfl [vmem:[#allocation1 + $0x10] sm:$0xff pattern:$0x75316420]  ;;  %v5811_v9 = vld.sshfl [vmem:[#allocation1 + $0x18] sm:$0xff pattern:$0x75316420] }
 0x206   : > { %2067 = vst [vmem:[#allocation1 + $0x10] ss:$2 sm:$0xff] %v5521_v33  ;;  %v2003_v14 = vld.sshfl [vmem:[#allocation1 + $0x8] sm:$0xff pattern:$0x75316420] }
 0x207   : > { %v1455_v7 = vpop.permute.xlu1 %1454  ;;  %v5822_v15 = vld.sshfl [vmem:[#allocation1] sm:$0xff pattern:$0x75316420] }
 0x208   : > { %1746 = vrot.lane.b32.xlu0 %v5672_v2, %s7649_s9  ;;  %v1470_v48 = vsel %vm7657_vm14, %v1455_v7, %v5731_v31  ;;  %v1988_v2 = vld [vmem:[%s4985_s10 + $0x24] sm:$0xf]  ;;  %s4919_s9 = smov 36  }
 0x209   : > { %1486 = vst [vmem:[#allocation2 + $0x218] sm:$0xf0] %v1470_v48  ;;  %v5907_v48 = vld.sshfl [vmem:[#allocation1 + $0x38] sm:$0xff pattern:$0x75316420] }
 0x20a   : > { %v1453_v8 = vpop.permute.xlu0 %1452  ;;  %1808 = vrot.lane.b32.xlu2 %v1794_v39, %s7655_s30  ;;  %2010 = vst [vmem:[#allocation1 + $0x1] ss:$2 sm:$0xff] %v1988_v2 }
 0x20b   : > { %v1468_v10 = vsel %vm7657_vm14, %v5716_v24, %v1453_v8  ;;  %v1469_v12 = vsel %vm7657_vm14, %v1453_v8, %v1455_v7  ;;  %v1937_v7 = vld.sshfl [vmem:[#allocation1 + $0x30] sm:$0xff pattern:$0x75316420] }
 0x20c   : > { %1484 = vst [vmem:[#allocation2 + $0x208] sm:$0xf0] %v1468_v10  ;;  %v5817_v13 = vpop.permute.xlu2 %1532 }
 0x20d   : > { %1485 = vst [vmem:[#allocation2 + $0x210] sm:$0xf0] %v1469_v12  ;;  %1806 = vrot.lane.b32.xlu1 %v5746_v41, %s7655_s30 }
 0x20e   : > { %2001 = vst [vmem:[#allocation1 + $0x31] ss:$2 sm:$0xff] %v5540_v42 }
 0x20f   : > { %v1461_v16 = vpop.permute.xlu1 %1460 }
 0x210   : > { %1804 = vrot.lane.b32.xlu0 %v5740_v38, %s7655_s30  ;;  %v1473_v11 = vsel %vm7657_vm14, %v1461_v16, %v5753_v46 }
 0x211   : > { %1489 = vst [vmem:[#allocation2 + $0x230] sm:$0xf0] %v1473_v11  ;;  %v5836_v21 = vld.sshfl [vmem:[#allocation1] sm:$0xff pattern:$0x75316420] }
 0x212   : > { %v1459_v33 = vpop.permute.xlu0 %1458  ;;  %1814 = vrot.lane.b32.xlu2 %v1797_v51, %s7655_s30  ;;  %2065 = vst [vmem:[#allocation1] ss:$2 sm:$0xff] %v5506_v23 }
 0x213   : > { %v1471_v17 = vsel %vm7657_vm14, %v5731_v31, %v1459_v33  ;;  %v1472_v18 = vsel %vm7657_vm14, %v1459_v33, %v1461_v16 }
 0x214   : > { %1487 = vst [vmem:[#allocation2 + $0x220] sm:$0xf0] %v1471_v17  ;;  %v5832_v20 = vpop.permute.xlu2 %1591  ;;  %v2075_v17 = vld.sshfl [vmem:[#allocation1 + $0x18] sm:$0xff pattern:$0x75316420] }
 0x215   : > { %1488 = vst [vmem:[#allocation2 + $0x228] sm:$0xf0] %v1472_v18  ;;  %1812 = vrot.lane.b32.xlu1 %v5766_v52, %s7655_s30 }
 0x217   : > { %v1519_v22 = vpop.permute.xlu1 %1518 }
 0x218   : > { %1810 = vrot.lane.b32.xlu0 %v5756_v47, %s7655_s30  ;;  %v1537_v24 = vsel %vm7658_vm15, %v1519_v22, %v5778_v57 }
 0x219   : > { %1553 = vst [vmem:[#allocation2 + $0x240] sm:$0xf] %v1537_v24  ;;  %v2073_v50 = vld.sshfl [vmem:[#allocation1 + $0x8] sm:$0xff pattern:$0x75316420] }
 0x21a   : > { %v1465_v26 = vpop.permute.xlu0 %1464  ;;  %1943 = vrot.lane.b32.xlu2 %v1932_v58, %s4919_s9 }
 0x21b   : > { %v1474_v27 = vsel %vm7657_vm14, %v5753_v46, %v1465_v26  ;;  %v2074_v46 = vld.sshfl [vmem:[#allocation1 + $0x10] sm:$0xff pattern:$0x75316420]  ;;  %vm7659_vm14 = vcmask 449536  }
 0x21c   : > { %1490 = vst.msk [vmem:[#allocation2 + $0x238] sm:$0xf0] %vm410_vm2, %v1474_v27  ;;  %v5847_v28 = vpop.permute.xlu2 %1597 }
 0x21d   : > { %1871 = vrot.lane.b32.xlu1 %v5736_v35, %s7666_s29  ;;  %v5862_v35 = vld.sshfl [vmem:[#allocation1 + $0x28] sm:$0xff pattern:$0x75316420] }
 0x21f   : > { %v1525_v23 = vpop.permute.xlu1 %1524 }
 0x220   : > { %1816 = vrot.lane.b32.xlu0 %v5719_v25, %s7655_s30  ;;  %v1540_v30 = vsel %vm7658_vm15, %v1525_v23, %v5799_v5  ;;  %v1865_v25 = vld.sshfl [vmem:[#allocation1 + $0x20] sm:$0xff pattern:$0x75316420]  ;;  %s7671_s30 = smov 34  }
 0x221   : > { %1556 = vst [vmem:[#allocation2 + $0x258] sm:$0xf] %v1540_v30 }
 0x222   : > { %v1523_v31 = vpop.permute.xlu0 %1522  ;;  %2016 = vrot.lane.b32.xlu2 %v2004_v29, %s7668_s26  ;;  %1928 = vst [vmem:[#allocation1 + $0x20] ss:$2 sm:$0xff] %v5524_v34 }
 0x223   : > { %v1538_v32 = vsel %vm7658_vm15, %v5778_v57, %v1523_v31  ;;  %v1539_v37 = vsel %vm7658_vm15, %v1523_v31, %v1525_v23  ;;  %v2072_v57 = vld.sshfl [vmem:[#allocation1] sm:$0xff pattern:$0x75316420] }
 0x224   : > { %1554 = vst [vmem:[#allocation2 + $0x248] sm:$0xf] %v1538_v32  ;;  %v5859_v38 = vpop.permute.xlu2 %1603 }
 0x225   : > { %1555 = vst [vmem:[#allocation2 + $0x250] sm:$0xf] %v1539_v37  ;;  %2014 = vrot.lane.b32.xlu1 %v2003_v14, %s7668_s26 }
 0x227   : > { %v1531_v40 = vpop.permute.xlu1 %1530 }
 0x228   : > { %1945 = vrot.lane.b32.xlu0 %v5791_v63, %s4919_s9  ;;  %v1543_v41 = vsel %vm7658_vm15, %v1531_v40, %v5817_v13 }
 0x229   : > { %1559 = vst [vmem:[#allocation2 + $0x270] sm:$0xf] %v1543_v41  ;;  %v1935_v51 = vld.sshfl [vmem:[#allocation1 + $0x20] sm:$0xff pattern:$0x75316420] }
 0x22a   : > { %v1529_v45 = vpop.permute.xlu0 %1528  ;;  %1941 = vrot.lane.b32.xlu2 %v5783_v59, %s4919_s9  ;;  %v5878_v52 = vld.sshfl [vmem:[#allocation1 + $0x28] sm:$0xff pattern:$0x75316420] }
 0x22b   : > { %v1541_v39 = vsel %vm7658_vm15, %v5799_v5, %v1529_v45  ;;  %v1542_v47 = vsel %vm7658_vm15, %v1529_v45, %v1531_v40  ;;  %1999 = vst [vmem:[#allocation1 + $0x21] ss:$2 sm:$0xff] %v5524_v34 }
 0x22c   : > { %1557 = vst [vmem:[#allocation2 + $0x260] sm:$0xf] %v1541_v39  ;;  %v5875_v1 = vpop.permute.xlu2 %1661 }
 0x22d   : > { %1558 = vst [vmem:[#allocation2 + $0x268] sm:$0xf] %v1542_v47  ;;  %2086 = vrot.lane.b32.xlu1 %v2074_v46, %s7671_s30 }
 0x22f   : > { %v1590_v53 = vpop.permute.xlu1 %1589 }
 0x230   : > { %2084 = vrot.lane.b32.xlu0 %v2073_v50, %s7671_s30  ;;  %v1608_v55 = vsel %vm7659_vm14, %v1590_v53, %v5832_v20 }
 0x231   : > { %1624 = vst [vmem:[#allocation2 + $0x240] sm:$0xf0] %v1608_v55 }
 0x232   : > { %v1535_v56 = vpop.permute.xlu0 %1534  ;;  %1873 = vrot.lane.b32.xlu2 %v5738_v36, %s7666_s29  ;;  %v2006_v61 = vld.sshfl [vmem:[#allocation1 + $0x20] sm:$0xff pattern:$0x75316420]  ;;  %v5896_v62 = vld.sshfl [vmem:[#allocation1 + $0x28] sm:$0xff pattern:$0x75316420] }
 0x233   : > { %v1544_v3 = vsel %vm7658_vm15, %v5817_v13, %v1535_v56  ;;  %2069 = vst [vmem:[#allocation1 + $0x20] ss:$2 sm:$0xff] %v5524_v34  ;;  %vm7660_vm15 = vcmask 441344   ;;  %v2009_v13 = vld.sshfl [vmem:[#allocation1 + $0x38] sm:$0xff pattern:$0x75316420] }
 0x234   : > { %1560 = vst.msk [vmem:[#allocation2 + $0x278] sm:$0xf] %vm345_vm1, %v1544_v3  ;;  %v5889_v58 = vpop.permute.xlu2 %1667 }
 0x235   : > { %2082 = vrot.lane.b32.xlu1 %v2072_v57, %s7671_s30 }
 0x237   : > { %v1596_v59 = vpop.permute.xlu1 %1595 }
 0x238   : > { %2012 = vrot.lane.b32.xlu0 %v5822_v15, %s7668_s26  ;;  %v1611_v60 = vsel %vm7659_vm14, %v1596_v59, %v5847_v28  ;;  %v2059_v15 = vld [vmem:[%s4985_s10 + $0x24] sm:$0xf] }
 0x239   : > { %1627 = vst [vmem:[#allocation2 + $0x258] sm:$0xf0] %v1611_v60 }
 0x23a   : > { %v1594_v36 = vpop.permute.xlu0 %1593  ;;  %1879 = vrot.lane.b32.xlu2 %v1865_v25, %s7666_s29  ;;  %2080 = vst [vmem:[#allocation1] ss:$2 sm:$0xff] %v2059_v15  ;;  %v2076_v31 = vld.sshfl [vmem:[#allocation1 + $0x20] sm:$0xff pattern:$0x75316420] }
 0x23b   : > { %v1609_v63 = vsel %vm7659_vm14, %v5832_v20, %v1594_v36  ;;  %v1610_v19 = vsel %vm7659_vm14, %v1594_v36, %v1596_v59 }
 0x23c   : > { %1625 = vst [vmem:[#allocation2 + $0x248] sm:$0xf0] %v1609_v63  ;;  %v5903_v5 = vpop.permute.xlu2 %1673 }
 0x23d   : > { %1626 = vst [vmem:[#allocation2 + $0x250] sm:$0xf0] %v1610_v19  ;;  %1877 = vrot.lane.b32.xlu1 %v5771_v54, %s7666_s29 }
 0x23f   : > { %v1602_v8 = vpop.permute.xlu1 %1601 }
 0x240   : > { %1875 = vrot.lane.b32.xlu0 %v5768_v0, %s7666_s29  ;;  %v1614_v34 = vsel %vm7659_vm14, %v1602_v8, %v5859_v38  ;;  %v5921_v0 = vld.sshfl [vmem:[#allocation1 + $0x30] sm:$0xff pattern:$0x75316420] }
 0x241   : > { %1630 = vst [vmem:[#allocation2 + $0x270] sm:$0xf0] %v1614_v34  ;;  %v2081_v40 = vld.sshfl [vmem:[#allocation1] sm:$0xff pattern:$0x75316420] }
 0x242   : > { %v1600_v29 = vpop.permute.xlu0 %1599  ;;  %1885 = vrot.lane.b32.xlu2 %v1868_v43, %s7666_s29  ;;  %2071 = vst [vmem:[#allocation1 + $0x30] ss:$2 sm:$0xff] %v5540_v42 }
 0x243   : > { %v1612_v54 = vsel %vm7659_vm14, %v5847_v28, %v1600_v29  ;;  %v1613_v10 = vsel %vm7659_vm14, %v1600_v29, %v1602_v8 }
 0x244   : > { %1628 = vst [vmem:[#allocation2 + $0x260] sm:$0xf0] %v1612_v54  ;;  %v5918_v12 = vpop.permute.xlu2 %1732 }
 0x245   : > { %1629 = vst [vmem:[#allocation2 + $0x268] sm:$0xf0] %v1613_v10  ;;  %1883 = vrot.lane.b32.xlu1 %v1867_v44, %s7666_s29 }
 0x247   : > { %v1660_v2 = vpop.permute.xlu1 %1659 }
 0x248   : > { %1881 = vrot.lane.b32.xlu0 %v5862_v35, %s7666_s29  ;;  %v1678_v14 = vsel %vm7660_vm15, %v1660_v2, %v5875_v1 }
 0x249   : > { %1694 = vst [vmem:[#allocation2 + $0x280] sm:$0xf] %v1678_v14  ;;  %v2079_v44 = vld.sshfl [vmem:[#allocation1 + $0x38] sm:$0xff pattern:$0x75316420] }
 0x24a   : > { %v1606_v16 = vpop.permute.xlu0 %1605  ;;  %1949 = vrot.lane.b32.xlu2 %v1935_v51, %s4919_s9  ;;  %v2078_v50 = vld.sshfl [vmem:[#allocation1 + $0x30] sm:$0xff pattern:$0x75316420] }
 0x24b   : > { %v1615_v11 = vsel %vm7659_vm14, %v5859_v38, %v1606_v16  ;;  %vm7662_vm14 = vcmask 375808  }
 0x24c   : > { %1631 = vst.msk [vmem:[#allocation2 + $0x278] sm:$0xf0] %vm410_vm2, %v1615_v11  ;;  %v1739_v33 = vpop.permute.xlu2 %1738 }
 0x24d   : > { %1947 = vrot.lane.b32.xlu1 %v5793_v4, %s4919_s9 }
 0x24f   : > { %v1666_v42 = vpop.permute.xlu1 %1665 }
 0x250   : > { %1887 = vrot.lane.b32.xlu0 %v5758_v49, %s7666_s29  ;;  %v1681_v18 = vsel %vm7660_vm15, %v1666_v42, %v5889_v58 }
 0x251   : > { %1697 = vst [vmem:[#allocation2 + $0x298] sm:$0xf] %v1681_v18 }
 0x252   : > { %v1664_v20 = vpop.permute.xlu0 %1663  ;;  %2088 = vrot.lane.b32.xlu2 %v2075_v17, %s7671_s30 }
 0x253   : > { %v1679_v22 = vsel %vm7660_vm15, %v5875_v1, %v1664_v20  ;;  %v1680_v24 = vsel %vm7660_vm15, %v1664_v20, %v1666_v42 }
 0x254   : > { %1695 = vst [vmem:[#allocation2 + $0x288] sm:$0xf] %v1679_v22  ;;  %v1745_v26 = vpop.permute.xlu2 %1744 }
 0x255   : > { %1696 = vst [vmem:[#allocation2 + $0x290] sm:$0xf] %v1680_v24  ;;  %2020 = vrot.lane.b32.xlu1 %v2006_v61, %s7668_s26 }
 0x257   : > { %v1672_v4 = vpop.permute.xlu1 %1671 }
 0x258   : > { %2018 = vrot.lane.b32.xlu0 %v5811_v9, %s7668_s26  ;;  %v1684_v49 = vsel %vm7660_vm15, %v1672_v4, %v5903_v5 }
 0x259   : > { %1700 = vst [vmem:[#allocation2 + $0x2b0] sm:$0xf] %v1684_v49 }
 0x25a   : > { %v1670_v27 = vpop.permute.xlu0 %1669  ;;  %1953 = vrot.lane.b32.xlu2 %v1937_v7, %s4919_s9 }
 0x25b   : > { %v1682_v28 = vsel %vm7660_vm15, %v5889_v58, %v1670_v27  ;;  %v1683_v23 = vsel %vm7660_vm15, %v1670_v27, %v1672_v4  ;;  %v2077_v58 = vld.sshfl [vmem:[#allocation1 + $0x28] sm:$0xff pattern:$0x75316420] }
 0x25c   : > { %1698 = vst [vmem:[#allocation2 + $0x2a0] sm:$0xf] %v1682_v28  ;;  %v1803_v30 = vpop.permute.xlu2 %1802 }
 0x25d   : > { %1699 = vst [vmem:[#allocation2 + $0x2a8] sm:$0xf] %v1683_v23  ;;  %1951 = vrot.lane.b32.xlu1 %v5878_v52, %s4919_s9 }
 0x25f   : > { %v1731_v9 = vpop.permute.xlu1 %1730 }
 0x260   : > { %2090 = vrot.lane.b32.xlu0 %v2076_v31, %s7671_s30  ;;  %v1749_v32 = vsel %vm7662_vm14, %v1731_v9, %v5918_v12 }
 0x261   : > { %1765 = vst [vmem:[#allocation2 + $0x280] sm:$0xf0] %v1749_v32 }
 0x262   : > { %v1676_v37 = vpop.permute.xlu0 %1675  ;;  %2026 = vrot.lane.b32.xlu2 %v2009_v13, %s7668_s26 }
 0x263   : > { %v1685_v38 = vsel %vm7660_vm15, %v5903_v5, %v1676_v37  ;;  %vm7665_vm15 = vcmask 367616  }
 0x264   : > { %1701 = vst.msk [vmem:[#allocation2 + $0x2b8] sm:$0xf] %vm345_vm1, %v1685_v38  ;;  %v1809_v25 = vpop.permute.xlu2 %1808 }
 0x265   : > { %1957 = vrot.lane.b32.xlu1 %v5803_v6, %s4919_s9 }
 0x267   : > { %v1737_v35 = vpop.permute.xlu1 %1736 }
 0x268   : > { %1955 = vrot.lane.b32.xlu0 %v5907_v48, %s4919_s9  ;;  %v1752_v41 = vsel %vm7662_vm14, %v1737_v35, %v1739_v33 }
 0x269   : > { %1768 = vst [vmem:[#allocation2 + $0x298] sm:$0xf0] %v1752_v41 }
 0x26a   : > { %v1735_v43 = vpop.permute.xlu0 %1734  ;;  %2098 = vrot.lane.b32.xlu2 %v2081_v40, %s7671_s30 }
 0x26b   : > { %v1750_v45 = vsel %vm7662_vm14, %v5918_v12, %v1735_v43  ;;  %v1751_v46 = vsel %vm7662_vm14, %v1735_v43, %v1737_v35 }
 0x26c   : > { %1766 = vst [vmem:[#allocation2 + $0x288] sm:$0xf0] %v1750_v45  ;;  %v1815_v39 = vpop.permute.xlu2 %1814 }
 0x26d   : > { %1767 = vst [vmem:[#allocation2 + $0x290] sm:$0xf0] %v1751_v46  ;;  %2096 = vrot.lane.b32.xlu1 %v2079_v44, %s7671_s30 }
 0x26f   : > { %v1743_v6 = vpop.permute.xlu1 %1742 }
 0x270   : > { %2028 = vrot.lane.b32.xlu0 %v5836_v21, %s7668_s26  ;;  %v1755_v47 = vsel %vm7662_vm14, %v1743_v6, %v1745_v26 }
 0x271   : > { %1771 = vst [vmem:[#allocation2 + $0x2b0] sm:$0xf0] %v1755_v47 }
 0x272   : > { %v1741_v1 = vpop.permute.xlu0 %1740  ;;  %2022 = vrot.lane.b32.xlu2 %v5896_v62, %s7668_s26 }
 0x273   : > { %v1753_v51 = vsel %vm7662_vm14, %v1739_v33, %v1741_v1  ;;  %v1754_v52 = vsel %vm7662_vm14, %v1741_v1, %v1743_v6  ;;  %v2198_v1 = vld [vmem:[#allocation2 + $0x240] sm:$0xff] }
 0x274   : > { %1769 = vst [vmem:[#allocation2 + $0x2a0] sm:$0xf0] %v1753_v51  ;;  %v1944_v53 = vpop.permute.xlu2 %1943 }
 0x275   : > { %1770 = vst [vmem:[#allocation2 + $0x2a8] sm:$0xf0] %v1754_v52  ;;  %2094 = vrot.lane.b32.xlu1 %v2078_v50, %s7671_s30  ;;  %v2207_v52 = vld [vmem:[#allocation2 + $0x288] sm:$0xff] }
 0x277   : > { %v1801_v55 = vpop.permute.xlu1 %1800 }
 0x278   : > { %2024 = vrot.lane.b32.xlu0 %v5921_v0, %s7668_s26  ;;  %v1819_v21 = vsel %vm7665_vm15, %v1801_v55, %v1803_v30 }
 0x279   : > { %1835 = vst [vmem:[#allocation2 + $0x2c0] sm:$0xf] %v1819_v21  ;;  %v2190_v21 = vld [vmem:[#allocation2 + $0x200] sm:$0xff] }
 0x27a   : > { %v1747_v56 = vpop.permute.xlu0 %1746 }
 0x27b   : > { %v1756_v57 = vsel %vm7662_vm14, %v1745_v26, %v1747_v56  ;;  %vm7670_vm14 = vcmask 359424  }
 0x27c   : > { %1772 = vst.msk [vmem:[#allocation2 + $0x2b8] sm:$0xf0] %vm410_vm2, %v1756_v57  ;;  %v5984_v3 = vpop.permute.xlu2 %2016  ;;  %v2270_v57 = vpack.c.bf16 %v2198_v1, %v2190_v21  ;;  %v2208_v1 = vld [vmem:[#allocation2 + $0x290] sm:$0xff] }
 0x27f   : > { %v1807_v59 = vpop.permute.xlu1 %1806 }
 0x280   : > { %2092 = vrot.lane.b32.xlu0 %v2077_v58, %s7671_s30  ;;  %v1822_v60 = vsel %vm7665_vm15, %v1807_v59, %v1809_v25  ;;  %v2199_v58 = vld [vmem:[#allocation2 + $0x248] sm:$0xff]  ;;  %s4924_s30 = smov 111  }
 0x281   : > { %1838 = vst [vmem:[#allocation2 + $0x2d8] sm:$0xf] %v1822_v60  ;;  %v4923_v60 = vmov 0  }
 0x282   : > { %v1805_v61 = vpop.permute.xlu0 %1804  ;;  %4886 = vset.pattern.permute.xlu1 %v4923_v60  ;;  %4887 = vset.pattern.permute.xlu2 %v4923_v60 }
 0x283   : > { %v1820_v62 = vsel %vm7665_vm15, %v1803_v30, %v1805_v61  ;;  %v1821_v36 = vsel %vm7665_vm15, %v1805_v61, %v1807_v59  ;;  %v2182_v59 = vld [vmem:[#allocation2 + $0x1c0] sm:$0xff]  ;;  %v2191_v61 = vld [vmem:[#allocation2 + $0x208] sm:$0xff]  ;;  %4888 = vset.pattern.permute.xlu0 %v4923_v60 }
 0x284   : > { %1836 = vst [vmem:[#allocation2 + $0x2c8] sm:$0xf] %v1820_v62  ;;  %v1942_v63 = vpop.permute.xlu2 %1941 }
 0x285   : > { %1837 = vst [vmem:[#allocation2 + $0x2d0] sm:$0xf] %v1821_v36  ;;  %v1960_v19 = vsel %vm7676_vm13, %v1942_v63, %v1944_v53  ;;  %v2426_v36 = vld [vmem:[%s7633_s3] sm:$0xf]  ;;  %v2271_v63 = vpack.c.bf16 %v2199_v58, %v2191_v61  ;;  %v2192_v58 = vld [vmem:[#allocation2 + $0x210] sm:$0xff] }
 0x286   : > { %1976 = vst [vmem:[#allocation2 + $0x300] sm:$0xf] %v1960_v19  ;;  %2429 = vperm.xlu1 %4886, %v2426_v36  }
 0x287   : > { %v1813_v5 = vpop.permute.xlu1 %1812 }
 0x288   : > { %v1825_v7 = vsel %vm7665_vm15, %v1813_v5, %v1815_v39 }
 0x289   : > { %1841 = vst [vmem:[#allocation2 + $0x2f0] sm:$0xf] %v1825_v7  ;;  %v2174_v7 = vld [vmem:[#allocation2 + $0x180] sm:$0xff] }
 0x28a   : > { %v1811_v48 = vpop.permute.xlu0 %1810 }
 0x28b   : > { %v1823_v8 = vsel %vm7665_vm15, %v1809_v25, %v1811_v48  ;;  %v1824_v34 = vsel %vm7665_vm15, %v1811_v48, %v1813_v5  ;;  %v2262_v48 = vpack.c.bf16 %v2182_v59, %v2174_v7 }
 0x28c   : > { %1839 = vst [vmem:[#allocation2 + $0x2e0] sm:$0xf] %v1823_v8  ;;  %v1874_v29 = vpop.permute.xlu2 %1873  ;;  %v2183_v8 = vld [vmem:[#allocation2 + $0x1c8] sm:$0xff] }
 0x28d   : > { %1840 = vst [vmem:[#allocation2 + $0x2e8] sm:$0xf] %v1824_v34 }
 0x28f   : > { %v1872_v54 = vpop.permute.xlu1 %1871 }
 0x290   : > { %v1890_v10 = vsel %vm7670_vm14, %v1872_v54, %v1874_v29 }
 0x291   : > { %1906 = vst [vmem:[#allocation2 + $0x2c0] sm:$0xf0] %v1890_v10  ;;  %v2175_v10 = vld [vmem:[#allocation2 + $0x188] sm:$0xff] }
 0x292   : > { %v1817_v12 = vpop.permute.xlu0 %1816 }
 0x293   : > { %v1826_v0 = vsel %vm7665_vm15, %v1815_v39, %v1817_v12  ;;  %vm7673_vm15 = vcmask 1045504   ;;  %v2206_v39 = vld [vmem:[#allocation2 + $0x280] sm:$0xff]  ;;  %v2263_v12 = vpack.c.bf16 %v2183_v8, %v2175_v10  ;;  %v2160_v10 = vld [vmem:[#allocation2 + $0x110] sm:$0xff] }
 0x294   : > { %1842 = vst.msk [vmem:[#allocation2 + $0x2f8] sm:$0xf] %vm345_vm1, %v1826_v0  ;;  %v1880_v13 = vpop.permute.xlu2 %1879  ;;  %v2158_v0 = vld [vmem:[#allocation2 + $0x100] sm:$0xff] }
 0x297   : > { %v2015_v2 = vpop.permute.xlu1 %2014 }
 0x298   : > { %v2032_v14 = vsel %vm7675_vm12, %v2015_v2, %v5984_v3  ;;  %v2214_v44 = vld [vmem:[#allocation2 + $0x2c0] sm:$0xff] }
 0x299   : > { %2048 = vst [vmem:[#allocation2 + $0x308] sm:$0xf0] %v2032_v14  ;;  %v2278_v6 = vpack.c.bf16 %v2214_v44, %v2206_v39  ;;  %v2167_v14 = vld [vmem:[#allocation2 + $0x148] sm:$0xff] }
 0x29a   : > { %v5999_v15 = vpop.permute.xlu0 %1945 }
 0x29b   : > { %v1961_v16 = vsel %vm7676_vm13, %v1944_v53, %v5999_v15 }
 0x29c   : > { %1977 = vst [vmem:[#allocation2 + $0x308] sm:$0xf] %v1961_v16  ;;  %v6003_v11 = vpop.permute.xlu2 %1885  ;;  %v2159_v16 = vld [vmem:[#allocation2 + $0x108] sm:$0xff] }
 0x29f   : > { %v2087_v33 = vpop.permute.xlu1 %2086 }
 0x2a2   : > { %v2085_v42 = vpop.permute.xlu0 %2084 }
 0x2a3   : > { %v2102_v17 = vsel %vm7674_vm11, %v2085_v42, %v2087_v33  ;;  %v2223_v4 = vld [vmem:[#allocation2 + $0x308] sm:$0xff] }
 0x2a4   : > { %2118 = vst [vmem:[#allocation2 + $0x348] sm:$0xf] %v2102_v17  ;;  %v6006_v18 = vpop.permute.xlu2 %1949  ;;  %v2142_v17 = vld [vmem:[#allocation2 + $0x80] sm:$0xff] }
 0x2a7   : > { %v2083_v20 = vpop.permute.xlu1 %2082 }
 0x2a8   : > { %v2101_v22 = vsel %vm7674_vm11, %v2083_v20, %v2085_v42  ;;  %v2255_v42 = vpack.c.bf16 %v2167_v14, %v2159_v16  ;;  %v2185_v14 = vld [vmem:[#allocation2 + $0x1d8] sm:$0xff] }
 0x2a9   : > { %2117 = vst [vmem:[#allocation2 + $0x340] sm:$0xf] %v2101_v22  ;;  %v2151_v22 = vld [vmem:[#allocation2 + $0xc8] sm:$0xff] }
 0x2aa   : > { %v2013_v24 = vpop.permute.xlu0 %2012 }
 0x2ab   : > { %v2031_v26 = vsel %vm7675_vm12, %v2013_v24, %v2015_v2  ;;  %v2231_v49 = vld [vmem:[#allocation2 + $0x348] sm:$0xf]  ;;  %v2134_v24 = vld [vmem:[#allocation2 + $0x40] sm:$0xff] }
 0x2ac   : > { %2047 = vst [vmem:[#allocation2 + $0x300] sm:$0xf0] %v2031_v26  ;;  %v2287_v27 = vpack.c.bf16 %v2231_v49, %v2223_v4  ;;  %v6010_v28 = vpop.permute.xlu2 %2088  ;;  %v2143_v49 = vld [vmem:[#allocation2 + $0x88] sm:$0xff] }
 0x2ad   : > { %v2103_v23 = vsel %vm7674_vm11, %v2087_v33, %v6010_v28 }
 0x2ae   : > { %v2302_v30 = vsel %vm7673_vm15, %v2287_v27, 0  ;;  %2119 = vst [vmem:[#allocation2 + $0x350] sm:$0xf] %v2103_v23  ;;  %v2247_v27 = vpack.c.bf16 %v2151_v22, %v2143_v49  ;;  %v2126_v23 = vld [vmem:[#allocation2] sm:$0xff]  ;;  %v2128_v49 = vld [vmem:[#allocation2 + $0x10] sm:$0xff] }
 0x2af   : > { %2336 = vmatpush.bf16.msra.mxu1 %v2302_v30  ;;  %v1878_v31 = vpop.permute.xlu1 %1877 }
 0x2b0   : > { %v1893_v9 = vsel %vm7670_vm14, %v1878_v31, %v1880_v13  ;;  %v2230_v32 = vld [vmem:[#allocation2 + $0x340] sm:$0xf] }
 0x2b1   : > { %1909 = vst [vmem:[#allocation2 + $0x2d8] sm:$0xf0] %v1893_v9  ;;  %v2135_v9 = vld [vmem:[#allocation2 + $0x48] sm:$0xff] }
 0x2b2   : > { %v1876_v37 = vpop.permute.xlu0 %1875 }
 0x2b3   : > { %v1891_v38 = vsel %vm7670_vm14, %v1874_v29, %v1876_v37  ;;  %v1892_v25 = vsel %vm7670_vm14, %v1876_v37, %v1878_v31  ;;  %v2222_v35 = vld [vmem:[#allocation2 + $0x300] sm:$0xff]  ;;  %v2238_v31 = vpack.c.bf16 %v2134_v24, %v2126_v23  ;;  %v2127_v37 = vld [vmem:[#allocation2 + $0x8] sm:$0xff]  ;;  %v2169_v24 = vld [vmem:[#allocation2 + $0x158] sm:$0xff] }
 0x2b4   : > { %1907 = vst [vmem:[#allocation2 + $0x2c8] sm:$0xf0] %v1891_v38  ;;  %v2286_v40 = vpack.c.bf16 %v2230_v32, %v2222_v35  ;;  %v6018_v41 = vpop.permute.xlu2 %1953  ;;  %v2166_v29 = vld [vmem:[#allocation2 + $0x140] sm:$0xff]  ;;  %v2239_v38 = vpack.c.bf16 %v2135_v9, %v2127_v37  ;;  %v2153_v9 = vld [vmem:[#allocation2 + $0xd8] sm:$0xff] }
 0x2b5   : > { %1908 = vst [vmem:[#allocation2 + $0x2d0] sm:$0xf0] %v1892_v25  ;;  %v2254_v2 = vpack.c.bf16 %v2166_v29, %v2158_v0  ;;  %v2201_v29 = vld [vmem:[#allocation2 + $0x258] sm:$0xff] }
 0x2b6   : > { %v2299_v43 = vsel %vm7673_vm15, %v2286_v40, 0  ;;  %v6053_v40 = vld [vmem:[%s7631_s1] sm:$0x3] }
 0x2b7   : > { %2323 = vmatpush.bf16.msra.mxu0 %v2299_v43  ;;  %v1884_v45 = vpop.permute.xlu1 %1883 }
 0x2b8   : > { %v1896_v46 = vsel %vm7670_vm14, %v1884_v45, %v6003_v11  ;;  %v2217_v36 = vld [vmem:[#allocation2 + $0x2d8] sm:$0xff] }
 0x2b9   : > { %1912 = vst [vmem:[#allocation2 + $0x2f0] sm:$0xf0] %v1896_v46 }
 0x2ba   : > { %v1882_v47 = vpop.permute.xlu0 %1881 }
 0x2bb   : > { %v1894_v50 = vsel %vm7670_vm14, %v1880_v13, %v1882_v47  ;;  %v1895_v51 = vsel %vm7670_vm14, %v1882_v47, %v1884_v45  ;;  %2324 = vmatpush.bf16.msra.mxu0 %v2278_v6  ;;  %v2215_v53 = vld [vmem:[#allocation2 + $0x2c8] sm:$0xff]  ;;  %v2232_v45 = vld [vmem:[#allocation2 + $0x350] sm:$0xf] }
 0x2bc   : > { %1910 = vst [vmem:[#allocation2 + $0x2e0] sm:$0xf0] %v1894_v50  ;;  %v2279_v55 = vpack.c.bf16 %v2215_v53, %v2207_v52  ;;  %v6025_v56 = vpop.permute.xlu2 %2026  ;;  %v2216_v6 = vld [vmem:[#allocation2 + $0x2d0] sm:$0xff] }
 0x2bd   : > { %1911 = vst [vmem:[#allocation2 + $0x2e8] sm:$0xf0] %v1895_v51  ;;  %v2280_v50 = vpack.c.bf16 %v2216_v6, %v2208_v1  ;;  %v2200_v52 = vld [vmem:[#allocation2 + $0x250] sm:$0xff] }
 0x2be   : > { %2337 = vmatpush.bf16.msra.mxu1 %v2279_v55  ;;  %v2272_v60 = vpack.c.bf16 %v2200_v52, %v2192_v58  ;;  %v2213_v52 = vld [vmem:[#allocation2 + $0x2b8] sm:$0xff] }
 0x2bf   : > { %2325 = vmatpush.bf16.msra.mxu0 %v2270_v57  ;;  %v1948_v62 = vpop.permute.xlu1 %1947 }
 0x2c0   : > { %v1962_v19 = vsel %vm7676_vm13, %v5999_v15, %v1948_v62  ;;  %v1963_v5 = vsel %vm7676_vm13, %v1948_v62, %v6006_v18  ;;  %v2150_v15 = vld [vmem:[#allocation2 + $0xc0] sm:$0xff]  ;;  %v2184_v62 = vld [vmem:[#allocation2 + $0x1d0] sm:$0xff] }
 0x2c1   : > { %1978 = vst [vmem:[#allocation2 + $0x310] sm:$0xf] %v1962_v19  ;;  %v2246_v20 = vpack.c.bf16 %v2150_v15, %v2142_v17  ;;  %v2176_v19 = vld [vmem:[#allocation2 + $0x190] sm:$0xff] }
 0x2c2   : > { %2338 = vmatpush.bf16.msra.mxu1 %v2271_v63  ;;  %v1888_v34 = vpop.permute.xlu0 %1887  ;;  %1979 = vst [vmem:[#allocation2 + $0x318] sm:$0xf] %v1963_v5  ;;  %v2209_v5 = vld [vmem:[#allocation2 + $0x298] sm:$0xff]  ;;  %v2264_v7 = vpack.c.bf16 %v2184_v62, %v2176_v19 }
 0x2c3   : > { %v1897_v54 = vsel %vm7670_vm14, %v6003_v11, %v1888_v34  ;;  %2326 = vmatpush.bf16.msra.mxu0 %v2262_v48  ;;  %v2281_v48 = vpack.c.bf16 %v2217_v36, %v2209_v5  ;;  %v2168_v34 = vld [vmem:[#allocation2 + $0x150] sm:$0xff]  ;;  %v2197_v19 = vld [vmem:[#allocation2 + $0x238] sm:$0xff]  ;;  %v2218_v5 = vld [vmem:[#allocation2 + $0x2e0] sm:$0xff]  ;;  %vm2492_vm14 = vcmask 1043456  }
 0x2c4   : > { %1913 = vst.msk [vmem:[#allocation2 + $0x2f8] sm:$0xf0] %vm410_vm2, %v1897_v54  ;;  %v6037_v13 = vpop.permute.xlu2 %2098  ;;  %v2256_v0 = vpack.c.bf16 %v2168_v34, %v2160_v10  ;;  %v2196_v36 = vld [vmem:[#allocation2 + $0x230] sm:$0xff] }
 0x2c5   : > { %v2188_v34 = vld [vmem:[#allocation2 + $0x1f0] sm:$0xff] }
 0x2c6   : > { %2339 = vmatpush.bf16.msra.mxu1 %v2263_v12  ;;  %v2193_v12 = vld [vmem:[#allocation2 + $0x218] sm:$0xff] }
 0x2c7   : > { %2327 = vmatpush.bf16.msra.mxu0 %v2254_v2  ;;  %v2021_v33 = vpop.permute.xlu1 %2020  ;;  %v2152_v2 = vld [vmem:[#allocation2 + $0xd0] sm:$0xff] }
 0x2ca   : > { %2340 = vmatpush.bf16.msra.mxu1 %v2255_v42  ;;  %v2019_v11 = vpop.permute.xlu0 %2018  ;;  %v2177_v42 = vld [vmem:[#allocation2 + $0x198] sm:$0xff] }
 0x2cb   : > { %v2033_v26 = vsel %vm7675_vm12, %v5984_v3, %v2019_v11  ;;  %v2034_v4 = vsel %vm7675_vm12, %v2019_v11, %v2021_v33  ;;  %2328 = vmatpush.bf16.msra.mxu0 %v2246_v20  ;;  %v2265_v20 = vpack.c.bf16 %v2185_v14, %v2177_v42  ;;  %v2136_v11 = vld [vmem:[#allocation2 + $0x50] sm:$0xff]  ;;  %v2181_v14 = vld [vmem:[#allocation2 + $0x1b8] sm:$0xff] }
 0x2cc   : > { %2049 = vst [vmem:[#allocation2 + $0x310] sm:$0xf0] %v2033_v26  ;;  %v6042_v30 = vpop.permute.xlu2 %2022  ;;  %v2240_v23 = vpack.c.bf16 %v2136_v11, %v2128_v49  ;;  %v2172_v42 = vld [vmem:[#allocation2 + $0x170] sm:$0xff]  ;;  %v2195_v11 = vld [vmem:[#allocation2 + $0x228] sm:$0xff]  ;;  %v2165_v49 = vld [vmem:[#allocation2 + $0x138] sm:$0xff] }
 0x2cd   : > { %2050 = vst [vmem:[#allocation2 + $0x318] sm:$0xf0] %v2034_v4  ;;  %v2035_v32 = vsel %vm7675_vm12, %v2021_v33, %v6042_v30  ;;  %v2144_v33 = vld [vmem:[#allocation2 + $0x90] sm:$0xff] }
 0x2ce   : > { %2341 = vmatpush.bf16.msra.mxu1 %v2247_v27  ;;  %2051 = vst [vmem:[#allocation2 + $0x320] sm:$0xf0] %v2035_v32  ;;  %v2248_v17 = vpack.c.bf16 %v2152_v2, %v2144_v33  ;;  %v2161_v27 = vld [vmem:[#allocation2 + $0x118] sm:$0xff]  ;;  %v2203_v33 = vld [vmem:[#allocation2 + $0x268] sm:$0xff] }
 0x2cf   : > { %2329 = vmatpush.bf16.msra.mxu0 %v2238_v31  ;;  %v1952_v3 = vpop.permute.xlu1 %1951  ;;  %v2257_v31 = vpack.c.bf16 %v2169_v24, %v2161_v27  ;;  %v2145_v32 = vld [vmem:[#allocation2 + $0x98] sm:$0xff]  ;;  %v2164_v24 = vld [vmem:[#allocation2 + $0x130] sm:$0xff]  ;;  %v2186_v27 = vld [vmem:[#allocation2 + $0x1e0] sm:$0xff] }
 0x2d0   : > { %v1964_v25 = vsel %vm7676_vm13, %v6006_v18, %v1952_v3  ;;  %v1965_v35 = vsel %vm7676_vm13, %v1952_v3, %v6018_v41 }
 0x2d1   : > { %1980 = vst [vmem:[#allocation2 + $0x320] sm:$0xf] %v1964_v25 }
 0x2d2   : > { %2342 = vmatpush.bf16.msra.mxu1 %v2239_v38  ;;  %v6055_v43 = vpop.permute.xlu0 %2090  ;;  %1981 = vst [vmem:[#allocation2 + $0x328] sm:$0xf] %v1965_v35  ;;  %4829 = vmatmul.msk.bf16.vlgmr.msra.gmra.mxu0 %vm705_vm7, %v6053_v40  ;;  %v2249_v38 = vpack.c.bf16 %v2153_v9, %v2145_v32  ;;  %v2156_v9 = vld [vmem:[#allocation2 + $0xf0] sm:$0xff]  ;;  %v2178_v32 = vld [vmem:[#allocation2 + $0x1a0] sm:$0xff] }
 0x2d3   : > { %v2104_v18 = vsel %vm7674_vm11, %v6010_v28, %v6055_v43  ;;  %v2224_v44 = vld [vmem:[#allocation2 + $0x310] sm:$0xff]  ;;  %v2440_v28 = vld [vmem:[%s7634_s4] sm:$0xf] }
 0x2d4   : > { %2120 = vst [vmem:[#allocation2 + $0x358] sm:$0xf] %v2104_v18  ;;  %v2288_v46 = vpack.c.bf16 %v2232_v45, %v2224_v44  ;;  %v2225_v21 = vld [vmem:[#allocation2 + $0x318] sm:$0xff]  ;;  %2443 = vperm.xlu2 %4887, %v2440_v28  }
 0x2d5   : > { %4830 = vmatmul.msk.bf16.vlgmr.msra.gmra.mxu1 %vm705_vm7, %v6053_v40  ;;  %v2129_v45 = vld [vmem:[#allocation2 + $0x18] sm:$0xff] }
 0x2d6   : > { %v2305_v39 = vsel %vm7673_vm15, %v2288_v46, 0 }
 0x2d7   : > { %2349 = vmatpush.bf16.msra.mxu2 %v2305_v39  ;;  %v1958_v47 = vpop.permute.xlu1 %1957 }
 0x2da   : > { %v1956_v51 = vpop.permute.xlu0 %1955 }
 0x2db   : > { %v1966_v53 = vsel %vm7676_vm13, %v6018_v41, %v1956_v51  ;;  %v1967_v55 = vsel %vm7676_vm13, %v1956_v51, %v1958_v47  ;;  %2350 = vmatpush.bf16.msra.mxu2 %v2280_v50  ;;  %v2233_v57 = vld [vmem:[#allocation2 + $0x358] sm:$0xf]  ;;  %v2220_v50 = vld [vmem:[#allocation2 + $0x2f0] sm:$0xff] }
 0x2dc   : > { %1982 = vst [vmem:[#allocation2 + $0x330] sm:$0xf] %v1966_v53  ;;  %v2289_v59 = vpack.c.bf16 %v2233_v57, %v2225_v21  ;;  %v2221_v51 = vld [vmem:[#allocation2 + $0x2f8] sm:$0xff]  ;;  %v2204_v57 = vld [vmem:[#allocation2 + $0x270] sm:$0xff] }
 0x2dd   : > { %1983 = vst.msk [vmem:[#allocation2 + $0x338] sm:$0xf] %vm345_vm1, %v1967_v55  ;;  %v2285_v53 = vpack.c.bf16 %v2221_v51, %v2213_v52  ;;  %v2226_v55 = vld [vmem:[#allocation2 + $0x320] sm:$0xff]  ;;  %v2133_v52 = vld [vmem:[#allocation2 + $0x38] sm:$0xff] }
 0x2de   : > { %v2308_v61 = vsel %vm7673_vm15, %v2289_v59, 0 }
 0x2df   : > { %2351 = vmatpush.bf16.msra.mxu2 %v2272_v60  ;;  %2362 = vmatpush.bf16.msra.mxu3 %v2308_v61  ;;  %v2097_v63 = vpop.permute.xlu1 %2096  ;;  %v2205_v61 = vld [vmem:[#allocation2 + $0x278] sm:$0xff] }
 0x2e0   : > { %v2108_v41 = vsel %vm7674_vm11, %v2097_v63, %v6037_v13  ;;  %v2273_v13 = vpack.c.bf16 %v2201_v29, %v2193_v12  ;;  %v2210_v29 = vld [vmem:[#allocation2 + $0x2a0] sm:$0xff]  ;;  %v2211_v12 = vld [vmem:[#allocation2 + $0x2a8] sm:$0xff] }
 0x2e1   : > { %2124 = vst.msk [vmem:[#allocation2 + $0x378] sm:$0xf] %vm345_vm1, %v2108_v41  ;;  %v2276_v41 = vpack.c.bf16 %v2204_v57, %v2196_v36  ;;  %v2282_v10 = vpack.c.bf16 %v2218_v5, %v2210_v29  ;;  %v6106_v29 = vld [vmem:[%s7637_s7] sm:$0xff] }
 0x2e2   : > { %v2029_v8 = vpop.permute.xlu0 %2028 }
 0x2e3   : > { %v2038_v54 = vsel %vm7675_vm12, %v6025_v56, %v2029_v8  ;;  %2352 = vmatpush.bf16.msra.mxu2 %v2264_v7  ;;  %2363 = vmatpush.bf16.msra.mxu3 %v2281_v48  ;;  %v2277_v48 = vpack.c.bf16 %v2205_v61, %v2197_v19  ;;  %v2219_v8 = vld [vmem:[#allocation2 + $0x2e8] sm:$0xff] }
 0x2e4   : > { %2054 = vst.msk [vmem:[#allocation2 + $0x338] sm:$0xf0] %vm410_vm2, %v2038_v54  ;;  %v2189_v54 = vld [vmem:[#allocation2 + $0x1f8] sm:$0xff]  ;;  %v2139_v61 = vld [vmem:[#allocation2 + $0x68] sm:$0xff] }
 0x2e7   : > { %2353 = vmatpush.bf16.msra.mxu2 %v2256_v0  ;;  %2364 = vmatpush.bf16.msra.mxu3 %v2273_v13  ;;  %v2095_v15 = vpop.permute.xlu1 %2094  ;;  %v2180_v0 = vld [vmem:[#allocation2 + $0x1b0] sm:$0xff]  ;;  %v2283_v13 = vpack.c.bf16 %v2219_v8, %v2211_v12  ;;  %v2464_v12 = vperm.slane %v6106_v29, 0 }
 0x2e8   : > { %v2107_v16 = vsel %vm7674_vm11, %v2095_v15, %v2097_v63  ;;  %v2237_v3 = vld [vmem:[#allocation2 + $0x378] sm:$0xf]  ;;  %v2268_v2 = vpack.c.bf16 %v2188_v34, %v2180_v0 }
 0x2e9   : > { %2123 = vst [vmem:[#allocation2 + $0x370] sm:$0xf] %v2107_v16  ;;  %v2269_v16 = vpack.c.bf16 %v2189_v54, %v2181_v14 }
 0x2ea   : > { %v2025_v22 = vpop.permute.xlu0 %2024 }
 0x2eb   : > { %v2036_v26 = vsel %vm7675_vm12, %v6042_v30, %v2025_v22  ;;  %v2037_v4 = vsel %vm7675_vm12, %v2025_v22, %v6025_v56  ;;  %2354 = vmatpush.bf16.msra.mxu2 %v2248_v17  ;;  %2365 = vmatpush.bf16.msra.mxu3 %v2265_v20  ;;  %v2229_v37 = vld [vmem:[#allocation2 + $0x338] sm:$0xff]  ;;  %v2194_v17 = vld [vmem:[#allocation2 + $0x220] sm:$0xff]  ;;  %vm2524_vm12 = vcmask 908288  }
 0x2ec   : > { %2052 = vst [vmem:[#allocation2 + $0x328] sm:$0xf0] %v2036_v26  ;;  %v2137_v30 = vld [vmem:[#allocation2 + $0x58] sm:$0xff]  ;;  %v2293_v44 = vpack.c.bf16 %v2237_v3, %v2229_v37  ;;  %v2275_v26 = vpack.c.bf16 %v2203_v33, %v2195_v11  ;;  %v2266_v3 = vpack.c.bf16 %v2186_v27, %v2178_v32 }
 0x2ed   : > { %2053 = vst [vmem:[#allocation2 + $0x330] sm:$0xf0] %v2037_v4  ;;  %v2241_v39 = vpack.c.bf16 %v2137_v30, %v2129_v45  ;;  %v2173_v20 = vld [vmem:[#allocation2 + $0x178] sm:$0xff]  ;;  %v2260_v4 = vpack.c.bf16 %v2172_v42, %v2164_v24  ;;  %v2171_v45 = vld [vmem:[#allocation2 + $0x168] sm:$0xff] }
 0x2ee   : > { %v2320_v1 = vsel %vm7673_vm15, %v2293_v44, 0  ;;  %v2157_v37 = vld [vmem:[#allocation2 + $0xf8] sm:$0xff] }
 0x2ef   : > { %2355 = vmatpush.bf16.msra.mxu2 %v2240_v23  ;;  %2366 = vmatpush.bf16.msra.mxu3 %v2257_v31  ;;  %v2261_v23 = vpack.c.bf16 %v2173_v20, %v2165_v49  ;;  %v2187_v31 = vld [vmem:[#allocation2 + $0x1e8] sm:$0xff]  ;;  %v2467_v49 = vperm.slane %v6106_v29, 3 }
 0x2f0   : > { %v2236_v35 = vld [vmem:[#allocation2 + $0x370] sm:$0xf] }
 0x2f2   : > { %v2093_v25 = vpop.permute.xlu0 %2092  ;;  %4831 = vmatmul.msk.bf16.vlgmr.msra.gmra.mxu2 %vm705_vm7, %v6053_v40 }
 0x2f3   : > { %v2105_v56 = vsel %vm7674_vm11, %v6055_v43, %v2093_v25  ;;  %v2106_v18 = vsel %vm7674_vm11, %v2093_v25, %v2095_v15  ;;  %2367 = vmatpush.bf16.msra.mxu3 %v2249_v38  ;;  %v2212_v43 = vld [vmem:[#allocation2 + $0x2b0] sm:$0xff]  ;;  %v2227_v59 = vld [vmem:[#allocation2 + $0x328] sm:$0xff]  ;;  %v2202_v15 = vld [vmem:[#allocation2 + $0x260] sm:$0xff] }
 0x2f4   : > { %2121 = vst [vmem:[#allocation2 + $0x360] sm:$0xf] %v2105_v56  ;;  %v2228_v46 = vld [vmem:[#allocation2 + $0x330] sm:$0xff]  ;;  %v2284_v28 = vpack.c.bf16 %v2220_v50, %v2212_v43  ;;  %v2274_v22 = vpack.c.bf16 %v2202_v15, %v2194_v17  ;;  %v2179_v38 = vld [vmem:[#allocation2 + $0x1a8] sm:$0xff]  ;;  %v2149_v56 = vld [vmem:[#allocation2 + $0xb8] sm:$0xff] }
 0x2f5   : > { %2122 = vst [vmem:[#allocation2 + $0x368] sm:$0xf] %v2106_v18  ;;  %v2292_v6 = vpack.c.bf16 %v2236_v35, %v2228_v46  ;;  %v2148_v25 = vld [vmem:[#allocation2 + $0xb0] sm:$0xff]  ;;  %v2267_v30 = vpack.c.bf16 %v2187_v31, %v2179_v38  ;;  %v2170_v18 = vld [vmem:[#allocation2 + $0x160] sm:$0xff]  ;;  %v2253_v44 = vpack.c.bf16 %v2157_v37, %v2149_v56  ;;  %v2466_v31 = vperm.slane %v6106_v29, 2 }
 0x2f6   : > { %v2252_v35 = vpack.c.bf16 %v2156_v9, %v2148_v25  ;;  %v2140_v46 = vld [vmem:[#allocation2 + $0x70] sm:$0xff]  ;;  %v4925_v37 = vmov 0.0  }
 0x2f7   : > { %2368 = vmatpush.bf16.msra.mxu3 %v2241_v39  ;;  %v2317_v47 = vsel %vm7673_vm15, %v2292_v6, 0  ;;  %v2162_v39 = vld [vmem:[#allocation2 + $0x120] sm:$0xff]  ;;  %v2141_v6 = vld [vmem:[#allocation2 + $0x78] sm:$0xff]  ;;  %v2132_v50 = vld [vmem:[#allocation2 + $0x30] sm:$0xff]  ;;  %2488 = vst [vmem:[#allocation4] sm:$0xff] %v4925_v37 }
 0x2f8   : > { %2401 = vmatpush.bf16.msrb.mxu2 %v2317_v47  ;;  %v2258_v47 = vpack.c.bf16 %v2170_v18, %v2162_v39  ;;  %v2244_v43 = vpack.c.bf16 %v2140_v46, %v2132_v50  ;;  %v2430_v19 = vpop.permute.xlu1 %2429 }
 0x2fa   : > { %4832 = vmatmul.msk.bf16.vlgmr.msra.gmra.mxu3 %vm705_vm7, %v6053_v40 }
 0x2fb   : > { %2414 = vmatpush.bf16.msrb.mxu3 %v2320_v1  ;;  %v2234_v21 = vld [vmem:[#allocation2 + $0x360] sm:$0xf]  ;;  %v2163_v1 = vld [vmem:[#allocation2 + $0x128] sm:$0xff] }
 0x2fc   : > { %2402 = vmatpush.bf16.msrb.mxu2 %v2284_v28  ;;  %v2290_v58 = vpack.c.bf16 %v2234_v21, %v2226_v55  ;;  %v2235_v60 = vld [vmem:[#allocation2 + $0x368] sm:$0xf]  ;;  %v2259_v51 = vpack.c.bf16 %v2171_v45, %v2163_v1  ;;  %v2154_v28 = vld [vmem:[#allocation2 + $0xe0] sm:$0xff]  ;;  %v2471_v1 = vperm.slane %v6106_v29, 7 }
 0x2fd   : > { %v2291_v62 = vpack.c.bf16 %v2235_v60, %v2227_v59  ;;  %v2155_v55 = vld [vmem:[#allocation2 + $0xe8] sm:$0xff]  ;;  %v2146_v21 = vld [vmem:[#allocation2 + $0xa0] sm:$0xff] }
 0x2fe   : > { %v2311_v63 = vsel %vm7673_vm15, %v2290_v58, 0  ;;  %v2250_v57 = vpack.c.bf16 %v2154_v28, %v2146_v21  ;;  %v2147_v58 = vld [vmem:[#allocation2 + $0xa8] sm:$0xff]  ;;  %v2138_v60 = vld [vmem:[#allocation2 + $0x60] sm:$0xff]  ;;  %v2470_v28 = vperm.slane %v6106_v29, 6  ;;  %v2468_v21 = vperm.slane %v6106_v29, 4 }
 0x2ff   : > { %2415 = vmatpush.bf16.msrb.mxu3 %v2285_v53  ;;  %2375 = vmatpush.bf16.msrb.mxu0 %v2311_v63  ;;  %v2314_v7 = vsel %vm7673_vm15, %v2291_v62, 0  ;;  %v2245_v53 = vpack.c.bf16 %v2141_v6, %v2133_v52  ;;  %v2251_v59 = vpack.c.bf16 %v2155_v55, %v2147_v58  ;;  %v2130_v62 = vld [vmem:[#allocation2 + $0x20] sm:$0xff]  ;;  %v2131_v63 = vld [vmem:[#allocation2 + $0x28] sm:$0xff]  ;;  %vm2493_vm15 = vcmask 572420  }
 0x300   : > { %2388 = vmatpush.bf16.msrb.mxu1 %v2314_v7  ;;  %2403 = vmatpush.bf16.msrb.mxu2 %v2276_v41  ;;  %v2242_v36 = vpack.c.bf16 %v2138_v60, %v2130_v62  ;;  %v2243_v41 = vpack.c.bf16 %v2139_v61, %v2131_v63  ;;  %vm2494_vm11 = vmor %vm2493_vm15, %vm2492_vm14  ;;  %vm2538_vm15 = vcmask 1047556  }
 0x301   : > { %2495 = vst.msk [vmem:[#allocation4 + $0x20] sm:$0xff] %vm2494_vm11, %v4925_v37  ;;  %vm2537_vm11 = vcmask 1044344  }
 0x302   : > { %vm2539_vm13 = vmor %vm2538_vm15, %vm2537_vm11 }
 0x303   : > { %2416 = vmatpush.bf16.msrb.mxu3 %v2277_v48  ;;  %2376 = vmatpush.bf16.msrb.mxu0 %v2282_v10 }
 0x304   : > { %2389 = vmatpush.bf16.msrb.mxu1 %v2283_v13  ;;  %2404 = vmatpush.bf16.msrb.mxu2 %v2268_v2  ;;  %v2465_v13 = vperm.slane %v6106_v29, 1 }
 0x307   : > { %2417 = vmatpush.bf16.msrb.mxu3 %v2269_v16  ;;  %2377 = vmatpush.bf16.msrb.mxu0 %v2274_v22 }
 0x308   : > { %2390 = vmatpush.bf16.msrb.mxu1 %v2275_v26  ;;  %2405 = vmatpush.bf16.msrb.mxu2 %v2260_v4 }
 0x30b   : > { %2418 = vmatpush.bf16.msrb.mxu3 %v2261_v23  ;;  %2378 = vmatpush.bf16.msrb.mxu0 %v2266_v3 }
 0x30c   : > { %2391 = vmatpush.bf16.msrb.mxu1 %v2267_v30  ;;  %2406 = vmatpush.bf16.msrb.mxu2 %v2252_v35 }
 0x30f   : > { %2419 = vmatpush.bf16.msrb.mxu3 %v2253_v44  ;;  %2379 = vmatpush.bf16.msrb.mxu0 %v2258_v47 }
 0x310   : > { %2392 = vmatpush.bf16.msrb.mxu1 %v2259_v51  ;;  %2407 = vmatpush.bf16.msrb.mxu2 %v2244_v43  ;;  %v2469_v43 = vperm.slane %v6106_v29, 5 }
 0x313   : > { %2420 = vmatpush.bf16.msrb.mxu3 %v2245_v53  ;;  %4835 = vmatmul.msk.bf16.vlgmr.msrb.gmra.mxu2 %vm705_vm7, %v6053_v40 }
 0x314   : > { %2380 = vmatpush.bf16.msrb.mxu0 %v2250_v57  ;;  %2393 = vmatpush.bf16.msrb.mxu1 %v2251_v59 }
 0x316   : > { %4836 = vmatmul.msk.bf16.vlgmr.msrb.gmra.mxu3 %vm705_vm7, %v6053_v40 }
 0x318   : > { %2381 = vmatpush.bf16.msrb.mxu0 %v2242_v36  ;;  %2394 = vmatpush.bf16.msrb.mxu1 %v2243_v41 }
 0x31b   : > { %4833 = vmatmul.msk.bf16.vlgmr.msrb.gmra.mxu0 %vm705_vm7, %v6053_v40  ;;  %4834 = vmatmul.msk.bf16.vlgmr.msrb.gmra.mxu1 %vm705_vm7, %v6053_v40 }
 0x32e   : > { %v2444_v48 = vpop.permute.xlu2 %2443 }
 0x34f   : > { %v2331_v5 = vpop.f32.mrf.mxu0 }
 0x350   : > { %v2432_v7 = vmul.f32 %v2430_v19, %v2331_v5 }
 0x352   : > { %v2344_v8 = vpop.f32.mrf.mxu1  ;;  %v2446_v34 = vadd.f32 %v2444_v48, %v2432_v7 }
 0x353   : > { %v2433_v54 = vmul.f32 %v2430_v19, %v2344_v8 }
 0x354   : > { %v2454_v10 = vmax.f32 %v2446_v34, 0.0 }
 0x355   : > { %v2447_v0 = vadd.f32 %v2444_v48, %v2433_v54 }
 0x356   : > { %v2480_v14 = vmul.f32 %v2464_v12, %v2454_v10 }
 0x357   : > { %v2455_v2 = vmax.f32 %v2447_v0, 0.0  ;;  %v2333_v40 = vpop.f32.mrf.mxu0 }
 0x359   : > { %v2481_v15 = vmul.f32 %v2465_v13, %v2455_v2 }
 0x35a   : > { %v2346_v16 = vpop.f32.mrf.mxu1 }
 0x35b   : > { %v2504_v33 = vrot.slane %v2481_v15, 4 }
 0x35d   : > { %v2508_v42 = vsel %vm2492_vm14, %v2480_v14, %v2504_v33 }
 0x35e   : > { %2512 = vrot.lane.b32.xlu0 %v2508_v42, %s4924_s30 }
 0x375   : > { %v2357_v17 = vpop.f32.mrf.mxu2 }
 0x376   : > { %v2434_v20 = vmul.f32 %v2430_v19, %v2357_v17 }
 0x378   : > { %v2448_v26 = vadd.f32 %v2444_v48, %v2434_v20 }
 0x37a   : > { %v2456_v23 = vmax.f32 %v2448_v26, 0.0 }
 0x37c   : > { %v2482_v38 = vmul.f32 %v2466_v31, %v2456_v23 }
 0x37d   : > { %v2370_v22 = vpop.f32.mrf.mxu3  ;;  %v2359_v11 = vpop.f32.mrf.mxu2 }
 0x37e   : > { %v2435_v24 = vmul.f32 %v2430_v19, %v2370_v22 }
 0x380   : > { %v2449_v4 = vadd.f32 %v2444_v48, %v2435_v24 }
 0x382   : > { %v2457_v27 = vmax.f32 %v2449_v4, 0.0 }
 0x384   : > { %v2483_v9 = vmul.f32 %v2467_v49, %v2457_v27 }
 0x385   : > { %v2372_v32 = vpop.f32.mrf.mxu3 }
 0x386   : > { %v2505_v3 = vrot.slane %v2483_v9, 4 }
 0x388   : > { %v2509_v25 = vsel %vm2492_vm14, %v2482_v38, %v2505_v3 }
 0x389   : > { %2514 = vrot.lane.b32.xlu1 %v2509_v25, %s4924_s30 }
 0x396   : > { %v2409_v30 = vpop.f32.mrf.mxu2 }
 0x397   : > { %v2438_v35 = vmul.f32 %v2430_v19, %v2409_v30 }
 0x398   : > { %v2383_v18 = vpop.f32.mrf.mxu0  ;;  %v2396_v46 = vpop.f32.mrf.mxu1 }
 0x399   : > { %v2422_v56 = vpop.f32.mrf.mxu3  ;;  %v2436_v45 = vmul.f32 %v2430_v19, %v2383_v18  ;;  %v2452_v39 = vadd.f32 %v2444_v48, %v2438_v35  ;;  %v2437_v6 = vmul.f32 %v2430_v19, %v2396_v46 }
 0x39a   : > { %v2439_v44 = vmul.f32 %v2430_v19, %v2422_v56 }
 0x39b   : > { %v2450_v50 = vadd.f32 %v2444_v48, %v2436_v45  ;;  %v2451_v51 = vadd.f32 %v2444_v48, %v2437_v6  ;;  %v2460_v52 = vmax.f32 %v2452_v39, 0.0 }
 0x39c   : > { %v2453_v47 = vadd.f32 %v2444_v48, %v2439_v44 }
 0x39d   : > { %v2458_v55 = vmax.f32 %v2450_v50, 0.0  ;;  %v2459_v57 = vmax.f32 %v2451_v51, 0.0  ;;  %v2486_v36 = vmul.f32 %v2470_v28, %v2460_v52 }
 0x39e   : > { %v2461_v53 = vmax.f32 %v2453_v47, 0.0  ;;  %v2411_v59 = vpop.f32.mrf.mxu2 }
 0x39f   : > { %v2485_v60 = vmul.f32 %v2469_v43, %v2459_v57  ;;  %v2484_v19 = vmul.f32 %v2468_v21, %v2458_v55 }
 0x3a0   : > { %v2487_v58 = vmul.f32 %v2471_v1, %v2461_v53  ;;  %v2385_v62 = vpop.f32.mrf.mxu0  ;;  %v2398_v41 = vpop.f32.mrf.mxu1 }
 0x3a1   : > { %v2424_v61 = vpop.f32.mrf.mxu3  ;;  %v2506_v5 = vrot.slane %v2485_v60, 4 }
 0x3a2   : > { %v2507_v63 = vrot.slane %v2487_v58, 4 }
 0x3a3   : > { %v2510_v48 = vsel %vm2492_vm14, %v2484_v19, %v2506_v5 }
 0x3a4   : > { %v2511_v7 = vsel %vm2492_vm14, %v2486_v36, %v2507_v63  ;;  %2516 = vrot.lane.b32.xlu2 %v2510_v48, %s4924_s30 }
 0x3a5   : > { %2518 = vrot.lane.b32.xlu0 %v2511_v7, %s4924_s30 }
 0x3d0   : > { %v2513_v8 = vpop.permute.xlu0 %2512 }
 0x3d1   : > { %v2520_v34 = vrot.slane %v2513_v8, 4 }
 0x3d3   : > { %v2525_v29 = vsel %vm2524_vm12, %v2520_v34, %v2513_v8 }
 0x3d4   : > { %2540 = vst.msk [vmem:[#allocation4] sm:$0xff] %vm2539_vm13, %v2525_v29  ;;  %vm2544_vm13 = vcmask 707584  }
 0x3db   : > { %v6126_v54 = vld [vmem:[#allocation4] sm:$0xff] }
 0x3dc   : > { %2554 = vst [vmem:[#allocation1] ss:$2 sm:$0xff] %v6126_v54 }
 0x3e3   : > { %v2561_v10 = vld.sshfl [vmem:[#allocation1] sm:$0xff pattern:$0x75316420]  ;;  %v2562_v12 = vld.sshfl [vmem:[#allocation1 + $0x8] sm:$0xff pattern:$0x75316420] }
 0x3e4   : > { %2594 = vst [vmem:[#allocation1 + $0x1] ss:$2 sm:$0xff] %v6126_v54 }
 0x3e5   : > { %2577 = vst [vmem:[#allocation3] sm:$0xf] %v2561_v10 }
 0x3e6   : > { %2578 = vst [vmem:[#allocation3 + $0x8] sm:$0xf] %v2562_v12 }
 0x3eb   : > { %v2601_v0 = vld.sshfl [vmem:[#allocation1] sm:$0xff pattern:$0x75316420]  ;;  %v2602_v13 = vld.sshfl [vmem:[#allocation1 + $0x8] sm:$0xff pattern:$0x75316420] }
 0x3ec   : > { %2609 = vrot.lane.b32.xlu1 %v2601_v0, %s4897_s11  ;;  %2611 = vrot.lane.b32.xlu2 %v2602_v13, %s4897_s11  ;;  %2656 = vst [vmem:[#allocation1] ss:$2 sm:$0xff] %v6126_v54 }
 0x3f3   : > { %v2664_v2 = vld.sshfl [vmem:[#allocation1 + $0x8] sm:$0xff pattern:$0x75316420]  ;;  %v2663_v40 = vld.sshfl [vmem:[#allocation1] sm:$0xff pattern:$0x75316420] }
 0x3f4   : > { %2719 = vst [vmem:[#allocation1 + $0x1] ss:$2 sm:$0xff] %v6126_v54 }
 0x3fb   : > { %v2515_v14 = vpop.permute.xlu1 %2514  ;;  %v2726_v15 = vld.sshfl [vmem:[#allocation1] sm:$0xff pattern:$0x75316420]  ;;  %v6134_v16 = vld.sshfl [vmem:[#allocation1 + $0x8] sm:$0xff pattern:$0x75316420] }
 0x3fc   : > { %v2521_v33 = vrot.slane %v2515_v14, 4  ;;  %2781 = vst [vmem:[#allocation1] ss:$2 sm:$0xff] %v6126_v54 }
 0x3fe   : > { %v2526_v42 = vsel %vm2492_vm14, %v2520_v34, %v2521_v33  ;;  %v2517_v17 = vpop.permute.xlu2 %2516 }
 0x3ff   : > { %v6139_v20 = vsel %vm2524_vm12, %v2526_v42, %v2515_v14  ;;  %v2522_v22 = vrot.slane %v2517_v17, 4 }
 0x400   : > { %2541 = vst [vmem:[#allocation4 + $0x8] sm:$0xff] %v6139_v20 }
 0x401   : > { %v2528_v11 = vsel %vm2492_vm14, %v2521_v33, %v2522_v22  ;;  %2556 = vst [vmem:[#allocation1 + $0x10] ss:$2 sm:$0xff] %v6139_v20 }
 0x402   : > { %v6145_v24 = vsel %vm2524_vm12, %v2528_v11, %v2517_v17 }
 0x403   : > { %2542 = vst [vmem:[#allocation4 + $0x10] sm:$0xff] %v6145_v24  ;;  %v6148_v26 = vld.sshfl [vmem:[#allocation1] sm:$0xff pattern:$0x75316420] }
 0x404   : > { %2558 = vst [vmem:[#allocation1 + $0x20] ss:$2 sm:$0xff] %v6145_v24  ;;  %v6151_v4 = vld.sshfl [vmem:[#allocation1 + $0x8] sm:$0xff pattern:$0x75316420] }
 0x405   : > { %2844 = vst [vmem:[#allocation1 + $0x1] ss:$2 sm:$0xff] %v6126_v54 }
 0x408   : > { %v2563_v49 = vld.sshfl [vmem:[#allocation1 + $0x10] sm:$0xff pattern:$0x75316420]  ;;  %v2564_v27 = vld.sshfl [vmem:[#allocation1 + $0x18] sm:$0xff pattern:$0x75316420] }
 0x409   : > { %2596 = vst [vmem:[#allocation1 + $0x11] ss:$2 sm:$0xff] %v6139_v20 }
 0x40a   : > { %2579 = vst [vmem:[#allocation3 + $0x10] sm:$0xf] %v2563_v49 }
 0x40b   : > { %2580 = vst [vmem:[#allocation3 + $0x18] sm:$0xf] %v2564_v27  ;;  %v2565_v23 = vld.sshfl [vmem:[#allocation1 + $0x20] sm:$0xff pattern:$0x75316420] }
 0x40c   : > { %v2566_v31 = vld.sshfl [vmem:[#allocation1 + $0x28] sm:$0xff pattern:$0x75316420]  ;;  %2581 = vst [vmem:[#allocation3 + $0x20] sm:$0xf] %v2565_v23 }
 0x40d   : > { %2598 = vst [vmem:[#allocation1 + $0x21] ss:$2 sm:$0xff] %v6145_v24  ;;  %v6156_v9 = vld.sshfl [vmem:[#allocation1] sm:$0xff pattern:$0x75316420] }
 0x40e   : > { %2582 = vst [vmem:[#allocation3 + $0x28] sm:$0xf] %v2566_v31  ;;  %v6158_v32 = vld.sshfl [vmem:[#allocation1 + $0x8] sm:$0xff pattern:$0x75316420] }
 0x40f   : > { %2906 = vst [vmem:[#allocation1] ss:$2 sm:$0xff] %v6126_v54 }
 0x410   : > { %v2603_v37 = vld.sshfl [vmem:[#allocation1 + $0x10] sm:$0xff pattern:$0x75316420]  ;;  %v2604_v3 = vld.sshfl [vmem:[#allocation1 + $0x18] sm:$0xff pattern:$0x75316420] }
 0x411   : > { %2613 = vrot.lane.b32.xlu0 %v2603_v37, %s4897_s11  ;;  %2615 = vrot.lane.b32.xlu1 %v2604_v3, %s4897_s11  ;;  %2658 = vst [vmem:[#allocation1 + $0x10] ss:$2 sm:$0xff] %v6139_v20 }
 0x414   : > { %v2605_v38 = vld.sshfl [vmem:[#allocation1 + $0x20] sm:$0xff pattern:$0x75316420]  ;;  %v2606_v25 = vld.sshfl [vmem:[#allocation1 + $0x28] sm:$0xff pattern:$0x75316420] }
 0x415   : > { %2660 = vst [vmem:[#allocation1 + $0x20] ss:$2 sm:$0xff] %v6145_v24 }
 0x416   : > { %v6165_v56 = vld.sshfl [vmem:[#allocation1] sm:$0xff pattern:$0x75316420]  ;;  %v6167_v18 = vld.sshfl [vmem:[#allocation1 + $0x8] sm:$0xff pattern:$0x75316420] }
 0x417   : > { %v2519_v30 = vpop.permute.xlu0 %2518  ;;  %2969 = vst [vmem:[#allocation1 + $0x1] ss:$2 sm:$0xff] %v6126_v54 }
 0x418   : > { %v2523_v35 = vrot.slane %v2519_v30, 4  ;;  %v2665_v45 = vld.sshfl [vmem:[#allocation1 + $0x10] sm:$0xff pattern:$0x75316420] }
 0x419   : > { %2673 = vrot.lane.b32.xlu1 %v2664_v2, %s4898_s12  ;;  %2671 = vrot.lane.b32.xlu0 %v2663_v40, %s4898_s12  ;;  %v2666_v39 = vld.sshfl [vmem:[#allocation1 + $0x18] sm:$0xff pattern:$0x75316420] }
 0x41a   : > { %v2530_v44 = vsel %vm2492_vm14, %v2522_v22, %v2523_v35  ;;  %2545 = vst.msk [vmem:[#allocation4 + $0x20] sm:$0xf] %vm2544_vm13, %v2523_v35  ;;  %2675 = vrot.lane.b32.xlu2 %v2665_v45, %s4898_s12 }
 0x41b   : > { %v6171_v46 = vsel %vm2524_vm12, %v2530_v44, %v2519_v30  ;;  %2721 = vst [vmem:[#allocation1 + $0x11] ss:$2 sm:$0xff] %v6139_v20 }
 0x41c   : > { %2543 = vst [vmem:[#allocation4 + $0x18] sm:$0xff] %v6171_v46  ;;  %v6180_v6 = vld.sshfl [vmem:[#allocation1 + $0x20] sm:$0xff pattern:$0x75316420] }
 0x41d   : > { %2560 = vst [vmem:[#allocation1 + $0x30] ss:$2 sm:$0xff] %v6171_v46  ;;  %v6182_v47 = vld.sshfl [vmem:[#allocation1 + $0x28] sm:$0xff pattern:$0x75316420] }
 0x41e   : > { %2723 = vst [vmem:[#allocation1 + $0x21] ss:$2 sm:$0xff] %v6145_v24  ;;  %v6194_v53 = vld.sshfl [vmem:[#allocation1] sm:$0xff pattern:$0x75316420] }
 0x41f   : > { %v6197_v55 = vld.sshfl [vmem:[#allocation1 + $0x8] sm:$0xff pattern:$0x75316420] }
 0x420   : > { %3031 = vst [vmem:[#allocation1] ss:$2 sm:$0xff] %v6126_v54 }
 0x421   : > { %2677 = vrot.lane.b32.xlu0 %v2666_v39, %s4898_s12  ;;  %v3089_v8 = vld [vmem:[#allocation4 + $0x20] sm:$0xf] }
 0x422   : > { %2734 = vrot.lane.b32.xlu2 %v2726_v15, %s4899_s13  ;;  %v2728_v51 = vld.sshfl [vmem:[#allocation1 + $0x10] sm:$0xff pattern:$0x75316420]  ;;  %v2729_v43 = vld.sshfl [vmem:[#allocation1 + $0x18] sm:$0xff pattern:$0x75316420] }
 0x423   : > { %2783 = vst [vmem:[#allocation1 + $0x10] ss:$2 sm:$0xff] %v6139_v20  ;;  %v3159_v11 = vld [vmem:[#allocation4 + $0x20] sm:$0xf] }
 0x424   : > { %v2567_v1 = vld.sshfl [vmem:[#allocation1 + $0x30] sm:$0xff pattern:$0x75316420]  ;;  %v2568_v50 = vld.sshfl [vmem:[#allocation1 + $0x38] sm:$0xff pattern:$0x75316420] }
 0x425   : > { %2583 = vst [vmem:[#allocation3 + $0x30] sm:$0xf] %v2567_v1  ;;  %v6190_v52 = vld.sshfl [vmem:[#allocation1 + $0x20] sm:$0xff pattern:$0x75316420] }
 0x426   : > { %2600 = vst [vmem:[#allocation1 + $0x31] ss:$2 sm:$0xff] %v6171_v46  ;;  %v6192_v28 = vld.sshfl [vmem:[#allocation1 + $0x28] sm:$0xff pattern:$0x75316420] }
 0x427   : > { %2584 = vst.msk [vmem:[#allocation3 + $0x38] sm:$0xf] %vm345_vm1, %v2568_v50  ;;  %v6213_v62 = vld.sshfl [vmem:[#allocation1] sm:$0xff pattern:$0x75316420] }
 0x428   : > { %2785 = vst [vmem:[#allocation1 + $0x20] ss:$2 sm:$0xff] %v6145_v24  ;;  %v6216_v36 = vld.sshfl [vmem:[#allocation1 + $0x8] sm:$0xff pattern:$0x75316420] }
 0x429   : > { %2736 = vrot.lane.b32.xlu0 %v6134_v16, %s4899_s13  ;;  %3096 = vst [vmem:[#allocation1 + $0x1] ss:$2 sm:$0xff] %v6126_v54  ;;  %v3228_v39 = vld [vmem:[#allocation4 + $0x20] sm:$0xf] }
 0x42a   : > { %2617 = vrot.lane.b32.xlu2 %v2605_v38, %s4897_s11  ;;  %v2790_v58 = vld.sshfl [vmem:[#allocation1 + $0x10] sm:$0xff pattern:$0x75316420]  ;;  %v6205_v59 = vld.sshfl [vmem:[#allocation1 + $0x18] sm:$0xff pattern:$0x75316420] }
 0x42b   : > { %2846 = vst [vmem:[#allocation1 + $0x11] ss:$2 sm:$0xff] %v6139_v20 }
 0x42d   : > { %v2607_v21 = vld.sshfl [vmem:[#allocation1 + $0x30] sm:$0xff pattern:$0x75316420]  ;;  %v2608_v57 = vld.sshfl [vmem:[#allocation1 + $0x38] sm:$0xff pattern:$0x75316420] }
 0x42e   : > { %2621 = vrot.lane.b32.xlu1 %v2607_v21, %s4897_s11  ;;  %2662 = vst [vmem:[#allocation1 + $0x30] ss:$2 sm:$0xff] %v6171_v46 }
 0x42f   : > { %v6208_v60 = vld.sshfl [vmem:[#allocation1 + $0x20] sm:$0xff pattern:$0x75316420]  ;;  %v6210_v61 = vld.sshfl [vmem:[#allocation1 + $0x28] sm:$0xff pattern:$0x75316420] }
 0x430   : > { %2848 = vst [vmem:[#allocation1 + $0x21] ss:$2 sm:$0xff] %v6145_v24  ;;  %v6233_v34 = vld.sshfl [vmem:[#allocation1] sm:$0xff pattern:$0x75316420] }
 0x431   : > { %2619 = vrot.lane.b32.xlu0 %v2606_v25, %s4897_s11  ;;  %v6235_v29 = vld.sshfl [vmem:[#allocation1 + $0x8] sm:$0xff pattern:$0x75316420] }
 0x432   : > { %2623 = vrot.lane.b32.xlu2 %v2608_v57, %s4897_s11  ;;  %v6222_v19 = vld.sshfl [vmem:[#allocation1 + $0x10] sm:$0xff pattern:$0x75316420]  ;;  %v6224_v5 = vld.sshfl [vmem:[#allocation1 + $0x18] sm:$0xff pattern:$0x75316420] }
 0x433   : > { %2908 = vst [vmem:[#allocation1 + $0x10] ss:$2 sm:$0xff] %v6139_v20  ;;  %s7781_s11 = smov 7  }
 0x434   : > { %3111 = vst [vmem:[#allocation1 + $0x1] ss:$2 sm:$0xff] %v3089_v8 }
 0x435   : > { %v2669_v63 = vld.sshfl [vmem:[#allocation1 + $0x30] sm:$0xff pattern:$0x75316420]  ;;  %v2670_v41 = vld.sshfl [vmem:[#allocation1 + $0x38] sm:$0xff pattern:$0x75316420] }
 0x436   : > { %2738 = vrot.lane.b32.xlu1 %v2728_v51, %s4899_s13  ;;  %2725 = vst [vmem:[#allocation1 + $0x31] ss:$2 sm:$0xff] %v6171_v46 }
 0x437   : > { %v6227_v7 = vld.sshfl [vmem:[#allocation1 + $0x20] sm:$0xff pattern:$0x75316420]  ;;  %v6229_v48 = vld.sshfl [vmem:[#allocation1 + $0x28] sm:$0xff pattern:$0x75316420] }
 0x438   : > { %2910 = vst [vmem:[#allocation1 + $0x20] ss:$2 sm:$0xff] %v6145_v24 }
 0x439   : > { %2683 = vrot.lane.b32.xlu0 %v2669_v63, %s4898_s12 }
 0x43a   : > { %2740 = vrot.lane.b32.xlu2 %v2729_v43, %s4899_s13  ;;  %v6241_v0 = vld.sshfl [vmem:[#allocation1 + $0x10] sm:$0xff pattern:$0x75316420]  ;;  %v6243_v13 = vld.sshfl [vmem:[#allocation1 + $0x18] sm:$0xff pattern:$0x75316420] }
 0x43b   : > { %2971 = vst [vmem:[#allocation1 + $0x11] ss:$2 sm:$0xff] %v6139_v20  ;;  %v6252_v14 = vld.sshfl [vmem:[#allocation1] sm:$0xff pattern:$0x75316420] }
 0x43c   : > { %3165 = vst [vmem:[#allocation1] ss:$2 sm:$0xff] %v6126_v54 }
 0x43d   : > { %v2732_v10 = vld.sshfl [vmem:[#allocation1 + $0x30] sm:$0xff pattern:$0x75316420]  ;;  %v2733_v12 = vld.sshfl [vmem:[#allocation1 + $0x38] sm:$0xff pattern:$0x75316420] }
 0x43e   : > { %2796 = vrot.lane.b32.xlu1 %v6148_v26, %s4900_s14  ;;  %2787 = vst [vmem:[#allocation1 + $0x30] ss:$2 sm:$0xff] %v6171_v46 }
 0x43f   : > { %v6246_v2 = vld.sshfl [vmem:[#allocation1 + $0x20] sm:$0xff pattern:$0x75316420]  ;;  %v6248_v40 = vld.sshfl [vmem:[#allocation1 + $0x28] sm:$0xff pattern:$0x75316420] }
 0x440   : > { %2973 = vst [vmem:[#allocation1 + $0x21] ss:$2 sm:$0xff] %v6145_v24 }
 0x441   : > { %2800 = vrot.lane.b32.xlu0 %v2790_v58, %s4900_s14 }
 0x442   : > { %2798 = vrot.lane.b32.xlu2 %v6151_v4, %s4900_s14  ;;  %v6264_v33 = vld.sshfl [vmem:[#allocation1 + $0x10] sm:$0xff pattern:$0x75316420]  ;;  %v6266_v42 = vld.sshfl [vmem:[#allocation1 + $0x18] sm:$0xff pattern:$0x75316420] }
 0x443   : > { %3033 = vst [vmem:[#allocation1 + $0x10] ss:$2 sm:$0xff] %v6139_v20  ;;  %v6276_v26 = vld.sshfl [vmem:[#allocation1 + $0x8] sm:$0xff pattern:$0x75316420] }
 0x444   : > { %v6278_v4 = vld.sshfl [vmem:[#allocation1] sm:$0xff pattern:$0x75316420] }
 0x445   : > { %v6257_v15 = vld.sshfl [vmem:[#allocation1 + $0x30] sm:$0xff pattern:$0x75316420]  ;;  %v6259_v16 = vld.sshfl [vmem:[#allocation1 + $0x38] sm:$0xff pattern:$0x75316420] }
 0x446   : > { %2679 = vrot.lane.b32.xlu1 %v6180_v6, %s4898_s12  ;;  %2850 = vst [vmem:[#allocation1 + $0x31] ss:$2 sm:$0xff] %v6171_v46  ;;  %v6332_v51 = vpop.permute.xlu2 %2611 }
 0x447   : > { %v6269_v17 = vld.sshfl [vmem:[#allocation1 + $0x20] sm:$0xff pattern:$0x75316420]  ;;  %v6271_v22 = vld.sshfl [vmem:[#allocation1 + $0x28] sm:$0xff pattern:$0x75316420] }
 0x448   : > { %3035 = vst [vmem:[#allocation1 + $0x20] ss:$2 sm:$0xff] %v6145_v24 }
 0x449   : > { %2859 = vrot.lane.b32.xlu0 %v6156_v9, %s4901_s15  ;;  %3180 = vst [vmem:[#allocation1] ss:$2 sm:$0xff] %v3159_v11 }
 0x44a   : > { %2681 = vrot.lane.b32.xlu2 %v6182_v47, %s4898_s12  ;;  %v6288_v23 = vld.sshfl [vmem:[#allocation1 + $0x10] sm:$0xff pattern:$0x75316420]  ;;  %v6290_v31 = vld.sshfl [vmem:[#allocation1 + $0x18] sm:$0xff pattern:$0x75316420] }
 0x44b   : > { %3098 = vst [vmem:[#allocation1 + $0x11] ss:$2 sm:$0xff] %v6139_v20 }
 0x44d   : > { %v6282_v49 = vld.sshfl [vmem:[#allocation1 + $0x30] sm:$0xff pattern:$0x75316420]  ;;  %v6284_v27 = vld.sshfl [vmem:[#allocation1 + $0x38] sm:$0xff pattern:$0x75316420] }
 0x44e   : > { %2685 = vrot.lane.b32.xlu1 %v2670_v41, %s4898_s12  ;;  %2912 = vst [vmem:[#allocation1 + $0x30] ss:$2 sm:$0xff] %v6171_v46  ;;  %s7801_s12 = smov 6  }
 0x44f   : > { %v6293_v9 = vld.sshfl [vmem:[#allocation1 + $0x28] sm:$0xff pattern:$0x75316420]  ;;  %v6295_v37 = vld.sshfl [vmem:[#allocation1 + $0x20] sm:$0xff pattern:$0x75316420] }
 0x450   : > { %3100 = vst [vmem:[#allocation1 + $0x21] ss:$2 sm:$0xff] %v6145_v24  ;;  %v6300_v3 = vld.sshfl [vmem:[#allocation1] sm:$0xff pattern:$0x75316420] }
 0x451   : > { %2742 = vrot.lane.b32.xlu0 %v6190_v52, %s4899_s13  ;;  %3235 = vst [vmem:[#allocation1 + $0x1] ss:$2 sm:$0xff] %v6126_v54 }
 0x452   : > { %2746 = vrot.lane.b32.xlu2 %v2732_v10, %s4899_s13  ;;  %v6311_v30 = vld.sshfl [vmem:[#allocation1 + $0x10] sm:$0xff pattern:$0x75316420]  ;;  %v6313_v35 = vld.sshfl [vmem:[#allocation1 + $0x18] sm:$0xff pattern:$0x75316420] }
 0x453   : > { %3167 = vst [vmem:[#allocation1 + $0x10] ss:$2 sm:$0xff] %v6139_v20 }
 0x455   : > { %v6304_v38 = vld.sshfl [vmem:[#allocation1 + $0x30] sm:$0xff pattern:$0x75316420]  ;;  %v6306_v25 = vld.sshfl [vmem:[#allocation1 + $0x38] sm:$0xff pattern:$0x75316420] }
 0x456   : > { %2802 = vrot.lane.b32.xlu1 %v6205_v59, %s4900_s14  ;;  %2975 = vst [vmem:[#allocation1 + $0x31] ss:$2 sm:$0xff] %v6171_v46 }
 0x457   : > { %v6316_v44 = vld.sshfl [vmem:[#allocation1 + $0x20] sm:$0xff pattern:$0x75316420]  ;;  %v6318_v45 = vld.sshfl [vmem:[#allocation1 + $0x28] sm:$0xff pattern:$0x75316420] }
 0x458   : > { %3169 = vst [vmem:[#allocation1 + $0x20] ss:$2 sm:$0xff] %v6145_v24  ;;  %v6322_v6 = vld.sshfl [vmem:[#allocation1 + $0x8] sm:$0xff pattern:$0x75316420] }
 0x459   : > { %2748 = vrot.lane.b32.xlu0 %v2733_v12, %s4899_s13  ;;  %v6324_v47 = vld.sshfl [vmem:[#allocation1] sm:$0xff pattern:$0x75316420] }
 0x45a   : > { %2863 = vrot.lane.b32.xlu2 %v6222_v19, %s4901_s15  ;;  %3250 = vst [vmem:[#allocation1 + $0x1] ss:$2 sm:$0xff] %v3228_v39  ;;  %v6337_v43 = vld.sshfl [vmem:[#allocation1 + $0x18] sm:$0xff pattern:$0x75316420] }
 0x45b   : > { %v6339_v52 = vld.sshfl [vmem:[#allocation1 + $0x10] sm:$0xff pattern:$0x75316420] }
 0x45c   : > { %3237 = vst [vmem:[#allocation1 + $0x11] ss:$2 sm:$0xff] %v6139_v20 }
 0x45d   : > { %v6328_v1 = vld.sshfl [vmem:[#allocation1 + $0x30] sm:$0xff pattern:$0x75316420]  ;;  %v6330_v50 = vld.sshfl [vmem:[#allocation1 + $0x38] sm:$0xff pattern:$0x75316420] }
 0x45e   : > { %2861 = vrot.lane.b32.xlu1 %v6158_v32, %s4901_s15  ;;  %3037 = vst [vmem:[#allocation1 + $0x30] ss:$2 sm:$0xff] %v6171_v46  ;;  %v2610_v21 = vpop.permute.xlu1 %2609 }
 0x45f   : > { %v2625_v57 = vsel %vm387_vm0, %v2610_v21, %v6332_v51  ;;  %v6344_v58 = vld.sshfl [vmem:[#allocation1 + $0x20] sm:$0xff pattern:$0x75316420]  ;;  %v6346_v59 = vld.sshfl [vmem:[#allocation1 + $0x28] sm:$0xff pattern:$0x75316420] }
 0x460   : > { %2640 = vst [vmem:[#allocation3] sm:$0xf0] %v2625_v57  ;;  %v3298_v21 = vld [vmem:[#allocation4 + $0x20] sm:$0xf] }
 0x461   : > { %2865 = vrot.lane.b32.xlu0 %v6224_v5, %s4901_s15  ;;  %3239 = vst [vmem:[#allocation1 + $0x21] ss:$2 sm:$0xff] %v6145_v24  ;;  %v6351_v32 = vld.sshfl [vmem:[#allocation1] sm:$0xff pattern:$0x75316420] }
 0x462   : > { %7677 = vst [vmem:[#allocation5_spill] sm:$0xff] %v6351_v32  ;;  %2921 = vrot.lane.b32.xlu2 %v6165_v56, %s4902_s16 }
 0x463   : > { %3304 = vst [vmem:[#allocation1] ss:$2 sm:$0xff] %v6126_v54  ;;  %v6363_v19 = vld.sshfl [vmem:[#allocation1 + $0x18] sm:$0xff pattern:$0x75316420] }
 0x464   : > { %v6365_v5 = vld.sshfl [vmem:[#allocation1 + $0x10] sm:$0xff pattern:$0x75316420] }
 0x465   : > { %v6356_v63 = vld.sshfl [vmem:[#allocation1 + $0x30] sm:$0xff pattern:$0x75316420]  ;;  %v6358_v41 = vld.sshfl [vmem:[#allocation1 + $0x38] sm:$0xff pattern:$0x75316420] }
 0x466   : > { %2744 = vrot.lane.b32.xlu1 %v6192_v28, %s4899_s13  ;;  %3102 = vst [vmem:[#allocation1 + $0x31] ss:$2 sm:$0xff] %v6171_v46  ;;  %s7814_s13 = smov 56  }
 0x467   : > { %3306 = vst [vmem:[#allocation1 + $0x10] ss:$2 sm:$0xff] %v6139_v20 }
 0x468   : > { %v6368_v8 = vld.sshfl [vmem:[#allocation1 + $0x20] sm:$0xff pattern:$0x75316420]  ;;  %v6370_v56 = vld.sshfl [vmem:[#allocation1 + $0x28] sm:$0xff pattern:$0x75316420] }
 0x469   : > { %7678 = vst [vmem:[#allocation6_spill] sm:$0xff] %v6370_v56  ;;  %2923 = vrot.lane.b32.xlu0 %v6167_v18, %s4902_s16 }
 0x46a   : > { %3308 = vst [vmem:[#allocation1 + $0x20] ss:$2 sm:$0xff] %v6145_v24  ;;  %2804 = vrot.lane.b32.xlu2 %v6208_v60, %s4900_s14  ;;  %v6377_v28 = vld.sshfl [vmem:[#allocation1 + $0x8] sm:$0xff pattern:$0x75316420] }
 0x46b   : > { %7679 = vst [vmem:[#allocation7_spill] sm:$0xff] %v6377_v28  ;;  %v6386_v11 = vld.sshfl [vmem:[#allocation1] sm:$0xff pattern:$0x75316420] }
 0x46c   : > { %7680 = vst [vmem:[#allocation8_spill] sm:$0xff] %v6386_v11 }
 0x46d   : > { %v6379_v10 = vld.sshfl [vmem:[#allocation1 + $0x38] sm:$0xff pattern:$0x75316420]  ;;  %v6381_v12 = vld.sshfl [vmem:[#allocation1 + $0x30] sm:$0xff pattern:$0x75316420] }
 0x46e   : > { %2808 = vrot.lane.b32.xlu1 %v6257_v15, %s4900_s14  ;;  %3171 = vst [vmem:[#allocation1 + $0x30] ss:$2 sm:$0xff] %v6171_v46  ;;  %v6388_v39 = vld.sshfl [vmem:[#allocation1 + $0x18] sm:$0xff pattern:$0x75316420] }
 0x46f   : > { %v6390_v18 = vld.sshfl [vmem:[#allocation1 + $0x10] sm:$0xff pattern:$0x75316420]  ;;  %3319 = vst [vmem:[#allocation1] ss:$2 sm:$0xff] %v3298_v21 }
 0x470   : > { %3376 = vst [vmem:[#allocation1 + $0x11] ss:$2 sm:$0xff] %v6139_v20 }
 0x471   : > { %v6393_v60 = vld.sshfl [vmem:[#allocation1 + $0x20] sm:$0xff pattern:$0x75316420]  ;;  %v6395_v57 = vld.sshfl [vmem:[#allocation1 + $0x28] sm:$0xff pattern:$0x75316420]  ;;  %2806 = vrot.lane.b32.xlu0 %v6210_v61, %s4900_s14 }
 0x472   : > { %7681 = vst [vmem:[#allocation9_spill] sm:$0xff] %v6395_v57  ;;  %2810 = vrot.lane.b32.xlu2 %v6259_v16, %s4900_s14  ;;  %v6418_v61 = vld [vmem:[#allocation4 + $0x10] sm:$0xff]  ;;  %s7825_s14 = smov 55  }
 0x473   : > { %3378 = vst [vmem:[#allocation1 + $0x21] ss:$2 sm:$0xff] %v6145_v24 }
 0x474   : > { %v6408_v21 = vpop.permute.xlu2 %2675 }
 0x475   : > { %v6402_v15 = vld.sshfl [vmem:[#allocation1 + $0x38] sm:$0xff pattern:$0x75316420]  ;;  %v6404_v11 = vld.sshfl [vmem:[#allocation1 + $0x30] sm:$0xff pattern:$0x75316420] }
 0x476   : > { %2925 = vrot.lane.b32.xlu1 %v6241_v0, %s4902_s16  ;;  %3241 = vst [vmem:[#allocation1 + $0x31] ss:$2 sm:$0xff] %v6171_v46  ;;  %v6416_v24 = vld.sshfl [vmem:[#allocation1] sm:$0xff pattern:$0x75316420] }
 0x477   : > { %v6411_v57 = vld.sshfl [vmem:[#allocation1 + $0x18] sm:$0xff pattern:$0x75316420]  ;;  %v6413_v32 = vld.sshfl [vmem:[#allocation1 + $0x10] sm:$0xff pattern:$0x75316420] }
 0x478   : > { %7682 = vst [vmem:[#allocation10_spill] sm:$0xff] %v6411_v57 }
 0x479   : > { %7683 = vst [vmem:[#allocation11_spill] sm:$0xff] %v6413_v32  ;;  %2871 = vrot.lane.b32.xlu0 %v6282_v49, %s4901_s15  ;;  %v3367_v32 = vld [vmem:[#allocation4 + $0x20] sm:$0xf] }
 0x47a   : > { %3445 = vst [vmem:[#allocation1 + $0x10] ss:$2 sm:$0xff] %v6139_v20  ;;  %v6421_v16 = vld.sshfl [vmem:[#allocation1 + $0x20] sm:$0xff pattern:$0x75316420]  ;;  %2927 = vrot.lane.b32.xlu2 %v6243_v13, %s4902_s16 }
 0x47b   : > { %7684 = vst [vmem:[#allocation12_spill] sm:$0xff] %v6416_v24  ;;  %v6423_v28 = vld.sshfl [vmem:[#allocation1 + $0x28] sm:$0xff pattern:$0x75316420] }
 0x47c   : > { %3374 = vst [vmem:[#allocation1 + $0x1] ss:$2 sm:$0xff] %v6126_v54  ;;  %v6436_v24 = vpop.permute.xlu2 %2734 }
 0x47d   : > { %7685 = vst [vmem:[#allocation13_spill] sm:$0xff] %v6421_v16  ;;  %v6430_v0 = vld.sshfl [vmem:[#allocation1 + $0x38] sm:$0xff pattern:$0x75316420] }
 0x47e   : > { %7686 = vst [vmem:[#allocation14_spill] sm:$0xff] %v6423_v28  ;;  %v6432_v20 = vld.sshfl [vmem:[#allocation1 + $0x30] sm:$0xff pattern:$0x75316420]  ;;  %2984 = vrot.lane.b32.xlu1 %v6194_v53, %s4903_s17 }
 0x47f   : > { %3447 = vst [vmem:[#allocation1 + $0x20] ss:$2 sm:$0xff] %v6418_v61  ;;  %v6439_v28 = vld [vmem:[#allocation4 + $0x8] sm:$0xff] }
 0x480   : > { %7687 = vst [vmem:[#allocation15_spill] sm:$0xff] %v6432_v20 }
 0x481   : > { %3310 = vst [vmem:[#allocation1 + $0x30] ss:$2 sm:$0xff] %v6171_v46  ;;  %v6441_v16 = vld.sshfl [vmem:[#allocation1 + $0x18] sm:$0xff pattern:$0x75316420]  ;;  %2988 = vrot.lane.b32.xlu0 %v6264_v33, %s4903_s17 }
 0x482   : > { %7688 = vst [vmem:[#allocation16_spill] sm:$0xff] %v6441_v16  ;;  %v6443_v49 = vld.sshfl [vmem:[#allocation1 + $0x10] sm:$0xff pattern:$0x75316420]  ;;  %2986 = vrot.lane.b32.xlu2 %v6197_v55, %s4903_s17 }
 0x483   : > { %7689 = vst [vmem:[#allocation17_spill] sm:$0xff] %v6443_v49  ;;  %v6446_v13 = vld.sshfl [vmem:[#allocation1 + $0x8] sm:$0xff pattern:$0x75316420]  ;;  %v2616_v49 = vpop.permute.xlu1 %2615  ;;  %v2614_v16 = vpop.permute.xlu0 %2613 }
 0x484   : > { %3515 = vst [vmem:[#allocation1 + $0x11] ss:$2 sm:$0xff] %v6439_v28  ;;  %v6448_v57 = vld.sshfl [vmem:[#allocation1] sm:$0xff pattern:$0x75316420]  ;;  %v2627_v33 = vsel %vm387_vm0, %v2614_v16, %v2616_v49 }
 0x485   : > { %7690 = vst [vmem:[#allocation18_spill] sm:$0xff] %v6446_v13 }
 0x486   : > { %7691 = vst [vmem:[#allocation19_spill] sm:$0xff] %v6448_v57  ;;  %v6450_v56 = vld.sshfl [vmem:[#allocation1 + $0x20] sm:$0xff pattern:$0x75316420]  ;;  %2867 = vrot.lane.b32.xlu1 %v6227_v7, %s4901_s15  ;;  %v2626_v57 = vsel %vm387_vm0, %v6332_v51, %v2614_v16 }
 0x487   : > { %7692 = vst [vmem:[#allocation20_spill] sm:$0xff] %v6450_v56  ;;  %v6452_v53 = vld.sshfl [vmem:[#allocation1 + $0x28] sm:$0xff pattern:$0x75316420] }
 0x488   : > { %7693 = vst [vmem:[#allocation21_spill] sm:$0xff] %v6452_v53  ;;  %v6459_v20 = vld.sshfl [vmem:[#allocation1 + $0x38] sm:$0xff pattern:$0x75316420] }
 0x489   : > { %3389 = vst [vmem:[#allocation1 + $0x1] ss:$2 sm:$0xff] %v3367_v32  ;;  %v6461_v13 = vld.sshfl [vmem:[#allocation1 + $0x30] sm:$0xff pattern:$0x75316420]  ;;  %v6468_v32 = vpop.permute.xlu2 %2617  ;;  %3046 = vrot.lane.b32.xlu0 %v6213_v62, %s4904_s18 }
 0x48a   : > { %3517 = vst [vmem:[#allocation1 + $0x21] ss:$2 sm:$0xff] %v6418_v61  ;;  %v2628_v55 = vsel %vm387_vm0, %v2616_v49, %v6468_v32  ;;  %2869 = vrot.lane.b32.xlu2 %v6229_v48, %s4901_s15  ;;  %v3437_v48 = vld [vmem:[#allocation4 + $0x20] sm:$0xf] }
 0x48b   : > { %3380 = vst [vmem:[#allocation1 + $0x31] ss:$2 sm:$0xff] %v6171_v46  ;;  %v6473_v53 = vld.sshfl [vmem:[#allocation1 + $0x18] sm:$0xff pattern:$0x75316420]  ;;  %v6485_v46 = vld [vmem:[#allocation4 + $0x18] sm:$0xff]  ;;  %v2674_v51 = vpop.permute.xlu1 %2673 }
 0x48c   : > { %2641 = vst [vmem:[#allocation3 + $0x8] sm:$0xf0] %v2626_v57  ;;  %v6475_v56 = vld.sshfl [vmem:[#allocation1 + $0x10] sm:$0xff pattern:$0x75316420]  ;;  %v2672_v57 = vpop.permute.xlu0 %2671 }
 0x48d   : > { %7694 = vst [vmem:[#allocation22_spill] sm:$0xff] %v6473_v53  ;;  %v2687_v62 = vsel %vm451_vm3, %v2672_v57, %v2674_v51 }
 0x48e   : > { %2642 = vst [vmem:[#allocation3 + $0x10] sm:$0xf0] %v2627_v33  ;;  %2873 = vrot.lane.b32.xlu1 %v6284_v27, %s4901_s15  ;;  %v2688_v33 = vsel %vm451_vm3, %v2674_v51, %v6408_v21  ;;  %s7835_s15 = smov 34  }
 0x48f   : > { %7695 = vst [vmem:[#allocation23_spill] sm:$0xff] %v6475_v56 }
 0x490   : > { %2643 = vst [vmem:[#allocation3 + $0x18] sm:$0xf0] %v2628_v55  ;;  %v6477_v7 = vld.sshfl [vmem:[#allocation1] sm:$0xff pattern:$0x75316420] }
 0x491   : > { %7696 = vst [vmem:[#allocation24_spill] sm:$0xff] %v6477_v7  ;;  %v2624_v55 = vpop.permute.xlu2 %2623  ;;  %v6497_v7 = vld.sshfl [vmem:[#allocation1 + $0x20] sm:$0xff pattern:$0x75316420]  ;;  %2929 = vrot.lane.b32.xlu0 %v6246_v2, %s4902_s16 }
 0x492   : > { %3584 = vst [vmem:[#allocation1 + $0x10] ss:$2 sm:$0xff] %v6439_v28  ;;  %v6487_v16 = vld.sshfl [vmem:[#allocation1 + $0x38] sm:$0xff pattern:$0x75316420]  ;;  %2933 = vrot.lane.b32.xlu2 %v6304_v38, %s4902_s16 }
 0x493   : > { %3443 = vst [vmem:[#allocation1] ss:$2 sm:$0xff] %v6126_v54  ;;  %v6489_v49 = vld.sshfl [vmem:[#allocation1 + $0x30] sm:$0xff pattern:$0x75316420] }
 0x494   : > { %3449 = vst [vmem:[#allocation1 + $0x30] ss:$2 sm:$0xff] %v6485_v46  ;;  %v6500_v56 = vld.sshfl [vmem:[#allocation1 + $0x28] sm:$0xff pattern:$0x75316420] }
 0x495   : > { %2703 = vst [vmem:[#allocation3 + $0x48] sm:$0xf] %v2688_v33  ;;  %v6515_v33 = vpop.permute.xlu0 %2677 }
 0x496   : > { %2702 = vst [vmem:[#allocation3 + $0x40] sm:$0xf] %v2687_v62  ;;  %2990 = vrot.lane.b32.xlu1 %v6266_v42, %s4903_s17  ;;  %v2689_v2 = vsel %vm451_vm3, %v6408_v21, %v6515_v33 }
 0x497   : > { %2647 = vst.msk [vmem:[#allocation3 + $0x38] sm:$0xf0] %vm410_vm2, %v2624_v55 }
 0x498   : > { %7697 = vst [vmem:[#allocation25_spill] sm:$0xff] %v6500_v56 }
 0x499   : > { %v6508_v51 = vld.sshfl [vmem:[#allocation1 + $0x18] sm:$0xff pattern:$0x75316420]  ;;  %3586 = vst [vmem:[#allocation1 + $0x20] ss:$2 sm:$0xff] %v6418_v61  ;;  %2935 = vrot.lane.b32.xlu0 %v6306_v25, %s4902_s16 }
 0x49a   : > { %v6502_v53 = vld.sshfl [vmem:[#allocation1 + $0x8] sm:$0xff pattern:$0x75316420]  ;;  %v6504_v27 = vld.sshfl [vmem:[#allocation1] sm:$0xff pattern:$0x75316420]  ;;  %3050 = vrot.lane.b32.xlu2 %v6288_v23, %s4904_s18 }
 0x49b   : > { %7698 = vst [vmem:[#allocation26_spill] sm:$0xff] %v6504_v27  ;;  %v6513_v57 = vld.sshfl [vmem:[#allocation1 + $0x10] sm:$0xff pattern:$0x75316420] }
 0x49c   : > { %3458 = vst [vmem:[#allocation1] ss:$2 sm:$0xff] %v3437_v48  ;;  %v6517_v62 = vld.sshfl [vmem:[#allocation1 + $0x38] sm:$0xff pattern:$0x75316420]  ;;  %v6526_v48 = vpop.permute.xlu2 %2740 }
 0x49d   : > { %7699 = vst [vmem:[#allocation27_spill] sm:$0xff] %v6508_v51  ;;  %v6519_v56 = vld.sshfl [vmem:[#allocation1 + $0x30] sm:$0xff pattern:$0x75316420] }
 0x49e   : > { %7700 = vst [vmem:[#allocation28_spill] sm:$0xff] %v6513_v57  ;;  %v2737_v57 = vpop.permute.xlu0 %2736  ;;  %3048 = vrot.lane.b32.xlu1 %v6216_v36, %s4904_s18 }
 0x49f   : > { %3519 = vst [vmem:[#allocation1 + $0x31] ss:$2 sm:$0xff] %v6485_v46  ;;  %v2750_v25 = vsel %vm515_vm4, %v6436_v24, %v2737_v57  ;;  %v3506_v24 = vld [vmem:[#allocation4 + $0x20] sm:$0xf] }
 0x4a0   : > { %2704 = vst [vmem:[#allocation3 + $0x50] sm:$0xf] %v2689_v2  ;;  %v6537_v42 = vld.sshfl [vmem:[#allocation1 + $0x20] sm:$0xff pattern:$0x75316420] }
 0x4a1   : > { %3654 = vst [vmem:[#allocation1 + $0x11] ss:$2 sm:$0xff] %v6439_v28  ;;  %v6539_v21 = vld.sshfl [vmem:[#allocation1 + $0x28] sm:$0xff pattern:$0x75316420]  ;;  %3052 = vrot.lane.b32.xlu0 %v6290_v31, %s4904_s18 }
 0x4a2   : > { %7702 = vst [vmem:[#allocation30_spill] sm:$0xff] %v6537_v42  ;;  %v2622_v42 = vpop.permute.xlu1 %2621  ;;  %3113 = vrot.lane.b32.xlu2 %v6233_v34, %s4905_s19 }
 0x4a3   : > { %v6530_v38 = vld.sshfl [vmem:[#allocation1] sm:$0xff pattern:$0x75316420]  ;;  %7703 = vst [vmem:[#allocation31_spill] sm:$0xff] %v6539_v21  ;;  %v2631_v27 = vsel %vm387_vm0, %v2622_v42, %v2624_v55 }
 0x4a4   : > { %7701 = vst [vmem:[#allocation29_spill] sm:$0xff] %v6530_v38  ;;  %v6549_v28 = vpop.permute.xlu2 %2798  ;;  %v6557_v38 = vld [vmem:[#allocation4 + $0xc] sm:$0xff] }
 0x4a5   : > { %3513 = vst [vmem:[#allocation1 + $0x1] ss:$2 sm:$0xff] %v6126_v54 }
 0x4a6   : > { %v6541_v51 = vld.sshfl [vmem:[#allocation1 + $0x30] sm:$0xff pattern:$0x75316420]  ;;  %v6543_v2 = vld.sshfl [vmem:[#allocation1 + $0x38] sm:$0xff pattern:$0x75316420]  ;;  %2931 = vrot.lane.b32.xlu1 %v6248_v40, %s4902_s16 }
 0x4a7   : > { %3588 = vst [vmem:[#allocation1 + $0x30] ss:$2 sm:$0xff] %v6485_v46  ;;  %s7836_s16 = smov 35  }
 0x4a8   : > { %2765 = vst [vmem:[#allocation3 + $0x40] sm:$0xf0] %v2750_v25  ;;  %v6552_v23 = vld.sshfl [vmem:[#allocation1 + $0x18] sm:$0xff pattern:$0x75316420] }
 0x4a9   : > { %7704 = vst [vmem:[#allocation32_spill] sm:$0xff] %v6552_v23  ;;  %v6555_v21 = vld.sshfl [vmem:[#allocation1 + $0x10] sm:$0xff pattern:$0x75316420]  ;;  %3115 = vrot.lane.b32.xlu0 %v6235_v29, %s4905_s19 }
 0x4aa   : > { %3656 = vst [vmem:[#allocation1 + $0x21] ss:$2 sm:$0xff] %v6418_v61  ;;  %v2620_v61 = vpop.permute.xlu0 %2619  ;;  %v2739_v34 = vpop.permute.xlu1 %2738  ;;  %2992 = vrot.lane.b32.xlu2 %v6269_v17, %s4903_s17 }
 0x4ab   : > { %7705 = vst [vmem:[#allocation33_spill] sm:$0xff] %v6555_v21  ;;  %v2629_v55 = vsel %vm387_vm0, %v6468_v32, %v2620_v61  ;;  %v2752_v40 = vsel %vm515_vm4, %v2739_v34, %v6526_v48 }
 0x4ac   : > { %3723 = vst [vmem:[#allocation1 + $0x10] ss:$2 sm:$0xff] %v6557_v38  ;;  %v6561_v36 = vld.sshfl [vmem:[#allocation1 + $0x8] sm:$0xff pattern:$0x75316420]  ;;  %v2682_v31 = vpop.permute.xlu2 %2681 }
 0x4ad   : > { %2646 = vst [vmem:[#allocation3 + $0x30] sm:$0xf0] %v2631_v27  ;;  %v6565_v25 = vld.sshfl [vmem:[#allocation1] sm:$0xff pattern:$0x75316420]  ;;  %v2630_v27 = vsel %vm387_vm0, %v2620_v61, %v2622_v42  ;;  %vm7768_vm0 = vcmask 220160  }
 0x4ae   : > { %7706 = vst [vmem:[#allocation34_spill] sm:$0xff] %v6565_v25  ;;  %v6569_v21 = vld.sshfl [vmem:[#allocation1 + $0x30] sm:$0xff pattern:$0x75316420]  ;;  %2996 = vrot.lane.b32.xlu1 %v6328_v1, %s4903_s17  ;;  %vm7786_vm12 = vmmov %vm7768_vm0 }
 0x4af   : > { %3528 = vst [vmem:[#allocation1 + $0x1] ss:$2 sm:$0xff] %v3506_v24  ;;  %v6571_v23 = vld.sshfl [vmem:[#allocation1 + $0x38] sm:$0xff pattern:$0x75316420]  ;;  %vm7791_vm15 = vmmov %vm7768_vm0 }
 0x4b0   : > { %7707 = vst [vmem:[#allocation35_spill] sm:$0xff] %v6569_v21  ;;  %v6583_v21 = vld [vmem:[#allocation4 + $0x14] sm:$0xff]  ;;  %vm7792_vm13 = vmmov %vm7768_vm0 }
 0x4b1   : > { %7708 = vst [vmem:[#allocation36_spill] sm:$0xff] %v6571_v23  ;;  %v6579_v25 = vld.sshfl [vmem:[#allocation1 + $0x20] sm:$0xff pattern:$0x75316420]  ;;  %v2751_v23 = vsel %vm515_vm4, %v2737_v57, %v2739_v34  ;;  %2994 = vrot.lane.b32.xlu0 %v6271_v22, %s4903_s17 }
 0x4b2   : > { %3658 = vst [vmem:[#allocation1 + $0x31] ss:$2 sm:$0xff] %v6485_v46  ;;  %v6581_v24 = vld.sshfl [vmem:[#allocation1 + $0x28] sm:$0xff pattern:$0x75316420]  ;;  %v2684_v57 = vpop.permute.xlu0 %2683  ;;  %2998 = vrot.lane.b32.xlu2 %v6330_v50, %s4903_s17  ;;  %s7843_s17 = smov 54  }
 0x4b3   : > { %2644 = vst [vmem:[#allocation3 + $0x20] sm:$0xf0] %v2629_v55  ;;  %v6593_v46 = vld [vmem:[#allocation4 + $0x1c] sm:$0xff]  ;;  %v2797_v55 = vpop.permute.xlu1 %2796 }
 0x4b4   : > { %2645 = vst [vmem:[#allocation3 + $0x28] sm:$0xf0] %v2630_v27  ;;  %v6605_v29 = vpop.permute.xlu2 %2746  ;;  %v2812_v34 = vsel %vm578_vm5, %v2797_v55, %v6549_v28 }
 0x4b5   : > { %7709 = vst [vmem:[#allocation37_spill] sm:$0xff] %v6581_v24 }
 0x4b6   : > { %3725 = vst [vmem:[#allocation1 + $0x20] ss:$2 sm:$0xff] %v6583_v21  ;;  %v6591_v32 = vld.sshfl [vmem:[#allocation1] sm:$0xff pattern:$0x75316420]  ;;  %3117 = vrot.lane.b32.xlu1 %v6311_v30, %s4905_s19 }
 0x4b7   : > { %2766 = vst [vmem:[#allocation3 + $0x48] sm:$0xf0] %v2751_v23  ;;  %v2692_v23 = vsel %vm451_vm3, %v2682_v31, %v2684_v57  ;;  %v6642_v30 = vld.sshfl [vmem:[#allocation1 + $0x18] sm:$0xff pattern:$0x75316420] }
 0x4b8   : > { %2767 = vst [vmem:[#allocation3 + $0x50] sm:$0xf0] %v2752_v40  ;;  %v3576_v40 = vld [vmem:[#allocation4 + $0x20] sm:$0xf] }
 0x4b9   : > { %3582 = vst [vmem:[#allocation1] ss:$2 sm:$0xff] %v6126_v54  ;;  %v6598_v42 = vld.sshfl [vmem:[#allocation1 + $0x30] sm:$0xff pattern:$0x75316420]  ;;  %3058 = vrot.lane.b32.xlu0 %v6356_v63, %s4904_s18 }
 0x4ba   : > { %7710 = vst [vmem:[#allocation38_spill] sm:$0xff] %v6598_v42  ;;  %v6600_v61 = vld.sshfl [vmem:[#allocation1 + $0x38] sm:$0xff pattern:$0x75316420]  ;;  %3119 = vrot.lane.b32.xlu2 %v6313_v35, %s4905_s19 }
 0x4bb   : > { %3727 = vst [vmem:[#allocation1 + $0x30] ss:$2 sm:$0xff] %v6593_v46 }
 0x4bc   : > { %2707 = vst [vmem:[#allocation3 + $0x68] sm:$0xf] %v2692_v23  ;;  %v2801_v23 = vpop.permute.xlu0 %2800  ;;  %v6631_v22 = vpop.permute.xlu2 %2863 }
 0x4bd   : > { %v6608_v27 = vld.sshfl [vmem:[#allocation1 + $0x20] sm:$0xff pattern:$0x75316420]  ;;  %v6610_v17 = vld.sshfl [vmem:[#allocation1 + $0x28] sm:$0xff pattern:$0x75316420]  ;;  %v2813_v55 = vsel %vm578_vm5, %v6549_v28, %v2801_v23 }
 0x4be   : > { %7711 = vst [vmem:[#allocation39_spill] sm:$0xff] %v6608_v27  ;;  %3129 = vrot.lane.b32.xlu1 %v6252_v14, %s4905_s19 }
 0x4bf   : > { %7712 = vst [vmem:[#allocation40_spill] sm:$0xff] %v6610_v17 }
 0x4c0   : > { %3795 = vst [vmem:[#allocation1 + $0x21] ss:$2 sm:$0xff] %v6583_v21  ;;  %v6617_v1 = vld.sshfl [vmem:[#allocation1 + $0x8] sm:$0xff pattern:$0x75316420] }
 0x4c1   : > { %2827 = vst [vmem:[#allocation3 + $0x80] sm:$0xf] %v2812_v34  ;;  %v6619_v24 = vld.sshfl [vmem:[#allocation1] sm:$0xff pattern:$0x75316420]  ;;  %v2680_v34 = vpop.permute.xlu1 %2679  ;;  %3184 = vrot.lane.b32.xlu0 %v6276_v26, %s4906_s20 }
 0x4c2   : > { %3597 = vst [vmem:[#allocation1] ss:$2 sm:$0xff] %v3576_v40  ;;  %v6623_v17 = vld.sshfl [vmem:[#allocation1 + $0x38] sm:$0xff pattern:$0x75316420]  ;;  %v2690_v40 = vsel %vm451_vm3, %v6515_v33, %v2680_v34  ;;  %3056 = vrot.lane.b32.xlu2 %v6293_v9, %s4904_s18 }
 0x4c3   : > { %v6625_v27 = vld.sshfl [vmem:[#allocation1 + $0x30] sm:$0xff pattern:$0x75316420]  ;;  %2828 = vst [vmem:[#allocation3 + $0x88] sm:$0xf] %v2813_v55 }
 0x4c4   : > { %7713 = vst [vmem:[#allocation41_spill] sm:$0xff] %v6625_v27  ;;  %v2691_v27 = vsel %vm451_vm3, %v2680_v34, %v2682_v31  ;;  %v6651_v55 = vld.sshfl [vmem:[#allocation1 + $0x10] sm:$0xff pattern:$0x75316420]  ;;  %v2860_v33 = vpop.permute.xlu0 %2859 }
 0x4c5   : > { %3797 = vst [vmem:[#allocation1 + $0x31] ss:$2 sm:$0xff] %v6593_v46 }
 0x4c6   : > { %2705 = vst [vmem:[#allocation3 + $0x58] sm:$0xf] %v2690_v40  ;;  %3054 = vrot.lane.b32.xlu1 %v6295_v37, %s4904_s18 }
 0x4c7   : > { %v6634_v42 = vld.sshfl [vmem:[#allocation1 + $0x20] sm:$0xff pattern:$0x75316420]  ;;  %v6636_v50 = vld.sshfl [vmem:[#allocation1 + $0x28] sm:$0xff pattern:$0x75316420] }
 0x4c8   : > { %7714 = vst [vmem:[#allocation42_spill] sm:$0xff] %v6636_v50 }
 0x4c9   : > { %3864 = vst [vmem:[#allocation1 + $0x20] ss:$2 sm:$0xff] %v6583_v21  ;;  %v6646_v28 = vld.sshfl [vmem:[#allocation1] sm:$0xff pattern:$0x75316420]  ;;  %v2686_v63 = vpop.permute.xlu1 %2685  ;;  %3121 = vrot.lane.b32.xlu0 %v6316_v44, %s4905_s19 }
 0x4ca   : > { %2706 = vst [vmem:[#allocation3 + $0x60] sm:$0xf] %v2691_v27  ;;  %v6659_v27 = vpop.permute.xlu2 %2921  ;;  %v2693_v35 = vsel %vm451_vm3, %v2684_v57, %v2686_v63  ;;  %3188 = vrot.lane.b32.xlu2 %v6337_v43, %s4906_s20  ;;  %v3715_v43 = vld [vmem:[#allocation4 + $0x24] sm:$0xf]  ;;  %vm7773_vm3 = vmmov %vm7768_vm0 }
 0x4cb   : > { %3652 = vst [vmem:[#allocation1 + $0x1] ss:$2 sm:$0xff] %v6126_v54  ;;  %v3645_v54 = vld [vmem:[#allocation4 + $0x20] sm:$0xf] }
 0x4cc   : > { %v6653_v31 = vld.sshfl [vmem:[#allocation1 + $0x30] sm:$0xff pattern:$0x75316420]  ;;  %v6655_v34 = vld.sshfl [vmem:[#allocation1 + $0x38] sm:$0xff pattern:$0x75316420]  ;;  %v2743_v57 = vpop.permute.xlu0 %2742 }
 0x4cd   : > { %7715 = vst [vmem:[#allocation43_spill] sm:$0xff] %v6653_v31  ;;  %v2753_v26 = vsel %vm515_vm4, %v6526_v48, %v2743_v57  ;;  %v6697_v48 = vld [vmem:[#allocation4 + $0x4] sm:$0xff] }
 0x4ce   : > { %7716 = vst [vmem:[#allocation44_spill] sm:$0xff] %v6655_v34  ;;  %3060 = vrot.lane.b32.xlu1 %v6358_v41, %s4904_s18  ;;  %s7847_s18 = smov 45  }
 0x4cf   : > { %3866 = vst [vmem:[#allocation1 + $0x30] ss:$2 sm:$0xff] %v6593_v46 }
 0x4d0   : > { %3793 = vst [vmem:[#allocation1 + $0x11] ss:$2 sm:$0xff] %v6557_v38  ;;  %v6671_v14 = vld.sshfl [vmem:[#allocation1 + $0x20] sm:$0xff pattern:$0x75316420] }
 0x4d1   : > { %2709 = vst.msk [vmem:[#allocation3 + $0x78] sm:$0xf] %vm345_vm1, %v2686_v63  ;;  %v6675_v31 = vld.sshfl [vmem:[#allocation1 + $0x28] sm:$0xff pattern:$0x75316420]  ;;  %3127 = vrot.lane.b32.xlu0 %v6379_v10, %s4905_s19 }
 0x4d2   : > { %2708 = vst [vmem:[#allocation3 + $0x70] sm:$0xf] %v2693_v35  ;;  %v6667_v40 = vld.sshfl [vmem:[#allocation1 + $0x8] sm:$0xff pattern:$0x75316420]  ;;  %v6685_v35 = vpop.permute.xlu2 %2804  ;;  %3182 = vrot.lane.b32.xlu2 %v6278_v4, %s4906_s20 }
 0x4d3   : > { %v6669_v34 = vld.sshfl [vmem:[#allocation1] sm:$0xff pattern:$0x75316420]  ;;  %7717 = vst [vmem:[#allocation45_spill] sm:$0xff] %v6671_v14 }
 0x4d4   : > { %3667 = vst [vmem:[#allocation1 + $0x1] ss:$2 sm:$0xff] %v3645_v54  ;;  %v2803_v54 = vpop.permute.xlu1 %2802 }
 0x4d5   : > { %7718 = vst [vmem:[#allocation46_spill] sm:$0xff] %v6675_v31  ;;  %v2814_v31 = vsel %vm578_vm5, %v2801_v23, %v2803_v54  ;;  %v2815_v37 = vsel %vm578_vm5, %v2803_v54, %v6685_v35  ;;  %v2749_v23 = vpop.permute.xlu0 %2748 }
 0x4d6   : > { %v6677_v50 = vld.sshfl [vmem:[#allocation1 + $0x30] sm:$0xff pattern:$0x75316420]  ;;  %v6679_v63 = vld.sshfl [vmem:[#allocation1 + $0x38] sm:$0xff pattern:$0x75316420]  ;;  %3186 = vrot.lane.b32.xlu1 %v6339_v52, %s4906_s20 }
 0x4d7   : > { %7719 = vst [vmem:[#allocation47_spill] sm:$0xff] %v6677_v50  ;;  %v6688_v14 = vld.sshfl [vmem:[#allocation1 + $0x18] sm:$0xff pattern:$0x75316420] }
 0x4d8   : > { %7720 = vst [vmem:[#allocation48_spill] sm:$0xff] %v6679_v63  ;;  %v6690_v9 = vld.sshfl [vmem:[#allocation1 + $0x10] sm:$0xff pattern:$0x75316420] }
 0x4d9   : > { %3936 = vst [vmem:[#allocation1 + $0x31] ss:$2 sm:$0xff] %v6593_v46  ;;  %3190 = vrot.lane.b32.xlu0 %v6344_v58, %s4906_s20 }
 0x4da   : > { %2768 = vst [vmem:[#allocation3 + $0x58] sm:$0xf0] %v2753_v26  ;;  %v2811_v54 = vpop.permute.xlu2 %2810  ;;  %3125 = vrot.lane.b32.xlu2 %v6381_v12, %s4905_s19 }
 0x4db   : > { %7721 = vst [vmem:[#allocation49_spill] sm:$0xff] %v6690_v9  ;;  %v6701_v26 = vld.sshfl [vmem:[#allocation1] sm:$0xff pattern:$0x75316420] }
 0x4dc   : > { %3934 = vst [vmem:[#allocation1 + $0x21] ss:$2 sm:$0xff] %v6583_v21  ;;  %v2862_v63 = vpop.permute.xlu1 %2861 }
 0x4dd   : > { %3862 = vst [vmem:[#allocation1 + $0x10] ss:$2 sm:$0xff] %v6557_v38  ;;  %v2876_v41 = vsel %vm642_vm6, %v2862_v63, %v6631_v22 }
 0x4de   : > { %2829 = vst [vmem:[#allocation3 + $0x90] sm:$0xf] %v2814_v31  ;;  %v2756_v31 = vsel %vm515_vm4, %v6605_v29, %v2749_v23  ;;  %3123 = vrot.lane.b32.xlu1 %v6318_v45, %s4905_s19  ;;  %v3784_v45 = vld [vmem:[#allocation4 + $0x24] sm:$0xf]  ;;  %s7848_s19 = smov 46  }
 0x4df   : > { %2830 = vst [vmem:[#allocation3 + $0x98] sm:$0xf] %v2815_v37 }
 0x4e0   : > { %3721 = vst [vmem:[#allocation1] ss:$2 sm:$0xff] %v6697_v48  ;;  %v6706_v50 = vld.sshfl [vmem:[#allocation1 + $0x30] sm:$0xff pattern:$0x75316420] }
 0x4e1   : > { %7722 = vst [vmem:[#allocation50_spill] sm:$0xff] %v6706_v50  ;;  %v6713_v44 = vld.sshfl [vmem:[#allocation1 + $0x38] sm:$0xff pattern:$0x75316420]  ;;  %v2875_v50 = vsel %vm642_vm6, %v2860_v33, %v2862_v63  ;;  %v6737_v63 = vpop.permute.xlu0 %2865  ;;  %3196 = vrot.lane.b32.xlu0 %v6402_v15, %s4906_s20 }
 0x4e2   : > { %2772 = vst.msk [vmem:[#allocation3 + $0x78] sm:$0xf0] %vm410_vm2, %v2749_v23  ;;  %v6744_v10 = vpop.permute.xlu2 %2927  ;;  %3258 = vrot.lane.b32.xlu2 %v6363_v19, %s4907_s21 }
 0x4e3   : > { %7723 = vst [vmem:[#allocation51_spill] sm:$0xff] %v6713_v44  ;;  %v6715_v37 = vld.sshfl [vmem:[#allocation1 + $0x20] sm:$0xff pattern:$0x75316420] }
 0x4e4   : > { %2771 = vst [vmem:[#allocation3 + $0x70] sm:$0xf0] %v2756_v31  ;;  %v6718_v9 = vld.sshfl [vmem:[#allocation1 + $0x28] sm:$0xff pattern:$0x75316420]  ;;  %v2745_v4 = vpop.permute.xlu1 %2744 }
 0x4e5   : > { %2834 = vst.msk [vmem:[#allocation3 + $0xb8] sm:$0xf] %vm345_vm1, %v2811_v54  ;;  %v6724_v23 = vld.sshfl [vmem:[#allocation1 + $0x10] sm:$0xff pattern:$0x75316420] }
 0x4e6   : > { %7724 = vst [vmem:[#allocation52_spill] sm:$0xff] %v6718_v9  ;;  %v6726_v44 = vld.sshfl [vmem:[#allocation1 + $0x18] sm:$0xff pattern:$0x75316420]  ;;  %3256 = vrot.lane.b32.xlu1 %v6365_v5, %s4907_s21 }
 0x4e7   : > { %4005 = vst [vmem:[#allocation1 + $0x30] ss:$2 sm:$0xff] %v6593_v46  ;;  %v6730_v31 = vld.sshfl [vmem:[#allocation1] sm:$0xff pattern:$0x75316420] }
 0x4e8   : > { %7725 = vst [vmem:[#allocation53_spill] sm:$0xff] %v6724_v23  ;;  %v6734_v33 = vld.sshfl [vmem:[#allocation1 + $0x8] sm:$0xff pattern:$0x75316420]  ;;  %v2754_v23 = vsel %vm515_vm4, %v2743_v57, %v2745_v4 }
 0x4e9   : > { %2890 = vst [vmem:[#allocation3 + $0x80] sm:$0xf0] %v2875_v50  ;;  %v2877_v50 = vsel %vm642_vm6, %v6631_v22, %v6737_v63  ;;  %v2924_v57 = vpop.permute.xlu0 %2923  ;;  %3254 = vrot.lane.b32.xlu0 %v6322_v6, %s4907_s21 }
 0x4ea   : > { %2891 = vst [vmem:[#allocation3 + $0x88] sm:$0xf0] %v2876_v41  ;;  %3194 = vrot.lane.b32.xlu2 %v6404_v11, %s4906_s20 }
 0x4eb   : > { %4003 = vst [vmem:[#allocation1 + $0x20] ss:$2 sm:$0xff] %v6583_v21 }
 0x4ec   : > { %3736 = vst [vmem:[#allocation1] ss:$2 sm:$0xff] %v3715_v43  ;;  %v2755_v43 = vsel %vm515_vm4, %v2745_v4, %v6605_v29  ;;  %v2937_v29 = vsel %vm705_vm7, %v6659_v27, %v2924_v57  ;;  %v2809_v4 = vpop.permute.xlu1 %2808  ;;  %vm7774_vm4 = vmmov %vm7768_vm0 }
 0x4ed   : > { %3932 = vst [vmem:[#allocation1 + $0x11] ss:$2 sm:$0xff] %v6557_v38 }
 0x4ee   : > { %2892 = vst [vmem:[#allocation3 + $0x90] sm:$0xf0] %v2877_v50  ;;  %v6747_v41 = vld.sshfl [vmem:[#allocation1 + $0x30] sm:$0xff pattern:$0x75316420]  ;;  %3198 = vrot.lane.b32.xlu1 %v6300_v3, %s4906_s20 }
 0x4ef   : > { %7726 = vst [vmem:[#allocation54_spill] sm:$0xff] %v6747_v41  ;;  %v6749_v9 = vld.sshfl [vmem:[#allocation1 + $0x38] sm:$0xff pattern:$0x75316420]  ;;  %v2818_v41 = vsel %vm578_vm5, %v2809_v4, %v2811_v54 }
 0x4f0   : > { %7727 = vst [vmem:[#allocation55_spill] sm:$0xff] %v6749_v9 }
 0x4f1   : > { %4075 = vst [vmem:[#allocation1 + $0x31] ss:$2 sm:$0xff] %v6593_v46  ;;  %3260 = vrot.lane.b32.xlu0 %v6368_v8, %s4907_s21 }
 0x4f2   : > { %2769 = vst [vmem:[#allocation3 + $0x60] sm:$0xf0] %v2754_v23  ;;  %v6757_v52 = vld.sshfl [vmem:[#allocation1 + $0x20] sm:$0xff pattern:$0x75316420]  ;;  %v6770_v23 = vpop.permute.xlu2 %2986  ;;  %3327 = vrot.lane.b32.xlu2 %v6388_v39, %s4908_s22 }
 0x4f3   : > { %2770 = vst [vmem:[#allocation3 + $0x68] sm:$0xf0] %v2755_v43  ;;  %v6761_v22 = vld.sshfl [vmem:[#allocation1] sm:$0xff pattern:$0x75316420] }
 0x4f4   : > { %7728 = vst [vmem:[#allocation56_spill] sm:$0xff] %v6757_v52  ;;  %v6763_v50 = vld.sshfl [vmem:[#allocation1 + $0x28] sm:$0xff pattern:$0x75316420]  ;;  %v2926_v19 = vpop.permute.xlu1 %2925 }
 0x4f5   : > { %7729 = vst [vmem:[#allocation57_spill] sm:$0xff] %v6763_v50  ;;  %v6772_v58 = vld.sshfl [vmem:[#allocation1 + $0x10] sm:$0xff pattern:$0x75316420]  ;;  %v2939_v5 = vsel %vm705_vm7, %v2926_v19, %v6744_v10 }
 0x4f6   : > { %3791 = vst [vmem:[#allocation1 + $0x1] ss:$2 sm:$0xff] %v6697_v48  ;;  %v6775_v12 = vld.sshfl [vmem:[#allocation1 + $0x18] sm:$0xff pattern:$0x75316420]  ;;  %3192 = vrot.lane.b32.xlu1 %v6346_v59, %s4906_s20  ;;  %s7852_s20 = smov 44  }
 0x4f7   : > { %7730 = vst [vmem:[#allocation58_spill] sm:$0xff] %v6772_v58 }
 0x4f8   : > { %4073 = vst [vmem:[#allocation1 + $0x21] ss:$2 sm:$0xff] %v6583_v21  ;;  %v6777_v43 = vld.sshfl [vmem:[#allocation1 + $0x30] sm:$0xff pattern:$0x75316420] }
 0x4f9   : > { %2952 = vst [vmem:[#allocation3 + $0xc0] sm:$0xf] %v2937_v29  ;;  %v6779_v50 = vld.sshfl [vmem:[#allocation1 + $0x38] sm:$0xff pattern:$0x75316420]  ;;  %3266 = vrot.lane.b32.xlu0 %v6430_v0, %s4907_s21 }
 0x4fa   : > { %7731 = vst [vmem:[#allocation59_spill] sm:$0xff] %v6777_v43  ;;  %v2807_v43 = vpop.permute.xlu0 %2806  ;;  %v2870_v15 = vpop.permute.xlu2 %2869  ;;  %3252 = vrot.lane.b32.xlu2 %v6324_v47, %s4907_s21 }
 0x4fb   : > { %7732 = vst [vmem:[#allocation60_spill] sm:$0xff] %v6779_v50  ;;  %v2816_v54 = vsel %vm578_vm5, %v6685_v35, %v2807_v43 }
 0x4fc   : > { %4144 = vst [vmem:[#allocation1 + $0x30] ss:$2 sm:$0xff] %v6593_v46  ;;  %v2985_v6 = vpop.permute.xlu1 %2984 }
 0x4fd   : > { %2833 = vst [vmem:[#allocation3 + $0xb0] sm:$0xf] %v2818_v41  ;;  %v6788_v27 = vld.sshfl [vmem:[#allocation1 + $0x8] sm:$0xff pattern:$0x75316420]  ;;  %v2817_v41 = vsel %vm578_vm5, %v2807_v43, %v2809_v4  ;;  %vm7776_vm5 = vmmov %vm7768_vm0 }
 0x4fe   : > { %4001 = vst [vmem:[#allocation1 + $0x10] ss:$2 sm:$0xff] %v6557_v38  ;;  %v6790_v29 = vld.sshfl [vmem:[#allocation1] sm:$0xff pattern:$0x75316420]  ;;  %3325 = vrot.lane.b32.xlu1 %v6390_v18, %s4908_s22  ;;  %v4666_v18 = vld [vmem:[%s4985_s10 + $0x10] sm:$0xff] }
 0x4ff   : > { %3806 = vst [vmem:[#allocation1 + $0x1] ss:$2 sm:$0xff] %v3784_v45  ;;  %v6797_v50 = vld.sshfl [vmem:[#allocation1 + $0x20] sm:$0xff pattern:$0x75316420]  ;;  %v2938_v45 = vsel %vm705_vm7, %v2924_v57, %v2926_v19 }
 0x500   : > { %v6799_v9 = vld.sshfl [vmem:[#allocation1 + $0x28] sm:$0xff pattern:$0x75316420]  ;;  %2831 = vst [vmem:[#allocation3 + $0xa0] sm:$0xf] %v2816_v54 }
 0x501   : > { %7733 = vst [vmem:[#allocation61_spill] sm:$0xff] %v6799_v9  ;;  %3329 = vrot.lane.b32.xlu0 %v6393_v60, %s4908_s22 }
 0x502   : > { %2832 = vst [vmem:[#allocation3 + $0xa8] sm:$0xf] %v2817_v41  ;;  %v2872_v43 = vpop.permute.xlu0 %2871  ;;  %v6824_v41 = vpop.permute.xlu2 %2933 }
 0x503   : > { %v6801_v58 = vld.sshfl [vmem:[#allocation1 + $0x30] sm:$0xff pattern:$0x75316420]  ;;  %v6806_v52 = vld.sshfl [vmem:[#allocation1 + $0x38] sm:$0xff pattern:$0x75316420]  ;;  %v2880_v54 = vsel %vm642_vm6, %v2870_v15, %v2872_v43 }
 0x504   : > { %7734 = vst [vmem:[#allocation62_spill] sm:$0xff] %v6801_v58  ;;  %v2868_v39 = vpop.permute.xlu1 %2867 }
 0x505   : > { %7735 = vst [vmem:[#allocation63_spill] sm:$0xff] %v6806_v52  ;;  %v6809_v35 = vld.sshfl [vmem:[#allocation1 + $0x10] sm:$0xff pattern:$0x75316420] }
 0x506   : > { %4142 = vst [vmem:[#allocation1 + $0x20] ss:$2 sm:$0xff] %v6583_v21  ;;  %v6813_v4 = vld.sshfl [vmem:[#allocation1 + $0x18] sm:$0xff pattern:$0x75316420] }
 0x507   : > { %2953 = vst [vmem:[#allocation3 + $0xc8] sm:$0xf] %v2938_v45  ;;  %v6818_v57 = vld.sshfl [vmem:[#allocation1] sm:$0xff pattern:$0x75316420]  ;;  %v3000_v45 = vsel %vm769_vm8, %v2985_v6, %v6770_v23 }
 0x508   : > { %2954 = vst [vmem:[#allocation3 + $0xd0] sm:$0xf] %v2939_v5  ;;  %v3854_v5 = vld [vmem:[#allocation4 + $0x24] sm:$0xf] }
 0x509   : > { %4214 = vst [vmem:[#allocation1 + $0x31] ss:$2 sm:$0xff] %v6593_v46  ;;  %3335 = vrot.lane.b32.xlu0 %v6459_v20, %s4908_s22 }
 0x50a   : > { %7736 = vst [vmem:[#allocation64_spill] sm:$0xff] %v6818_v57  ;;  %v2989_v9 = vpop.permute.xlu0 %2988 }
 0x50b   : > { %3860 = vst [vmem:[#allocation1] ss:$2 sm:$0xff] %v6697_v48  ;;  %v3001_v6 = vsel %vm769_vm8, %v6770_v23, %v2989_v9 }
 0x50c   : > { %4071 = vst [vmem:[#allocation1 + $0x11] ss:$2 sm:$0xff] %v6557_v38  ;;  %v2874_v0 = vpop.permute.xlu1 %2873 }
 0x50d   : > { %2895 = vst [vmem:[#allocation3 + $0xa8] sm:$0xf0] %v2880_v54  ;;  %v6827_v19 = vld.sshfl [vmem:[#allocation1 + $0x20] sm:$0xff pattern:$0x75316420]  ;;  %v2881_v47 = vsel %vm642_vm6, %v2872_v43, %v2874_v0 }
 0x50e   : > { %v6829_v11 = vld.sshfl [vmem:[#allocation1 + $0x28] sm:$0xff pattern:$0x75316420]  ;;  %3015 = vst [vmem:[#allocation3 + $0xc0] sm:$0xf0] %v3000_v45  ;;  %v6848_v45 = vpop.permute.xlu2 %3050 }
 0x50f   : > { %7737 = vst [vmem:[#allocation65_spill] sm:$0xff] %v6829_v11  ;;  %v2878_v11 = vsel %vm642_vm6, %v6737_v63, %v2868_v39 }
 0x510   : > { %4212 = vst [vmem:[#allocation1 + $0x21] ss:$2 sm:$0xff] %v6583_v21 }
 0x511   : > { %3016 = vst [vmem:[#allocation3 + $0xc8] sm:$0xf0] %v3001_v6  ;;  %v6876_v6 = vld.sshfl [vmem:[#allocation1 + $0x30] sm:$0xff pattern:$0x75316420] }
 0x512   : > { %v6838_v3 = vld.sshfl [vmem:[#allocation1] sm:$0xff pattern:$0x75316420]  ;;  %v6840_v54 = vld.sshfl [vmem:[#allocation1 + $0x8] sm:$0xff pattern:$0x75316420]  ;;  %v3047_v23 = vpop.permute.xlu0 %3046 }
 0x513   : > { %7738 = vst [vmem:[#allocation66_spill] sm:$0xff] %v6838_v3  ;;  %v6842_v57 = vld.sshfl [vmem:[#allocation1 + $0x10] sm:$0xff pattern:$0x75316420] }
 0x514   : > { %3875 = vst [vmem:[#allocation1] ss:$2 sm:$0xff] %v3854_v5  ;;  %v6850_v8 = vld.sshfl [vmem:[#allocation1 + $0x18] sm:$0xff pattern:$0x75316420]  ;;  %v2879_v5 = vsel %vm642_vm6, %v2868_v39, %v2870_v15  ;;  %vm7779_vm6 = vmmov %vm7768_vm0 }
 0x515   : > { %7739 = vst [vmem:[#allocation67_spill] sm:$0xff] %v6842_v57  ;;  %v3923_v39 = vld [vmem:[#allocation4 + $0x24] sm:$0xf] }
 0x516   : > { %4140 = vst [vmem:[#allocation1 + $0x10] ss:$2 sm:$0xff] %v6557_v38  ;;  %v6870_v63 = vpop.permute.xlu2 %3113 }
 0x517   : > { %v6856_v58 = vld.sshfl [vmem:[#allocation1 + $0x20] sm:$0xff pattern:$0x75316420]  ;;  %v6858_v52 = vld.sshfl [vmem:[#allocation1 + $0x28] sm:$0xff pattern:$0x75316420] }
 0x518   : > { %7740 = vst [vmem:[#allocation68_spill] sm:$0xff] %v6858_v52 }
 0x519   : > { %2893 = vst [vmem:[#allocation3 + $0x98] sm:$0xf0] %v2878_v11 }
 0x51a   : > { %2894 = vst [vmem:[#allocation3 + $0xa0] sm:$0xf0] %v2879_v5  ;;  %v7744_v5 = vld [vmem:[#allocation15_spill] sm:$0xff]  ;;  %v2930_v43 = vpop.permute.xlu0 %2929 }
 0x51b   : > { %v6864_v59 = vld.sshfl [vmem:[#allocation1] sm:$0xff pattern:$0x75316420]  ;;  %4281 = vst [vmem:[#allocation1 + $0x20] ss:$2 sm:$0xff] %v6583_v21  ;;  %3264 = vrot.lane.b32.xlu2 %v7744_v5, %s4907_s21  ;;  %v2940_v60 = vsel %vm705_vm7, %v6744_v10, %v2930_v43  ;;  %v7748_v10 = vld [vmem:[#allocation10_spill] sm:$0xff] }
 0x51c   : > { %7741 = vst [vmem:[#allocation69_spill] sm:$0xff] %v6864_v59  ;;  %v6881_v21 = vld.sshfl [vmem:[#allocation1 + $0x38] sm:$0xff pattern:$0x75316420] }
 0x51d   : > { %3930 = vst [vmem:[#allocation1 + $0x1] ss:$2 sm:$0xff] %v6697_v48  ;;  %v6872_v15 = vld.sshfl [vmem:[#allocation1 + $0x10] sm:$0xff pattern:$0x75316420] }
 0x51e   : > { %v6874_v11 = vld.sshfl [vmem:[#allocation1 + $0x18] sm:$0xff pattern:$0x75316420]  ;;  %7742 = vst [vmem:[#allocation70_spill] sm:$0xff] %v6876_v6 }
 0x51f   : > { %4210 = vst [vmem:[#allocation1 + $0x11] ss:$2 sm:$0xff] %v6557_v38 }
 0x520   : > { %2897 = vst.msk [vmem:[#allocation3 + $0xb8] sm:$0xf0] %vm410_vm2, %v2874_v0 }
 0x521   : > { %2896 = vst [vmem:[#allocation3 + $0xb0] sm:$0xf0] %v2881_v47  ;;  %v7747_v47 = vld [vmem:[#allocation6_spill] sm:$0xff] }
 0x522   : > { %7743 = vst [vmem:[#allocation71_spill] sm:$0xff] %v6881_v21  ;;  %v6889_v52 = vld.sshfl [vmem:[#allocation1 + $0x20] sm:$0xff pattern:$0x75316420]  ;;  %3262 = vrot.lane.b32.xlu1 %v7747_v47, %s4907_s21  ;;  %v2991_v21 = vpop.permute.xlu1 %2990 }
 0x523   : > { %4283 = vst [vmem:[#allocation1 + $0x30] ss:$2 sm:$0xff] %v6593_v46  ;;  %v6891_v59 = vld.sshfl [vmem:[#allocation1 + $0x28] sm:$0xff pattern:$0x75316420]  ;;  %v6901_v46 = vpop.permute.xlu2 %2992  ;;  %3397 = vrot.lane.b32.xlu2 %v7748_v10, %s4909_s23  ;;  %v7749_v47 = vld [vmem:[#allocation11_spill] sm:$0xff] }
 0x524   : > { %7745 = vst [vmem:[#allocation15_spill] sm:$0xff] %v6891_v59  ;;  %v6893_v6 = vld.sshfl [vmem:[#allocation1] sm:$0xff pattern:$0x75316420]  ;;  %v3002_v59 = vsel %vm769_vm8, %v2989_v9, %v2991_v21 }
 0x525   : > { %7746 = vst [vmem:[#allocation72_spill] sm:$0xff] %v6893_v6  ;;  %v6895_v0 = vld.sshfl [vmem:[#allocation1 + $0x8] sm:$0xff pattern:$0x75316420]  ;;  %v3003_v6 = vsel %vm769_vm8, %v2991_v21, %v6901_v46 }
 0x526   : > { %3945 = vst [vmem:[#allocation1 + $0x1] ss:$2 sm:$0xff] %v3923_v39  ;;  %v6903_v5 = vld.sshfl [vmem:[#allocation1 + $0x10] sm:$0xff pattern:$0x75316420]  ;;  %v2936_v39 = vpop.permute.xlu0 %2935 }
 0x527   : > { %2955 = vst [vmem:[#allocation3 + $0xd8] sm:$0xf] %v2940_v60  ;;  %v6905_v3 = vld.sshfl [vmem:[#allocation1 + $0x18] sm:$0xff pattern:$0x75316420]  ;;  %v2943_v9 = vsel %vm705_vm7, %v6824_v41, %v2936_v39 }
 0x528   : > { %4678 = vst [vmem:[#allocation1 + $0x20] ss:$2 sm:$0xff] %v4666_v18 }
 0x529   : > { %4279 = vst [vmem:[#allocation1 + $0x10] ss:$2 sm:$0xff] %v6557_v38 }
 0x52a   : > { %3017 = vst [vmem:[#allocation3 + $0xd0] sm:$0xf0] %v3002_v59  ;;  %3395 = vrot.lane.b32.xlu1 %v7749_v47, %s4909_s23  ;;  %v3049_v20 = vpop.permute.xlu1 %3048  ;;  %v6925_v21 = vld.sshfl [vmem:[#allocation1 + $0x38] sm:$0xff pattern:$0x75316420] }
 0x52b   : > { %3018 = vst [vmem:[#allocation3 + $0xd8] sm:$0xf0] %v3003_v6  ;;  %v2999_v38 = vpop.permute.xlu2 %2998  ;;  %v3062_v18 = vsel %vm832_vm9, %v3047_v23, %v3049_v20  ;;  %v3063_v60 = vsel %vm832_vm9, %v3049_v20, %v6848_v45  ;;  %v6934_v47 = vld.sshfl [vmem:[#allocation1 + $0x30] sm:$0xff pattern:$0x75316420]  ;;  %3333 = vrot.lane.b32.xlu2 %v6461_v13, %s4908_s22 }
 0x52c   : > { %2959 = vst.msk [vmem:[#allocation3 + $0xf8] sm:$0xf] %vm345_vm1, %v2936_v39  ;;  %v4665_v39 = vld [vmem:[%s4985_s10 + $0x8] sm:$0xff] }
 0x52d   : > { %v6920_v59 = vld.sshfl [vmem:[#allocation1] sm:$0xff pattern:$0x75316420]  ;;  %2958 = vst [vmem:[#allocation3 + $0xf0] sm:$0xf] %v2943_v9  ;;  %v4667_v9 = vld [vmem:[%s4985_s10 + $0x18] sm:$0xff] }
 0x52e   : > { %7750 = vst [vmem:[#allocation6_spill] sm:$0xff] %v6920_v59  ;;  %v7753_v59 = vld [vmem:[#allocation7_spill] sm:$0xff]  ;;  %v6941_v23 = vpop.permute.xlu0 %3052  ;;  %v3993_v20 = vld [vmem:[#allocation4 + $0x24] sm:$0xf] }
 0x52f   : > { %3022 = vst.msk [vmem:[#allocation3 + $0xf8] sm:$0xf0] %vm410_vm2, %v2999_v38  ;;  %3323 = vrot.lane.b32.xlu0 %v7753_v59, %s4908_s22 }
 0x530   : > { %v6923_v6 = vld.sshfl [vmem:[#allocation1 + $0x18] sm:$0xff pattern:$0x75316420]  ;;  %7751 = vst [vmem:[#allocation10_spill] sm:$0xff] %v6925_v21  ;;  %v7754_v21 = vld [vmem:[#allocation5_spill] sm:$0xff] }
 0x531   : > { %v6930_v10 = vld.sshfl [vmem:[#allocation1 + $0x10] sm:$0xff pattern:$0x75316420]  ;;  %3999 = vst [vmem:[#allocation1] ss:$2 sm:$0xff] %v6697_v48 }
 0x532   : > { %3077 = vst [vmem:[#allocation3 + $0x100] sm:$0xf] %v3062_v18  ;;  %3268 = vrot.lane.b32.xlu1 %v7754_v21, %s4907_s21  ;;  %v3064_v18 = vsel %vm832_vm9, %v6848_v45, %v6941_v23  ;;  %v7757_v21 = vld [vmem:[#allocation13_spill] sm:$0xff]  ;;  %v7758_v45 = vld [vmem:[#allocation16_spill] sm:$0xff] }
 0x533   : > { %7752 = vst [vmem:[#allocation11_spill] sm:$0xff] %v6934_v47  ;;  %v6948_v47 = vpop.permute.xlu2 %3119  ;;  %3466 = vrot.lane.b32.xlu2 %v7758_v45, %s4910_s24 }
 0x534   : > { %3078 = vst [vmem:[#allocation3 + $0x108] sm:$0xf] %v3063_v60  ;;  %v2932_v60 = vpop.permute.xlu1 %2931 }
 0x535   : > { %4676 = vst [vmem:[#allocation1 + $0x10] ss:$2 sm:$0xff] %v4665_v39  ;;  %v2941_v13 = vsel %vm705_vm7, %v2930_v43, %v2932_v60  ;;  %v2942_v39 = vsel %vm705_vm7, %v2932_v60, %v6824_v41  ;;  %v7761_v60 = vld [vmem:[#allocation8_spill] sm:$0xff] }
 0x536   : > { %4680 = vst [vmem:[#allocation1 + $0x30] ss:$2 sm:$0xff] %v4667_v9  ;;  %v3116_v9 = vpop.permute.xlu0 %3115 }
 0x537   : > { %3079 = vst [vmem:[#allocation3 + $0x110] sm:$0xf] %v3064_v18  ;;  %3399 = vrot.lane.b32.xlu0 %v7757_v21, %s4909_s23  ;;  %v7759_v18 = vld [vmem:[#allocation9_spill] sm:$0xff] }
 0x538   : > { %v6950_v59 = vld.sshfl [vmem:[#allocation1] sm:$0xff pattern:$0x75316420]  ;;  %v6952_v57 = vld.sshfl [vmem:[#allocation1 + $0x8] sm:$0xff pattern:$0x75316420] }
 0x539   : > { %7755 = vst [vmem:[#allocation7_spill] sm:$0xff] %v6950_v59  ;;  %v3131_v59 = vsel %vm902_vm10, %v6870_v63, %v3116_v9 }
 0x53a   : > { %7756 = vst [vmem:[#allocation5_spill] sm:$0xff] %v6952_v57  ;;  %3331 = vrot.lane.b32.xlu1 %v7759_v18, %s4908_s22 }
 0x53b   : > { %4014 = vst [vmem:[#allocation1] ss:$2 sm:$0xff] %v3993_v20  ;;  %v3057_v43 = vpop.permute.xlu2 %3056  ;;  %3321 = vrot.lane.b32.xlu2 %v7761_v60, %s4908_s22 }
 0x53c   : > { %2956 = vst [vmem:[#allocation3 + $0xe0] sm:$0xf] %v2941_v13  ;;  %v2997_v57 = vpop.permute.xlu1 %2996 }
 0x53d   : > { %2957 = vst [vmem:[#allocation3 + $0xe8] sm:$0xf] %v2942_v39  ;;  %v3006_v20 = vsel %vm769_vm8, %v2997_v57, %v2999_v38  ;;  %v7762_v39 = vld [vmem:[#allocation17_spill] sm:$0xff]  ;;  %v4062_v38 = vld [vmem:[#allocation4 + $0x24] sm:$0xf] }
 0x53e   : > { %3147 = vst [vmem:[#allocation3 + $0x100] sm:$0xf0] %v3131_v59  ;;  %v2995_v13 = vpop.permute.xlu0 %2994 }
 0x53f   : > { %3021 = vst [vmem:[#allocation3 + $0xf0] sm:$0xf0] %v3006_v20  ;;  %3405 = vrot.lane.b32.xlu0 %v6487_v16, %s4909_s23  ;;  %v3004_v63 = vsel %vm769_vm8, %v6901_v46, %v2995_v13  ;;  %v3005_v59 = vsel %vm769_vm8, %v2995_v13, %v2997_v57  ;;  %v7763_v46 = vld [vmem:[#allocation20_spill] sm:$0xff]  ;;  %v7764_v13 = vld [vmem:[#allocation14_spill] sm:$0xff]  ;;  %vm7780_vm8 = vcmask 211968  }
 0x540   : > { %3019 = vst [vmem:[#allocation3 + $0xe0] sm:$0xf0] %v3004_v63  ;;  %vm7790_vm11 = vmmov %vm7780_vm8 }
 0x541   : > { %3020 = vst [vmem:[#allocation3 + $0xe8] sm:$0xf0] %v3005_v59 }
 0x542   : > { %v6965_v41 = vld.sshfl [vmem:[#allocation1] sm:$0xff pattern:$0x75316420]  ;;  %3464 = vrot.lane.b32.xlu1 %v7762_v39, %s4910_s24 }
 0x543   : > { %7760 = vst [vmem:[#allocation13_spill] sm:$0xff] %v6965_v41  ;;  %v6978_v21 = vpop.permute.xlu2 %3188  ;;  %3403 = vrot.lane.b32.xlu2 %v6489_v49, %s4909_s23 }
 0x544   : > { %4069 = vst [vmem:[#allocation1 + $0x1] ss:$2 sm:$0xff] %v6697_v48  ;;  %v3118_v45 = vpop.permute.xlu1 %3117 }
 0x545   : > { %v3132_v16 = vsel %vm902_vm10, %v3116_v9, %v3118_v45  ;;  %v3133_v18 = vsel %vm902_vm10, %v3118_v45, %v6948_v47  ;;  %v7766_v45 = vld [vmem:[#allocation22_spill] sm:$0xff] }
 0x546   : > { %3148 = vst [vmem:[#allocation3 + $0x108] sm:$0xf0] %v3132_v16  ;;  %v3059_v57 = vpop.permute.xlu0 %3058 }
 0x547   : > { %3149 = vst [vmem:[#allocation3 + $0x110] sm:$0xf0] %v3133_v18  ;;  %3468 = vrot.lane.b32.xlu0 %v7763_v46, %s4910_s24  ;;  %v3067_v9 = vsel %vm832_vm9, %v3057_v43, %v3059_v57 }
 0x548   : > { %3082 = vst [vmem:[#allocation3 + $0x128] sm:$0xf] %v3067_v9  ;;  %v4132_v9 = vld [vmem:[#allocation4 + $0x24] sm:$0xf] }
 0x54a   : > { %3401 = vrot.lane.b32.xlu1 %v7764_v13, %s4909_s23 }
 0x54b   : > { %v6983_v20 = vld.sshfl [vmem:[#allocation1] sm:$0xff pattern:$0x75316420]  ;;  %v6985_v60 = vld.sshfl [vmem:[#allocation1 + $0x8] sm:$0xff pattern:$0x75316420]  ;;  %v3183_v39 = vpop.permute.xlu2 %3182  ;;  %3536 = vrot.lane.b32.xlu2 %v7766_v45, %s4911_s25 }
 0x54c   : > { %4084 = vst [vmem:[#allocation1 + $0x1] ss:$2 sm:$0xff] %v4062_v38  ;;  %v3130_v63 = vpop.permute.xlu1 %3129  ;;  %v7767_v38 = vld [vmem:[#allocation12_spill] sm:$0xff]  ;;  %v7769_v45 = vld [vmem:[#allocation18_spill] sm:$0xff] }
 0x54e   : > { %v3185_v49 = vpop.permute.xlu0 %3184 }
 0x54f   : > { %3474 = vrot.lane.b32.xlu0 %v6517_v62, %s4910_s24  ;;  %v3200_v16 = vsel %vm7768_vm0, %v3183_v39, %v3185_v49  ;;  %vm7794_vm0 = vmmov %vm7780_vm8 }
 0x550   : > { %3216 = vst [vmem:[#allocation3 + $0x140] sm:$0xf] %v3200_v16  ;;  %v7770_v16 = vld [vmem:[#allocation21_spill] sm:$0xff] }
 0x552   : > { %3337 = vrot.lane.b32.xlu1 %v7767_v38, %s4908_s22 }
 0x553   : > { %v6996_v59 = vld.sshfl [vmem:[#allocation1] sm:$0xff pattern:$0x75316420]  ;;  %v3126_v18 = vpop.permute.xlu2 %3125  ;;  %3472 = vrot.lane.b32.xlu2 %v6519_v56, %s4910_s24 }
 0x554   : > { %7765 = vst [vmem:[#allocation16_spill] sm:$0xff] %v6996_v59  ;;  %v3055_v46 = vpop.permute.xlu1 %3054  ;;  %v7771_v56 = vld [vmem:[#allocation19_spill] sm:$0xff] }
 0x555   : > { %4138 = vst [vmem:[#allocation1] ss:$2 sm:$0xff] %v6697_v48  ;;  %v3065_v13 = vsel %vm832_vm9, %v6941_v23, %v3055_v46  ;;  %v3066_v62 = vsel %vm832_vm9, %v3055_v46, %v3057_v43 }
 0x556   : > { %3080 = vst [vmem:[#allocation3 + $0x118] sm:$0xf] %v3065_v13  ;;  %v3122_v38 = vpop.permute.xlu0 %3121 }
 0x557   : > { %3081 = vst [vmem:[#allocation3 + $0x120] sm:$0xf] %v3066_v62  ;;  %3393 = vrot.lane.b32.xlu0 %v7769_v45, %s4909_s23  ;;  %v3134_v23 = vsel %vm902_vm10, %v6948_v47, %v3122_v38  ;;  %v7772_v47 = vld [vmem:[#allocation23_spill] sm:$0xff] }
 0x558   : > { %3150 = vst [vmem:[#allocation3 + $0x118] sm:$0xf0] %v3134_v23 }
 0x55a   : > { %3470 = vrot.lane.b32.xlu1 %v7770_v16, %s4910_s24 }
 0x55b   : > { %v7019_v43 = vpop.permute.xlu2 %3258  ;;  %3391 = vrot.lane.b32.xlu2 %v7771_v56, %s4909_s23 }
 0x55c   : > { %v7009_v59 = vld.sshfl [vmem:[#allocation1] sm:$0xff pattern:$0x75316420]  ;;  %v7013_v39 = vld.sshfl [vmem:[#allocation1 + $0x8] sm:$0xff pattern:$0x75316420]  ;;  %v3061_v46 = vpop.permute.xlu1 %3060 }
 0x55d   : > { %4153 = vst [vmem:[#allocation1] ss:$2 sm:$0xff] %v4132_v9  ;;  %v3068_v13 = vsel %vm832_vm9, %v3059_v57, %v3061_v46  ;;  %vm7784_vm9 = vmmov %vm7780_vm8 }
 0x55e   : > { %3084 = vst.msk [vmem:[#allocation3 + $0x138] sm:$0xf] %vm345_vm1, %v3061_v46  ;;  %v3128_v9 = vpop.permute.xlu0 %3127 }
 0x55f   : > { %3083 = vst [vmem:[#allocation3 + $0x130] sm:$0xf] %v3068_v13  ;;  %3538 = vrot.lane.b32.xlu0 %v6497_v7, %s4911_s25  ;;  %v3137_v45 = vsel %vm902_vm10, %v3126_v18, %v3128_v9  ;;  %v3138_v57 = vsel %vm902_vm10, %v3128_v9, %v3130_v63  ;;  %v4201_v13 = vld [vmem:[#allocation4 + $0x24] sm:$0xf] }
 0x560   : > { %3153 = vst [vmem:[#allocation3 + $0x130] sm:$0xf0] %v3137_v45 }
 0x561   : > { %3154 = vst.msk [vmem:[#allocation3 + $0x138] sm:$0xf0] %vm410_vm2, %v3138_v57 }
 0x562   : > { %3534 = vrot.lane.b32.xlu1 %v7772_v47, %s4911_s25 }
 0x563   : > { %v3195_v16 = vpop.permute.xlu2 %3194  ;;  %3542 = vrot.lane.b32.xlu2 %v6541_v51, %s4911_s25  ;;  %v7777_v51 = vld [vmem:[#allocation26_spill] sm:$0xff] }
 0x564   : > { %v7027_v62 = vld.sshfl [vmem:[#allocation1] sm:$0xff pattern:$0x75316420]  ;;  %v3187_v7 = vpop.permute.xlu1 %3186 }
 0x565   : > { %4208 = vst [vmem:[#allocation1 + $0x1] ss:$2 sm:$0xff] %v6697_v48  ;;  %v3201_v23 = vsel %vm7773_vm3, %v3185_v49, %v3187_v7  ;;  %v3202_v46 = vsel %vm7774_vm4, %v3187_v7, %v6978_v21  ;;  %v7775_v49 = vld [vmem:[#allocation24_spill] sm:$0xff]  ;;  %vm7795_vm3 = vcmask 146432  }
 0x566   : > { %3217 = vst [vmem:[#allocation3 + $0x148] sm:$0xf] %v3201_v23  ;;  %v3191_v9 = vpop.permute.xlu0 %3190  ;;  %vm7798_vm4 = vmmov %vm7795_vm3 }
 0x567   : > { %3218 = vst [vmem:[#allocation3 + $0x150] sm:$0xf] %v3202_v46  ;;  %3462 = vrot.lane.b32.xlu0 %v6502_v53, %s4910_s24  ;;  %v3203_v47 = vsel %vm7776_vm5, %v6978_v21, %v3191_v9  ;;  %v7778_v21 = vld [vmem:[#allocation25_spill] sm:$0xff]  ;;  %vm7799_vm5 = vmmov %vm7794_vm0 }
 0x568   : > { %3219 = vst [vmem:[#allocation3 + $0x158] sm:$0xf] %v3203_v47  ;;  %v7782_v47 = vld [vmem:[#allocation27_spill] sm:$0xff] }
 0x56a   : > { %3407 = vrot.lane.b32.xlu1 %v7775_v49, %s4909_s23 }
 0x56b   : > { %v3328_v45 = vpop.permute.xlu2 %3327  ;;  %3460 = vrot.lane.b32.xlu2 %v7777_v51, %s4910_s24 }
 0x56c   : > { %v7042_v63 = vld.sshfl [vmem:[#allocation1] sm:$0xff pattern:$0x75316420]  ;;  %v7044_v56 = vld.sshfl [vmem:[#allocation1 + $0x8] sm:$0xff pattern:$0x75316420]  ;;  %v3124_v57 = vpop.permute.xlu1 %3123 }
 0x56d   : > { %4223 = vst [vmem:[#allocation1 + $0x1] ss:$2 sm:$0xff] %v4201_v13  ;;  %v3135_v53 = vsel %vm902_vm10, %v3122_v38, %v3124_v57  ;;  %v3136_v7 = vsel %vm902_vm10, %v3124_v57, %v3126_v18  ;;  %vm7785_vm10 = vmmov %vm7780_vm8 }
 0x56e   : > { %3151 = vst [vmem:[#allocation3 + $0x120] sm:$0xf0] %v3135_v53  ;;  %v3197_v46 = vpop.permute.xlu0 %3196 }
 0x56f   : > { %3152 = vst [vmem:[#allocation3 + $0x128] sm:$0xf0] %v3136_v7  ;;  %3544 = vrot.lane.b32.xlu0 %v6543_v2, %s4911_s25  ;;  %v3206_v38 = vsel %vm7779_vm6, %v3195_v16, %v3197_v46  ;;  %v4271_v2 = vld [vmem:[#allocation4 + $0x24] sm:$0xf]  ;;  %v7783_v7 = vld [vmem:[#allocation29_spill] sm:$0xff]  ;;  %vm7800_vm6 = vmmov %vm7794_vm0 }
 0x570   : > { %3222 = vst [vmem:[#allocation3 + $0x170] sm:$0xf] %v3206_v38 }
 0x572   : > { %3540 = vrot.lane.b32.xlu1 %v7778_v21, %s4911_s25 }
 0x573   : > { %v3253_v13 = vpop.permute.xlu2 %3252  ;;  %3605 = vrot.lane.b32.xlu2 %v7782_v47, %s7781_s11  ;;  %v7787_v47 = vld [vmem:[#allocation30_spill] sm:$0xff] }
 0x574   : > { %v7056_v23 = vld.sshfl [vmem:[#allocation1] sm:$0xff pattern:$0x75316420]  ;;  %v3257_v18 = vpop.permute.xlu1 %3256 }
 0x575   : > { %4277 = vst [vmem:[#allocation1] ss:$2 sm:$0xff] %v6697_v48  ;;  %v3272_v49 = vsel %vm7780_vm8, %v3257_v18, %v7019_v43  ;;  %vm7803_vm8 = vmmov %vm7795_vm3 }
 0x576   : > { %3288 = vst [vmem:[#allocation3 + $0x150] sm:$0xf0] %v3272_v49  ;;  %v3255_v53 = vpop.permute.xlu0 %3254 }
 0x577   : > { %3532 = vrot.lane.b32.xlu0 %v6561_v36, %s4911_s25  ;;  %v3270_v51 = vsel %vm7784_vm9, %v3253_v13, %v3255_v53  ;;  %v3271_v21 = vsel %vm7785_vm10, %v3255_v53, %v3257_v18  ;;  %vm7804_vm9 = vcmask 138240   ;;  %vm7806_vm10 = vmmov %vm7795_vm3 }
 0x578   : > { %3286 = vst [vmem:[#allocation3 + $0x140] sm:$0xf0] %v3270_v51 }
 0x579   : > { %3287 = vst [vmem:[#allocation3 + $0x148] sm:$0xf0] %v3271_v21  ;;  %v7793_v21 = vld [vmem:[#allocation35_spill] sm:$0xff] }
 0x57a   : > { %3476 = vrot.lane.b32.xlu1 %v7783_v7, %s4910_s24  ;;  %v7789_v7 = vld [vmem:[#allocation28_spill] sm:$0xff] }
 0x57b   : > { %v3265_v38 = vpop.permute.xlu2 %3264 }
 0x57c   : > { %v7068_v48 = vld.sshfl [vmem:[#allocation1 + $0x8] sm:$0xff pattern:$0x75316420]  ;;  %v7070_v57 = vld.sshfl [vmem:[#allocation1] sm:$0xff pattern:$0x75316420]  ;;  %v3199_v36 = vpop.permute.xlu1 %3198 }
 0x57d   : > { %4292 = vst [vmem:[#allocation1] ss:$2 sm:$0xff] %v4271_v2  ;;  %v3207_v49 = vsel %vm7786_vm12, %v3197_v46, %v3199_v36  ;;  %v7788_v2 = vld [vmem:[#allocation34_spill] sm:$0xff]  ;;  %vm7807_vm12 = vmmov %vm7795_vm3 }
 0x57e   : > { %3223 = vst.msk [vmem:[#allocation3 + $0x178] sm:$0xf] %vm345_vm1, %v3207_v49  ;;  %3530 = vrot.lane.b32.xlu2 %v7788_v2, %s4911_s25  ;;  %v3261_v41 = vpop.permute.xlu0 %3260  ;;  %v7797_v2 = vld [vmem:[#allocation31_spill] sm:$0xff] }
 0x57f   : > { %3607 = vrot.lane.b32.xlu0 %v7787_v47, %s7781_s11  ;;  %v3273_v13 = vsel %vm7790_vm11, %v7019_v43, %v3261_v41  ;;  %vm7808_vm11 = vmmov %vm7794_vm0 }
 0x580   : > { %3289 = vst [vmem:[#allocation3 + $0x158] sm:$0xf0] %v3273_v13 }
 0x582   : > { %3603 = vrot.lane.b32.xlu1 %v7789_v7, %s7781_s11 }
 0x583   : > { %v3398_v18 = vpop.permute.xlu2 %3397 }
 0x584   : > { %v3193_v53 = vpop.permute.xlu1 %3192 }
 0x585   : > { %v3204_v46 = vsel %vm7791_vm15, %v3191_v9, %v3193_v53  ;;  %v3205_v51 = vsel %vm7792_vm13, %v3193_v53, %v3195_v16  ;;  %v7796_v16 = vld [vmem:[#allocation36_spill] sm:$0xff]  ;;  %vm7811_vm15 = vmmov %vm7804_vm9 }
 0x586   : > { %3220 = vst [vmem:[#allocation3 + $0x160] sm:$0xf] %v3204_v46  ;;  %3611 = vrot.lane.b32.xlu2 %v7793_v21, %s7781_s11  ;;  %v3267_v36 = vpop.permute.xlu0 %3266  ;;  %vm7812_vm13 = vmmov %vm7795_vm3 }
 0x587   : > { %3221 = vst [vmem:[#allocation3 + $0x168] sm:$0xf] %v3205_v51  ;;  %3601 = vrot.lane.b32.xlu0 %v6617_v1, %s7781_s11  ;;  %v3276_v43 = vsel %vm7794_vm0, %v3265_v38, %v3267_v36  ;;  %vm7813_vm0 = vmmov %vm7795_vm3 }
 0x588   : > { %3292 = vst [vmem:[#allocation3 + $0x170] sm:$0xf0] %v3276_v43 }
 0x58a   : > { %3546 = vrot.lane.b32.xlu1 %v6591_v32, %s4911_s25 }
 0x58b   : > { %v3334_v49 = vpop.permute.xlu2 %3333 }
 0x58c   : > { %v3326_v47 = vpop.permute.xlu1 %3325 }
 0x58d   : > { %v3341_v9 = vsel %vm7795_vm3, %v3326_v47, %v3328_v45  ;;  %vm7815_vm3 = vmmov %vm7804_vm9 }
 0x58e   : > { %3357 = vst [vmem:[#allocation3 + $0x190] sm:$0xf] %v3341_v9  ;;  %3599 = vrot.lane.b32.xlu2 %v6619_v24, %s7781_s11  ;;  %v3330_v1 = vpop.permute.xlu0 %3329  ;;  %v7802_v24 = vld [vmem:[#allocation32_spill] sm:$0xff] }
 0x58f   : > { %3613 = vrot.lane.b32.xlu0 %v7796_v16, %s7781_s11  ;;  %v3342_v32 = vsel %vm7798_vm4, %v3328_v45, %v3330_v1  ;;  %vm7816_vm4 = vcmask 130048  }
 0x590   : > { %3358 = vst [vmem:[#allocation3 + $0x198] sm:$0xf] %v3342_v32 }
 0x592   : > { %3609 = vrot.lane.b32.xlu1 %v7797_v2, %s7781_s11 }
 0x593   : > { %v3467_v7 = vpop.permute.xlu2 %3466 }
 0x594   : > { %v3263_v13 = vpop.permute.xlu1 %3262 }
 0x595   : > { %v3274_v53 = vsel %vm7799_vm5, %v3261_v41, %v3263_v13  ;;  %v3275_v46 = vsel %vm7800_vm6, %v3263_v13, %v3265_v38  ;;  %v7810_v13 = vld [vmem:[#allocation37_spill] sm:$0xff]  ;;  %vm7818_vm5 = vmmov %vm7816_vm4 }
 0x596   : > { %3290 = vst [vmem:[#allocation3 + $0x160] sm:$0xf0] %v3274_v53  ;;  %3675 = vrot.lane.b32.xlu2 %v7802_v24, %s7801_s12  ;;  %v7109_v51 = vpop.permute.xlu0 %3335  ;;  %vm7819_vm6 = vmmov %vm7815_vm3 }
 0x597   : > { %3291 = vst [vmem:[#allocation3 + $0x168] sm:$0xf0] %v3275_v46  ;;  %3671 = vrot.lane.b32.xlu0 %v6667_v40, %s7801_s12  ;;  %v3345_v45 = vsel %vm7803_vm8, %v3334_v49, %v7109_v51  ;;  %vm7820_vm8 = vmmov %vm7815_vm3 }
 0x598   : > { %3361 = vst [vmem:[#allocation3 + $0x1b0] sm:$0xf] %v3345_v45 }
 0x59a   : > { %3615 = vrot.lane.b32.xlu1 %v6646_v28, %s7781_s11  ;;  %v7805_v28 = vld [vmem:[#allocation33_spill] sm:$0xff] }
 0x59b   : > { %v3322_v21 = vpop.permute.xlu2 %3321 }
 0x59c   : > { %v7115_v41 = vpop.permute.xlu1 %3395 }
 0x59d   : > { %v3411_v38 = vsel %vm7804_vm9, %v7115_v41, %v3398_v18  ;;  %vm7823_vm9 = vmmov %vm7816_vm4 }
 0x59e   : > { %3427 = vst [vmem:[#allocation3 + $0x190] sm:$0xf0] %v3411_v38  ;;  %3669 = vrot.lane.b32.xlu2 %v6669_v34, %s7801_s12 }
 0x59f   : > { %3677 = vrot.lane.b32.xlu0 %v6579_v25, %s7801_s12  ;;  %v7809_v25 = vld [vmem:[#allocation38_spill] sm:$0xff] }
 0x5a1   : > { %v3324_v40 = vpop.permute.xlu0 %3323 }
 0x5a2   : > { %3673 = vrot.lane.b32.xlu1 %v7805_v28, %s7801_s12  ;;  %v3339_v43 = vsel %vm7806_vm10, %v3322_v21, %v3324_v40  ;;  %v3340_v9 = vsel %vm7807_vm12, %v3324_v40, %v3326_v47  ;;  %v7817_v21 = vld [vmem:[#allocation39_spill] sm:$0xff]  ;;  %vm7824_vm10 = vmmov %vm7813_vm0 }
 0x5a3   : > { %v3404_v16 = vpop.permute.xlu2 %3403  ;;  %3355 = vst [vmem:[#allocation3 + $0x180] sm:$0xf] %v3339_v43  ;;  %vm7826_vm12 = vmmov %vm7815_vm3 }
 0x5a4   : > { %3356 = vst [vmem:[#allocation3 + $0x188] sm:$0xf] %v3340_v9  ;;  %v3269_v2 = vpop.permute.xlu1 %3268 }
 0x5a5   : > { %v3277_v32 = vsel %vm7808_vm11, %v3267_v36, %v3269_v2  ;;  %vm7827_vm11 = vmmov %vm7815_vm3 }
 0x5a6   : > { %3293 = vst.msk [vmem:[#allocation3 + $0x178] sm:$0xf0] %vm410_vm2, %v3277_v32  ;;  %3681 = vrot.lane.b32.xlu2 %v7809_v25, %s7801_s12 }
 0x5a7   : > { %3683 = vrot.lane.b32.xlu0 %v6600_v61, %s7801_s12 }
 0x5a9   : > { %v3400_v34 = vpop.permute.xlu0 %3399 }
 0x5aa   : > { %3679 = vrot.lane.b32.xlu1 %v7810_v13, %s7801_s12  ;;  %v3412_v47 = vsel %vm7811_vm15, %v3398_v18, %v3400_v34  ;;  %vm7828_vm15 = vmmov %vm7816_vm4 }
 0x5ab   : > { %v3537_v53 = vpop.permute.xlu2 %3536  ;;  %3428 = vst [vmem:[#allocation3 + $0x198] sm:$0xf0] %v3412_v47 }
 0x5ac   : > { %v3332_v46 = vpop.permute.xlu1 %3331 }
 0x5ad   : > { %v3343_v24 = vsel %vm7812_vm13, %v3330_v1, %v3332_v46  ;;  %v3344_v36 = vsel %vm7813_vm0, %v3332_v46, %v3334_v49  ;;  %vm7829_vm13 = vmmov %vm7816_vm4  ;;  %vm7831_vm0 = vcmask 64512  }
 0x5ae   : > { %3359 = vst [vmem:[#allocation3 + $0x1a0] sm:$0xf] %v3343_v24  ;;  %3738 = vrot.lane.b32.xlu2 %v6730_v31, %s7814_s13 }
 0x5af   : > { %3360 = vst [vmem:[#allocation3 + $0x1a8] sm:$0xf] %v3344_v36  ;;  %3740 = vrot.lane.b32.xlu0 %v6734_v33, %s7814_s13 }
 0x5b1   : > { %v7142_v61 = vpop.permute.xlu0 %3405 }
 0x5b2   : > { %3685 = vrot.lane.b32.xlu1 %v6701_v26, %s7801_s12  ;;  %v3415_v18 = vsel %vm7815_vm3, %v3404_v16, %v7142_v61  ;;  %vm7832_vm3 = vmmov %vm7831_vm0 }
 0x5b3   : > { %v3473_v45 = vpop.permute.xlu2 %3472  ;;  %3431 = vst [vmem:[#allocation3 + $0x1b0] sm:$0xf0] %v3415_v18 }
 0x5b4   : > { %v3465_v1 = vpop.permute.xlu1 %3464 }
 0x5b5   : > { %v3480_v49 = vsel %vm7816_vm4, %v3465_v1, %v3467_v7 }
 0x5b6   : > { %3496 = vst [vmem:[#allocation3 + $0x1d0] sm:$0xf] %v3480_v49  ;;  %3744 = vrot.lane.b32.xlu2 %v6642_v30, %s7814_s13  ;;  %v7821_v30 = vld [vmem:[#allocation41_spill] sm:$0xff] }
 0x5b7   : > { %3746 = vrot.lane.b32.xlu0 %v7817_v21, %s7814_s13 }
 0x5b9   : > { %v3469_v31 = vpop.permute.xlu0 %3468 }
 0x5ba   : > { %3742 = vrot.lane.b32.xlu1 %v6651_v55, %s7814_s13  ;;  %v3481_v26 = vsel %vm7818_vm5, %v3467_v7, %v3469_v31  ;;  %v7822_v55 = vld [vmem:[#allocation40_spill] sm:$0xff]  ;;  %vm7834_vm5 = vmmov %vm7816_vm4 }
 0x5bb   : > { %v3392_v33 = vpop.permute.xlu2 %3391  ;;  %3497 = vst [vmem:[#allocation3 + $0x1d8] sm:$0xf] %v3481_v26 }
 0x5bc   : > { %v3402_v38 = vpop.permute.xlu1 %3401 }
 0x5bd   : > { %v3413_v40 = vsel %vm7819_vm6, %v3400_v34, %v3402_v38  ;;  %v3414_v28 = vsel %vm7820_vm8, %v3402_v38, %v3404_v16  ;;  %vm7837_vm8 = vmmov %vm7831_vm0 }
 0x5be   : > { %3429 = vst [vmem:[#allocation3 + $0x1a0] sm:$0xf0] %v3413_v40  ;;  %3750 = vrot.lane.b32.xlu2 %v7821_v30, %s7814_s13 }
 0x5bf   : > { %3430 = vst [vmem:[#allocation3 + $0x1a8] sm:$0xf0] %v3414_v28  ;;  %3752 = vrot.lane.b32.xlu0 %v6623_v17, %s7814_s13 }
 0x5c1   : > { %v7162_v43 = vpop.permute.xlu0 %3474 }
 0x5c2   : > { %3748 = vrot.lane.b32.xlu1 %v7822_v55, %s7814_s13  ;;  %v3484_v7 = vsel %vm7823_vm9, %v3473_v45, %v7162_v43  ;;  %vm7838_vm9 = vmmov %vm7831_vm0 }
 0x5c3   : > { %v3543_v9 = vpop.permute.xlu2 %3542  ;;  %3500 = vst [vmem:[#allocation3 + $0x1f0] sm:$0xf] %v3484_v7 }
 0x5c4   : > { %v3338_v2 = vpop.permute.xlu1 %3337 }
 0x5c5   : > { %v3346_v16 = vsel %vm7824_vm10, %v7109_v51, %v3338_v2  ;;  %vm7839_vm10 = vmmov %vm7831_vm0 }
 0x5c6   : > { %3362 = vst.msk [vmem:[#allocation3 + $0x1b8] sm:$0xf] %vm345_vm1, %v3346_v16  ;;  %3808 = vrot.lane.b32.xlu2 %v6790_v29, %s7825_s14  ;;  %v7830_v29 = vld [vmem:[#allocation49_spill] sm:$0xff] }
 0x5c7   : > { %3810 = vrot.lane.b32.xlu0 %v6788_v27, %s7825_s14 }
 0x5c9   : > { %v3394_v17 = vpop.permute.xlu0 %3393 }
 0x5ca   : > { %3754 = vrot.lane.b32.xlu1 %v6761_v22, %s7814_s13  ;;  %v3409_v32 = vsel %vm7826_vm12, %v3392_v33, %v3394_v17  ;;  %v3410_v25 = vsel %vm7827_vm11, %v3394_v17, %v7115_v41  ;;  %vm7840_vm12 = vmmov %vm7831_vm0 }
 0x5cb   : > { %v3461_v34 = vpop.permute.xlu2 %3460  ;;  %3425 = vst [vmem:[#allocation3 + $0x180] sm:$0xf0] %v3409_v32  ;;  %vm7841_vm11 = vmmov %vm7831_vm0 }
 0x5cc   : > { %3426 = vst [vmem:[#allocation3 + $0x188] sm:$0xf0] %v3410_v25  ;;  %v3471_v51 = vpop.permute.xlu1 %3470  ;;  %v7858_v25 = vld [vmem:[#allocation53_spill] sm:$0xff] }
 0x5cd   : > { %v3482_v13 = vsel %vm7828_vm15, %v3469_v31, %v3471_v51  ;;  %v3483_v27 = vsel %vm7829_vm13, %v3471_v51, %v3473_v45  ;;  %vm7842_vm15 = vmmov %vm7816_vm4  ;;  %vm7845_vm13 = vcmask 56320  }
 0x5ce   : > { %3498 = vst [vmem:[#allocation3 + $0x1e0] sm:$0xf] %v3482_v13  ;;  %3814 = vrot.lane.b32.xlu2 %v6688_v14, %s7825_s14  ;;  %v7833_v14 = vld [vmem:[#allocation42_spill] sm:$0xff] }
 0x5cf   : > { %3499 = vst [vmem:[#allocation3 + $0x1e8] sm:$0xf] %v3483_v27  ;;  %3816 = vrot.lane.b32.xlu0 %v6634_v42, %s7825_s14 }
 0x5d1   : > { %v3539_v22 = vpop.permute.xlu0 %3538 }
 0x5d2   : > { %3812 = vrot.lane.b32.xlu1 %v7830_v29, %s7825_s14  ;;  %v3551_v41 = vsel %vm7831_vm0, %v3537_v53, %v3539_v22  ;;  %vm7846_vm0 = vmmov %vm7845_vm13 }
 0x5d3   : > { %v3606_v47 = vpop.permute.xlu2 %3605  ;;  %3567 = vst [vmem:[#allocation3 + $0x1d8] sm:$0xf0] %v3551_v41 }
 0x5d4   : > { %v3535_v46 = vpop.permute.xlu1 %3534 }
 0x5d5   : > { %v3550_v24 = vsel %vm7832_vm3, %v3535_v46, %v3537_v53  ;;  %vm7849_vm3 = vmmov %vm7846_vm0 }
 0x5d6   : > { %3566 = vst [vmem:[#allocation3 + $0x1d0] sm:$0xf0] %v3550_v24  ;;  %4161 = vrot.lane.b32.xlu2 %v6874_v11, %s4919_s9 }
 0x5d7   : > { %4163 = vrot.lane.b32.xlu0 %v6827_v19, %s4919_s9 }
 0x5d9   : > { %v3463_v42 = vpop.permute.xlu0 %3462 }
 0x5da   : > { %3818 = vrot.lane.b32.xlu1 %v7833_v14, %s7825_s14  ;;  %v3478_v36 = vsel %vm7816_vm4, %v3461_v34, %v3463_v42  ;;  %v3479_v18 = vsel %vm7834_vm5, %v3463_v42, %v3465_v1  ;;  %vm7850_vm4 = vmmov %vm7846_vm0 }
 0x5db   : > { %v3531_v45 = vpop.permute.xlu2 %3530  ;;  %3494 = vst [vmem:[#allocation3 + $0x1c0] sm:$0xf] %v3478_v36  ;;  %vm7851_vm5 = vmmov %vm7837_vm8 }
 0x5dc   : > { %3495 = vst [vmem:[#allocation3 + $0x1c8] sm:$0xf] %v3479_v18  ;;  %v3408_v49 = vpop.permute.xlu1 %3407  ;;  %v7869_v18 = vld [vmem:[#allocation5_spill] sm:$0xff] }
 0x5dd   : > { %v3416_v53 = vsel %vm7819_vm6, %v7142_v61, %v3408_v49  ;;  %vm7854_vm6 = vmmov %vm7846_vm0 }
 0x5de   : > { %3432 = vst.msk [vmem:[#allocation3 + $0x1b8] sm:$0xf0] %vm410_vm2, %v3416_v53  ;;  %4233 = vrot.lane.b32.xlu2 %v6856_v58, %s7836_s16 }
 0x5df   : > { %4300 = vrot.lane.b32.xlu0 %v6923_v6, %s7835_s15 }
 0x5e1   : > { %v3545_v19 = vpop.permute.xlu0 %3544 }
 0x5e2   : > { %4231 = vrot.lane.b32.xlu1 %v6905_v3, %s7836_s16  ;;  %v3554_v11 = vsel %vm7837_vm8, %v3543_v9, %v3545_v19  ;;  %vm7855_vm8 = vmmov %vm7846_vm0 }
 0x5e3   : > { %v3612_v1 = vpop.permute.xlu2 %3611  ;;  %3570 = vst [vmem:[#allocation3 + $0x1f0] sm:$0xf0] %v3554_v11  ;;  %v7872_v11 = vld [vmem:[#allocation72_spill] sm:$0xff] }
 0x5e4   : > { %v3541_v21 = vpop.permute.xlu1 %3540 }
 0x5e5   : > { %v3552_v31 = vsel %vm7838_vm9, %v3539_v22, %v3541_v21  ;;  %v3553_v61 = vsel %vm7839_vm10, %v3541_v21, %v3543_v9  ;;  %vm7856_vm9 = vmmov %vm7846_vm0  ;;  %vm7859_vm10 = vcmask 48128  }
 0x5e6   : > { %3568 = vst [vmem:[#allocation3 + $0x1e0] sm:$0xf0] %v3552_v31  ;;  %4159 = vrot.lane.b32.xlu2 %v6872_v15, %s4919_s9 }
 0x5e7   : > { %3569 = vst [vmem:[#allocation3 + $0x1e8] sm:$0xf0] %v3553_v61  ;;  %4229 = vrot.lane.b32.xlu0 %v6903_v5, %s7836_s16  ;;  %v7844_v5 = vld [vmem:[#allocation45_spill] sm:$0xff] }
 0x5e9   : > { %v3533_v58 = vpop.permute.xlu0 %3532 }
 0x5ea   : > { %4302 = vrot.lane.b32.xlu1 %v6889_v52, %s7835_s15  ;;  %v3548_v3 = vsel %vm7840_vm12, %v3531_v45, %v3533_v58  ;;  %v3549_v6 = vsel %vm7841_vm11, %v3533_v58, %v3535_v46  ;;  %vm7860_vm12 = vmmov %vm7846_vm0 }
 0x5eb   : > { %v3600_v26 = vpop.permute.xlu2 %3599  ;;  %3564 = vst [vmem:[#allocation3 + $0x1c0] sm:$0xf0] %v3548_v3  ;;  %vm7861_vm11 = vmmov %vm7859_vm10 }
 0x5ec   : > { %3565 = vst [vmem:[#allocation3 + $0x1c8] sm:$0xf0] %v3549_v6  ;;  %v3477_v33 = vpop.permute.xlu1 %3476 }
 0x5ed   : > { %v3485_v38 = vsel %vm7842_vm15, %v7162_v43, %v3477_v33  ;;  %vm7862_vm15 = vmmov %vm7859_vm10 }
 0x5ee   : > { %3501 = vst.msk [vmem:[#allocation3 + $0x1f8] sm:$0xf] %vm345_vm1, %v3485_v38  ;;  %3883 = vrot.lane.b32.xlu2 %v6726_v44, %s7843_s17 }
 0x5ef   : > { %3885 = vrot.lane.b32.xlu0 %v7844_v5, %s7843_s17 }
 0x5f1   : > { %v3608_v52 = vpop.permute.xlu0 %3607 }
 0x5f2   : > { %4298 = vrot.lane.b32.xlu1 %v6930_v10, %s7835_s15  ;;  %v3620_v15 = vsel %vm7845_vm13, %v3606_v47, %v3608_v52  ;;  %vm7863_vm13 = vmmov %vm7859_vm10 }
 0x5f3   : > { %v3676_v40 = vpop.permute.xlu2 %3675  ;;  %3636 = vst [vmem:[#allocation3 + $0x218] sm:$0xf] %v3620_v15 }
 0x5f4   : > { %v3604_v28 = vpop.permute.xlu1 %3603 }
 0x5f5   : > { %v3619_v30 = vsel %vm7846_vm0, %v3604_v28, %v3606_v47  ;;  %vm7865_vm0 = vmmov %vm7859_vm10 }
 0x5f6   : > { %3635 = vst [vmem:[#allocation3 + $0x210] sm:$0xf] %v3619_v30  ;;  %3955 = vrot.lane.b32.xlu2 %v6715_v37, %s7848_s19 }
 0x5f7   : > { %4022 = vrot.lane.b32.xlu0 %v6813_v4, %s7847_s18 }
 0x5f9   : > { %v3602_v43 = vpop.permute.xlu0 %3601 }
 0x5fa   : > { %3953 = vrot.lane.b32.xlu1 %v6775_v12, %s7848_s19  ;;  %v3617_v44 = vsel %vm7849_vm3, %v3600_v26, %v3602_v43  ;;  %v3618_v10 = vsel %vm7850_vm4, %v3602_v43, %v3604_v28  ;;  %v7853_v12 = vld [vmem:[#allocation56_spill] sm:$0xff]  ;;  %vm7866_vm3 = vmmov %vm7865_vm0  ;;  %v4293_v28 = vld.sshfl [vmem:[#allocation1] sm:$0xff pattern:$0x75316420] }
 0x5fb   : > { %v3670_v55 = vpop.permute.xlu2 %3669  ;;  %3633 = vst [vmem:[#allocation3 + $0x200] sm:$0xf] %v3617_v44  ;;  %vm7867_vm4 = vmmov %vm7865_vm0  ;;  %v7884_v43 = vld [vmem:[#allocation10_spill] sm:$0xff] }
 0x5fc   : > { %3634 = vst [vmem:[#allocation3 + $0x208] sm:$0xf] %v3618_v10  ;;  %v3547_v7 = vpop.permute.xlu1 %3546 }
 0x5fd   : > { %v3555_v9 = vsel %vm7851_vm5, %v3545_v19, %v3547_v7  ;;  %vm7870_vm5 = vcmask 457728  }
 0x5fe   : > { %3571 = vst.msk [vmem:[#allocation3 + $0x1f8] sm:$0xf0] %vm410_vm2, %v3555_v9  ;;  %4092 = vrot.lane.b32.xlu2 %v6850_v8, %s7852_s20 }
 0x5ff   : > { %4094 = vrot.lane.b32.xlu0 %v6797_v50, %s7852_s20  ;;  %v7857_v50 = vld [vmem:[#allocation58_spill] sm:$0xff] }
 0x601   : > { %v3614_v37 = vpop.permute.xlu0 %3613 }
 0x602   : > { %4024 = vrot.lane.b32.xlu1 %v7853_v12, %s7847_s18  ;;  %v3623_v4 = vsel %vm7854_vm6, %v3612_v1, %v3614_v37  ;;  %vm7871_vm6 = vmmov %vm7865_vm0  ;;  %v7889_v12 = vld [vmem:[#allocation11_spill] sm:$0xff] }
 0x603   : > { %v3682_v2 = vpop.permute.xlu2 %3681  ;;  %3639 = vst [vmem:[#allocation3 + $0x230] sm:$0xf] %v3623_v4 }
 0x604   : > { %v3610_v16 = vpop.permute.xlu1 %3609 }
 0x605   : > { %v3621_v17 = vsel %vm7855_vm8, %v3608_v52, %v3610_v16  ;;  %v3622_v32 = vsel %vm7856_vm9, %v3610_v16, %v3612_v1  ;;  %vm7873_vm8 = vmmov %vm7870_vm5 }
 0x606   : > { %3637 = vst [vmem:[#allocation3 + $0x220] sm:$0xf] %v3621_v17  ;;  %3951 = vrot.lane.b32.xlu2 %v7857_v50, %s7848_s19  ;;  %vm7874_vm9 = vmmov %vm7870_vm5 }
 0x607   : > { %3638 = vst [vmem:[#allocation3 + $0x228] sm:$0xf] %v3622_v32  ;;  %4020 = vrot.lane.b32.xlu0 %v6809_v35, %s7847_s18 }
 0x609   : > { %v3672_v8 = vpop.permute.xlu0 %3671 }
 0x60a   : > { %3881 = vrot.lane.b32.xlu1 %v7858_v25, %s7843_s17  ;;  %v3687_v34 = vsel %vm7859_vm10, %v3670_v55, %v3672_v8  ;;  %vm7875_vm10 = vmmov %vm7870_vm5  ;;  %v7895_v25 = vld [vmem:[#allocation69_spill] sm:$0xff] }
 0x60b   : > { %v3739_v51 = vpop.permute.xlu2 %3738  ;;  %3703 = vst [vmem:[#allocation3 + $0x200] sm:$0xf0] %v3687_v34 }
 0x60c   : > { %v3616_v13 = vpop.permute.xlu1 %3615 }
 0x60d   : > { %v3624_v27 = vsel %vm7860_vm12, %v3614_v37, %v3616_v13  ;;  %vm7877_vm12 = vmmov %vm7870_vm5 }
 0x60e   : > { %3640 = vst.msk [vmem:[#allocation3 + $0x238] sm:$0xf] %vm345_vm1, %v3624_v27  ;;  %4155 = vrot.lane.b32.xlu2 %v7009_v59, %s4919_s9  ;;  %v7864_v59 = vld [vmem:[#allocation67_spill] sm:$0xff] }
 0x60f   : > { %3949 = vrot.lane.b32.xlu0 %v6895_v0, %s7848_s19 }
 0x611   : > { %v3678_v35 = vpop.permute.xlu0 %3677 }
 0x612   : > { %4157 = vrot.lane.b32.xlu1 %v7013_v39, %s4919_s9  ;;  %v3690_v22 = vsel %vm7861_vm11, %v3676_v40, %v3678_v35  ;;  %vm7878_vm11 = vmmov %vm7870_vm5 }
 0x613   : > { %v3745_v29 = vpop.permute.xlu2 %3744  ;;  %3706 = vst [vmem:[#allocation3 + $0x218] sm:$0xf0] %v3690_v22  ;;  %v7898_v22 = vld [vmem:[#allocation13_spill] sm:$0xff] }
 0x614   : > { %v3674_v41 = vpop.permute.xlu1 %3673 }
 0x615   : > { %v3688_v47 = vsel %vm7862_vm15, %v3672_v8, %v3674_v41  ;;  %v3689_v46 = vsel %vm7863_vm13, %v3674_v41, %v3676_v40  ;;  %vm7879_vm15 = vmmov %vm7870_vm5  ;;  %vm7882_vm13 = vcmask 449536   ;;  %v7894_v8 = vld [vmem:[#allocation51_spill] sm:$0xff] }
 0x616   : > { %3704 = vst [vmem:[#allocation3 + $0x208] sm:$0xf0] %v3688_v47  ;;  %3879 = vrot.lane.b32.xlu2 %v6840_v54, %s7843_s17  ;;  %v7900_v47 = vld [vmem:[#allocation6_spill] sm:$0xff] }
 0x617   : > { %3705 = vst [vmem:[#allocation3 + $0x210] sm:$0xf0] %v3689_v46  ;;  %4225 = vrot.lane.b32.xlu0 %v7042_v63, %s7836_s16  ;;  %v7868_v63 = vld [vmem:[#allocation66_spill] sm:$0xff] }
 0x619   : > { %v3684_v0 = vpop.permute.xlu0 %3683 }
 0x61a   : > { %4090 = vrot.lane.b32.xlu1 %v7864_v59, %s7852_s20  ;;  %v3693_v39 = vsel %vm7865_vm0, %v3682_v2, %v3684_v0  ;;  %vm7883_vm0 = vmmov %vm7870_vm5 }
 0x61b   : > { %v3751_v24 = vpop.permute.xlu2 %3750  ;;  %3709 = vst [vmem:[#allocation3 + $0x230] sm:$0xf0] %v3693_v39 }
 0x61c   : > { %v3680_v42 = vpop.permute.xlu1 %3679 }
 0x61d   : > { %v3691_v14 = vsel %vm7866_vm3, %v3678_v35, %v3680_v42  ;;  %v3692_v36 = vsel %vm7867_vm4, %v3680_v42, %v3682_v2  ;;  %vm7885_vm3 = vmmov %vm7882_vm13  ;;  %vm7886_vm4 = vcmask 293888   ;;  %v7891_v2 = vld [vmem:[#allocation62_spill] sm:$0xff]  ;;  %v7904_v42 = vld [vmem:[#allocation16_spill] sm:$0xff] }
 0x61e   : > { %3707 = vst [vmem:[#allocation3 + $0x220] sm:$0xf0] %v3691_v14  ;;  %4227 = vrot.lane.b32.xlu2 %v7044_v56, %s7836_s16 }
 0x61f   : > { %3708 = vst [vmem:[#allocation3 + $0x228] sm:$0xf0] %v3692_v36  ;;  %3877 = vrot.lane.b32.xlu0 %v7868_v63, %s7843_s17  ;;  %v7905_v36 = vld [vmem:[#allocation60_spill] sm:$0xff] }
 0x621   : > { %v3741_v54 = vpop.permute.xlu0 %3740 }
 0x622   : > { %4018 = vrot.lane.b32.xlu1 %v7869_v18, %s7847_s18  ;;  %v3756_v45 = vsel %vm7870_vm5, %v3739_v51, %v3741_v54  ;;  %vm7887_vm5 = vmmov %vm7885_vm3  ;;  %v7896_v51 = vld [vmem:[#allocation48_spill] sm:$0xff] }
 0x623   : > { %v3809_v49 = vpop.permute.xlu2 %3808  ;;  %3772 = vst [vmem:[#allocation3 + $0x240] sm:$0xf] %v3756_v45 }
 0x624   : > { %v3686_v53 = vpop.permute.xlu1 %3685 }
 0x625   : > { %v3694_v19 = vsel %vm7871_vm6, %v3684_v0, %v3686_v53  ;;  %vm7888_vm6 = vmmov %vm7885_vm3 }
 0x626   : > { %3710 = vst.msk [vmem:[#allocation3 + $0x238] sm:$0xf0] %vm410_vm2, %v3694_v19  ;;  %4088 = vrot.lane.b32.xlu2 %v6985_v60, %s7852_s20  ;;  %v7876_v60 = vld [vmem:[#allocation7_spill] sm:$0xff] }
 0x627   : > { %4296 = vrot.lane.b32.xlu0 %v7068_v48, %s7835_s15 }
 0x629   : > { %v3747_v56 = vpop.permute.xlu0 %3746 }
 0x62a   : > { %3947 = vrot.lane.b32.xlu1 %v7872_v11, %s7848_s19  ;;  %v3759_v1 = vsel %vm7873_vm8, %v3745_v29, %v3747_v56  ;;  %vm7892_vm8 = vmmov %vm7886_vm4  ;;  %v7909_v11 = vld [vmem:[#allocation15_spill] sm:$0xff] }
 0x62b   : > { %v3815_v21 = vpop.permute.xlu2 %3814  ;;  %3775 = vst [vmem:[#allocation3 + $0x258] sm:$0xf] %v3759_v1 }
 0x62c   : > { %v3743_v31 = vpop.permute.xlu1 %3742 }
 0x62d   : > { %v3757_v61 = vsel %vm7874_vm9, %v3741_v54, %v3743_v31  ;;  %v3758_v58 = vsel %vm7875_vm10, %v3743_v31, %v3745_v29  ;;  %vm7893_vm9 = vmmov %vm7885_vm3  ;;  %vm7897_vm10 = vcmask 285696   ;;  %v7899_v29 = vld [vmem:[#allocation55_spill] sm:$0xff]  ;;  %v7911_v31 = vld [vmem:[#allocation68_spill] sm:$0xff] }
 0x62e   : > { %3773 = vst [vmem:[#allocation3 + $0x248] sm:$0xf] %v3757_v61  ;;  %4016 = vrot.lane.b32.xlu2 %v7876_v60, %s7847_s18 }
 0x62f   : > { %3774 = vst [vmem:[#allocation3 + $0x250] sm:$0xf] %v3758_v58  ;;  %4086 = vrot.lane.b32.xlu0 %v6983_v20, %s7852_s20  ;;  %v7880_v20 = vld [vmem:[#allocation71_spill] sm:$0xff] }
 0x631   : > { %v3753_v48 = vpop.permute.xlu0 %3752 }
 0x632   : > { %4294 = vrot.lane.b32.xlu1 %v7070_v57, %s7835_s15  ;;  %v3762_v3 = vsel %vm7877_vm12, %v3751_v24, %v3753_v48  ;;  %v7881_v57 = vld [vmem:[#allocation63_spill] sm:$0xff]  ;;  %vm7901_vm12 = vmmov %vm7897_vm10 }
 0x633   : > { %v4162_v6 = vpop.permute.xlu2 %4161  ;;  %3778 = vst [vmem:[#allocation3 + $0x270] sm:$0xf] %v3762_v3 }
 0x634   : > { %v3749_v26 = vpop.permute.xlu1 %3748 }
 0x635   : > { %v3760_v33 = vsel %vm7878_vm11, %v3747_v56, %v3749_v26  ;;  %v3761_v38 = vsel %vm7879_vm15, %v3749_v26, %v3751_v24  ;;  %vm7902_vm11 = vcmask 277504   ;;  %v7903_v24 = vld [vmem:[#allocation65_spill] sm:$0xff]  ;;  %vm7906_vm15 = vcmask 441344   ;;  %v7908_v56 = vld [vmem:[#allocation47_spill] sm:$0xff] }
 0x636   : > { %3776 = vst [vmem:[#allocation3 + $0x260] sm:$0xf] %v3760_v33  ;;  %4171 = vrot.lane.b32.xlu2 %v7027_v62, %s4919_s9  ;;  %v7914_v33 = vld [vmem:[#allocation59_spill] sm:$0xff] }
 0x637   : > { %3777 = vst [vmem:[#allocation3 + $0x268] sm:$0xf] %v3761_v38  ;;  %4239 = vrot.lane.b32.xlu0 %v7880_v20, %s7836_s16  ;;  %v7915_v38 = vld [vmem:[#allocation54_spill] sm:$0xff] }
 0x639   : > { %v3811_v5 = vpop.permute.xlu0 %3810 }
 0x63a   : > { %4169 = vrot.lane.b32.xlu1 %v7881_v57, %s4919_s9  ;;  %v3826_v52 = vsel %vm7882_vm13, %v3809_v49, %v3811_v5  ;;  %vm7907_vm13 = vmmov %vm7902_vm11 }
 0x63b   : > { %v7309_v15 = vpop.permute.xlu2 %4233  ;;  %3842 = vst [vmem:[#allocation3 + $0x240] sm:$0xf0] %v3826_v52  ;;  %v7917_v52 = vld [vmem:[#allocation50_spill] sm:$0xff] }
 0x63c   : > { %v3755_v40 = vpop.permute.xlu1 %3754 }
 0x63d   : > { %v3763_v30 = vsel %vm7883_vm0, %v3753_v48, %v3755_v40  ;;  %vm7910_vm0 = vcmask 1045504  }
 0x63e   : > { %3779 = vst.msk [vmem:[#allocation3 + $0x278] sm:$0xf] %vm345_vm1, %v3763_v30  ;;  %4308 = vrot.lane.b32.xlu2 %v7884_v43, %s7835_s15 }
 0x63f   : > { %4310 = vrot.lane.b32.xlu0 %v4293_v28, %s7835_s15 }
 0x641   : > { %v3817_v62 = vpop.permute.xlu0 %3816 }
 0x642   : > { %4241 = vrot.lane.b32.xlu1 %v7056_v23, %s7836_s16  ;;  %v3829_v44 = vsel %vm7885_vm3, %v3815_v21, %v3817_v62  ;;  %v7890_v23 = vld [vmem:[#allocation70_spill] sm:$0xff]  ;;  %vm7912_vm3 = vcmask 375808  }
 0x643   : > { %v7319_v10 = vpop.permute.xlu2 %4159  ;;  %3845 = vst [vmem:[#allocation3 + $0x258] sm:$0xf0] %v3829_v44  ;;  %v7921_v44 = vld [vmem:[#allocation64_spill] sm:$0xff] }
 0x644   : > { %v4175_v55 = vsel %vm7886_vm4, %v7319_v10, %v4162_v6  ;;  %v3813_v7 = vpop.permute.xlu1 %3812  ;;  %vm7913_vm4 = vmmov %vm7912_vm3 }
 0x645   : > { %4191 = vst [vmem:[#allocation3 + $0x310] sm:$0xf] %v4175_v55  ;;  %v3827_v9 = vsel %vm7887_vm5, %v3811_v5, %v3813_v7  ;;  %v3828_v37 = vsel %vm7888_vm6, %v3813_v7, %v3815_v21  ;;  %vm7916_vm5 = vmmov %vm7910_vm0  ;;  %v4664_v5 = vld [vmem:[%s4985_s10] sm:$0xff]  ;;  %vm7918_vm6 = vcmask 359424  }
 0x646   : > { %3843 = vst [vmem:[#allocation3 + $0x248] sm:$0xf0] %v3827_v9  ;;  %4237 = vrot.lane.b32.xlu2 %v7890_v23, %s7836_s16  ;;  %v4668_v9 = vld [vmem:[%s4985_s10 + $0x20] sm:$0xf] }
 0x647   : > { %3844 = vst [vmem:[#allocation3 + $0x250] sm:$0xf0] %v3828_v37  ;;  %4306 = vrot.lane.b32.xlu0 %v7889_v12, %s7835_s15  ;;  %v7922_v12 = vld [vmem:[#allocation44_spill] sm:$0xff] }
 0x648   : > { %4674 = vst [vmem:[#allocation1] ss:$2 sm:$0xff] %v4664_v5 }
 0x649   : > { %v7329_v4 = vpop.permute.xlu0 %4163 }
 0x64a   : > { %4167 = vrot.lane.b32.xlu1 %v7891_v2, %s4919_s9  ;;  %v4176_v16 = vsel %vm7892_vm8, %v4162_v6, %v7329_v4  ;;  %vm7919_vm8 = vcmask 367616  }
 0x64b   : > { %v7335_v17 = vpop.permute.xlu2 %3883  ;;  %4192 = vst [vmem:[#allocation3 + $0x318] sm:$0xf] %v4176_v16 }
 0x64c   : > { %v7337_v32 = vpop.permute.xlu1 %3818 }
 0x64d   : > { %v3830_v50 = vsel %vm7893_vm9, %v3817_v62, %v7337_v32  ;;  %v7920_v62 = vld [vmem:[#allocation43_spill] sm:$0xff]  ;;  %vm7923_vm9 = vmmov %vm7919_vm8 }
 0x64e   : > { %3846 = vst [vmem:[#allocation3 + $0x260] sm:$0xf0] %v3830_v50  ;;  %3893 = vrot.lane.b32.xlu2 %v7895_v25, %s7843_s17 }
 0x64f   : > { %3961 = vrot.lane.b32.xlu0 %v7894_v8, %s7848_s19  ;;  %v7415_v55 = vld.sshfl [vmem:[#allocation1 + $0x8] sm:$0xff pattern:$0x75316420]  ;;  %v7420_v37 = vld.sshfl [vmem:[#allocation1] sm:$0xff pattern:$0x75316420] }
 0x650   : > { %4689 = vst [vmem:[#allocation1] ss:$2 sm:$0xff] %v4668_v9 }
 0x651   : > { %v4301_v34 = vpop.permute.xlu0 %4300 }
 0x652   : > { %3891 = vrot.lane.b32.xlu1 %v7896_v51, %s7843_s17 }
 0x653   : > { %v7347_v13 = vpop.permute.xlu2 %3955 }
 0x654   : > { %v4232_v27 = vpop.permute.xlu1 %4231 }
 0x655   : > { %v4246_v35 = vsel %vm7897_vm10, %v4232_v27, %v7309_v15 }
 0x656   : > { %4262 = vst [vmem:[#allocation3 + $0x318] sm:$0xf0] %v4246_v35  ;;  %4030 = vrot.lane.b32.xlu2 %v7899_v29, %s7847_s18  ;;  %v7926_v35 = vld [vmem:[#allocation57_spill] sm:$0xff]  ;;  %v7927_v29 = vld [vmem:[#allocation52_spill] sm:$0xff] }
 0x657   : > { %4032 = vrot.lane.b32.xlu0 %v7898_v22, %s7847_s18  ;;  %v4412_v22 = vld [vmem:[#allocation3 + $0x258] sm:$0xff] }
 0x658   : > { %v4690_v9 = vld.sshfl [vmem:[#allocation1] sm:$0xff pattern:$0x75316420] }
 0x659   : > { %v4230_v41 = vpop.permute.xlu0 %4229 }
 0x65a   : > { %3963 = vrot.lane.b32.xlu1 %v7900_v47, %s7848_s19  ;;  %v4245_v46 = vsel %vm7901_vm12, %v4230_v41, %v4232_v27  ;;  %vm7924_vm12 = vmmov %vm7906_vm15  ;;  %v4404_v47 = vld [vmem:[#allocation3 + $0x218] sm:$0xff] }
 0x65b   : > { %v7358_v0 = vpop.permute.xlu2 %4092  ;;  %4261 = vst [vmem:[#allocation3 + $0x310] sm:$0xf0] %v4245_v46  ;;  %v7928_v46 = vld [vmem:[#allocation46_spill] sm:$0xff] }
 0x65c   : > { %v7360_v59 = vpop.permute.xlu1 %4302 }
 0x65d   : > { %v4315_v39 = vsel %vm7902_vm11, %v4301_v34, %v7360_v59  ;;  %v4436_v49 = vld [vmem:[#allocation3 + $0x318] sm:$0xff]  ;;  %vm7925_vm11 = vmmov %vm7924_vm12 }
 0x65e   : > { %4331 = vst [vmem:[#allocation3 + $0x358] sm:$0xf] %v4315_v39  ;;  %4102 = vrot.lane.b32.xlu2 %v7904_v42, %s7852_s20  ;;  %v4396_v42 = vld [vmem:[#allocation3 + $0x1d8] sm:$0xff] }
 0x65f   : > { %4165 = vrot.lane.b32.xlu0 %v7903_v24, %s4919_s9  ;;  %v4484_v24 = vpack.c.bf16 %v4412_v22, %v4404_v47  ;;  %v4395_v22 = vld [vmem:[#allocation3 + $0x1d0] sm:$0xff] }
 0x660   : > { %v4387_v47 = vld [vmem:[#allocation3 + $0x190] sm:$0xff] }
 0x661   : > { %v7368_v14 = vpop.permute.xlu0 %3885 }
 0x662   : > { %4100 = vrot.lane.b32.xlu1 %v7905_v36, %s7852_s20  ;;  %v3898_v63 = vsel %vm7906_vm15, %v7335_v17, %v7368_v14  ;;  %v4435_v3 = vld [vmem:[#allocation3 + $0x310] sm:$0xff]  ;;  %vm7929_vm15 = vmmov %vm7912_vm3 }
 0x663   : > { %v7375_v54 = vpop.permute.xlu2 %3951  ;;  %3914 = vst [vmem:[#allocation3 + $0x298] sm:$0xf] %v3898_v63  ;;  %v4650_v63 = vld [vmem:[%s7636_s6] sm:$0xf] }
 0x664   : > { %v7377_v18 = vpop.permute.xlu1 %4298 }
 0x665   : > { %v4314_v45 = vsel %vm7907_vm13, %v7377_v18, %v4301_v34  ;;  %v4444_v53 = vld [vmem:[#allocation3 + $0x358] sm:$0xf]  ;;  %vm7930_vm13 = vcmask 293888  }
 0x666   : > { %4330 = vst [vmem:[#allocation3 + $0x350] sm:$0xf] %v4314_v45  ;;  %v4500_v19 = vpack.c.bf16 %v4444_v53, %v4436_v49  ;;  %4304 = vrot.lane.b32.xlu2 %v7909_v11, %s7835_s15  ;;  %v4388_v53 = vld [vmem:[#allocation3 + $0x198] sm:$0xff] }
 0x667   : > { %3889 = vrot.lane.b32.xlu0 %v7908_v56, %s7843_s17  ;;  %v4380_v56 = vld [vmem:[#allocation3 + $0x158] sm:$0xff] }
 0x668   : > { %v4518_v1 = vsel %vm7910_vm0, %v4500_v19, 0  ;;  %vm7931_vm0 = vmmov %vm7930_vm13  ;;  %v4476_v19 = vpack.c.bf16 %v4396_v42, %v4388_v53 }
 0x669   : > { %4572 = vmatpush.bf16.msra.mxu3 %v4518_v1  ;;  %v4023_v21 = vpop.permute.xlu0 %4022  ;;  %v4372_v1 = vld [vmem:[#allocation3 + $0x118] sm:$0xff] }
 0x66a   : > { %4235 = vrot.lane.b32.xlu1 %v7911_v31, %s7836_s16 }
 0x66b   : > { %v4156_v61 = vpop.permute.xlu2 %4155 }
 0x66c   : > { %v3954_v58 = vpop.permute.xlu1 %3953 }
 0x66d   : > { %v3967_v60 = vsel %vm7912_vm3, %v7375_v54, %v3954_v58  ;;  %v3968_v48 = vsel %vm7913_vm4, %v3954_v58, %v7347_v13  ;;  %v4443_v6 = vld [vmem:[#allocation3 + $0x350] sm:$0xf]  ;;  %vm7933_vm3 = vmmov %vm7897_vm10  ;;  %v4364_v58 = vld [vmem:[#allocation3 + $0xd8] sm:$0xff] }
 0x66e   : > { %3983 = vst [vmem:[#allocation3 + $0x290] sm:$0xf0] %v3967_v60  ;;  %v4499_v26 = vpack.c.bf16 %v4443_v6, %v4435_v3  ;;  %4028 = vrot.lane.b32.xlu2 %v7915_v38, %s7847_s18  ;;  %vm7934_vm4 = vmmov %vm7918_vm6  ;;  %v4356_v6 = vld [vmem:[#allocation3 + $0x98] sm:$0xff]  ;;  %v4683_v38 = vld.sshfl [vmem:[#allocation1 + $0x10] sm:$0xff pattern:$0x75316420] }
 0x66f   : > { %3984 = vst [vmem:[#allocation3 + $0x298] sm:$0xf0] %v3968_v48  ;;  %4098 = vrot.lane.b32.xlu0 %v7914_v33, %s7852_s20  ;;  %v4686_v33 = vld.sshfl [vmem:[#allocation1 + $0x28] sm:$0xff pattern:$0x75316420] }
 0x670   : > { %v4515_v20 = vsel %vm7916_vm5, %v4499_v26, 0  ;;  %vm7935_vm5 = vmmov %vm7934_vm4  ;;  %v4460_v26 = vpack.c.bf16 %v4364_v58, %v4356_v6  ;;  %v4347_v58 = vld [vmem:[#allocation3 + $0x50] sm:$0xff] }
 0x671   : > { %4559 = vmatpush.bf16.msra.mxu2 %v4515_v20  ;;  %v7398_v57 = vpop.permute.xlu0 %4094  ;;  %v4348_v20 = vld [vmem:[#allocation3 + $0x58] sm:$0xff] }
 0x672   : > { %3959 = vrot.lane.b32.xlu1 %v7917_v52, %s7848_s19  ;;  %v4107_v40 = vsel %vm7918_vm6, %v7358_v0, %v7398_v57  ;;  %v4340_v52 = vld [vmem:[#allocation3 + $0x18] sm:$0xff]  ;;  %vm7936_vm6 = vmmov %vm7925_vm11 }
 0x673   : > { %v7405_v28 = vpop.permute.xlu2 %3879  ;;  %4123 = vst [vmem:[#allocation3 + $0x2d8] sm:$0xf0] %v4107_v40 }
 0x674   : > { %v7407_v30 = vpop.permute.xlu1 %4024 }
 0x675   : > { %v4037_v43 = vsel %vm7919_vm8, %v4023_v21, %v7407_v30 }
 0x676   : > { %4053 = vst [vmem:[#allocation3 + $0x2d8] sm:$0xf] %v4037_v43  ;;  %3824 = vrot.lane.b32.xlu2 %v7921_v44, %s7825_s14  ;;  %v4420_v34 = vld [vmem:[#allocation3 + $0x298] sm:$0xff]  ;;  %v4452_v43 = vpack.c.bf16 %v4348_v20, %v4340_v52 }
 0x677   : > { %3820 = vrot.lane.b32.xlu0 %v7920_v62, %s7825_s14  ;;  %v7471_v44 = vld [vmem:[%s7632_s2] sm:$0x3] }
 0x679   : > { %v7417_v7 = vpop.permute.xlu0 %4020 }
 0x67a   : > { %3822 = vrot.lane.b32.xlu1 %v7922_v12, %s7825_s14  ;;  %v4036_v23 = vsel %vm7923_vm9, %v7417_v7, %v4023_v21  ;;  %v7932_v21 = vld [vmem:[#allocation61_spill] sm:$0xff]  ;;  %vm7937_vm9 = vmmov %vm7919_vm8 }
 0x67b   : > { %v4228_v2 = vpop.permute.xlu2 %4227  ;;  %4052 = vst [vmem:[#allocation3 + $0x2d0] sm:$0xf] %v4036_v23 }
 0x67c   : > { %v4244_v16 = vsel %vm7897_vm10, %v4228_v2, %v4230_v41  ;;  %v3882_v50 = vpop.permute.xlu1 %3881  ;;  %vm7938_vm10 = vcmask 277504  }
 0x67d   : > { %4260 = vst [vmem:[#allocation3 + $0x308] sm:$0xf0] %v4244_v16  ;;  %v3896_v8 = vsel %vm7924_vm12, %v7405_v28, %v3882_v50  ;;  %v3897_v25 = vsel %vm7925_vm11, %v3882_v50, %v7335_v17  ;;  %v4428_v51 = vld [vmem:[#allocation3 + $0x2d8] sm:$0xff]  ;;  %v4411_v50 = vld [vmem:[#allocation3 + $0x250] sm:$0xff]  ;;  %vm7939_vm12 = vmmov %vm7929_vm15 }
 0x67e   : > { %3912 = vst [vmem:[#allocation3 + $0x288] sm:$0xf] %v3896_v8  ;;  %v4492_v27 = vpack.c.bf16 %v4428_v51, %v4420_v34  ;;  %3957 = vrot.lane.b32.xlu2 %v7927_v29, %s7848_s19  ;;  %v4685_v16 = vld.sshfl [vmem:[#allocation1 + $0x20] sm:$0xff pattern:$0x75316420]  ;;  %v4403_v51 = vld [vmem:[#allocation3 + $0x210] sm:$0xff]  ;;  %vm7940_vm11 = vmmov %vm7934_vm4 }
 0x67f   : > { %3913 = vst [vmem:[#allocation3 + $0x290] sm:$0xf] %v3897_v25  ;;  %4026 = vrot.lane.b32.xlu0 %v7926_v35, %s7847_s18  ;;  %v4684_v8 = vld.sshfl [vmem:[#allocation1 + $0x18] sm:$0xff pattern:$0x75316420] }
 0x680   : > { %4573 = vmatpush.bf16.msra.mxu3 %v4492_v27  ;;  %v4483_v27 = vpack.c.bf16 %v4411_v50, %v4403_v51 }
 0x681   : > { %v7435_v41 = vpop.permute.xlu0 %3949 }
 0x682   : > { %3887 = vrot.lane.b32.xlu1 %v7928_v46, %s7843_s17  ;;  %v3966_v17 = vsel %vm7929_vm15, %v7435_v41, %v7375_v54  ;;  %v4636_v54 = vld [vmem:[%s7635_s5] sm:$0xf]  ;;  %v4475_v46 = vpack.c.bf16 %v4395_v22, %v4387_v47  ;;  %vm7941_vm15 = vmmov %vm7938_vm10  ;;  %v4362_v22 = vld [vmem:[#allocation3 + $0xc8] sm:$0xff] }
 0x683   : > { %v7442_v39 = vpop.permute.xlu2 %4088  ;;  %3982 = vst [vmem:[#allocation3 + $0x288] sm:$0xf0] %v3966_v17  ;;  %v4688_v17 = vld.sshfl [vmem:[#allocation1 + $0x38] sm:$0xff pattern:$0x75316420] }
 0x684   : > { %v4158_v36 = vpop.permute.xlu1 %4157  ;;  %4574 = vmatpush.bf16.msra.mxu3 %v4484_v24  ;;  %v4379_v24 = vld [vmem:[#allocation3 + $0x150] sm:$0xff] }
 0x685   : > { %v4173_v45 = vsel %vm7930_vm13, %v4156_v61, %v4158_v36  ;;  %v4174_v49 = vsel %vm7931_vm0, %v4158_v36, %v7319_v10  ;;  %v4468_v61 = vpack.c.bf16 %v4380_v56, %v4372_v1  ;;  %v4363_v56 = vld [vmem:[#allocation3 + $0xd0] sm:$0xff]  ;;  %vm7942_vm13 = vcmask 1045504   ;;  %vm7943_vm0 = vmmov %vm7933_vm3 }
 0x686   : > { %4189 = vst [vmem:[#allocation3 + $0x300] sm:$0xf] %v4173_v45  ;;  %4639 = vperm.xlu2 %4887, %v4636_v54   ;;  %v4419_v23 = vld [vmem:[#allocation3 + $0x290] sm:$0xff] }
 0x687   : > { %4190 = vst [vmem:[#allocation3 + $0x308] sm:$0xf] %v4174_v49  ;;  %4653 = vperm.xlu0 %4888, %v4650_v63   ;;  %v4371_v45 = vld [vmem:[#allocation3 + $0x110] sm:$0xff] }
 0x688   : > { %4575 = vmatpush.bf16.msra.mxu3 %v4476_v19  ;;  %v4467_v53 = vpack.c.bf16 %v4379_v24, %v4371_v45  ;;  %v4393_v24 = vld [vmem:[#allocation3 + $0x1c0] sm:$0xff] }
 0x689   : > { %v4226_v11 = vpop.permute.xlu0 %4225 }
 0x68a   : > { %4096 = vrot.lane.b32.xlu1 %v7932_v21, %s7852_s20  ;;  %v4243_v31 = vsel %vm7933_vm3, %v4226_v11, %v4228_v2  ;;  %vm7944_vm3 = vcmask 293888  }
 0x68b   : > { %v4017_v10 = vpop.permute.xlu2 %4016  ;;  %4259 = vst [vmem:[#allocation3 + $0x300] sm:$0xf0] %v4243_v31  ;;  %v4355_v31 = vld [vmem:[#allocation3 + $0x90] sm:$0xff] }
 0x68c   : > { %v4091_v60 = vpop.permute.xlu1 %4090  ;;  %4576 = vmatpush.bf16.msra.mxu3 %v4468_v61 }
 0x68d   : > { %v4105_v48 = vsel %vm7934_vm4, %v7442_v39, %v4091_v60  ;;  %v4106_v3 = vsel %vm7935_vm5, %v4091_v60, %v7358_v0  ;;  %vm7945_vm4 = vmmov %vm7942_vm13 }
 0x68e   : > { %4121 = vst [vmem:[#allocation3 + $0x2c8] sm:$0xf0] %v4105_v48  ;;  %4695 = vrot.lane.b32.xlu2 %v4683_v38, %s4909_s23  ;;  %v4410_v48 = vld [vmem:[#allocation3 + $0x248] sm:$0xff]  ;;  %vm7946_vm5 = vmmov %vm7938_vm10 }
 0x68f   : > { %4122 = vst [vmem:[#allocation3 + $0x2d0] sm:$0xf0] %v4106_v3  ;;  %4701 = vrot.lane.b32.xlu0 %v4686_v33, %s4909_s23  ;;  %v4402_v38 = vld [vmem:[#allocation3 + $0x208] sm:$0xff] }
 0x690   : > { %4577 = vmatpush.bf16.msra.mxu3 %v4460_v26  ;;  %v4339_v26 = vld [vmem:[#allocation3 + $0x10] sm:$0xff] }
 0x691   : > { %v3878_v5 = vpop.permute.xlu0 %3877  ;;  %v4451_v33 = vpack.c.bf16 %v4347_v58, %v4339_v26 }
 0x692   : > { %4693 = vrot.lane.b32.xlu1 %v7415_v55, %s4909_s23  ;;  %v3895_v0 = vsel %vm7936_vm6, %v3878_v5, %v7405_v28  ;;  %v4482_v5 = vpack.c.bf16 %v4410_v48, %v4402_v38  ;;  %vm7947_vm6 = vmmov %vm7943_vm0  ;;  %v4353_v48 = vld [vmem:[#allocation3 + $0x80] sm:$0xff] }
 0x693   : > { %v7466_v40 = vpop.permute.xlu2 %4171  ;;  %3911 = vst [vmem:[#allocation3 + $0x280] sm:$0xf] %v3895_v0  ;;  %v4433_v0 = vld [vmem:[#allocation3 + $0x300] sm:$0xff] }
 0x694   : > { %v4019_v62 = vpop.permute.xlu1 %4018  ;;  %4578 = vmatpush.bf16.msra.mxu3 %v4452_v43 }
 0x695   : > { %v4034_v12 = vsel %vm7919_vm8, %v4017_v10, %v4019_v62  ;;  %v4035_v55 = vsel %vm7937_vm9, %v4019_v62, %v7417_v7  ;;  %v4418_v10 = vld [vmem:[#allocation3 + $0x288] sm:$0xff]  ;;  %vm7948_vm8 = vmmov %vm7946_vm5 }
 0x696   : > { %4050 = vst [vmem:[#allocation3 + $0x2c0] sm:$0xf] %v4034_v12  ;;  %v4427_v28 = vld [vmem:[#allocation3 + $0x2d0] sm:$0xff]  ;;  %4699 = vrot.lane.b32.xlu2 %v4685_v16, %s4909_s23  ;;  %v4394_v62 = vld [vmem:[#allocation3 + $0x1c8] sm:$0xff]  ;;  %vm7949_vm9 = vmmov %vm7944_vm3 }
 0x697   : > { %4051 = vst [vmem:[#allocation3 + $0x2c8] sm:$0xf] %v4035_v55  ;;  %4840 = vmatmul.msk.bf16.vlgmr.msra.gmra.mxu3 %vm705_vm7, %v7471_v44  ;;  %v4491_v2 = vpack.c.bf16 %v4427_v28, %v4419_v23  ;;  %4707 = vrot.lane.b32.xlu0 %v4690_v9, %s4909_s23  ;;  %v4386_v12 = vld [vmem:[#allocation3 + $0x188] sm:$0xff] }
 0x698   : > { %v4474_v55 = vpack.c.bf16 %v4394_v62, %v4386_v12 }
 0x699   : > { %4560 = vmatpush.bf16.msra.mxu2 %v4491_v2  ;;  %v4297_v25 = vpop.permute.xlu0 %4296  ;;  %v4378_v2 = vld [vmem:[#allocation3 + $0x148] sm:$0xff] }
 0x69a   : > { %4697 = vrot.lane.b32.xlu1 %v4684_v8, %s4909_s23  ;;  %v4313_v7 = vsel %vm7938_vm10, %v4297_v25, %v7377_v18  ;;  %v4687_v18 = vld.sshfl [vmem:[#allocation1 + $0x30] sm:$0xff pattern:$0x75316420]  ;;  %vm7950_vm10 = vmmov %vm7945_vm4 }
 0x69b   : > { %v7483_v34 = vpop.permute.xlu2 %4308  ;;  %4329 = vst [vmem:[#allocation3 + $0x348] sm:$0xf] %v4313_v7 }
 0x69c   : > { %v3948_v35 = vpop.permute.xlu1 %3947 }
 0x69d   : > { %v3965_v29 = vsel %vm7939_vm12, %v3948_v35, %v7435_v41  ;;  %4561 = vmatpush.bf16.msra.mxu2 %v4483_v27  ;;  %v4434_v41 = vld [vmem:[#allocation3 + $0x308] sm:$0xff]  ;;  %v4409_v27 = vld [vmem:[#allocation3 + $0x240] sm:$0xff]  ;;  %vm7951_vm12 = vmmov %vm7946_vm5 }
 0x69e   : > { %3981 = vst [vmem:[#allocation3 + $0x280] sm:$0xf0] %v3965_v29  ;;  %4705 = vrot.lane.b32.xlu2 %v4688_v17, %s4909_s23  ;;  %v4426_v21 = vld [vmem:[#allocation3 + $0x2c8] sm:$0xff]  ;;  %v4401_v29 = vld [vmem:[#allocation3 + $0x200] sm:$0xff] }
 0x69f   : > { %v4490_v61 = vpack.c.bf16 %v4426_v21, %v4418_v10  ;;  %v4481_v47 = vpack.c.bf16 %v4409_v27, %v4401_v29 }
 0x6a1   : > { %4562 = vmatpush.bf16.msra.mxu2 %v4475_v46  ;;  %v4087_v42 = vpop.permute.xlu0 %4086  ;;  %v4354_v46 = vld [vmem:[#allocation3 + $0x88] sm:$0xff] }
 0x6a2   : > { %4703 = vrot.lane.b32.xlu1 %v4687_v18, %s4909_s23  ;;  %v4104_v36 = vsel %vm7940_vm11, %v4087_v42, %v7442_v39  ;;  %v4442_v49 = vld [vmem:[#allocation3 + $0x348] sm:$0xf]  ;;  %v4459_v39 = vpack.c.bf16 %v4363_v56, %v4355_v31  ;;  %v4458_v17 = vpack.c.bf16 %v4362_v22, %v4354_v46  ;;  %v4369_v31 = vld [vmem:[#allocation3 + $0x100] sm:$0xff]  ;;  %vm7952_vm11 = vmmov %vm7946_vm5 }
 0x6a3   : > { %v7491_v63 = vpop.permute.xlu2 %4237  ;;  %4120 = vst [vmem:[#allocation3 + $0x2c0] sm:$0xf0] %v4104_v36  ;;  %v4498_v54 = vpack.c.bf16 %v4442_v49, %v4434_v41  ;;  %v4346_v42 = vld [vmem:[#allocation3 + $0x48] sm:$0xff]  ;;  %v4385_v41 = vld [vmem:[#allocation3 + $0x180] sm:$0xff] }
 0x6a4   : > { %v4295_v19 = vpop.permute.xlu1 %4294  ;;  %v4473_v49 = vpack.c.bf16 %v4393_v24, %v4385_v41 }
 0x6a5   : > { %v4312_v11 = vsel %vm7941_vm15, %v4295_v19, %v4297_v25  ;;  %4563 = vmatpush.bf16.msra.mxu2 %v4467_v53  ;;  %v4512_v1 = vsel %vm7942_vm13, %v4498_v54, 0  ;;  %v4417_v50 = vld [vmem:[#allocation3 + $0x280] sm:$0xff]  ;;  %v4370_v25 = vld [vmem:[#allocation3 + $0x108] sm:$0xff]  ;;  %vm7953_vm15 = vcmask 441344   ;;  %vm7954_vm13 = vmmov %vm7945_vm4 }
 0x6a6   : > { %4328 = vst [vmem:[#allocation3 + $0x340] sm:$0xf] %v4312_v11  ;;  %4546 = vmatpush.bf16.msra.mxu1 %v4512_v1  ;;  %v4466_v51 = vpack.c.bf16 %v4378_v2, %v4370_v25  ;;  %v4338_v53 = vld [vmem:[#allocation3 + $0x8] sm:$0xff]  ;;  %v4377_v11 = vld [vmem:[#allocation3 + $0x140] sm:$0xff] }
 0x6a7   : > { %v4450_v56 = vpack.c.bf16 %v4346_v42, %v4338_v53  ;;  %v4465_v10 = vpack.c.bf16 %v4377_v11, %v4369_v31 }
 0x6a9   : > { %4564 = vmatpush.bf16.msra.mxu2 %v4459_v39  ;;  %v4240_v60 = vpop.permute.xlu0 %4239 }
 0x6aa   : > { %v4249_v3 = vsel %vm7943_vm0, %v7491_v63, %v4240_v60  ;;  %4547 = vmatpush.bf16.msra.mxu1 %v4490_v61  ;;  %4691 = vrot.lane.b32.xlu1 %v7420_v37, %s4909_s23  ;;  %v4425_v23 = vld [vmem:[#allocation3 + $0x2c0] sm:$0xff]  ;;  %vm7955_vm0 = vcmask 367616   ;;  %s4847_s23 = sshll.u32 %s7987_s28, 5 }
 0x6ab   : > { %v7497_v6 = vpop.permute.xlu2 %3893  ;;  %4265 = vst [vmem:[#allocation3 + $0x330] sm:$0xf0] %v4249_v3  ;;  %v4489_v8 = vpack.c.bf16 %v4425_v23, %v4417_v50  ;;  %v4361_v61 = vld [vmem:[#allocation3 + $0xc0] sm:$0xff]  ;;  %s7596_s29 = scalar_lea.vmem %s7638_s8, %s4847_s23 }
 0x6ac   : > { %v4170_v20 = vpop.permute.xlu1 %4169 }
 0x6ad   : > { %v4180_v52 = vsel %vm7944_vm3, %v4170_v20, %v7466_v40  ;;  %4565 = vmatpush.bf16.msra.mxu2 %v4451_v33  ;;  %v4441_v43 = vld [vmem:[#allocation3 + $0x340] sm:$0xf]  ;;  %v4457_v33 = vpack.c.bf16 %v4361_v61, %v4353_v48  ;;  %vm7956_vm3 = vmmov %vm7955_vm0 }
 0x6ae   : > { %4196 = vst.msk [vmem:[#allocation3 + $0x338] sm:$0xf] %vm345_vm1, %v4180_v52  ;;  %4548 = vmatpush.bf16.msra.mxu1 %v4482_v5  ;;  %v4497_v9 = vpack.c.bf16 %v4441_v43, %v4433_v0  ;;  %v4345_v5 = vld [vmem:[#allocation3 + $0x40] sm:$0xff] }
 0x6af   : > { %v4337_v43 = vld [vmem:[#allocation3] sm:$0xff] }
 0x6b0   : > { %4839 = vmatmul.msk.bf16.vlgmr.msra.gmra.mxu2 %vm705_vm7, %v7471_v44  ;;  %v4509_v37 = vsel %vm7945_vm4, %v4497_v9, 0  ;;  %v4449_v9 = vpack.c.bf16 %v4345_v5, %v4337_v43  ;;  %vm7957_vm4 = vcmask 375808   ;;  %v4391_v43 = vld [vmem:[#allocation3 + $0x1b0] sm:$0xff] }
 0x6b1   : > { %4533 = vmatpush.bf16.msra.mxu0 %v4509_v37  ;;  %v4311_v28 = vpop.permute.xlu0 %4310 }
 0x6b2   : > { %v4319_v40 = vsel %vm7946_vm5, %v7483_v34, %v4311_v28  ;;  %4549 = vmatpush.bf16.msra.mxu1 %v4474_v55  ;;  %vm7958_vm5 = vmmov %vm7949_vm9 }
 0x6b3   : > { %v7509_v16 = vpop.permute.xlu2 %4030  ;;  %4335 = vst.msk [vmem:[#allocation3 + $0x378] sm:$0xf] %vm345_vm1, %v4319_v40 }
 0x6b4   : > { %v4242_v7 = vpop.permute.xlu1 %4241 }
 0x6b5   : > { %v4250_v35 = vsel %vm7947_vm6, %v4240_v60, %v4242_v7  ;;  %4534 = vmatpush.bf16.msra.mxu0 %v4489_v8  ;;  %vm7959_vm6 = vmmov %vm7958_vm5 }
 0x6b6   : > { %4266 = vst.msk [vmem:[#allocation3 + $0x338] sm:$0xf0] %vm410_vm2, %v4250_v35  ;;  %4550 = vmatpush.bf16.msra.mxu1 %v4466_v51 }
 0x6b9   : > { %4535 = vmatpush.bf16.msra.mxu0 %v4481_v47  ;;  %v4307_v18 = vpop.permute.xlu0 %4306 }
 0x6ba   : > { %v4318_v36 = vsel %vm7948_vm8, %v4307_v18, %v7483_v34  ;;  %4551 = vmatpush.bf16.msra.mxu1 %v4458_v17  ;;  %v4448_v54 = vld [vmem:[#allocation3 + $0x378] sm:$0xf]  ;;  %vm7961_vm8 = vmmov %vm7953_vm15 }
 0x6bb   : > { %v4103_v45 = vpop.permute.xlu2 %4102  ;;  %4334 = vst [vmem:[#allocation3 + $0x370] sm:$0xf] %v4318_v36 }
 0x6bc   : > { %v4168_v19 = vpop.permute.xlu1 %4167 }
 0x6bd   : > { %v4179_v1 = vsel %vm7949_vm9, %v4168_v19, %v4170_v20  ;;  %4536 = vmatpush.bf16.msra.mxu0 %v4473_v49  ;;  %v4440_v21 = vld [vmem:[#allocation3 + $0x338] sm:$0xff]  ;;  %vm7962_vm9 = vmmov %vm7957_vm4 }
 0x6be   : > { %4195 = vst [vmem:[#allocation3 + $0x330] sm:$0xf] %v4179_v1  ;;  %4552 = vmatpush.bf16.msra.mxu1 %v4450_v56  ;;  %v4504_v39 = vpack.c.bf16 %v4448_v54, %v4440_v21 }
 0x6c0   : > { %v4530_v34 = vsel %vm7950_vm10, %v4504_v39, 0  ;;  %vm7963_vm10 = vcmask 285696  }
 0x6c1   : > { %4537 = vmatpush.bf16.msra.mxu0 %v4465_v10  ;;  %4624 = vmatpush.bf16.msrb.mxu3 %v4530_v34  ;;  %v3962_v58 = vpop.permute.xlu0 %3961 }
 0x6c2   : > { %4838 = vmatmul.msk.bf16.vlgmr.msra.gmra.mxu1 %vm705_vm7, %v7471_v44  ;;  %v4447_v38 = vld [vmem:[#allocation3 + $0x370] sm:$0xf] }
 0x6c3   : > { %v4305_v60 = vpop.permute.xlu2 %4304 }
 0x6c4   : > { %v4316_v3 = vsel %vm7951_vm12, %v7360_v59, %v4305_v60  ;;  %v4317_v26 = vsel %vm7952_vm11, %v4305_v60, %v4307_v18  ;;  %v3892_v20 = vpop.permute.xlu1 %3891  ;;  %vm7964_vm12 = vmmov %vm7963_vm10 }
 0x6c5   : > { %4332 = vst [vmem:[#allocation3 + $0x360] sm:$0xf] %v4316_v3  ;;  %v3902_v52 = vsel %vm7953_vm15, %v3892_v20, %v7497_v6  ;;  %4538 = vmatpush.bf16.msra.mxu0 %v4457_v33  ;;  %v4439_v0 = vld [vmem:[#allocation3 + $0x330] sm:$0xff]  ;;  %vm7966_vm15 = vmmov %vm7957_vm4 }
 0x6c6   : > { %4333 = vst [vmem:[#allocation3 + $0x368] sm:$0xf] %v4317_v26  ;;  %v4503_v62 = vpack.c.bf16 %v4447_v38, %v4439_v0  ;;  %v4407_v26 = vld [vmem:[#allocation3 + $0x230] sm:$0xff]  ;;  %v4400_v0 = vld [vmem:[#allocation3 + $0x1f8] sm:$0xff] }
 0x6c7   : > { %3918 = vst.msk [vmem:[#allocation3 + $0x2b8] sm:$0xf] %vm345_vm1, %v3902_v52 }
 0x6c8   : > { %v4527_v59 = vsel %vm7954_vm13, %v4503_v62, 0  ;;  %vm7967_vm13 = vmmov %vm7957_vm4 }
 0x6c9   : > { %4539 = vmatpush.bf16.msra.mxu0 %v4449_v9  ;;  %4611 = vmatpush.bf16.msrb.mxu2 %v4527_v59  ;;  %v4033_v12 = vpop.permute.xlu0 %4032  ;;  %v4392_v9 = vld [vmem:[#allocation3 + $0x1b8] sm:$0xff] }
 0x6ca   : > { %v4041_v37 = vsel %vm7955_vm0, %v7509_v16, %v4033_v12  ;;  %vm7968_vm0 = vcmask 1045504   ;;  %v4480_v59 = vpack.c.bf16 %v4400_v0, %v4392_v9  ;;  %v4383_v12 = vld [vmem:[#allocation3 + $0x170] sm:$0xff] }
 0x6cb   : > { %v7529_v55 = vpop.permute.xlu2 %4028  ;;  %4057 = vst.msk [vmem:[#allocation3 + $0x2f8] sm:$0xf] %vm345_vm1, %v4041_v37  ;;  %vm7960_vm1 = vcmask 359424   ;;  %v4384_v37 = vld [vmem:[#allocation3 + $0x178] sm:$0xff] }
 0x6cc   : > { %v4040_v6 = vsel %vm7956_vm3, %v7529_v55, %v7509_v16  ;;  %v3964_v23 = vpop.permute.xlu1 %3963  ;;  %4837 = vmatmul.msk.bf16.vlgmr.msra.gmra.mxu0 %vm705_vm7, %v7471_v44  ;;  %vm7965_vm11 = vmmov %vm7960_vm1 }
 0x6cd   : > { %4056 = vst [vmem:[#allocation3 + $0x2f0] sm:$0xf] %v4040_v6  ;;  %v3972_v28 = vsel %vm7957_vm4, %v3962_v58, %v3964_v23  ;;  %v4446_v49 = vld [vmem:[#allocation3 + $0x368] sm:$0xf]  ;;  %vm7969_vm3 = vmmov %vm7968_vm0  ;;  %vm7970_vm4 = vcmask 449536   ;;  %v4375_v23 = vld [vmem:[#allocation3 + $0x130] sm:$0xff] }
 0x6ce   : > { %3988 = vst.msk [vmem:[#allocation3 + $0x2b8] sm:$0xf0] %vm410_vm2, %v3972_v28  ;;  %v4471_v28 = vpack.c.bf16 %v4383_v12, %v4375_v23 }
 0x6d1   : > { %v4166_v2 = vpop.permute.xlu0 %4165 }
 0x6d2   : > { %v4177_v40 = vsel %vm7958_vm5, %v7329_v4, %v4166_v2  ;;  %v4178_v50 = vsel %vm7959_vm6, %v4166_v2, %v4168_v19  ;;  %vm7971_vm5 = vmmov %vm7970_vm4  ;;  %v4376_v2 = vld [vmem:[#allocation3 + $0x138] sm:$0xff] }
 0x6d3   : > { %v3825_v8 = vpop.permute.xlu2 %3824  ;;  %4193 = vst [vmem:[#allocation3 + $0x320] sm:$0xf] %v4177_v40  ;;  %vm7972_vm6 = vmmov %vm7970_vm4  ;;  %v4472_v40 = vpack.c.bf16 %v4384_v37, %v4376_v2 }
 0x6d4   : > { %4194 = vst [vmem:[#allocation3 + $0x328] sm:$0xf] %v4178_v50  ;;  %v4101_v25 = vpop.permute.xlu1 %4100  ;;  %v4367_v50 = vld [vmem:[#allocation3 + $0xf0] sm:$0xff] }
 0x6d5   : > { %v4111_v16 = vsel %vm7960_vm1, %v4101_v25, %v4103_v45  ;;  %v4424_v47 = vld [vmem:[#allocation3 + $0x2b8] sm:$0xff]  ;;  %vm7973_vm1 = vcmask 367616  }
 0x6d6   : > { %4127 = vst.msk [vmem:[#allocation3 + $0x2f8] sm:$0xf0] %vm410_vm2, %v4111_v16 }
 0x6d9   : > { %v3890_v7 = vpop.permute.xlu0 %3889 }
 0x6da   : > { %v3901_v51 = vsel %vm7961_vm8, %v3890_v7, %v3892_v20  ;;  %vm7974_vm8 = vmmov %vm7973_vm1  ;;  %v4408_v20 = vld [vmem:[#allocation3 + $0x238] sm:$0xff] }
 0x6db   : > { %v3958_v27 = vpop.permute.xlu2 %3957  ;;  %3917 = vst [vmem:[#allocation3 + $0x2b0] sm:$0xf] %v3901_v51 }
 0x6dc   : > { %v3969_v35 = vsel %vm7962_vm9, %v7347_v13, %v3958_v27  ;;  %v4236_v4 = vpop.permute.xlu1 %4235  ;;  %vm7975_vm9 = vcmask 441344  }
 0x6dd   : > { %3985 = vst [vmem:[#allocation3 + $0x2a0] sm:$0xf0] %v3969_v35  ;;  %v4247_v22 = vsel %vm7963_vm10, %v7309_v15, %v4236_v4  ;;  %v4248_v29 = vsel %vm7964_vm12, %v4236_v4, %v7491_v63  ;;  %v4432_v46 = vld [vmem:[#allocation3 + $0x2f8] sm:$0xff]  ;;  %v4445_v15 = vld [vmem:[#allocation3 + $0x360] sm:$0xf]  ;;  %vm7976_vm10 = vmmov %vm7975_vm9 }
 0x6de   : > { %4263 = vst [vmem:[#allocation3 + $0x320] sm:$0xf0] %v4247_v22  ;;  %v4496_v17 = vpack.c.bf16 %v4432_v46, %v4424_v47  ;;  %vm7977_vm12 = vmmov %vm7965_vm11  ;;  %v4343_v22 = vld [vmem:[#allocation3 + $0x30] sm:$0xff] }
 0x6df   : > { %4264 = vst [vmem:[#allocation3 + $0x328] sm:$0xf0] %v4248_v29 }
 0x6e0   : > { %4625 = vmatpush.bf16.msrb.mxu3 %v4496_v17 }
 0x6e1   : > { %v4099_v24 = vpop.permute.xlu0 %4098 }
 0x6e2   : > { %v4110_v18 = vsel %vm7965_vm11, %v4099_v24, %v4101_v25  ;;  %v4359_v25 = vld [vmem:[#allocation3 + $0xb0] sm:$0xff] }
 0x6e3   : > { %4126 = vst [vmem:[#allocation3 + $0x2f0] sm:$0xf0] %v4110_v18  ;;  %v4463_v16 = vpack.c.bf16 %v4367_v50, %v4359_v25  ;;  %v7575_v0 = vpop.permute.xlu2 %4639 }
 0x6e4   : > { %v3960_v42 = vpop.permute.xlu1 %3959 }
 0x6e5   : > { %v3970_v13 = vsel %vm7966_vm15, %v3958_v27, %v3960_v42  ;;  %v3971_v36 = vsel %vm7967_vm13, %v3960_v42, %v3962_v58  ;;  %v4437_v45 = vld [vmem:[#allocation3 + $0x320] sm:$0xff]  ;;  %v4351_v27 = vld [vmem:[#allocation3 + $0x70] sm:$0xff]  ;;  %vm7978_vm15 = vcmask 138240  }
 0x6e6   : > { %3986 = vst [vmem:[#allocation3 + $0x2a8] sm:$0xf0] %v3970_v13  ;;  %v4501_v41 = vpack.c.bf16 %v4445_v15, %v4437_v45  ;;  %v4438_v63 = vld [vmem:[#allocation3 + $0x328] sm:$0xff]  ;;  %v4455_v17 = vpack.c.bf16 %v4351_v27, %v4343_v22  ;;  %v4413_v13 = vld [vmem:[#allocation3 + $0x260] sm:$0xff] }
 0x6e7   : > { %3987 = vst [vmem:[#allocation3 + $0x2b0] sm:$0xf0] %v3971_v36  ;;  %v4502_v53 = vpack.c.bf16 %v4446_v49, %v4438_v63  ;;  %v4405_v45 = vld [vmem:[#allocation3 + $0x220] sm:$0xff] }
 0x6e8   : > { %v4521_v54 = vsel %vm7968_vm0, %v4501_v41, 0  ;;  %v4485_v15 = vpack.c.bf16 %v4413_v13, %v4405_v45  ;;  %v4406_v41 = vld [vmem:[#allocation3 + $0x228] sm:$0xff]  ;;  %v4397_v49 = vld [vmem:[#allocation3 + $0x1e0] sm:$0xff] }
 0x6e9   : > { %4585 = vmatpush.bf16.msrb.mxu0 %v4521_v54  ;;  %v4524_v19 = vsel %vm7969_vm3, %v4502_v53, 0  ;;  %v3821_v56 = vpop.permute.xlu0 %3820  ;;  %v4398_v53 = vld [vmem:[#allocation3 + $0x1e8] sm:$0xff]  ;;  %v4389_v54 = vld [vmem:[#allocation3 + $0x1a0] sm:$0xff] }
 0x6ea   : > { %4598 = vmatpush.bf16.msrb.mxu1 %v4524_v19  ;;  %v3831_v11 = vsel %vm7970_vm4, %v7337_v32, %v3821_v56  ;;  %v4431_v21 = vld [vmem:[#allocation3 + $0x2f0] sm:$0xff]  ;;  %v4477_v19 = vpack.c.bf16 %v4397_v49, %v4389_v54 }
 0x6eb   : > { %3847 = vst [vmem:[#allocation3 + $0x268] sm:$0xf0] %v3831_v11  ;;  %v4696_v9 = vpop.permute.xlu2 %4695 }
 0x6ec   : > { %v3823_v1 = vpop.permute.xlu1 %3822 }
 0x6ed   : > { %v3832_v31 = vsel %vm7971_vm5, %v3821_v56, %v3823_v1  ;;  %v3833_v39 = vsel %vm7972_vm6, %v3823_v1, %v3825_v8  ;;  %v4368_v8 = vld [vmem:[#allocation3 + $0xf8] sm:$0xff]  ;;  %v4390_v56 = vld [vmem:[#allocation3 + $0x1a8] sm:$0xff]  ;;  %v4381_v1 = vld [vmem:[#allocation3 + $0x160] sm:$0xff] }
 0x6ee   : > { %3848 = vst [vmem:[#allocation3 + $0x270] sm:$0xf0] %v3832_v31  ;;  %v4423_v10 = vld [vmem:[#allocation3 + $0x2b0] sm:$0xff]  ;;  %v4478_v11 = vpack.c.bf16 %v4398_v53, %v4390_v56  ;;  %v4373_v31 = vld [vmem:[#allocation3 + $0x120] sm:$0xff]  ;;  %vm4764_vm5 = vmor %vm410_vm2, %vm2492_vm14 }
 0x6ef   : > { %3849 = vst.msk [vmem:[#allocation3 + $0x278] sm:$0xf0] %vm410_vm2, %v3833_v39  ;;  %v4495_v34 = vpack.c.bf16 %v4431_v21, %v4423_v10  ;;  %v4382_v21 = vld [vmem:[#allocation3 + $0x168] sm:$0xff]  ;;  %v4469_v39 = vpack.c.bf16 %v4381_v1, %v4373_v31 }
 0x6f0   : > { %v4374_v10 = vld [vmem:[#allocation3 + $0x128] sm:$0xff] }
 0x6f1   : > { %4612 = vmatpush.bf16.msrb.mxu2 %v4495_v34  ;;  %v4027_v61 = vpop.permute.xlu0 %4026  ;;  %v4470_v34 = vpack.c.bf16 %v4382_v21, %v4374_v10 }
 0x6f2   : > { %v4038_v58 = vsel %vm7973_vm1, %v7407_v30, %v4027_v61  ;;  %v4039_v32 = vsel %vm7974_vm8, %v4027_v61, %v7529_v55  ;;  %v4399_v30 = vld [vmem:[#allocation3 + $0x1f0] sm:$0xff]  ;;  %v4414_v36 = vld [vmem:[#allocation3 + $0x268] sm:$0xff]  ;;  %v4365_v61 = vld [vmem:[#allocation3 + $0xe0] sm:$0xff] }
 0x6f3   : > { %4054 = vst [vmem:[#allocation3 + $0x2e0] sm:$0xf] %v4038_v58  ;;  %v4479_v62 = vpack.c.bf16 %v4399_v30, %v4391_v43  ;;  %v4486_v63 = vpack.c.bf16 %v4414_v36, %v4406_v41  ;;  %v4366_v58 = vld [vmem:[#allocation3 + $0xe8] sm:$0xff] }
 0x6f4   : > { %4055 = vst [vmem:[#allocation3 + $0x2e8] sm:$0xf] %v4039_v32  ;;  %v3888_v60 = vpop.permute.xlu1 %3887  ;;  %v4357_v32 = vld [vmem:[#allocation3 + $0xa0] sm:$0xff] }
 0x6f5   : > { %v3899_v48 = vsel %vm7975_vm9, %v7368_v14, %v3888_v60  ;;  %v3900_v3 = vsel %vm7976_vm10, %v3888_v60, %v3890_v7  ;;  %v4415_v33 = vld [vmem:[#allocation3 + $0x270] sm:$0xff]  ;;  %v4360_v7 = vld [vmem:[#allocation3 + $0xb8] sm:$0xff]  ;;  %v4461_v60 = vpack.c.bf16 %v4365_v61, %v4357_v32 }
 0x6f6   : > { %3915 = vst [vmem:[#allocation3 + $0x2a0] sm:$0xf] %v3899_v48  ;;  %v4487_v38 = vpack.c.bf16 %v4415_v33, %v4407_v26  ;;  %v4416_v5 = vld [vmem:[#allocation3 + $0x278] sm:$0xff]  ;;  %v4464_v51 = vpack.c.bf16 %v4368_v8, %v4360_v7  ;;  %v4358_v48 = vld [vmem:[#allocation3 + $0xa8] sm:$0xff]  ;;  %v4349_v26 = vld [vmem:[#allocation3 + $0x60] sm:$0xff] }
 0x6f7   : > { %3916 = vst [vmem:[#allocation3 + $0x2a8] sm:$0xf] %v3900_v3  ;;  %v4488_v52 = vpack.c.bf16 %v4416_v5, %v4408_v20  ;;  %v4462_v3 = vpack.c.bf16 %v4366_v58, %v4358_v48  ;;  %v4350_v33 = vld [vmem:[#allocation3 + $0x68] sm:$0xff] }
 0x6f8   : > { %4613 = vmatpush.bf16.msrb.mxu2 %v4487_v38  ;;  %v4341_v38 = vld [vmem:[#allocation3 + $0x20] sm:$0xff] }
 0x6f9   : > { %4626 = vmatpush.bf16.msrb.mxu3 %v4488_v52  ;;  %v4453_v5 = vpack.c.bf16 %v4349_v26, %v4341_v38  ;;  %v4342_v52 = vld [vmem:[#allocation3 + $0x28] sm:$0xff]  ;;  %v7582_v12 = vpop.permute.xlu0 %4653 }
 0x6fa   : > { %v4454_v30 = vpack.c.bf16 %v4350_v33, %v4342_v52 }
 0x6fc   : > { %v4097_v14 = vpop.permute.xlu1 %4096  ;;  %4614 = vmatpush.bf16.msrb.mxu2 %v4479_v62 }
 0x6fd   : > { %v4108_v55 = vsel %vm7977_vm12, %v7398_v57, %v4097_v14  ;;  %v4109_v6 = vsel %vm7965_vm11, %v4097_v14, %v4099_v24  ;;  %4627 = vmatpush.bf16.msrb.mxu3 %v4480_v59  ;;  %v4352_v57 = vld [vmem:[#allocation3 + $0x78] sm:$0xff]  ;;  %v4421_v35 = vld [vmem:[#allocation3 + $0x2a0] sm:$0xff] }
 0x6fe   : > { %4124 = vst [vmem:[#allocation3 + $0x2e0] sm:$0xf0] %v4108_v55  ;;  %v4422_v47 = vld [vmem:[#allocation3 + $0x2a8] sm:$0xff]  ;;  %v4344_v24 = vld [vmem:[#allocation3 + $0x38] sm:$0xff]  ;;  %v7585_v55 = vpop.permute.xlu2 %4699 }
 0x6ff   : > { %4125 = vst [vmem:[#allocation3 + $0x2e8] sm:$0xf0] %v4109_v6  ;;  %v4456_v42 = vpack.c.bf16 %v4352_v57, %v4344_v24 }
 0x700   : > { %4615 = vmatpush.bf16.msrb.mxu2 %v4471_v28 }
 0x701   : > { %4628 = vmatpush.bf16.msrb.mxu3 %v4472_v40  ;;  %v4702_v49 = vpop.permute.xlu0 %4701 }
 0x704   : > { %4616 = vmatpush.bf16.msrb.mxu2 %v4463_v16  ;;  %v4694_v62 = vpop.permute.xlu1 %4693 }
 0x705   : > { %4629 = vmatpush.bf16.msrb.mxu3 %v4464_v51  ;;  %v4429_v4 = vld [vmem:[#allocation3 + $0x2e0] sm:$0xff] }
 0x706   : > { %v4493_v29 = vpack.c.bf16 %v4429_v4, %v4421_v35  ;;  %v4430_v46 = vld [vmem:[#allocation3 + $0x2e8] sm:$0xff]  ;;  %v4706_v21 = vpop.permute.xlu2 %4705 }
 0x707   : > { %v4494_v18 = vpack.c.bf16 %v4430_v46, %v4422_v47 }
 0x708   : > { %4586 = vmatpush.bf16.msrb.mxu0 %v4493_v29  ;;  %4617 = vmatpush.bf16.msrb.mxu2 %v4455_v17 }
 0x709   : > { %4599 = vmatpush.bf16.msrb.mxu1 %v4494_v18  ;;  %4630 = vmatpush.bf16.msrb.mxu3 %v4456_v42  ;;  %v4708_v56 = vpop.permute.xlu0 %4707 }
 0x70b   : > { %4843 = vmatmul.msk.bf16.vlgmr.msrb.gmra.mxu2 %vm705_vm7, %v7471_v44 }
 0x70c   : > { %4844 = vmatmul.msk.bf16.vlgmr.msrb.gmra.mxu3 %vm705_vm7, %v7471_v44  ;;  %4587 = vmatpush.bf16.msrb.mxu0 %v4485_v15  ;;  %v4698_v14 = vpop.permute.xlu1 %4697 }
 0x70d   : > { %4600 = vmatpush.bf16.msrb.mxu1 %v4486_v63  ;;  %v4712_v6 = vsel %vm7978_vm15, %v4698_v14, %v7585_v55 }
 0x710   : > { %4588 = vmatpush.bf16.msrb.mxu0 %v4477_v19 }
 0x711   : > { %4601 = vmatpush.bf16.msrb.mxu1 %v4478_v11 }
 0x714   : > { %4589 = vmatpush.bf16.msrb.mxu0 %v4469_v39  ;;  %v4704_v57 = vpop.permute.xlu1 %4703 }
 0x715   : > { %4602 = vmatpush.bf16.msrb.mxu1 %v4470_v34 }
 0x718   : > { %4590 = vmatpush.bf16.msrb.mxu0 %v4461_v60 }
 0x719   : > { %4603 = vmatpush.bf16.msrb.mxu1 %v4462_v3 }
 0x71a   : > { %v4580_v20 = vpop.f32.mrf.mxu3 }
 0x71b   : > { %v4645_v59 = vmul.f32 %v7575_v0, %v4580_v20 }
 0x71c   : > { %4591 = vmatpush.bf16.msrb.mxu0 %v4453_v5  ;;  %v4692_v46 = vpop.permute.xlu1 %4691 }
 0x71d   : > { %4604 = vmatpush.bf16.msrb.mxu1 %v4454_v30  ;;  %v4659_v37 = vadd.f32 %v7582_v12, %v4645_v59 }
 0x71f   : > { %4841 = vmatmul.msk.bf16.vlgmr.msrb.gmra.mxu0 %vm705_vm7, %v7471_v44  ;;  %v4728_v23 = vadd.f32 %v4712_v6, %v4659_v37 }
 0x720   : > { %4842 = vmatmul.msk.bf16.vlgmr.msrb.gmra.mxu1 %vm705_vm7, %v7471_v44  ;;  %vm7979_vm7 = vmmov %vm7978_vm15 }
 0x721   : > { %v4736_v2 = vmax.f32 %v4728_v23, 0.0  ;;  %v4711_v50 = vsel %vm7979_vm7, %v4696_v9, %v4698_v14  ;;  %vm7980_vm13 = vmmov %vm7979_vm7 }
 0x722   : > { %v4582_v43 = vpop.f32.mrf.mxu3  ;;  %v4710_v22 = vsel %vm7980_vm13, %v4694_v62, %v4696_v9  ;;  %vm7981_vm0 = vmmov %vm7979_vm7 }
 0x723   : > { %v4750_v25 = vrot.slane %v4736_v2, 4  ;;  %v4709_v18 = vsel %vm7981_vm0, %v4692_v46, %v4694_v62  ;;  %vm7982_vm3 = vmmov %vm7981_vm0 }
 0x724   : > { %v4716_v39 = vsel %vm7982_vm3, %v4706_v21, %v4708_v56  ;;  %vm7983_vm4 = vmmov %vm7981_vm0 }
 0x725   : > { %v4715_v10 = vsel %vm7983_vm4, %v4704_v57, %v4706_v21  ;;  %vm7984_vm6 = vmmov %vm7981_vm0 }
 0x726   : > { %v4713_v43 = vsel %vm7984_vm6, %v7585_v55, %v4702_v49  ;;  %vm7985_vm1 = vmmov %vm7981_vm0 }
 0x727   : > { %v4714_v62 = vsel %vm7985_vm1, %v4702_v49, %v4704_v57 }
 0x733   : > { %v4567_v28 = vpop.f32.mrf.mxu2 }
 0x734   : > { %v4644_v44 = vmul.f32 %v7575_v0, %v4567_v28 }
 0x736   : > { %v4658_v40 = vadd.f32 %v7582_v12, %v4644_v44 }
 0x738   : > { %v4727_v8 = vadd.f32 %v4711_v50, %v4658_v40 }
 0x73a   : > { %v4735_v16 = vmax.f32 %v4727_v8, 0.0 }
 0x73b   : > { %v4569_v7 = vpop.f32.mrf.mxu2 }
 0x73c   : > { %v4754_v51 = vsel %vm2492_vm14, %v4735_v16, %v4750_v25 }
 0x73d   : > { %4762 = vst [vmem:[%s7596_s29 + $0x8] sm:$0xff] %v4754_v51 }
 0x73f   : > { %v4554_v27 = vpop.f32.mrf.mxu1 }
 0x740   : > { %v4643_v35 = vmul.f32 %v7575_v0, %v4554_v27 }
 0x742   : > { %v4657_v4 = vadd.f32 %v7582_v12, %v4643_v35 }
 0x744   : > { %v4726_v47 = vadd.f32 %v4710_v22, %v4657_v4 }
 0x746   : > { %v4734_v42 = vmax.f32 %v4726_v47, 0.0 }
 0x747   : > { %v4556_v29 = vpop.f32.mrf.mxu1 }
 0x748   : > { %v4749_v45 = vrot.slane %v4734_v42, 4 }
 0x749   : > { %v4541_v17 = vpop.f32.mrf.mxu0 }
 0x74a   : > { %v4642_v24 = vmul.f32 %v7575_v0, %v4541_v17 }
 0x74c   : > { %v4656_v13 = vadd.f32 %v7582_v12, %v4642_v24 }
 0x74e   : > { %v4725_v36 = vadd.f32 %v4709_v18, %v4656_v13 }
 0x750   : > { %v4733_v15 = vmax.f32 %v4725_v36, 0.0 }
 0x751   : > { %v4543_v41 = vpop.f32.mrf.mxu0 }
 0x752   : > { %v4753_v63 = vsel %vm2492_vm14, %v4733_v15, %v4749_v45 }
 0x753   : > { %4761 = vst [vmem:[%s7596_s29] sm:$0xff] %v4753_v63 }
 0x78e   : > { %v4619_v53 = vpop.f32.mrf.mxu2 }
 0x78f   : > { %v4648_v54 = vmul.f32 %v7575_v0, %v4619_v53  ;;  %v4632_v19 = vpop.f32.mrf.mxu3 }
 0x790   : > { %v4649_v11 = vmul.f32 %v7575_v0, %v4632_v19 }
 0x791   : > { %v4662_v1 = vadd.f32 %v7582_v12, %v4648_v54 }
 0x792   : > { %v4663_v31 = vadd.f32 %v7582_v12, %v4649_v11 }
 0x793   : > { %v4731_v34 = vadd.f32 %v4715_v10, %v4662_v1 }
 0x794   : > { %v4732_v61 = vadd.f32 %v4716_v39, %v4663_v31 }
 0x795   : > { %v4739_v48 = vmax.f32 %v4731_v34, 0.0 }
 0x796   : > { %v4740_v58 = vmax.f32 %v4732_v61, 0.0  ;;  %v4621_v32 = vpop.f32.mrf.mxu2 }
 0x797   : > { %v4634_v60 = vpop.f32.mrf.mxu3 }
 0x798   : > { %v4752_v3 = vrot.slane %v4740_v58, 4 }
 0x79a   : > { %v4756_v26 = vsel %vm2492_vm14, %v4739_v48, %v4752_v3 }
 0x79b   : > { %4765 = vst.msk [vmem:[%s7596_s29 + $0x18] sm:$0xff] %vm4764_vm5, %v4756_v26 }
 0x79c   : > { %v4593_v33 = vpop.f32.mrf.mxu0 }
 0x79d   : > { %v4646_v38 = vmul.f32 %v7575_v0, %v4593_v33  ;;  %v4606_v20 = vpop.f32.mrf.mxu1 }
 0x79e   : > { %v4647_v5 = vmul.f32 %v7575_v0, %v4606_v20 }
 0x79f   : > { %v4660_v52 = vadd.f32 %v7582_v12, %v4646_v38 }
 0x7a0   : > { %v4661_v30 = vadd.f32 %v7582_v12, %v4647_v5 }
 0x7a1   : > { %v4729_v9 = vadd.f32 %v4713_v43, %v4660_v52 }
 0x7a2   : > { %v4730_v59 = vadd.f32 %v4714_v62, %v4661_v30 }
 0x7a3   : > { %v4737_v23 = vmax.f32 %v4729_v9, 0.0 }
 0x7a4   : > { %v4738_v14 = vmax.f32 %v4730_v59, 0.0  ;;  %v4595_v37 = vpop.f32.mrf.mxu0 }
 0x7a5   : > { %v4608_v6 = vpop.f32.mrf.mxu1 }
 0x7a6   : > { %v4751_v28 = vrot.slane %v4738_v14, 4 }
 0x7a8   : > { %v4755_v44 = vsel %vm2492_vm14, %v4737_v23, %v4751_v28 }
 0x7a9   : > { %4763 = vst [vmem:[%s7596_s29 + $0x10] sm:$0xff] %v4755_v44 }
 0x7aa PF: > { %s18_s27 = sadd.s32 1, %s4895_s27  }
 0x7ab   : > { %p15_p4 = scmp.ge.s32.totalorder %s18_s27, 4  }
 0x7ad   :  { %17 = sbr.rel (!%p15_p4) target bundleno = 1 (0x1), region = 273 }

</bundles_post_ra>
